<compile_context>
chip_gen: v7x
topology: tpu7x:2x2x1
jax: 0.10.0
libtpu: 0.0.40
codegen_flags: <defaults>
</compile_context>

<pallas_src>
import functools

import jax
import jax.numpy as jnp
from jax import lax
from jax.experimental import pallas as pl
from jax.experimental.pallas import tpu as pltpu


_N_CHUNKS = 4          # wl1 streamed in 4 chunks of 4 spatial blocks (256 KiB bf16 each)
_PAGES_PER_CHUNK = 16 // _N_CHUNKS


# ---------------------------------------------------------------------------
# Fused kernel: conv1 + conv2 + conv3 + linear1 + linear2
# ---------------------------------------------------------------------------
def _fused_kernel(cols1_ref, w1_ref, b1_ref, w2_ref, b2_ref, w3_ref, b3_ref,
                  wl1_hbm_ref, bl1_ref, wl2_ref, bl2_ref,
                  o_ref,
                  y2_ref, z_ref, wl1_ref, dma_sems,
                  *, batch):
    # --- kick off the linear-1 weight stream immediately (overlaps all conv work)
    for k in range(_N_CHUNKS):
        lo = k * _PAGES_PER_CHUNK
        hi = lo + _PAGES_PER_CHUNK
        pltpu.make_async_copy(wl1_hbm_ref.at[lo:hi], wl1_ref.at[lo:hi],
                              dma_sems.at[k]).start()

    m2 = 36 * batch          # conv2 output rows: (i6*6 + j6) * B + b
    m3 = 22 * batch          # conv3 rows kept (spatial index 0..21 covers all valid 4x4)

    # --- conv1 + conv2 fused tap-wise (cols1 rows pre-ordered (tap2, spatial, batch))
    w1 = w1_ref[...]
    b1 = b1_ref[...]
    acc2 = jnp.zeros((m2, 64), jnp.float32)
    for t in range(16):
        patch = cols1_ref[t * m2:(t + 1) * m2, :]                       # (36B, 256) bf16
        y1t = jnp.dot(patch, w1, preferred_element_type=jnp.float32)
        y1t = jnp.maximum(y1t + b1, 0.0)                                # conv1 relu
        acc2 = acc2 + jnp.dot(y1t.astype(jnp.bfloat16).astype(jnp.float32)
                              if False else y1t,                        # keep f32 path
                              w2_ref[t], preferred_element_type=jnp.float32)
    y2_ref[...] = jnp.maximum(acc2 + b2_ref[...], 0.0)                  # (36B, 64)

    # --- conv3: 9 shifted row-slice matmuls (shift = (6p+q)*B); no im2col copies
    acc3 = jnp.zeros((m3, 64), jnp.float32)
    for p in range(3):
        for q in range(3):
            d = (6 * p + q) * batch
            acc3 = acc3 + jnp.dot(y2_ref[d:d + m3, :], w3_ref[3 * p + q],
                                  preferred_element_type=jnp.float32)
    z_ref[...] = jnp.maximum(acc3 + b3_ref[...], 0.0)                   # (22B, 64)

    # --- linear1: consume the streamed bf16 weight chunk-by-chunk
    h = jnp.zeros((batch, 512), jnp.float32)
    for k in range(_N_CHUNKS):
        lo = k * _PAGES_PER_CHUNK
        hi = lo + _PAGES_PER_CHUNK
        pltpu.make_async_copy(wl1_hbm_ref.at[lo:hi], wl1_ref.at[lo:hi],
                              dma_sems.at[k]).wait()
        for sl in range(_PAGES_PER_CHUNK):
            s = lo + sl                                   # torch spatial index i4*4 + j4
            r = ((s // 4) * 6 + (s % 4)) * batch          # row in the 6x6 layout of z
            zb = z_ref[r:r + batch, :].astype(jnp.bfloat16)
            h = h + jnp.dot(zb, wl1_ref[s], preferred_element_type=jnp.float32)
    h = jnp.maximum(h + bl1_ref[...], 0.0)

    # --- linear2 (bare head, no activation — matches the reference module)
    o_ref[...] = jnp.dot(h, wl2_ref[...], preferred_element_type=jnp.float32) \
        + bl2_ref[...]


def _fused_call(cols1, w1, b1, w2, b2, w3, b3, wl1, bl1, wl2, bl2, *, batch, act_dim):
    return pl.pallas_call(
        functools.partial(_fused_kernel, batch=batch),
        out_shape=jax.ShapeDtypeStruct((batch, act_dim), jnp.float32),
        grid=(1,),
        in_specs=[
            pl.BlockSpec(cols1.shape, lambda i: (0, 0)),
            pl.BlockSpec(w1.shape, lambda i: (0, 0)),
            pl.BlockSpec(b1.shape, lambda i: (0, 0)),
            pl.BlockSpec(w2.shape, lambda i: (0, 0, 0)),
            pl.BlockSpec(b2.shape, lambda i: (0, 0)),
            pl.BlockSpec(w3.shape, lambda i: (0, 0, 0)),
            pl.BlockSpec(b3.shape, lambda i: (0, 0)),
            pl.BlockSpec(memory_space=pl.ANY),            # wl1 stays in HBM; manual DMA
            pl.BlockSpec(bl1.shape, lambda i: (0, 0)),
            pl.BlockSpec(wl2.shape, lambda i: (0, 0)),
            pl.BlockSpec(bl2.shape, lambda i: (0, 0)),
        ],
        out_specs=pl.BlockSpec((batch, act_dim), lambda i: (0, 0)),
        scratch_shapes=[
            pltpu.VMEM((36 * batch, 64), jnp.float32),    # conv2 output (6x6 rows, b fastest)
            pltpu.VMEM((22 * batch, 64), jnp.float32),    # conv3 output (valid rows subset)
            pltpu.VMEM((16, 64, 512), jnp.bfloat16),      # l1 weight landing buffer
            pltpu.SemaphoreType.DMA((_N_CHUNKS,)),
        ],
        compiler_params=pltpu.CompilerParams(dimension_semantics=("arbitrary",)),
    )(cols1, w1, b1, w2, b2, w3, b3, wl1, bl1, wl2, bl2)


# ---------------------------------------------------------------------------
# XLA glue: conv1 im2col, duplicated/ordered for tap-wise conv2 inside the kernel.
# Row order: (tap2 = p2*4+q2, spatial s6 = i6*6+j6, batch b); columns (p1*8+q1)*C + c.
# ---------------------------------------------------------------------------
def _im2col_nhwc(x, kh, kw, stride):
    B, H, W, C = x.shape
    oh = (H - kh) // stride + 1
    ow = (W - kw) // stride + 1
    patches = []
    for p in range(kh):
        for q in range(kw):
            patches.append(
                x[:, p:p + stride * (oh - 1) + 1:stride,
                     q:q + stride * (ow - 1) + 1:stride, :])
    return jnp.concatenate(patches, axis=-1), oh, ow      # (B, oh, ow, kh*kw*C)


def _build_cols1_dup(obs):
    B = obs.shape[0]
    x = jnp.transpose(obs, (0, 2, 3, 1))                   # NHWC, once
    cols_std, oh, ow = _im2col_nhwc(x, 8, 8, 4)            # (B, 14, 14, 256)
    assert (oh, ow) == (14, 14), "module requires 60x60 spatial input"
    taps = []
    for p2 in range(4):
        for q2 in range(4):
            sub = cols_std[:, p2:p2 + 11:2, q2:q2 + 11:2, :]        # (B, 6, 6, 256)
            sub = jnp.transpose(sub, (1, 2, 0, 3)).reshape(36 * B, 256)
            taps.append(sub)
    return jnp.concatenate(taps, axis=0).astype(jnp.bfloat16)       # (16*36B, 256)


# ---------------------------------------------------------------------------
# Parameter init (PyTorch layouts) and one-time baking into kernel layouts.
# ---------------------------------------------------------------------------
def init_cnn_actor_params(key, in_channels, act_dim):
    ks = jax.random.split(key, 10)
    s = 0.05
    return {
        "c1_w": s * jax.random.normal(ks[0], (32, in_channels, 8, 8), jnp.float32),
        "c1_b": s * jax.random.normal(ks[1], (32,), jnp.float32),
        "c2_w": s * jax.random.normal(ks[2], (64, 32, 4, 4), jnp.float32),
        "c2_b": s * jax.random.normal(ks[3], (64,), jnp.float32),
        "c3_w": s * jax.random.normal(ks[4], (64, 64, 3, 3), jnp.float32),
        "c3_b": s * jax.random.normal(ks[5], (64,), jnp.float32),
        "l1_w": s * jax.random.normal(ks[6], (512, 1024), jnp.float32),  # (out, in)
        "l1_b": s * jax.random.normal(ks[7], (512,), jnp.float32),
        "l2_w": s * jax.random.normal(ks[8], (act_dim, 512), jnp.float32),
        "l2_b": s * jax.random.normal(ks[9], (act_dim,), jnp.float32),
    }


def bake_params(p):
    def conv_taps(w):     # (Cout, Cin, kh, kw) -> (kh*kw, Cin, Cout), tap = p*kw + q
        co, ci, kh, kw = w.shape
        return jnp.transpose(w, (2, 3, 1, 0)).reshape(kh * kw, ci, co)

    c1 = conv_taps(p["c1_w"]).reshape(8 * 8 * p["c1_w"].shape[1], 32)   # (256, 32)
    # l1: torch in-feature index is c*16 + s (NCHW flatten); kernel uses row s*64 + c.
    l1 = (p["l1_w"].T                      # (1024, 512), rows c*16 + s
          .reshape(64, 16, 512)            # (c, s, n)
          .transpose(1, 0, 2)              # (s, c, n)
          .reshape(16, 64, 512))           # page s, rows c
    return {
        "c1_w": c1.astype(jnp.bfloat16),   "c1_b": p["c1_b"].reshape(1, -1),
        "c2_w": conv_taps(p["c2_w"]),      "c2_b": p["c2_b"].reshape(1, -1),
        "c3_w": conv_taps(p["c3_w"]),      "c3_b": p["c3_b"].reshape(1, -1),
        "l1_w": l1.astype(jnp.bfloat16),   "l1_b": p["l1_b"].reshape(1, -1),
        "l2_w": p["l2_w"].T,               "l2_b": p["l2_b"].reshape(1, -1),
    }


# ---------------------------------------------------------------------------
# Forward pass: one pallas_call.
# ---------------------------------------------------------------------------
def cnn_actor_forward(baked, obs):
    B = obs.shape[0]
    cols1 = _build_cols1_dup(obs)
    act_dim = baked["l2_b"].shape[1]
    return _fused_call(cols1,
                       baked["c1_w"], baked["c1_b"],
                       baked["c2_w"], baked["c2_b"],
                       baked["c3_w"], baked["c3_b"],
                       baked["l1_w"], baked["l1_b"],
                       baked["l2_w"], baked["l2_b"],
                       batch=B, act_dim=act_dim)


# ---------------------------------------------------------------------------
# Independent pure-JAX reference (torch semantics) for a correctness check.
# ---------------------------------------------------------------------------
def reference_forward(p, obs):
    dn = ("NCHW", "OIHW", "NCHW")
    hp = lax.Precision.HIGHEST

    def conv(x, w, b, s):
        y = lax.conv_general_dilated(x, w, (s, s), "VALID",
                                     dimension_numbers=dn, precision=hp)
        return jax.nn.relu(y + b[None, :, None, None])

    q = conv(obs, p["c1_w"], p["c1_b"], 4)
    q = conv(q, p["c2_w"], p["c2_b"], 2)
    q = conv(q, p["c3_w"], p["c3_b"], 1)
    q = q.reshape(-1, 1024)
    q = jax.nn.relu(jnp.dot(q, p["l1_w"].T, precision=hp) + p["l1_b"])
    return jnp.dot(q, p["l2_w"].T, precision=hp) + p["l2_b"]


if __name__ == "__main__":
    # 60x60 spatial so the conv stack yields 64*4*4 = 1024 features (Linear(1024, 512)).
    B, C, H, W = 2, 4, 60, 60
    act_dim = 6

    key = jax.random.PRNGKey(0)
    k_obs, k_par = jax.random.split(key)
    obs = jax.random.normal(k_obs, (B, C, H, W), jnp.float32)

    torch_params = init_cnn_actor_params(k_par, C, act_dim)
    baked = bake_params(torch_params)          # one-time weight re-layout

    fwd = jax.jit(cnn_actor_forward)
    out = fwd(baked, obs)
    jax.block_until_ready(out)

    assert out.shape == (B, act_dim), out.shape
    assert out.dtype == jnp.float32
    assert bool(jnp.all(jnp.isfinite(out)))

    ref = reference_forward(torch_params, obs)
    err = float(jnp.max(jnp.abs(out - ref)))
    assert err < 5e-2, f"mismatch vs reference: max abs err {err}"

    print("KERNEL_OK")
</pallas_src>

<mosaic_0001>
module attributes {stable_mosaic.version = 11 : i64} {
  func.func @_fused_kernel(%arg0: i32, %arg1: memref<1152x256xbf16, #tpu.memory_space<vmem>>, %arg2: memref<256x32xbf16, #tpu.memory_space<vmem>>, %arg3: memref<1x32xf32, #tpu.memory_space<vmem>>, %arg4: memref<16x32x64xf32, #tpu.memory_space<vmem>>, %arg5: memref<1x64xf32, #tpu.memory_space<vmem>>, %arg6: memref<9x64x64xf32, #tpu.memory_space<vmem>>, %arg7: memref<1x64xf32, #tpu.memory_space<vmem>>, %arg8: memref<16x64x512xbf16, #tpu.memory_space<any>>, %arg9: memref<1x512xf32, #tpu.memory_space<vmem>>, %arg10: memref<512x6xf32, #tpu.memory_space<vmem>>, %arg11: memref<1x6xf32, #tpu.memory_space<vmem>>, %arg12: memref<2x6xf32, #tpu.memory_space<vmem>>, %arg13: memref<72x64xf32, #tpu.memory_space<vmem>>, %arg14: memref<44x64xf32, #tpu.memory_space<vmem>>, %arg15: memref<16x64x512xbf16, #tpu.memory_space<vmem>>, %arg16: memref<4x!tpu.dma_semaphore, #tpu.memory_space<semaphore_mem>>) attributes {dimension_semantics = [#tpu.dimension_semantics<arbitrary>], iteration_bounds = array<i64: 1>, scalar_prefetch = 0 : i64, scratch_operands = 4 : i64, tpu.core_type = #tpu.core_type<tc>, window_params = [{pipeline_mode = #tpu.pipeline_mode<synchronous>, transform_indices = @transform_0, window_bounds = array<i64: 1152, 256>}, {pipeline_mode = #tpu.pipeline_mode<synchronous>, transform_indices = @transform_1, window_bounds = array<i64: 256, 32>}, {pipeline_mode = #tpu.pipeline_mode<synchronous>, transform_indices = @transform_2, window_bounds = array<i64: 1, 32>}, {pipeline_mode = #tpu.pipeline_mode<synchronous>, transform_indices = @transform_3, window_bounds = array<i64: 16, 32, 64>}, {pipeline_mode = #tpu.pipeline_mode<synchronous>, transform_indices = @transform_4, window_bounds = array<i64: 1, 64>}, {pipeline_mode = #tpu.pipeline_mode<synchronous>, transform_indices = @transform_5, window_bounds = array<i64: 9, 64, 64>}, {pipeline_mode = #tpu.pipeline_mode<synchronous>, transform_indices = @transform_6, window_bounds = array<i64: 1, 64>}, {}, {pipeline_mode = #tpu.pipeline_mode<synchronous>, transform_indices = @transform_8, window_bounds = array<i64: 1, 512>}, {pipeline_mode = #tpu.pipeline_mode<synchronous>, transform_indices = @transform_9, window_bounds = array<i64: 512, 6>}, {pipeline_mode = #tpu.pipeline_mode<synchronous>, transform_indices = @transform_10, window_bounds = array<i64: 1, 6>}, {pipeline_mode = #tpu.pipeline_mode<synchronous>, transform_indices = @transform_11, window_bounds = array<i64: 2, 6>}]} {
    %c0_i32 = arith.constant 0 : i32
    %c0_i32_0 = arith.constant 0 : i32
    %c0_i32_1 = arith.constant 0 : i32
    %c0_i32_2 = arith.constant 0 : i32
    %0 = tpu.memref_slice %arg8[%c0_i32_0, %c0_i32_1, %c0_i32_2] : memref<16x64x512xbf16, #tpu.memory_space<any>> -> memref<4x64x512xbf16, #tpu.memory_space<any>>
    %c0_i32_3 = arith.constant 0 : i32
    %c0_i32_4 = arith.constant 0 : i32
    %c0_i32_5 = arith.constant 0 : i32
    %1 = tpu.memref_slice %arg15[%c0_i32_3, %c0_i32_4, %c0_i32_5] : memref<16x64x512xbf16, #tpu.memory_space<vmem>> -> memref<4x64x512xbf16, #tpu.memory_space<vmem>>
    %2 = tpu.memref_slice %arg16[%c0_i32] : memref<4x!tpu.dma_semaphore, #tpu.memory_space<semaphore_mem>> -> memref<1x!tpu.dma_semaphore, #tpu.memory_space<semaphore_mem>>
    %3 = tpu.memref_squeeze %2 : memref<1x!tpu.dma_semaphore, #tpu.memory_space<semaphore_mem>> -> memref<!tpu.dma_semaphore, #tpu.memory_space<semaphore_mem>>
    tpu.enqueue_dma source(%0 : memref<4x64x512xbf16, #tpu.memory_space<any>>) target(%1 : memref<4x64x512xbf16, #tpu.memory_space<vmem>>) target_semaphore(%3 : memref<!tpu.dma_semaphore, #tpu.memory_space<semaphore_mem>>)
    %c1_i32 = arith.constant 1 : i32
    %c4_i32 = arith.constant 4 : i32
    %c0_i32_6 = arith.constant 0 : i32
    %c0_i32_7 = arith.constant 0 : i32
    %4 = tpu.memref_slice %arg8[%c4_i32, %c0_i32_6, %c0_i32_7] : memref<16x64x512xbf16, #tpu.memory_space<any>> -> memref<4x64x512xbf16, #tpu.memory_space<any>>
    %c4_i32_8 = arith.constant 4 : i32
    %c0_i32_9 = arith.constant 0 : i32
    %c0_i32_10 = arith.constant 0 : i32
    %5 = tpu.memref_slice %arg15[%c4_i32_8, %c0_i32_9, %c0_i32_10] : memref<16x64x512xbf16, #tpu.memory_space<vmem>> -> memref<4x64x512xbf16, #tpu.memory_space<vmem>>
    %6 = tpu.memref_slice %arg16[%c1_i32] : memref<4x!tpu.dma_semaphore, #tpu.memory_space<semaphore_mem>> -> memref<1x!tpu.dma_semaphore, #tpu.memory_space<semaphore_mem>>
    %7 = tpu.memref_squeeze %6 : memref<1x!tpu.dma_semaphore, #tpu.memory_space<semaphore_mem>> -> memref<!tpu.dma_semaphore, #tpu.memory_space<semaphore_mem>>
    tpu.enqueue_dma source(%4 : memref<4x64x512xbf16, #tpu.memory_space<any>>) target(%5 : memref<4x64x512xbf16, #tpu.memory_space<vmem>>) target_semaphore(%7 : memref<!tpu.dma_semaphore, #tpu.memory_space<semaphore_mem>>)
    %c2_i32 = arith.constant 2 : i32
    %c8_i32 = arith.constant 8 : i32
    %c0_i32_11 = arith.constant 0 : i32
    %c0_i32_12 = arith.constant 0 : i32
    %8 = tpu.memref_slice %arg8[%c8_i32, %c0_i32_11, %c0_i32_12] : memref<16x64x512xbf16, #tpu.memory_space<any>> -> memref<4x64x512xbf16, #tpu.memory_space<any>>
    %c8_i32_13 = arith.constant 8 : i32
    %c0_i32_14 = arith.constant 0 : i32
    %c0_i32_15 = arith.constant 0 : i32
    %9 = tpu.memref_slice %arg15[%c8_i32_13, %c0_i32_14, %c0_i32_15] : memref<16x64x512xbf16, #tpu.memory_space<vmem>> -> memref<4x64x512xbf16, #tpu.memory_space<vmem>>
    %10 = tpu.memref_slice %arg16[%c2_i32] : memref<4x!tpu.dma_semaphore, #tpu.memory_space<semaphore_mem>> -> memref<1x!tpu.dma_semaphore, #tpu.memory_space<semaphore_mem>>
    %11 = tpu.memref_squeeze %10 : memref<1x!tpu.dma_semaphore, #tpu.memory_space<semaphore_mem>> -> memref<!tpu.dma_semaphore, #tpu.memory_space<semaphore_mem>>
    tpu.enqueue_dma source(%8 : memref<4x64x512xbf16, #tpu.memory_space<any>>) target(%9 : memref<4x64x512xbf16, #tpu.memory_space<vmem>>) target_semaphore(%11 : memref<!tpu.dma_semaphore, #tpu.memory_space<semaphore_mem>>)
    %c3_i32 = arith.constant 3 : i32
    %c12_i32 = arith.constant 12 : i32
    %c0_i32_16 = arith.constant 0 : i32
    %c0_i32_17 = arith.constant 0 : i32
    %12 = tpu.memref_slice %arg8[%c12_i32, %c0_i32_16, %c0_i32_17] : memref<16x64x512xbf16, #tpu.memory_space<any>> -> memref<4x64x512xbf16, #tpu.memory_space<any>>
    %c12_i32_18 = arith.constant 12 : i32
    %c0_i32_19 = arith.constant 0 : i32
    %c0_i32_20 = arith.constant 0 : i32
    %13 = tpu.memref_slice %arg15[%c12_i32_18, %c0_i32_19, %c0_i32_20] : memref<16x64x512xbf16, #tpu.memory_space<vmem>> -> memref<4x64x512xbf16, #tpu.memory_space<vmem>>
    %14 = tpu.memref_slice %arg16[%c3_i32] : memref<4x!tpu.dma_semaphore, #tpu.memory_space<semaphore_mem>> -> memref<1x!tpu.dma_semaphore, #tpu.memory_space<semaphore_mem>>
    %15 = tpu.memref_squeeze %14 : memref<1x!tpu.dma_semaphore, #tpu.memory_space<semaphore_mem>> -> memref<!tpu.dma_semaphore, #tpu.memory_space<semaphore_mem>>
    tpu.enqueue_dma source(%12 : memref<4x64x512xbf16, #tpu.memory_space<any>>) target(%13 : memref<4x64x512xbf16, #tpu.memory_space<vmem>>) target_semaphore(%15 : memref<!tpu.dma_semaphore, #tpu.memory_space<semaphore_mem>>)
    %c0 = arith.constant 0 : index
    %c0_21 = arith.constant 0 : index
    %16 = vector.load %arg2[%c0, %c0_21] : memref<256x32xbf16, #tpu.memory_space<vmem>>, vector<256x32xbf16>
    %c0_22 = arith.constant 0 : index
    %c0_23 = arith.constant 0 : index
    %17 = vector.load %arg3[%c0_22, %c0_23] : memref<1x32xf32, #tpu.memory_space<vmem>>, vector<1x32xf32>
    %cst = arith.constant 0.000000e+00 : f32
    %18 = vector.broadcast %cst : f32 to vector<72x64xf32>
    %c0_24 = arith.constant 0 : index
    %c0_25 = arith.constant 0 : index
    %19 = vector.load %arg1[%c0_24, %c0_25] : memref<1152x256xbf16, #tpu.memory_space<vmem>>, vector<72x256xbf16>
    %cst_26 = arith.constant dense<0.000000e+00> : vector<72x32xf32>
    %20 = tpu.matmul %19, %16, %cst_26 {dimension_numbers = #tpu.dot_dimension_numbers<[1], [0], [0], [1], [0, 0, 1, 1], [], []>} : vector<72x256xbf16>, vector<256x32xbf16>, vector<72x32xf32> -> vector<72x32xf32>
    %21 = vector.broadcast %17 : vector<1x32xf32> to vector<72x32xf32>
    %22 = arith.addf %20, %21 : vector<72x32xf32>
    %cst_27 = arith.constant 0.000000e+00 : f32
    %23 = vector.broadcast %cst_27 : f32 to vector<72x32xf32>
    %24 = arith.maximumf %22, %23 : vector<72x32xf32>
    %c0_28 = arith.constant 0 : index
    %c0_29 = arith.constant 0 : index
    %c0_30 = arith.constant 0 : index
    %25 = vector.load %arg4[%c0_28, %c0_29, %c0_30] : memref<16x32x64xf32, #tpu.memory_space<vmem>>, vector<1x32x64xf32>
    %26 = vector.shape_cast %25 : vector<1x32x64xf32> to vector<32x64xf32>
    %cst_31 = arith.constant dense<0.000000e+00> : vector<72x64xf32>
    %27 = tpu.matmul %24, %26, %cst_31 {dimension_numbers = #tpu.dot_dimension_numbers<[1], [0], [0], [1], [0, 0, 1, 1], [], []>} : vector<72x32xf32>, vector<32x64xf32>, vector<72x64xf32> -> vector<72x64xf32>
    %28 = arith.addf %18, %27 : vector<72x64xf32>
    %c72 = arith.constant 72 : index
    %c0_32 = arith.constant 0 : index
    %29 = vector.load %arg1[%c72, %c0_32] : memref<1152x256xbf16, #tpu.memory_space<vmem>>, vector<72x256xbf16>
    %cst_33 = arith.constant dense<0.000000e+00> : vector<72x32xf32>
    %30 = tpu.matmul %29, %16, %cst_33 {dimension_numbers = #tpu.dot_dimension_numbers<[1], [0], [0], [1], [0, 0, 1, 1], [], []>} : vector<72x256xbf16>, vector<256x32xbf16>, vector<72x32xf32> -> vector<72x32xf32>
    %31 = vector.broadcast %17 : vector<1x32xf32> to vector<72x32xf32>
    %32 = arith.addf %30, %31 : vector<72x32xf32>
    %cst_34 = arith.constant 0.000000e+00 : f32
    %33 = vector.broadcast %cst_34 : f32 to vector<72x32xf32>
    %34 = arith.maximumf %32, %33 : vector<72x32xf32>
    %c1 = arith.constant 1 : index
    %c0_35 = arith.constant 0 : index
    %c0_36 = arith.constant 0 : index
    %35 = vector.load %arg4[%c1, %c0_35, %c0_36] : memref<16x32x64xf32, #tpu.memory_space<vmem>>, vector<1x32x64xf32>
    %36 = vector.shape_cast %35 : vector<1x32x64xf32> to vector<32x64xf32>
    %cst_37 = arith.constant dense<0.000000e+00> : vector<72x64xf32>
    %37 = tpu.matmul %34, %36, %cst_37 {dimension_numbers = #tpu.dot_dimension_numbers<[1], [0], [0], [1], [0, 0, 1, 1], [], []>} : vector<72x32xf32>, vector<32x64xf32>, vector<72x64xf32> -> vector<72x64xf32>
    %38 = arith.addf %28, %37 : vector<72x64xf32>
    %c144 = arith.constant 144 : index
    %c0_38 = arith.constant 0 : index
    %39 = vector.load %arg1[%c144, %c0_38] : memref<1152x256xbf16, #tpu.memory_space<vmem>>, vector<72x256xbf16>
    %cst_39 = arith.constant dense<0.000000e+00> : vector<72x32xf32>
    %40 = tpu.matmul %39, %16, %cst_39 {dimension_numbers = #tpu.dot_dimension_numbers<[1], [0], [0], [1], [0, 0, 1, 1], [], []>} : vector<72x256xbf16>, vector<256x32xbf16>, vector<72x32xf32> -> vector<72x32xf32>
    %41 = vector.broadcast %17 : vector<1x32xf32> to vector<72x32xf32>
    %42 = arith.addf %40, %41 : vector<72x32xf32>
    %cst_40 = arith.constant 0.000000e+00 : f32
    %43 = vector.broadcast %cst_40 : f32 to vector<72x32xf32>
    %44 = arith.maximumf %42, %43 : vector<72x32xf32>
    %c2 = arith.constant 2 : index
    %c0_41 = arith.constant 0 : index
    %c0_42 = arith.constant 0 : index
    %45 = vector.load %arg4[%c2, %c0_41, %c0_42] : memref<16x32x64xf32, #tpu.memory_space<vmem>>, vector<1x32x64xf32>
    %46 = vector.shape_cast %45 : vector<1x32x64xf32> to vector<32x64xf32>
    %cst_43 = arith.constant dense<0.000000e+00> : vector<72x64xf32>
    %47 = tpu.matmul %44, %46, %cst_43 {dimension_numbers = #tpu.dot_dimension_numbers<[1], [0], [0], [1], [0, 0, 1, 1], [], []>} : vector<72x32xf32>, vector<32x64xf32>, vector<72x64xf32> -> vector<72x64xf32>
    %48 = arith.addf %38, %47 : vector<72x64xf32>
    %c216 = arith.constant 216 : index
    %c0_44 = arith.constant 0 : index
    %49 = vector.load %arg1[%c216, %c0_44] : memref<1152x256xbf16, #tpu.memory_space<vmem>>, vector<72x256xbf16>
    %cst_45 = arith.constant dense<0.000000e+00> : vector<72x32xf32>
    %50 = tpu.matmul %49, %16, %cst_45 {dimension_numbers = #tpu.dot_dimension_numbers<[1], [0], [0], [1], [0, 0, 1, 1], [], []>} : vector<72x256xbf16>, vector<256x32xbf16>, vector<72x32xf32> -> vector<72x32xf32>
    %51 = vector.broadcast %17 : vector<1x32xf32> to vector<72x32xf32>
    %52 = arith.addf %50, %51 : vector<72x32xf32>
    %cst_46 = arith.constant 0.000000e+00 : f32
    %53 = vector.broadcast %cst_46 : f32 to vector<72x32xf32>
    %54 = arith.maximumf %52, %53 : vector<72x32xf32>
    %c3 = arith.constant 3 : index
    %c0_47 = arith.constant 0 : index
    %c0_48 = arith.constant 0 : index
    %55 = vector.load %arg4[%c3, %c0_47, %c0_48] : memref<16x32x64xf32, #tpu.memory_space<vmem>>, vector<1x32x64xf32>
    %56 = vector.shape_cast %55 : vector<1x32x64xf32> to vector<32x64xf32>
    %cst_49 = arith.constant dense<0.000000e+00> : vector<72x64xf32>
    %57 = tpu.matmul %54, %56, %cst_49 {dimension_numbers = #tpu.dot_dimension_numbers<[1], [0], [0], [1], [0, 0, 1, 1], [], []>} : vector<72x32xf32>, vector<32x64xf32>, vector<72x64xf32> -> vector<72x64xf32>
    %58 = arith.addf %48, %57 : vector<72x64xf32>
    %c288 = arith.constant 288 : index
    %c0_50 = arith.constant 0 : index
    %59 = vector.load %arg1[%c288, %c0_50] : memref<1152x256xbf16, #tpu.memory_space<vmem>>, vector<72x256xbf16>
    %cst_51 = arith.constant dense<0.000000e+00> : vector<72x32xf32>
    %60 = tpu.matmul %59, %16, %cst_51 {dimension_numbers = #tpu.dot_dimension_numbers<[1], [0], [0], [1], [0, 0, 1, 1], [], []>} : vector<72x256xbf16>, vector<256x32xbf16>, vector<72x32xf32> -> vector<72x32xf32>
    %61 = vector.broadcast %17 : vector<1x32xf32> to vector<72x32xf32>
    %62 = arith.addf %60, %61 : vector<72x32xf32>
    %cst_52 = arith.constant 0.000000e+00 : f32
    %63 = vector.broadcast %cst_52 : f32 to vector<72x32xf32>
    %64 = arith.maximumf %62, %63 : vector<72x32xf32>
    %c4 = arith.constant 4 : index
    %c0_53 = arith.constant 0 : index
    %c0_54 = arith.constant 0 : index
    %65 = vector.load %arg4[%c4, %c0_53, %c0_54] : memref<16x32x64xf32, #tpu.memory_space<vmem>>, vector<1x32x64xf32>
    %66 = vector.shape_cast %65 : vector<1x32x64xf32> to vector<32x64xf32>
    %cst_55 = arith.constant dense<0.000000e+00> : vector<72x64xf32>
    %67 = tpu.matmul %64, %66, %cst_55 {dimension_numbers = #tpu.dot_dimension_numbers<[1], [0], [0], [1], [0, 0, 1, 1], [], []>} : vector<72x32xf32>, vector<32x64xf32>, vector<72x64xf32> -> vector<72x64xf32>
    %68 = arith.addf %58, %67 : vector<72x64xf32>
    %c360 = arith.constant 360 : index
    %c0_56 = arith.constant 0 : index
    %69 = vector.load %arg1[%c360, %c0_56] : memref<1152x256xbf16, #tpu.memory_space<vmem>>, vector<72x256xbf16>
    %cst_57 = arith.constant dense<0.000000e+00> : vector<72x32xf32>
    %70 = tpu.matmul %69, %16, %cst_57 {dimension_numbers = #tpu.dot_dimension_numbers<[1], [0], [0], [1], [0, 0, 1, 1], [], []>} : vector<72x256xbf16>, vector<256x32xbf16>, vector<72x32xf32> -> vector<72x32xf32>
    %71 = vector.broadcast %17 : vector<1x32xf32> to vector<72x32xf32>
    %72 = arith.addf %70, %71 : vector<72x32xf32>
    %cst_58 = arith.constant 0.000000e+00 : f32
    %73 = vector.broadcast %cst_58 : f32 to vector<72x32xf32>
    %74 = arith.maximumf %72, %73 : vector<72x32xf32>
    %c5 = arith.constant 5 : index
    %c0_59 = arith.constant 0 : index
    %c0_60 = arith.constant 0 : index
    %75 = vector.load %arg4[%c5, %c0_59, %c0_60] : memref<16x32x64xf32, #tpu.memory_space<vmem>>, vector<1x32x64xf32>
    %76 = vector.shape_cast %75 : vector<1x32x64xf32> to vector<32x64xf32>
    %cst_61 = arith.constant dense<0.000000e+00> : vector<72x64xf32>
    %77 = tpu.matmul %74, %76, %cst_61 {dimension_numbers = #tpu.dot_dimension_numbers<[1], [0], [0], [1], [0, 0, 1, 1], [], []>} : vector<72x32xf32>, vector<32x64xf32>, vector<72x64xf32> -> vector<72x64xf32>
    %78 = arith.addf %68, %77 : vector<72x64xf32>
    %c432 = arith.constant 432 : index
    %c0_62 = arith.constant 0 : index
    %79 = vector.load %arg1[%c432, %c0_62] : memref<1152x256xbf16, #tpu.memory_space<vmem>>, vector<72x256xbf16>
    %cst_63 = arith.constant dense<0.000000e+00> : vector<72x32xf32>
    %80 = tpu.matmul %79, %16, %cst_63 {dimension_numbers = #tpu.dot_dimension_numbers<[1], [0], [0], [1], [0, 0, 1, 1], [], []>} : vector<72x256xbf16>, vector<256x32xbf16>, vector<72x32xf32> -> vector<72x32xf32>
    %81 = vector.broadcast %17 : vector<1x32xf32> to vector<72x32xf32>
    %82 = arith.addf %80, %81 : vector<72x32xf32>
    %cst_64 = arith.constant 0.000000e+00 : f32
    %83 = vector.broadcast %cst_64 : f32 to vector<72x32xf32>
    %84 = arith.maximumf %82, %83 : vector<72x32xf32>
    %c6 = arith.constant 6 : index
    %c0_65 = arith.constant 0 : index
    %c0_66 = arith.constant 0 : index
    %85 = vector.load %arg4[%c6, %c0_65, %c0_66] : memref<16x32x64xf32, #tpu.memory_space<vmem>>, vector<1x32x64xf32>
    %86 = vector.shape_cast %85 : vector<1x32x64xf32> to vector<32x64xf32>
    %cst_67 = arith.constant dense<0.000000e+00> : vector<72x64xf32>
    %87 = tpu.matmul %84, %86, %cst_67 {dimension_numbers = #tpu.dot_dimension_numbers<[1], [0], [0], [1], [0, 0, 1, 1], [], []>} : vector<72x32xf32>, vector<32x64xf32>, vector<72x64xf32> -> vector<72x64xf32>
    %88 = arith.addf %78, %87 : vector<72x64xf32>
    %c504 = arith.constant 504 : index
    %c0_68 = arith.constant 0 : index
    %89 = vector.load %arg1[%c504, %c0_68] : memref<1152x256xbf16, #tpu.memory_space<vmem>>, vector<72x256xbf16>
    %cst_69 = arith.constant dense<0.000000e+00> : vector<72x32xf32>
    %90 = tpu.matmul %89, %16, %cst_69 {dimension_numbers = #tpu.dot_dimension_numbers<[1], [0], [0], [1], [0, 0, 1, 1], [], []>} : vector<72x256xbf16>, vector<256x32xbf16>, vector<72x32xf32> -> vector<72x32xf32>
    %91 = vector.broadcast %17 : vector<1x32xf32> to vector<72x32xf32>
    %92 = arith.addf %90, %91 : vector<72x32xf32>
    %cst_70 = arith.constant 0.000000e+00 : f32
    %93 = vector.broadcast %cst_70 : f32 to vector<72x32xf32>
    %94 = arith.maximumf %92, %93 : vector<72x32xf32>
    %c7 = arith.constant 7 : index
    %c0_71 = arith.constant 0 : index
    %c0_72 = arith.constant 0 : index
    %95 = vector.load %arg4[%c7, %c0_71, %c0_72] : memref<16x32x64xf32, #tpu.memory_space<vmem>>, vector<1x32x64xf32>
    %96 = vector.shape_cast %95 : vector<1x32x64xf32> to vector<32x64xf32>
    %cst_73 = arith.constant dense<0.000000e+00> : vector<72x64xf32>
    %97 = tpu.matmul %94, %96, %cst_73 {dimension_numbers = #tpu.dot_dimension_numbers<[1], [0], [0], [1], [0, 0, 1, 1], [], []>} : vector<72x32xf32>, vector<32x64xf32>, vector<72x64xf32> -> vector<72x64xf32>
    %98 = arith.addf %88, %97 : vector<72x64xf32>
    %c576 = arith.constant 576 : index
    %c0_74 = arith.constant 0 : index
    %99 = vector.load %arg1[%c576, %c0_74] : memref<1152x256xbf16, #tpu.memory_space<vmem>>, vector<72x256xbf16>
    %cst_75 = arith.constant dense<0.000000e+00> : vector<72x32xf32>
    %100 = tpu.matmul %99, %16, %cst_75 {dimension_numbers = #tpu.dot_dimension_numbers<[1], [0], [0], [1], [0, 0, 1, 1], [], []>} : vector<72x256xbf16>, vector<256x32xbf16>, vector<72x32xf32> -> vector<72x32xf32>
    %101 = vector.broadcast %17 : vector<1x32xf32> to vector<72x32xf32>
    %102 = arith.addf %100, %101 : vector<72x32xf32>
    %cst_76 = arith.constant 0.000000e+00 : f32
    %103 = vector.broadcast %cst_76 : f32 to vector<72x32xf32>
    %104 = arith.maximumf %102, %103 : vector<72x32xf32>
    %c8 = arith.constant 8 : index
    %c0_77 = arith.constant 0 : index
    %c0_78 = arith.constant 0 : index
    %105 = vector.load %arg4[%c8, %c0_77, %c0_78] : memref<16x32x64xf32, #tpu.memory_space<vmem>>, vector<1x32x64xf32>
    %106 = vector.shape_cast %105 : vector<1x32x64xf32> to vector<32x64xf32>
    %cst_79 = arith.constant dense<0.000000e+00> : vector<72x64xf32>
    %107 = tpu.matmul %104, %106, %cst_79 {dimension_numbers = #tpu.dot_dimension_numbers<[1], [0], [0], [1], [0, 0, 1, 1], [], []>} : vector<72x32xf32>, vector<32x64xf32>, vector<72x64xf32> -> vector<72x64xf32>
    %108 = arith.addf %98, %107 : vector<72x64xf32>
    %c648 = arith.constant 648 : index
    %c0_80 = arith.constant 0 : index
    %109 = vector.load %arg1[%c648, %c0_80] : memref<1152x256xbf16, #tpu.memory_space<vmem>>, vector<72x256xbf16>
    %cst_81 = arith.constant dense<0.000000e+00> : vector<72x32xf32>
    %110 = tpu.matmul %109, %16, %cst_81 {dimension_numbers = #tpu.dot_dimension_numbers<[1], [0], [0], [1], [0, 0, 1, 1], [], []>} : vector<72x256xbf16>, vector<256x32xbf16>, vector<72x32xf32> -> vector<72x32xf32>
    %111 = vector.broadcast %17 : vector<1x32xf32> to vector<72x32xf32>
    %112 = arith.addf %110, %111 : vector<72x32xf32>
    %cst_82 = arith.constant 0.000000e+00 : f32
    %113 = vector.broadcast %cst_82 : f32 to vector<72x32xf32>
    %114 = arith.maximumf %112, %113 : vector<72x32xf32>
    %c9 = arith.constant 9 : index
    %c0_83 = arith.constant 0 : index
    %c0_84 = arith.constant 0 : index
    %115 = vector.load %arg4[%c9, %c0_83, %c0_84] : memref<16x32x64xf32, #tpu.memory_space<vmem>>, vector<1x32x64xf32>
    %116 = vector.shape_cast %115 : vector<1x32x64xf32> to vector<32x64xf32>
    %cst_85 = arith.constant dense<0.000000e+00> : vector<72x64xf32>
    %117 = tpu.matmul %114, %116, %cst_85 {dimension_numbers = #tpu.dot_dimension_numbers<[1], [0], [0], [1], [0, 0, 1, 1], [], []>} : vector<72x32xf32>, vector<32x64xf32>, vector<72x64xf32> -> vector<72x64xf32>
    %118 = arith.addf %108, %117 : vector<72x64xf32>
    %c720 = arith.constant 720 : index
    %c0_86 = arith.constant 0 : index
    %119 = vector.load %arg1[%c720, %c0_86] : memref<1152x256xbf16, #tpu.memory_space<vmem>>, vector<72x256xbf16>
    %cst_87 = arith.constant dense<0.000000e+00> : vector<72x32xf32>
    %120 = tpu.matmul %119, %16, %cst_87 {dimension_numbers = #tpu.dot_dimension_numbers<[1], [0], [0], [1], [0, 0, 1, 1], [], []>} : vector<72x256xbf16>, vector<256x32xbf16>, vector<72x32xf32> -> vector<72x32xf32>
    %121 = vector.broadcast %17 : vector<1x32xf32> to vector<72x32xf32>
    %122 = arith.addf %120, %121 : vector<72x32xf32>
    %cst_88 = arith.constant 0.000000e+00 : f32
    %123 = vector.broadcast %cst_88 : f32 to vector<72x32xf32>
    %124 = arith.maximumf %122, %123 : vector<72x32xf32>
    %c10 = arith.constant 10 : index
    %c0_89 = arith.constant 0 : index
    %c0_90 = arith.constant 0 : index
    %125 = vector.load %arg4[%c10, %c0_89, %c0_90] : memref<16x32x64xf32, #tpu.memory_space<vmem>>, vector<1x32x64xf32>
    %126 = vector.shape_cast %125 : vector<1x32x64xf32> to vector<32x64xf32>
    %cst_91 = arith.constant dense<0.000000e+00> : vector<72x64xf32>
    %127 = tpu.matmul %124, %126, %cst_91 {dimension_numbers = #tpu.dot_dimension_numbers<[1], [0], [0], [1], [0, 0, 1, 1], [], []>} : vector<72x32xf32>, vector<32x64xf32>, vector<72x64xf32> -> vector<72x64xf32>
    %128 = arith.addf %118, %127 : vector<72x64xf32>
    %c792 = arith.constant 792 : index
    %c0_92 = arith.constant 0 : index
    %129 = vector.load %arg1[%c792, %c0_92] : memref<1152x256xbf16, #tpu.memory_space<vmem>>, vector<72x256xbf16>
    %cst_93 = arith.constant dense<0.000000e+00> : vector<72x32xf32>
    %130 = tpu.matmul %129, %16, %cst_93 {dimension_numbers = #tpu.dot_dimension_numbers<[1], [0], [0], [1], [0, 0, 1, 1], [], []>} : vector<72x256xbf16>, vector<256x32xbf16>, vector<72x32xf32> -> vector<72x32xf32>
    %131 = vector.broadcast %17 : vector<1x32xf32> to vector<72x32xf32>
    %132 = arith.addf %130, %131 : vector<72x32xf32>
    %cst_94 = arith.constant 0.000000e+00 : f32
    %133 = vector.broadcast %cst_94 : f32 to vector<72x32xf32>
    %134 = arith.maximumf %132, %133 : vector<72x32xf32>
    %c11 = arith.constant 11 : index
    %c0_95 = arith.constant 0 : index
    %c0_96 = arith.constant 0 : index
    %135 = vector.load %arg4[%c11, %c0_95, %c0_96] : memref<16x32x64xf32, #tpu.memory_space<vmem>>, vector<1x32x64xf32>
    %136 = vector.shape_cast %135 : vector<1x32x64xf32> to vector<32x64xf32>
    %cst_97 = arith.constant dense<0.000000e+00> : vector<72x64xf32>
    %137 = tpu.matmul %134, %136, %cst_97 {dimension_numbers = #tpu.dot_dimension_numbers<[1], [0], [0], [1], [0, 0, 1, 1], [], []>} : vector<72x32xf32>, vector<32x64xf32>, vector<72x64xf32> -> vector<72x64xf32>
    %138 = arith.addf %128, %137 : vector<72x64xf32>
    %c864 = arith.constant 864 : index
    %c0_98 = arith.constant 0 : index
    %139 = vector.load %arg1[%c864, %c0_98] : memref<1152x256xbf16, #tpu.memory_space<vmem>>, vector<72x256xbf16>
    %cst_99 = arith.constant dense<0.000000e+00> : vector<72x32xf32>
    %140 = tpu.matmul %139, %16, %cst_99 {dimension_numbers = #tpu.dot_dimension_numbers<[1], [0], [0], [1], [0, 0, 1, 1], [], []>} : vector<72x256xbf16>, vector<256x32xbf16>, vector<72x32xf32> -> vector<72x32xf32>
    %141 = vector.broadcast %17 : vector<1x32xf32> to vector<72x32xf32>
    %142 = arith.addf %140, %141 : vector<72x32xf32>
    %cst_100 = arith.constant 0.000000e+00 : f32
    %143 = vector.broadcast %cst_100 : f32 to vector<72x32xf32>
    %144 = arith.maximumf %142, %143 : vector<72x32xf32>
    %c12 = arith.constant 12 : index
    %c0_101 = arith.constant 0 : index
    %c0_102 = arith.constant 0 : index
    %145 = vector.load %arg4[%c12, %c0_101, %c0_102] : memref<16x32x64xf32, #tpu.memory_space<vmem>>, vector<1x32x64xf32>
    %146 = vector.shape_cast %145 : vector<1x32x64xf32> to vector<32x64xf32>
    %cst_103 = arith.constant dense<0.000000e+00> : vector<72x64xf32>
    %147 = tpu.matmul %144, %146, %cst_103 {dimension_numbers = #tpu.dot_dimension_numbers<[1], [0], [0], [1], [0, 0, 1, 1], [], []>} : vector<72x32xf32>, vector<32x64xf32>, vector<72x64xf32> -> vector<72x64xf32>
    %148 = arith.addf %138, %147 : vector<72x64xf32>
    %c936 = arith.constant 936 : index
    %c0_104 = arith.constant 0 : index
    %149 = vector.load %arg1[%c936, %c0_104] : memref<1152x256xbf16, #tpu.memory_space<vmem>>, vector<72x256xbf16>
    %cst_105 = arith.constant dense<0.000000e+00> : vector<72x32xf32>
    %150 = tpu.matmul %149, %16, %cst_105 {dimension_numbers = #tpu.dot_dimension_numbers<[1], [0], [0], [1], [0, 0, 1, 1], [], []>} : vector<72x256xbf16>, vector<256x32xbf16>, vector<72x32xf32> -> vector<72x32xf32>
    %151 = vector.broadcast %17 : vector<1x32xf32> to vector<72x32xf32>
    %152 = arith.addf %150, %151 : vector<72x32xf32>
    %cst_106 = arith.constant 0.000000e+00 : f32
    %153 = vector.broadcast %cst_106 : f32 to vector<72x32xf32>
    %154 = arith.maximumf %152, %153 : vector<72x32xf32>
    %c13 = arith.constant 13 : index
    %c0_107 = arith.constant 0 : index
    %c0_108 = arith.constant 0 : index
    %155 = vector.load %arg4[%c13, %c0_107, %c0_108] : memref<16x32x64xf32, #tpu.memory_space<vmem>>, vector<1x32x64xf32>
    %156 = vector.shape_cast %155 : vector<1x32x64xf32> to vector<32x64xf32>
    %cst_109 = arith.constant dense<0.000000e+00> : vector<72x64xf32>
    %157 = tpu.matmul %154, %156, %cst_109 {dimension_numbers = #tpu.dot_dimension_numbers<[1], [0], [0], [1], [0, 0, 1, 1], [], []>} : vector<72x32xf32>, vector<32x64xf32>, vector<72x64xf32> -> vector<72x64xf32>
    %158 = arith.addf %148, %157 : vector<72x64xf32>
    %c1008 = arith.constant 1008 : index
    %c0_110 = arith.constant 0 : index
    %159 = vector.load %arg1[%c1008, %c0_110] : memref<1152x256xbf16, #tpu.memory_space<vmem>>, vector<72x256xbf16>
    %cst_111 = arith.constant dense<0.000000e+00> : vector<72x32xf32>
    %160 = tpu.matmul %159, %16, %cst_111 {dimension_numbers = #tpu.dot_dimension_numbers<[1], [0], [0], [1], [0, 0, 1, 1], [], []>} : vector<72x256xbf16>, vector<256x32xbf16>, vector<72x32xf32> -> vector<72x32xf32>
    %161 = vector.broadcast %17 : vector<1x32xf32> to vector<72x32xf32>
    %162 = arith.addf %160, %161 : vector<72x32xf32>
    %cst_112 = arith.constant 0.000000e+00 : f32
    %163 = vector.broadcast %cst_112 : f32 to vector<72x32xf32>
    %164 = arith.maximumf %162, %163 : vector<72x32xf32>
    %c14 = arith.constant 14 : index
    %c0_113 = arith.constant 0 : index
    %c0_114 = arith.constant 0 : index
    %165 = vector.load %arg4[%c14, %c0_113, %c0_114] : memref<16x32x64xf32, #tpu.memory_space<vmem>>, vector<1x32x64xf32>
    %166 = vector.shape_cast %165 : vector<1x32x64xf32> to vector<32x64xf32>
    %cst_115 = arith.constant dense<0.000000e+00> : vector<72x64xf32>
    %167 = tpu.matmul %164, %166, %cst_115 {dimension_numbers = #tpu.dot_dimension_numbers<[1], [0], [0], [1], [0, 0, 1, 1], [], []>} : vector<72x32xf32>, vector<32x64xf32>, vector<72x64xf32> -> vector<72x64xf32>
    %168 = arith.addf %158, %167 : vector<72x64xf32>
    %c1080 = arith.constant 1080 : index
    %c0_116 = arith.constant 0 : index
    %169 = vector.load %arg1[%c1080, %c0_116] : memref<1152x256xbf16, #tpu.memory_space<vmem>>, vector<72x256xbf16>
    %cst_117 = arith.constant dense<0.000000e+00> : vector<72x32xf32>
    %170 = tpu.matmul %169, %16, %cst_117 {dimension_numbers = #tpu.dot_dimension_numbers<[1], [0], [0], [1], [0, 0, 1, 1], [], []>} : vector<72x256xbf16>, vector<256x32xbf16>, vector<72x32xf32> -> vector<72x32xf32>
    %171 = vector.broadcast %17 : vector<1x32xf32> to vector<72x32xf32>
    %172 = arith.addf %170, %171 : vector<72x32xf32>
    %cst_118 = arith.constant 0.000000e+00 : f32
    %173 = vector.broadcast %cst_118 : f32 to vector<72x32xf32>
    %174 = arith.maximumf %172, %173 : vector<72x32xf32>
    %c15 = arith.constant 15 : index
    %c0_119 = arith.constant 0 : index
    %c0_120 = arith.constant 0 : index
    %175 = vector.load %arg4[%c15, %c0_119, %c0_120] : memref<16x32x64xf32, #tpu.memory_space<vmem>>, vector<1x32x64xf32>
    %176 = vector.shape_cast %175 : vector<1x32x64xf32> to vector<32x64xf32>
    %cst_121 = arith.constant dense<0.000000e+00> : vector<72x64xf32>
    %177 = tpu.matmul %174, %176, %cst_121 {dimension_numbers = #tpu.dot_dimension_numbers<[1], [0], [0], [1], [0, 0, 1, 1], [], []>} : vector<72x32xf32>, vector<32x64xf32>, vector<72x64xf32> -> vector<72x64xf32>
    %178 = arith.addf %168, %177 : vector<72x64xf32>
    %c0_122 = arith.constant 0 : index
    %c0_123 = arith.constant 0 : index
    %179 = vector.load %arg5[%c0_122, %c0_123] : memref<1x64xf32, #tpu.memory_space<vmem>>, vector<1x64xf32>
    %180 = vector.broadcast %179 : vector<1x64xf32> to vector<72x64xf32>
    %181 = arith.addf %178, %180 : vector<72x64xf32>
    %cst_124 = arith.constant 0.000000e+00 : f32
    %182 = vector.broadcast %cst_124 : f32 to vector<72x64xf32>
    %183 = arith.maximumf %181, %182 : vector<72x64xf32>
    %c0_125 = arith.constant 0 : index
    %c0_126 = arith.constant 0 : index
    %184 = vector.load %arg13[%c0_125, %c0_126] : memref<72x64xf32, #tpu.memory_space<vmem>>, vector<72x64xf32>
    tpu.vector_store %arg13[%c0_125, %c0_126], %183 {strides = array<i32>} : memref<72x64xf32, #tpu.memory_space<vmem>>, vector<72x64xf32>,
    %cst_127 = arith.constant 0.000000e+00 : f32
    %185 = vector.broadcast %cst_127 : f32 to vector<44x64xf32>
    %c0_128 = arith.constant 0 : index
    %c0_129 = arith.constant 0 : index
    %186 = vector.load %arg13[%c0_128, %c0_129] : memref<72x64xf32, #tpu.memory_space<vmem>>, vector<44x64xf32>
    %c0_130 = arith.constant 0 : index
    %c0_131 = arith.constant 0 : index
    %c0_132 = arith.constant 0 : index
    %187 = vector.load %arg6[%c0_130, %c0_131, %c0_132] : memref<9x64x64xf32, #tpu.memory_space<vmem>>, vector<1x64x64xf32>
    %188 = vector.shape_cast %187 : vector<1x64x64xf32> to vector<64x64xf32>
    %cst_133 = arith.constant dense<0.000000e+00> : vector<44x64xf32>
    %189 = tpu.matmul %186, %188, %cst_133 {dimension_numbers = #tpu.dot_dimension_numbers<[1], [0], [0], [1], [0, 0, 1, 1], [], []>} : vector<44x64xf32>, vector<64x64xf32>, vector<44x64xf32> -> vector<44x64xf32>
    %190 = arith.addf %185, %189 : vector<44x64xf32>
    %c2_134 = arith.constant 2 : index
    %c0_135 = arith.constant 0 : index
    %191 = vector.load %arg13[%c2_134, %c0_135] : memref<72x64xf32, #tpu.memory_space<vmem>>, vector<44x64xf32>
    %c1_136 = arith.constant 1 : index
    %c0_137 = arith.constant 0 : index
    %c0_138 = arith.constant 0 : index
    %192 = vector.load %arg6[%c1_136, %c0_137, %c0_138] : memref<9x64x64xf32, #tpu.memory_space<vmem>>, vector<1x64x64xf32>
    %193 = vector.shape_cast %192 : vector<1x64x64xf32> to vector<64x64xf32>
    %cst_139 = arith.constant dense<0.000000e+00> : vector<44x64xf32>
    %194 = tpu.matmul %191, %193, %cst_139 {dimension_numbers = #tpu.dot_dimension_numbers<[1], [0], [0], [1], [0, 0, 1, 1], [], []>} : vector<44x64xf32>, vector<64x64xf32>, vector<44x64xf32> -> vector<44x64xf32>
    %195 = arith.addf %190, %194 : vector<44x64xf32>
    %c4_140 = arith.constant 4 : index
    %c0_141 = arith.constant 0 : index
    %196 = vector.load %arg13[%c4_140, %c0_141] : memref<72x64xf32, #tpu.memory_space<vmem>>, vector<44x64xf32>
    %c2_142 = arith.constant 2 : index
    %c0_143 = arith.constant 0 : index
    %c0_144 = arith.constant 0 : index
    %197 = vector.load %arg6[%c2_142, %c0_143, %c0_144] : memref<9x64x64xf32, #tpu.memory_space<vmem>>, vector<1x64x64xf32>
    %198 = vector.shape_cast %197 : vector<1x64x64xf32> to vector<64x64xf32>
    %cst_145 = arith.constant dense<0.000000e+00> : vector<44x64xf32>
    %199 = tpu.matmul %196, %198, %cst_145 {dimension_numbers = #tpu.dot_dimension_numbers<[1], [0], [0], [1], [0, 0, 1, 1], [], []>} : vector<44x64xf32>, vector<64x64xf32>, vector<44x64xf32> -> vector<44x64xf32>
    %200 = arith.addf %195, %199 : vector<44x64xf32>
    %c12_146 = arith.constant 12 : index
    %c0_147 = arith.constant 0 : index
    %201 = vector.load %arg13[%c12_146, %c0_147] : memref<72x64xf32, #tpu.memory_space<vmem>>, vector<44x64xf32>
    %c3_148 = arith.constant 3 : index
    %c0_149 = arith.constant 0 : index
    %c0_150 = arith.constant 0 : index
    %202 = vector.load %arg6[%c3_148, %c0_149, %c0_150] : memref<9x64x64xf32, #tpu.memory_space<vmem>>, vector<1x64x64xf32>
    %203 = vector.shape_cast %202 : vector<1x64x64xf32> to vector<64x64xf32>
    %cst_151 = arith.constant dense<0.000000e+00> : vector<44x64xf32>
    %204 = tpu.matmul %201, %203, %cst_151 {dimension_numbers = #tpu.dot_dimension_numbers<[1], [0], [0], [1], [0, 0, 1, 1], [], []>} : vector<44x64xf32>, vector<64x64xf32>, vector<44x64xf32> -> vector<44x64xf32>
    %205 = arith.addf %200, %204 : vector<44x64xf32>
    %c14_152 = arith.constant 14 : index
    %c0_153 = arith.constant 0 : index
    %206 = vector.load %arg13[%c14_152, %c0_153] : memref<72x64xf32, #tpu.memory_space<vmem>>, vector<44x64xf32>
    %c4_154 = arith.constant 4 : index
    %c0_155 = arith.constant 0 : index
    %c0_156 = arith.constant 0 : index
    %207 = vector.load %arg6[%c4_154, %c0_155, %c0_156] : memref<9x64x64xf32, #tpu.memory_space<vmem>>, vector<1x64x64xf32>
    %208 = vector.shape_cast %207 : vector<1x64x64xf32> to vector<64x64xf32>
    %cst_157 = arith.constant dense<0.000000e+00> : vector<44x64xf32>
    %209 = tpu.matmul %206, %208, %cst_157 {dimension_numbers = #tpu.dot_dimension_numbers<[1], [0], [0], [1], [0, 0, 1, 1], [], []>} : vector<44x64xf32>, vector<64x64xf32>, vector<44x64xf32> -> vector<44x64xf32>
    %210 = arith.addf %205, %209 : vector<44x64xf32>
    %c16 = arith.constant 16 : index
    %c0_158 = arith.constant 0 : index
    %211 = vector.load %arg13[%c16, %c0_158] : memref<72x64xf32, #tpu.memory_space<vmem>>, vector<44x64xf32>
    %c5_159 = arith.constant 5 : index
    %c0_160 = arith.constant 0 : index
    %c0_161 = arith.constant 0 : index
    %212 = vector.load %arg6[%c5_159, %c0_160, %c0_161] : memref<9x64x64xf32, #tpu.memory_space<vmem>>, vector<1x64x64xf32>
    %213 = vector.shape_cast %212 : vector<1x64x64xf32> to vector<64x64xf32>
    %cst_162 = arith.constant dense<0.000000e+00> : vector<44x64xf32>
    %214 = tpu.matmul %211, %213, %cst_162 {dimension_numbers = #tpu.dot_dimension_numbers<[1], [0], [0], [1], [0, 0, 1, 1], [], []>} : vector<44x64xf32>, vector<64x64xf32>, vector<44x64xf32> -> vector<44x64xf32>
    %215 = arith.addf %210, %214 : vector<44x64xf32>
    %c24 = arith.constant 24 : index
    %c0_163 = arith.constant 0 : index
    %216 = vector.load %arg13[%c24, %c0_163] : memref<72x64xf32, #tpu.memory_space<vmem>>, vector<44x64xf32>
    %c6_164 = arith.constant 6 : index
    %c0_165 = arith.constant 0 : index
    %c0_166 = arith.constant 0 : index
    %217 = vector.load %arg6[%c6_164, %c0_165, %c0_166] : memref<9x64x64xf32, #tpu.memory_space<vmem>>, vector<1x64x64xf32>
    %218 = vector.shape_cast %217 : vector<1x64x64xf32> to vector<64x64xf32>
    %cst_167 = arith.constant dense<0.000000e+00> : vector<44x64xf32>
    %219 = tpu.matmul %216, %218, %cst_167 {dimension_numbers = #tpu.dot_dimension_numbers<[1], [0], [0], [1], [0, 0, 1, 1], [], []>} : vector<44x64xf32>, vector<64x64xf32>, vector<44x64xf32> -> vector<44x64xf32>
    %220 = arith.addf %215, %219 : vector<44x64xf32>
    %c26 = arith.constant 26 : index
    %c0_168 = arith.constant 0 : index
    %221 = vector.load %arg13[%c26, %c0_168] : memref<72x64xf32, #tpu.memory_space<vmem>>, vector<44x64xf32>
    %c7_169 = arith.constant 7 : index
    %c0_170 = arith.constant 0 : index
    %c0_171 = arith.constant 0 : index
    %222 = vector.load %arg6[%c7_169, %c0_170, %c0_171] : memref<9x64x64xf32, #tpu.memory_space<vmem>>, vector<1x64x64xf32>
    %223 = vector.shape_cast %222 : vector<1x64x64xf32> to vector<64x64xf32>
    %cst_172 = arith.constant dense<0.000000e+00> : vector<44x64xf32>
    %224 = tpu.matmul %221, %223, %cst_172 {dimension_numbers = #tpu.dot_dimension_numbers<[1], [0], [0], [1], [0, 0, 1, 1], [], []>} : vector<44x64xf32>, vector<64x64xf32>, vector<44x64xf32> -> vector<44x64xf32>
    %225 = arith.addf %220, %224 : vector<44x64xf32>
    %c28 = arith.constant 28 : index
    %c0_173 = arith.constant 0 : index
    %226 = vector.load %arg13[%c28, %c0_173] : memref<72x64xf32, #tpu.memory_space<vmem>>, vector<44x64xf32>
    %c8_174 = arith.constant 8 : index
    %c0_175 = arith.constant 0 : index
    %c0_176 = arith.constant 0 : index
    %227 = vector.load %arg6[%c8_174, %c0_175, %c0_176] : memref<9x64x64xf32, #tpu.memory_space<vmem>>, vector<1x64x64xf32>
    %228 = vector.shape_cast %227 : vector<1x64x64xf32> to vector<64x64xf32>
    %cst_177 = arith.constant dense<0.000000e+00> : vector<44x64xf32>
    %229 = tpu.matmul %226, %228, %cst_177 {dimension_numbers = #tpu.dot_dimension_numbers<[1], [0], [0], [1], [0, 0, 1, 1], [], []>} : vector<44x64xf32>, vector<64x64xf32>, vector<44x64xf32> -> vector<44x64xf32>
    %230 = arith.addf %225, %229 : vector<44x64xf32>
    %c0_178 = arith.constant 0 : index
    %c0_179 = arith.constant 0 : index
    %231 = vector.load %arg7[%c0_178, %c0_179] : memref<1x64xf32, #tpu.memory_space<vmem>>, vector<1x64xf32>
    %232 = vector.broadcast %231 : vector<1x64xf32> to vector<44x64xf32>
    %233 = arith.addf %230, %232 : vector<44x64xf32>
    %cst_180 = arith.constant 0.000000e+00 : f32
    %234 = vector.broadcast %cst_180 : f32 to vector<44x64xf32>
    %235 = arith.maximumf %233, %234 : vector<44x64xf32>
    %c0_181 = arith.constant 0 : index
    %c0_182 = arith.constant 0 : index
    %236 = vector.load %arg14[%c0_181, %c0_182] : memref<44x64xf32, #tpu.memory_space<vmem>>, vector<44x64xf32>
    tpu.vector_store %arg14[%c0_181, %c0_182], %235 {strides = array<i32>} : memref<44x64xf32, #tpu.memory_space<vmem>>, vector<44x64xf32>,
    %cst_183 = arith.constant 0.000000e+00 : f32
    %237 = vector.broadcast %cst_183 : f32 to vector<2x512xf32>
    %c0_i32_184 = arith.constant 0 : i32
    %c0_i32_185 = arith.constant 0 : i32
    %c0_i32_186 = arith.constant 0 : i32
    %c0_i32_187 = arith.constant 0 : i32
    %238 = tpu.memref_slice %arg8[%c0_i32_185, %c0_i32_186, %c0_i32_187] : memref<16x64x512xbf16, #tpu.memory_space<any>> -> memref<4x64x512xbf16, #tpu.memory_space<any>>
    %c0_i32_188 = arith.constant 0 : i32
    %c0_i32_189 = arith.constant 0 : i32
    %c0_i32_190 = arith.constant 0 : i32
    %239 = tpu.memref_slice %arg15[%c0_i32_188, %c0_i32_189, %c0_i32_190] : memref<16x64x512xbf16, #tpu.memory_space<vmem>> -> memref<4x64x512xbf16, #tpu.memory_space<vmem>>
    %240 = tpu.memref_slice %arg16[%c0_i32_184] : memref<4x!tpu.dma_semaphore, #tpu.memory_space<semaphore_mem>> -> memref<1x!tpu.dma_semaphore, #tpu.memory_space<semaphore_mem>>
    %241 = tpu.memref_squeeze %240 : memref<1x!tpu.dma_semaphore, #tpu.memory_space<semaphore_mem>> -> memref<!tpu.dma_semaphore, #tpu.memory_space<semaphore_mem>>
    tpu.wait_dma2 semaphore(%241 : memref<!tpu.dma_semaphore, #tpu.memory_space<semaphore_mem>>) src(%238 : memref<4x64x512xbf16, #tpu.memory_space<any>>) dst(%239 : memref<4x64x512xbf16, #tpu.memory_space<vmem>>)
    %c0_191 = arith.constant 0 : index
    %c0_192 = arith.constant 0 : index
    %242 = vector.load %arg14[%c0_191, %c0_192] : memref<44x64xf32, #tpu.memory_space<vmem>>, vector<2x64xf32>
    %243 = arith.truncf %242 : vector<2x64xf32> to vector<2x64xbf16>
    %c0_193 = arith.constant 0 : index
    %c0_194 = arith.constant 0 : index
    %c0_195 = arith.constant 0 : index
    %244 = vector.load %arg15[%c0_193, %c0_194, %c0_195] : memref<16x64x512xbf16, #tpu.memory_space<vmem>>, vector<1x64x512xbf16>
    %245 = vector.shape_cast %244 : vector<1x64x512xbf16> to vector<64x512xbf16>
    %cst_196 = arith.constant dense<0.000000e+00> : vector<2x512xf32>
    %246 = tpu.matmul %243, %245, %cst_196 {dimension_numbers = #tpu.dot_dimension_numbers<[1], [0], [0], [1], [0, 0, 1, 1], [], []>} : vector<2x64xbf16>, vector<64x512xbf16>, vector<2x512xf32> -> vector<2x512xf32>
    %247 = arith.addf %237, %246 : vector<2x512xf32>
    %c2_197 = arith.constant 2 : index
    %c0_198 = arith.constant 0 : index
    %248 = vector.load %arg14[%c2_197, %c0_198] : memref<44x64xf32, #tpu.memory_space<vmem>>, vector<2x64xf32>
    %249 = arith.truncf %248 : vector<2x64xf32> to vector<2x64xbf16>
    %c1_199 = arith.constant 1 : index
    %c0_200 = arith.constant 0 : index
    %c0_201 = arith.constant 0 : index
    %250 = vector.load %arg15[%c1_199, %c0_200, %c0_201] : memref<16x64x512xbf16, #tpu.memory_space<vmem>>, vector<1x64x512xbf16>
    %251 = vector.shape_cast %250 : vector<1x64x512xbf16> to vector<64x512xbf16>
    %cst_202 = arith.constant dense<0.000000e+00> : vector<2x512xf32>
    %252 = tpu.matmul %249, %251, %cst_202 {dimension_numbers = #tpu.dot_dimension_numbers<[1], [0], [0], [1], [0, 0, 1, 1], [], []>} : vector<2x64xbf16>, vector<64x512xbf16>, vector<2x512xf32> -> vector<2x512xf32>
    %253 = arith.addf %247, %252 : vector<2x512xf32>
    %c4_203 = arith.constant 4 : index
    %c0_204 = arith.constant 0 : index
    %254 = vector.load %arg14[%c4_203, %c0_204] : memref<44x64xf32, #tpu.memory_space<vmem>>, vector<2x64xf32>
    %255 = arith.truncf %254 : vector<2x64xf32> to vector<2x64xbf16>
    %c2_205 = arith.constant 2 : index
    %c0_206 = arith.constant 0 : index
    %c0_207 = arith.constant 0 : index
    %256 = vector.load %arg15[%c2_205, %c0_206, %c0_207] : memref<16x64x512xbf16, #tpu.memory_space<vmem>>, vector<1x64x512xbf16>
    %257 = vector.shape_cast %256 : vector<1x64x512xbf16> to vector<64x512xbf16>
    %cst_208 = arith.constant dense<0.000000e+00> : vector<2x512xf32>
    %258 = tpu.matmul %255, %257, %cst_208 {dimension_numbers = #tpu.dot_dimension_numbers<[1], [0], [0], [1], [0, 0, 1, 1], [], []>} : vector<2x64xbf16>, vector<64x512xbf16>, vector<2x512xf32> -> vector<2x512xf32>
    %259 = arith.addf %253, %258 : vector<2x512xf32>
    %c6_209 = arith.constant 6 : index
    %c0_210 = arith.constant 0 : index
    %260 = vector.load %arg14[%c6_209, %c0_210] : memref<44x64xf32, #tpu.memory_space<vmem>>, vector<2x64xf32>
    %261 = arith.truncf %260 : vector<2x64xf32> to vector<2x64xbf16>
    %c3_211 = arith.constant 3 : index
    %c0_212 = arith.constant 0 : index
    %c0_213 = arith.constant 0 : index
    %262 = vector.load %arg15[%c3_211, %c0_212, %c0_213] : memref<16x64x512xbf16, #tpu.memory_space<vmem>>, vector<1x64x512xbf16>
    %263 = vector.shape_cast %262 : vector<1x64x512xbf16> to vector<64x512xbf16>
    %cst_214 = arith.constant dense<0.000000e+00> : vector<2x512xf32>
    %264 = tpu.matmul %261, %263, %cst_214 {dimension_numbers = #tpu.dot_dimension_numbers<[1], [0], [0], [1], [0, 0, 1, 1], [], []>} : vector<2x64xbf16>, vector<64x512xbf16>, vector<2x512xf32> -> vector<2x512xf32>
    %265 = arith.addf %259, %264 : vector<2x512xf32>
    %c1_i32_215 = arith.constant 1 : i32
    %c4_i32_216 = arith.constant 4 : i32
    %c0_i32_217 = arith.constant 0 : i32
    %c0_i32_218 = arith.constant 0 : i32
    %266 = tpu.memref_slice %arg8[%c4_i32_216, %c0_i32_217, %c0_i32_218] : memref<16x64x512xbf16, #tpu.memory_space<any>> -> memref<4x64x512xbf16, #tpu.memory_space<any>>
    %c4_i32_219 = arith.constant 4 : i32
    %c0_i32_220 = arith.constant 0 : i32
    %c0_i32_221 = arith.constant 0 : i32
    %267 = tpu.memref_slice %arg15[%c4_i32_219, %c0_i32_220, %c0_i32_221] : memref<16x64x512xbf16, #tpu.memory_space<vmem>> -> memref<4x64x512xbf16, #tpu.memory_space<vmem>>
    %268 = tpu.memref_slice %arg16[%c1_i32_215] : memref<4x!tpu.dma_semaphore, #tpu.memory_space<semaphore_mem>> -> memref<1x!tpu.dma_semaphore, #tpu.memory_space<semaphore_mem>>
    %269 = tpu.memref_squeeze %268 : memref<1x!tpu.dma_semaphore, #tpu.memory_space<semaphore_mem>> -> memref<!tpu.dma_semaphore, #tpu.memory_space<semaphore_mem>>
    tpu.wait_dma2 semaphore(%269 : memref<!tpu.dma_semaphore, #tpu.memory_space<semaphore_mem>>) src(%266 : memref<4x64x512xbf16, #tpu.memory_space<any>>) dst(%267 : memref<4x64x512xbf16, #tpu.memory_space<vmem>>)
    %c12_222 = arith.constant 12 : index
    %c0_223 = arith.constant 0 : index
    %270 = vector.load %arg14[%c12_222, %c0_223] : memref<44x64xf32, #tpu.memory_space<vmem>>, vector<2x64xf32>
    %271 = arith.truncf %270 : vector<2x64xf32> to vector<2x64xbf16>
    %c4_224 = arith.constant 4 : index
    %c0_225 = arith.constant 0 : index
    %c0_226 = arith.constant 0 : index
    %272 = vector.load %arg15[%c4_224, %c0_225, %c0_226] : memref<16x64x512xbf16, #tpu.memory_space<vmem>>, vector<1x64x512xbf16>
    %273 = vector.shape_cast %272 : vector<1x64x512xbf16> to vector<64x512xbf16>
    %cst_227 = arith.constant dense<0.000000e+00> : vector<2x512xf32>
    %274 = tpu.matmul %271, %273, %cst_227 {dimension_numbers = #tpu.dot_dimension_numbers<[1], [0], [0], [1], [0, 0, 1, 1], [], []>} : vector<2x64xbf16>, vector<64x512xbf16>, vector<2x512xf32> -> vector<2x512xf32>
    %275 = arith.addf %265, %274 : vector<2x512xf32>
    %c14_228 = arith.constant 14 : index
    %c0_229 = arith.constant 0 : index
    %276 = vector.load %arg14[%c14_228, %c0_229] : memref<44x64xf32, #tpu.memory_space<vmem>>, vector<2x64xf32>
    %277 = arith.truncf %276 : vector<2x64xf32> to vector<2x64xbf16>
    %c5_230 = arith.constant 5 : index
    %c0_231 = arith.constant 0 : index
    %c0_232 = arith.constant 0 : index
    %278 = vector.load %arg15[%c5_230, %c0_231, %c0_232] : memref<16x64x512xbf16, #tpu.memory_space<vmem>>, vector<1x64x512xbf16>
    %279 = vector.shape_cast %278 : vector<1x64x512xbf16> to vector<64x512xbf16>
    %cst_233 = arith.constant dense<0.000000e+00> : vector<2x512xf32>
    %280 = tpu.matmul %277, %279, %cst_233 {dimension_numbers = #tpu.dot_dimension_numbers<[1], [0], [0], [1], [0, 0, 1, 1], [], []>} : vector<2x64xbf16>, vector<64x512xbf16>, vector<2x512xf32> -> vector<2x512xf32>
    %281 = arith.addf %275, %280 : vector<2x512xf32>
    %c16_234 = arith.constant 16 : index
    %c0_235 = arith.constant 0 : index
    %282 = vector.load %arg14[%c16_234, %c0_235] : memref<44x64xf32, #tpu.memory_space<vmem>>, vector<2x64xf32>
    %283 = arith.truncf %282 : vector<2x64xf32> to vector<2x64xbf16>
    %c6_236 = arith.constant 6 : index
    %c0_237 = arith.constant 0 : index
    %c0_238 = arith.constant 0 : index
    %284 = vector.load %arg15[%c6_236, %c0_237, %c0_238] : memref<16x64x512xbf16, #tpu.memory_space<vmem>>, vector<1x64x512xbf16>
    %285 = vector.shape_cast %284 : vector<1x64x512xbf16> to vector<64x512xbf16>
    %cst_239 = arith.constant dense<0.000000e+00> : vector<2x512xf32>
    %286 = tpu.matmul %283, %285, %cst_239 {dimension_numbers = #tpu.dot_dimension_numbers<[1], [0], [0], [1], [0, 0, 1, 1], [], []>} : vector<2x64xbf16>, vector<64x512xbf16>, vector<2x512xf32> -> vector<2x512xf32>
    %287 = arith.addf %281, %286 : vector<2x512xf32>
    %c18 = arith.constant 18 : index
    %c0_240 = arith.constant 0 : index
    %288 = vector.load %arg14[%c18, %c0_240] : memref<44x64xf32, #tpu.memory_space<vmem>>, vector<2x64xf32>
    %289 = arith.truncf %288 : vector<2x64xf32> to vector<2x64xbf16>
    %c7_241 = arith.constant 7 : index
    %c0_242 = arith.constant 0 : index
    %c0_243 = arith.constant 0 : index
    %290 = vector.load %arg15[%c7_241, %c0_242, %c0_243] : memref<16x64x512xbf16, #tpu.memory_space<vmem>>, vector<1x64x512xbf16>
    %291 = vector.shape_cast %290 : vector<1x64x512xbf16> to vector<64x512xbf16>
    %cst_244 = arith.constant dense<0.000000e+00> : vector<2x512xf32>
    %292 = tpu.matmul %289, %291, %cst_244 {dimension_numbers = #tpu.dot_dimension_numbers<[1], [0], [0], [1], [0, 0, 1, 1], [], []>} : vector<2x64xbf16>, vector<64x512xbf16>, vector<2x512xf32> -> vector<2x512xf32>
    %293 = arith.addf %287, %292 : vector<2x512xf32>
    %c2_i32_245 = arith.constant 2 : i32
    %c8_i32_246 = arith.constant 8 : i32
    %c0_i32_247 = arith.constant 0 : i32
    %c0_i32_248 = arith.constant 0 : i32
    %294 = tpu.memref_slice %arg8[%c8_i32_246, %c0_i32_247, %c0_i32_248] : memref<16x64x512xbf16, #tpu.memory_space<any>> -> memref<4x64x512xbf16, #tpu.memory_space<any>>
    %c8_i32_249 = arith.constant 8 : i32
    %c0_i32_250 = arith.constant 0 : i32
    %c0_i32_251 = arith.constant 0 : i32
    %295 = tpu.memref_slice %arg15[%c8_i32_249, %c0_i32_250, %c0_i32_251] : memref<16x64x512xbf16, #tpu.memory_space<vmem>> -> memref<4x64x512xbf16, #tpu.memory_space<vmem>>
    %296 = tpu.memref_slice %arg16[%c2_i32_245] : memref<4x!tpu.dma_semaphore, #tpu.memory_space<semaphore_mem>> -> memref<1x!tpu.dma_semaphore, #tpu.memory_space<semaphore_mem>>
    %297 = tpu.memref_squeeze %296 : memref<1x!tpu.dma_semaphore, #tpu.memory_space<semaphore_mem>> -> memref<!tpu.dma_semaphore, #tpu.memory_space<semaphore_mem>>
    tpu.wait_dma2 semaphore(%297 : memref<!tpu.dma_semaphore, #tpu.memory_space<semaphore_mem>>) src(%294 : memref<4x64x512xbf16, #tpu.memory_space<any>>) dst(%295 : memref<4x64x512xbf16, #tpu.memory_space<vmem>>)
    %c24_252 = arith.constant 24 : index
    %c0_253 = arith.constant 0 : index
    %298 = vector.load %arg14[%c24_252, %c0_253] : memref<44x64xf32, #tpu.memory_space<vmem>>, vector<2x64xf32>
    %299 = arith.truncf %298 : vector<2x64xf32> to vector<2x64xbf16>
    %c8_254 = arith.constant 8 : index
    %c0_255 = arith.constant 0 : index
    %c0_256 = arith.constant 0 : index
    %300 = vector.load %arg15[%c8_254, %c0_255, %c0_256] : memref<16x64x512xbf16, #tpu.memory_space<vmem>>, vector<1x64x512xbf16>
    %301 = vector.shape_cast %300 : vector<1x64x512xbf16> to vector<64x512xbf16>
    %cst_257 = arith.constant dense<0.000000e+00> : vector<2x512xf32>
    %302 = tpu.matmul %299, %301, %cst_257 {dimension_numbers = #tpu.dot_dimension_numbers<[1], [0], [0], [1], [0, 0, 1, 1], [], []>} : vector<2x64xbf16>, vector<64x512xbf16>, vector<2x512xf32> -> vector<2x512xf32>
    %303 = arith.addf %293, %302 : vector<2x512xf32>
    %c26_258 = arith.constant 26 : index
    %c0_259 = arith.constant 0 : index
    %304 = vector.load %arg14[%c26_258, %c0_259] : memref<44x64xf32, #tpu.memory_space<vmem>>, vector<2x64xf32>
    %305 = arith.truncf %304 : vector<2x64xf32> to vector<2x64xbf16>
    %c9_260 = arith.constant 9 : index
    %c0_261 = arith.constant 0 : index
    %c0_262 = arith.constant 0 : index
    %306 = vector.load %arg15[%c9_260, %c0_261, %c0_262] : memref<16x64x512xbf16, #tpu.memory_space<vmem>>, vector<1x64x512xbf16>
    %307 = vector.shape_cast %306 : vector<1x64x512xbf16> to vector<64x512xbf16>
    %cst_263 = arith.constant dense<0.000000e+00> : vector<2x512xf32>
    %308 = tpu.matmul %305, %307, %cst_263 {dimension_numbers = #tpu.dot_dimension_numbers<[1], [0], [0], [1], [0, 0, 1, 1], [], []>} : vector<2x64xbf16>, vector<64x512xbf16>, vector<2x512xf32> -> vector<2x512xf32>
    %309 = arith.addf %303, %308 : vector<2x512xf32>
    %c28_264 = arith.constant 28 : index
    %c0_265 = arith.constant 0 : index
    %310 = vector.load %arg14[%c28_264, %c0_265] : memref<44x64xf32, #tpu.memory_space<vmem>>, vector<2x64xf32>
    %311 = arith.truncf %310 : vector<2x64xf32> to vector<2x64xbf16>
    %c10_266 = arith.constant 10 : index
    %c0_267 = arith.constant 0 : index
    %c0_268 = arith.constant 0 : index
    %312 = vector.load %arg15[%c10_266, %c0_267, %c0_268] : memref<16x64x512xbf16, #tpu.memory_space<vmem>>, vector<1x64x512xbf16>
    %313 = vector.shape_cast %312 : vector<1x64x512xbf16> to vector<64x512xbf16>
    %cst_269 = arith.constant dense<0.000000e+00> : vector<2x512xf32>
    %314 = tpu.matmul %311, %313, %cst_269 {dimension_numbers = #tpu.dot_dimension_numbers<[1], [0], [0], [1], [0, 0, 1, 1], [], []>} : vector<2x64xbf16>, vector<64x512xbf16>, vector<2x512xf32> -> vector<2x512xf32>
    %315 = arith.addf %309, %314 : vector<2x512xf32>
    %c30 = arith.constant 30 : index
    %c0_270 = arith.constant 0 : index
    %316 = vector.load %arg14[%c30, %c0_270] : memref<44x64xf32, #tpu.memory_space<vmem>>, vector<2x64xf32>
    %317 = arith.truncf %316 : vector<2x64xf32> to vector<2x64xbf16>
    %c11_271 = arith.constant 11 : index
    %c0_272 = arith.constant 0 : index
    %c0_273 = arith.constant 0 : index
    %318 = vector.load %arg15[%c11_271, %c0_272, %c0_273] : memref<16x64x512xbf16, #tpu.memory_space<vmem>>, vector<1x64x512xbf16>
    %319 = vector.shape_cast %318 : vector<1x64x512xbf16> to vector<64x512xbf16>
    %cst_274 = arith.constant dense<0.000000e+00> : vector<2x512xf32>
    %320 = tpu.matmul %317, %319, %cst_274 {dimension_numbers = #tpu.dot_dimension_numbers<[1], [0], [0], [1], [0, 0, 1, 1], [], []>} : vector<2x64xbf16>, vector<64x512xbf16>, vector<2x512xf32> -> vector<2x512xf32>
    %321 = arith.addf %315, %320 : vector<2x512xf32>
    %c3_i32_275 = arith.constant 3 : i32
    %c12_i32_276 = arith.constant 12 : i32
    %c0_i32_277 = arith.constant 0 : i32
    %c0_i32_278 = arith.constant 0 : i32
    %322 = tpu.memref_slice %arg8[%c12_i32_276, %c0_i32_277, %c0_i32_278] : memref<16x64x512xbf16, #tpu.memory_space<any>> -> memref<4x64x512xbf16, #tpu.memory_space<any>>
    %c12_i32_279 = arith.constant 12 : i32
    %c0_i32_280 = arith.constant 0 : i32
    %c0_i32_281 = arith.constant 0 : i32
    %323 = tpu.memref_slice %arg15[%c12_i32_279, %c0_i32_280, %c0_i32_281] : memref<16x64x512xbf16, #tpu.memory_space<vmem>> -> memref<4x64x512xbf16, #tpu.memory_space<vmem>>
    %324 = tpu.memref_slice %arg16[%c3_i32_275] : memref<4x!tpu.dma_semaphore, #tpu.memory_space<semaphore_mem>> -> memref<1x!tpu.dma_semaphore, #tpu.memory_space<semaphore_mem>>
    %325 = tpu.memref_squeeze %324 : memref<1x!tpu.dma_semaphore, #tpu.memory_space<semaphore_mem>> -> memref<!tpu.dma_semaphore, #tpu.memory_space<semaphore_mem>>
    tpu.wait_dma2 semaphore(%325 : memref<!tpu.dma_semaphore, #tpu.memory_space<semaphore_mem>>) src(%322 : memref<4x64x512xbf16, #tpu.memory_space<any>>) dst(%323 : memref<4x64x512xbf16, #tpu.memory_space<vmem>>)
    %c36 = arith.constant 36 : index
    %c0_282 = arith.constant 0 : index
    %326 = vector.load %arg14[%c36, %c0_282] : memref<44x64xf32, #tpu.memory_space<vmem>>, vector<2x64xf32>
    %327 = arith.truncf %326 : vector<2x64xf32> to vector<2x64xbf16>
    %c12_283 = arith.constant 12 : index
    %c0_284 = arith.constant 0 : index
    %c0_285 = arith.constant 0 : index
    %328 = vector.load %arg15[%c12_283, %c0_284, %c0_285] : memref<16x64x512xbf16, #tpu.memory_space<vmem>>, vector<1x64x512xbf16>
    %329 = vector.shape_cast %328 : vector<1x64x512xbf16> to vector<64x512xbf16>
    %cst_286 = arith.constant dense<0.000000e+00> : vector<2x512xf32>
    %330 = tpu.matmul %327, %329, %cst_286 {dimension_numbers = #tpu.dot_dimension_numbers<[1], [0], [0], [1], [0, 0, 1, 1], [], []>} : vector<2x64xbf16>, vector<64x512xbf16>, vector<2x512xf32> -> vector<2x512xf32>
    %331 = arith.addf %321, %330 : vector<2x512xf32>
    %c38 = arith.constant 38 : index
    %c0_287 = arith.constant 0 : index
    %332 = vector.load %arg14[%c38, %c0_287] : memref<44x64xf32, #tpu.memory_space<vmem>>, vector<2x64xf32>
    %333 = arith.truncf %332 : vector<2x64xf32> to vector<2x64xbf16>
    %c13_288 = arith.constant 13 : index
    %c0_289 = arith.constant 0 : index
    %c0_290 = arith.constant 0 : index
    %334 = vector.load %arg15[%c13_288, %c0_289, %c0_290] : memref<16x64x512xbf16, #tpu.memory_space<vmem>>, vector<1x64x512xbf16>
    %335 = vector.shape_cast %334 : vector<1x64x512xbf16> to vector<64x512xbf16>
    %cst_291 = arith.constant dense<0.000000e+00> : vector<2x512xf32>
    %336 = tpu.matmul %333, %335, %cst_291 {dimension_numbers = #tpu.dot_dimension_numbers<[1], [0], [0], [1], [0, 0, 1, 1], [], []>} : vector<2x64xbf16>, vector<64x512xbf16>, vector<2x512xf32> -> vector<2x512xf32>
    %337 = arith.addf %331, %336 : vector<2x512xf32>
    %c40 = arith.constant 40 : index
    %c0_292 = arith.constant 0 : index
    %338 = vector.load %arg14[%c40, %c0_292] : memref<44x64xf32, #tpu.memory_space<vmem>>, vector<2x64xf32>
    %339 = arith.truncf %338 : vector<2x64xf32> to vector<2x64xbf16>
    %c14_293 = arith.constant 14 : index
    %c0_294 = arith.constant 0 : index
    %c0_295 = arith.constant 0 : index
    %340 = vector.load %arg15[%c14_293, %c0_294, %c0_295] : memref<16x64x512xbf16, #tpu.memory_space<vmem>>, vector<1x64x512xbf16>
    %341 = vector.shape_cast %340 : vector<1x64x512xbf16> to vector<64x512xbf16>
    %cst_296 = arith.constant dense<0.000000e+00> : vector<2x512xf32>
    %342 = tpu.matmul %339, %341, %cst_296 {dimension_numbers = #tpu.dot_dimension_numbers<[1], [0], [0], [1], [0, 0, 1, 1], [], []>} : vector<2x64xbf16>, vector<64x512xbf16>, vector<2x512xf32> -> vector<2x512xf32>
    %343 = arith.addf %337, %342 : vector<2x512xf32>
    %c42 = arith.constant 42 : index
    %c0_297 = arith.constant 0 : index
    %344 = vector.load %arg14[%c42, %c0_297] : memref<44x64xf32, #tpu.memory_space<vmem>>, vector<2x64xf32>
    %345 = arith.truncf %344 : vector<2x64xf32> to vector<2x64xbf16>
    %c15_298 = arith.constant 15 : index
    %c0_299 = arith.constant 0 : index
    %c0_300 = arith.constant 0 : index
    %346 = vector.load %arg15[%c15_298, %c0_299, %c0_300] : memref<16x64x512xbf16, #tpu.memory_space<vmem>>, vector<1x64x512xbf16>
    %347 = vector.shape_cast %346 : vector<1x64x512xbf16> to vector<64x512xbf16>
    %cst_301 = arith.constant dense<0.000000e+00> : vector<2x512xf32>
    %348 = tpu.matmul %345, %347, %cst_301 {dimension_numbers = #tpu.dot_dimension_numbers<[1], [0], [0], [1], [0, 0, 1, 1], [], []>} : vector<2x64xbf16>, vector<64x512xbf16>, vector<2x512xf32> -> vector<2x512xf32>
    %349 = arith.addf %343, %348 : vector<2x512xf32>
    %c0_302 = arith.constant 0 : index
    %c0_303 = arith.constant 0 : index
    %350 = vector.load %arg9[%c0_302, %c0_303] : memref<1x512xf32, #tpu.memory_space<vmem>>, vector<1x512xf32>
    %351 = vector.broadcast %350 : vector<1x512xf32> to vector<2x512xf32>
    %352 = arith.addf %349, %351 : vector<2x512xf32>
    %cst_304 = arith.constant 0.000000e+00 : f32
    %353 = vector.broadcast %cst_304 : f32 to vector<2x512xf32>
    %354 = arith.maximumf %352, %353 : vector<2x512xf32>
    %c0_305 = arith.constant 0 : index
    %c0_306 = arith.constant 0 : index
    %355 = vector.load %arg10[%c0_305, %c0_306] : memref<512x6xf32, #tpu.memory_space<vmem>>, vector<512x6xf32>
    %cst_307 = arith.constant dense<0.000000e+00> : vector<2x6xf32>
    %356 = tpu.matmul %354, %355, %cst_307 {dimension_numbers = #tpu.dot_dimension_numbers<[1], [0], [0], [1], [0, 0, 1, 1], [], []>} : vector<2x512xf32>, vector<512x6xf32>, vector<2x6xf32> -> vector<2x6xf32>
    %c0_308 = arith.constant 0 : index
    %c0_309 = arith.constant 0 : index
    %357 = vector.load %arg11[%c0_308, %c0_309] : memref<1x6xf32, #tpu.memory_space<vmem>>, vector<1x6xf32>
    %358 = vector.broadcast %357 : vector<1x6xf32> to vector<2x6xf32>
    %359 = arith.addf %356, %358 : vector<2x6xf32>
    %c0_310 = arith.constant 0 : index
    %c0_311 = arith.constant 0 : index
    %360 = vector.load %arg12[%c0_310, %c0_311] : memref<2x6xf32, #tpu.memory_space<vmem>>, vector<2x6xf32>
    tpu.vector_store %arg12[%c0_310, %c0_311], %359 {strides = array<i32>} : memref<2x6xf32, #tpu.memory_space<vmem>>, vector<2x6xf32>,
    return
  }
  func.func @transform_0(%arg0: i32) -> (i32, i32) {
    %c0_i32 = arith.constant 0 : i32
    %c0_i32_0 = arith.constant 0 : i32
    %c0_i32_1 = arith.constant 0 : i32
    return %c0_i32, %c0_i32_0 : i32, i32
  }
  func.func @transform_1(%arg0: i32) -> (i32, i32) {
    %c0_i32 = arith.constant 0 : i32
    %c0_i32_0 = arith.constant 0 : i32
    %c0_i32_1 = arith.constant 0 : i32
    return %c0_i32, %c0_i32_0 : i32, i32
  }
  func.func @transform_2(%arg0: i32) -> (i32, i32) {
    %c0_i32 = arith.constant 0 : i32
    %c0_i32_0 = arith.constant 0 : i32
    %c0_i32_1 = arith.constant 0 : i32
    return %c0_i32, %c0_i32_0 : i32, i32
  }
  func.func @transform_3(%arg0: i32) -> (i32, i32, i32) {
    %c0_i32 = arith.constant 0 : i32
    %c0_i32_0 = arith.constant 0 : i32
    %c0_i32_1 = arith.constant 0 : i32
    %c0_i32_2 = arith.constant 0 : i32
    return %c0_i32, %c0_i32_0, %c0_i32_1 : i32, i32, i32
  }
  func.func @transform_4(%arg0: i32) -> (i32, i32) {
    %c0_i32 = arith.constant 0 : i32
    %c0_i32_0 = arith.constant 0 : i32
    %c0_i32_1 = arith.constant 0 : i32
    return %c0_i32, %c0_i32_0 : i32, i32
  }
  func.func @transform_5(%arg0: i32) -> (i32, i32, i32) {
    %c0_i32 = arith.constant 0 : i32
    %c0_i32_0 = arith.constant 0 : i32
    %c0_i32_1 = arith.constant 0 : i32
    %c0_i32_2 = arith.constant 0 : i32
    return %c0_i32, %c0_i32_0, %c0_i32_1 : i32, i32, i32
  }
  func.func @transform_6(%arg0: i32) -> (i32, i32) {
    %c0_i32 = arith.constant 0 : i32
    %c0_i32_0 = arith.constant 0 : i32
    %c0_i32_1 = arith.constant 0 : i32
    return %c0_i32, %c0_i32_0 : i32, i32
  }
  func.func @transform_8(%arg0: i32) -> (i32, i32) {
    %c0_i32 = arith.constant 0 : i32
    %c0_i32_0 = arith.constant 0 : i32
    %c0_i32_1 = arith.constant 0 : i32
    return %c0_i32, %c0_i32_0 : i32, i32
  }
  func.func @transform_9(%arg0: i32) -> (i32, i32) {
    %c0_i32 = arith.constant 0 : i32
    %c0_i32_0 = arith.constant 0 : i32
    %c0_i32_1 = arith.constant 0 : i32
    return %c0_i32, %c0_i32_0 : i32, i32
  }
  func.func @transform_10(%arg0: i32) -> (i32, i32) {
    %c0_i32 = arith.constant 0 : i32
    %c0_i32_0 = arith.constant 0 : i32
    %c0_i32_1 = arith.constant 0 : i32
    return %c0_i32, %c0_i32_0 : i32, i32
  }
  func.func @transform_11(%arg0: i32) -> (i32, i32) {
    %c0_i32 = arith.constant 0 : i32
    %c0_i32_0 = arith.constant 0 : i32
    %c0_i32_1 = arith.constant 0 : i32
    return %c0_i32, %c0_i32_0 : i32, i32
  }
}

</mosaic_0001>

<bundles_post_ra>
// kernel: cnn_actor_forward.1
= control target key start
LH: loop header
LB: loop body
LE: loop exit
PB: predicated region body
PF: predicated region fallthrough
CT: control target
= control target key end

     0   :  { %16 = vsyncpa [#allocation7], 0  ;;  %s18589_s0 = inlined_call_operand.vmem [shape: bf16[1152,256], index: 0, kind: input, shape index: {}]   ;;  %s18590_s1 = inlined_call_operand.vmem [shape: bf16[256,32], index: 1, kind: input, shape index: {}]   ;;  %s18591_s2 = inlined_call_operand.vmem [shape: f32[1,32], index: 2, kind: input, shape index: {}]   ;;  %s18592_s3 = inlined_call_operand.vmem [shape: f32[16,32,64], index: 3, kind: input, shape index: {}]   ;;  %s18593_s4 = inlined_call_operand.vmem [shape: f32[1,64], index: 4, kind: input, shape index: {}]   ;;  %s18594_s5 = inlined_call_operand.vmem [shape: f32[9,64,64], index: 5, kind: input, shape index: {}]   ;;  %s18595_s6 = inlined_call_operand.vmem [shape: f32[1,64], index: 6, kind: input, shape index: {}]   ;;  %s18596_s7 = inlined_call_operand.vmem [shape: bf16[16,64,512], index: 7, kind: input, shape index: {}]   ;;  %s18597_s8 = inlined_call_operand.vmem [shape: f32[1,512], index: 8, kind: input, shape index: {}]   ;;  %s18598_s9 = inlined_call_operand.vmem [shape: f32[512,6], index: 9, kind: input, shape index: {}]   ;;  %s18599_s10 = inlined_call_operand.vmem [shape: f32[1,6], index: 10, kind: input, shape index: {}]   ;;  %s18600_s11 = inlined_call_operand.hbm [shape: f32[2,6], index: 11, kind: output, shape index: {}]  }
   0x1   :  { %v55_v0 = vld [vmem:[%s18596_s7] sm:$0xf]  ;;  %v57_v1 = vld [vmem:[%s18596_s7 + $0x10] sm:$0xf]  ;;  %v59_v2 = vld [vmem:[%s18596_s7 + $0x4] sm:$0xf] }
   0x2   :  { %56 = vst [vmem:[#allocation4] sm:$0xf] %v55_v0  ;;  %58 = vst [vmem:[#allocation4 + $0x4] sm:$0xf] %v57_v1  ;;  %v61_v3 = vld [vmem:[%s18596_s7 + $0x14] sm:$0xf] }
   0x3   :  { %v63_v4 = vld [vmem:[%s18596_s7 + $0x8] sm:$0xf]  ;;  %60 = vst [vmem:[#allocation4 + $0x8] sm:$0xf] %v59_v2  ;;  %62 = vst [vmem:[#allocation4 + $0xc] sm:$0xf] %v61_v3 }
   0x4   :  { %64 = vst [vmem:[#allocation4 + $0x10] sm:$0xf] %v63_v4  ;;  %v65_v5 = vld [vmem:[%s18596_s7 + $0x18] sm:$0xf]  ;;  %v67_v6 = vld [vmem:[%s18596_s7 + $0xc] sm:$0xf] }
   0x5   :  { %v69_v7 = vld [vmem:[%s18596_s7 + $0x1c] sm:$0xff]   ;;  %66 = vst [vmem:[#allocation4 + $0x14] sm:$0xf] %v65_v5  ;;  %68 = vst [vmem:[#allocation4 + $0x18] sm:$0xf] %v67_v6 }
   0x6   :  { %70 = vst [vmem:[#allocation4 + $0x1c] sm:$0xff] %v69_v7   ;;  %v73_v8 = vld [vmem:[%s18596_s7 + $0x30] sm:$0xf]  ;;  %v75_v9 = vld [vmem:[%s18596_s7 + $0x24] sm:$0xf]  ;;  %v85_v14 = vld [vmem:[%s18596_s7 + $0x3c] sm:$0xff]  }
   0x7   :  { %v77_v10 = vld [vmem:[%s18596_s7 + $0x34] sm:$0xf]  ;;  %74 = vst [vmem:[#allocation4 + $0x24] sm:$0xf] %v73_v8  ;;  %76 = vst [vmem:[#allocation4 + $0x28] sm:$0xf] %v75_v9 }
   0x8   :  { %78 = vst [vmem:[#allocation4 + $0x2c] sm:$0xf] %v77_v10  ;;  %v79_v11 = vld [vmem:[%s18596_s7 + $0x28] sm:$0xf]  ;;  %v81_v12 = vld [vmem:[%s18596_s7 + $0x38] sm:$0xf] }
   0x9   :  { %v83_v13 = vld [vmem:[%s18596_s7 + $0x2c] sm:$0xf]  ;;  %80 = vst [vmem:[#allocation4 + $0x30] sm:$0xf] %v79_v11  ;;  %82 = vst [vmem:[#allocation4 + $0x34] sm:$0xf] %v81_v12 }
   0xa   :  { %84 = vst [vmem:[#allocation4 + $0x38] sm:$0xf] %v83_v13  ;;  %v89_v15 = vld [vmem:[%s18596_s7 + $0x50] sm:$0xf]  ;;  %v91_v16 = vld [vmem:[%s18596_s7 + $0x44] sm:$0xf] }
   0xb   :  { %86 = vst [vmem:[#allocation4 + $0x3c] sm:$0xff] %v85_v14   ;;  %90 = vst [vmem:[#allocation4 + $0x44] sm:$0xf] %v89_v15  ;;  %v93_v17 = vld [vmem:[%s18596_s7 + $0x54] sm:$0xf]  ;;  %v101_v21 = vld [vmem:[%s18596_s7 + $0x5c] sm:$0xff]  }
   0xc   :  { %92 = vst [vmem:[#allocation4 + $0x48] sm:$0xf] %v91_v16  ;;  %v95_v18 = vld [vmem:[%s18596_s7 + $0x48] sm:$0xf]  ;;  %v97_v19 = vld [vmem:[%s18596_s7 + $0x58] sm:$0xf] }
   0xd   :  { %94 = vst [vmem:[#allocation4 + $0x4c] sm:$0xf] %v93_v17  ;;  %96 = vst [vmem:[#allocation4 + $0x50] sm:$0xf] %v95_v18  ;;  %v99_v20 = vld [vmem:[%s18596_s7 + $0x4c] sm:$0xf] }
   0xe   :  { %98 = vst [vmem:[#allocation4 + $0x54] sm:$0xf] %v97_v19  ;;  %v105_v22 = vld [vmem:[%s18596_s7 + $0x70] sm:$0xf]  ;;  %100 = vst [vmem:[#allocation4 + $0x58] sm:$0xf] %v99_v20 }
   0xf   :  { %102 = vst [vmem:[#allocation4 + $0x5c] sm:$0xff] %v101_v21   ;;  %106 = vst [vmem:[#allocation4 + $0x64] sm:$0xf] %v105_v22  ;;  %v107_v23 = vld [vmem:[%s18596_s7 + $0x64] sm:$0xf]  ;;  %v117_v28 = vld [vmem:[%s18596_s7 + $0x7c] sm:$0xff]  }
  0x10   :  { %v109_v24 = vld [vmem:[%s18596_s7 + $0x74] sm:$0xf]  ;;  %v111_v25 = vld [vmem:[%s18596_s7 + $0x68] sm:$0xf]  ;;  %108 = vst [vmem:[#allocation4 + $0x68] sm:$0xf] %v107_v23 }
  0x11   :  { %110 = vst [vmem:[#allocation4 + $0x6c] sm:$0xf] %v109_v24  ;;  %112 = vst [vmem:[#allocation4 + $0x70] sm:$0xf] %v111_v25  ;;  %v113_v26 = vld [vmem:[%s18596_s7 + $0x78] sm:$0xf] }
  0x12   :  { %v115_v27 = vld [vmem:[%s18596_s7 + $0x6c] sm:$0xf]  ;;  %114 = vst [vmem:[#allocation4 + $0x74] sm:$0xf] %v113_v26  ;;  %118 = vst [vmem:[#allocation4 + $0x7c] sm:$0xff] %v117_v28   ;;  %v133_v35 = vld [vmem:[%s18596_s7 + $0x9c] sm:$0xff]  }
  0x13   :  { %116 = vst [vmem:[#allocation4 + $0x78] sm:$0xf] %v115_v27  ;;  %v121_v29 = vld [vmem:[%s18596_s7 + $0x90] sm:$0xf]  ;;  %v123_v30 = vld [vmem:[%s18596_s7 + $0x84] sm:$0xf] }
  0x14   :  { %v125_v31 = vld [vmem:[%s18596_s7 + $0x94] sm:$0xf]  ;;  %122 = vst [vmem:[#allocation4 + $0x84] sm:$0xf] %v121_v29  ;;  %124 = vst [vmem:[#allocation4 + $0x88] sm:$0xf] %v123_v30 }
  0x15   :  { %126 = vst [vmem:[#allocation4 + $0x8c] sm:$0xf] %v125_v31  ;;  %v127_v32 = vld [vmem:[%s18596_s7 + $0x88] sm:$0xf]  ;;  %v129_v33 = vld [vmem:[%s18596_s7 + $0x98] sm:$0xf] }
  0x16   :  { %v131_v34 = vld [vmem:[%s18596_s7 + $0x8c] sm:$0xf]  ;;  %128 = vst [vmem:[#allocation4 + $0x90] sm:$0xf] %v127_v32  ;;  %130 = vst [vmem:[#allocation4 + $0x94] sm:$0xf] %v129_v33 }
  0x17   :  { %132 = vst [vmem:[#allocation4 + $0x98] sm:$0xf] %v131_v34  ;;  %v137_v36 = vld [vmem:[%s18596_s7 + $0xb0] sm:$0xf]  ;;  %v139_v37 = vld [vmem:[%s18596_s7 + $0xa4] sm:$0xf] }
  0x18   :  { %134 = vst [vmem:[#allocation4 + $0x9c] sm:$0xff] %v133_v35   ;;  %138 = vst [vmem:[#allocation4 + $0xa4] sm:$0xf] %v137_v36  ;;  %v141_v38 = vld [vmem:[%s18596_s7 + $0xb4] sm:$0xf]  ;;  %v149_v42 = vld [vmem:[%s18596_s7 + $0xbc] sm:$0xff]  }
  0x19   :  { %140 = vst [vmem:[#allocation4 + $0xa8] sm:$0xf] %v139_v37  ;;  %v143_v39 = vld [vmem:[%s18596_s7 + $0xa8] sm:$0xf]  ;;  %v145_v40 = vld [vmem:[%s18596_s7 + $0xb8] sm:$0xf] }
  0x1a   :  { %142 = vst [vmem:[#allocation4 + $0xac] sm:$0xf] %v141_v38  ;;  %144 = vst [vmem:[#allocation4 + $0xb0] sm:$0xf] %v143_v39  ;;  %v147_v41 = vld [vmem:[%s18596_s7 + $0xac] sm:$0xf] }
  0x1b   :  { %146 = vst [vmem:[#allocation4 + $0xb4] sm:$0xf] %v145_v40  ;;  %v153_v43 = vld [vmem:[%s18596_s7 + $0xd0] sm:$0xf]  ;;  %148 = vst [vmem:[#allocation4 + $0xb8] sm:$0xf] %v147_v41 }
  0x1c   :  { %150 = vst [vmem:[#allocation4 + $0xbc] sm:$0xff] %v149_v42   ;;  %154 = vst [vmem:[#allocation4 + $0xc4] sm:$0xf] %v153_v43  ;;  %v155_v44 = vld [vmem:[%s18596_s7 + $0xc4] sm:$0xf]  ;;  %v165_v49 = vld [vmem:[%s18596_s7 + $0xdc] sm:$0xff]  }
  0x1d   :  { %v157_v45 = vld [vmem:[%s18596_s7 + $0xd4] sm:$0xf]  ;;  %v159_v46 = vld [vmem:[%s18596_s7 + $0xc8] sm:$0xf]  ;;  %156 = vst [vmem:[#allocation4 + $0xc8] sm:$0xf] %v155_v44 }
  0x1e   :  { %158 = vst [vmem:[#allocation4 + $0xcc] sm:$0xf] %v157_v45  ;;  %160 = vst [vmem:[#allocation4 + $0xd0] sm:$0xf] %v159_v46  ;;  %v161_v47 = vld [vmem:[%s18596_s7 + $0xd8] sm:$0xf] }
  0x1f   :  { %v163_v48 = vld [vmem:[%s18596_s7 + $0xcc] sm:$0xf]  ;;  %162 = vst [vmem:[#allocation4 + $0xd4] sm:$0xf] %v161_v47  ;;  %166 = vst [vmem:[#allocation4 + $0xdc] sm:$0xff] %v165_v49   ;;  %v181_v56 = vld [vmem:[%s18596_s7 + $0xfc] sm:$0xff]  }
  0x20   :  { %164 = vst [vmem:[#allocation4 + $0xd8] sm:$0xf] %v163_v48  ;;  %v169_v50 = vld [vmem:[%s18596_s7 + $0xf0] sm:$0xf]  ;;  %v171_v51 = vld [vmem:[%s18596_s7 + $0xe4] sm:$0xf] }
  0x21   :  { %v173_v52 = vld [vmem:[%s18596_s7 + $0xf4] sm:$0xf]  ;;  %170 = vst [vmem:[#allocation4 + $0xe4] sm:$0xf] %v169_v50  ;;  %172 = vst [vmem:[#allocation4 + $0xe8] sm:$0xf] %v171_v51 }
  0x22   :  { %174 = vst [vmem:[#allocation4 + $0xec] sm:$0xf] %v173_v52  ;;  %v175_v53 = vld [vmem:[%s18596_s7 + $0xe8] sm:$0xf]  ;;  %v177_v54 = vld [vmem:[%s18596_s7 + $0xf8] sm:$0xf] }
  0x23   :  { %v179_v55 = vld [vmem:[%s18596_s7 + $0xec] sm:$0xf]  ;;  %176 = vst [vmem:[#allocation4 + $0xf0] sm:$0xf] %v175_v53  ;;  %178 = vst [vmem:[#allocation4 + $0xf4] sm:$0xf] %v177_v54 }
  0x24   :  { %180 = vst [vmem:[#allocation4 + $0xf8] sm:$0xf] %v179_v55  ;;  %v185_v57 = vld [vmem:[%s18596_s7 + $0x110] sm:$0xf]  ;;  %v187_v58 = vld [vmem:[%s18596_s7 + $0x104] sm:$0xf] }
  0x25   :  { %182 = vst [vmem:[#allocation4 + $0xfc] sm:$0xff] %v181_v56   ;;  %186 = vst [vmem:[#allocation4 + $0x104] sm:$0xf] %v185_v57  ;;  %v189_v59 = vld [vmem:[%s18596_s7 + $0x114] sm:$0xf]  ;;  %v197_v63 = vld [vmem:[%s18596_s7 + $0x11c] sm:$0xff]  }
  0x26   :  { %188 = vst [vmem:[#allocation4 + $0x108] sm:$0xf] %v187_v58  ;;  %v191_v60 = vld [vmem:[%s18596_s7 + $0x108] sm:$0xf]  ;;  %v193_v61 = vld [vmem:[%s18596_s7 + $0x118] sm:$0xf] }
  0x27   :  { %190 = vst [vmem:[#allocation4 + $0x10c] sm:$0xf] %v189_v59  ;;  %192 = vst [vmem:[#allocation4 + $0x110] sm:$0xf] %v191_v60  ;;  %v195_v62 = vld [vmem:[%s18596_s7 + $0x10c] sm:$0xf] }
  0x28   :  { %194 = vst [vmem:[#allocation4 + $0x114] sm:$0xf] %v193_v61  ;;  %v201_v0 = vld [vmem:[%s18596_s7 + $0x130] sm:$0xf]  ;;  %196 = vst [vmem:[#allocation4 + $0x118] sm:$0xf] %v195_v62 }
  0x29   :  { %198 = vst [vmem:[#allocation4 + $0x11c] sm:$0xff] %v197_v63   ;;  %202 = vst [vmem:[#allocation4 + $0x124] sm:$0xf] %v201_v0  ;;  %v203_v1 = vld [vmem:[%s18596_s7 + $0x124] sm:$0xf]  ;;  %v213_v6 = vld [vmem:[%s18596_s7 + $0x13c] sm:$0xff]  }
  0x2a   :  { %v205_v2 = vld [vmem:[%s18596_s7 + $0x134] sm:$0xf]  ;;  %v207_v3 = vld [vmem:[%s18596_s7 + $0x128] sm:$0xf]  ;;  %204 = vst [vmem:[#allocation4 + $0x128] sm:$0xf] %v203_v1 }
  0x2b   :  { %206 = vst [vmem:[#allocation4 + $0x12c] sm:$0xf] %v205_v2  ;;  %208 = vst [vmem:[#allocation4 + $0x130] sm:$0xf] %v207_v3  ;;  %v209_v4 = vld [vmem:[%s18596_s7 + $0x138] sm:$0xf] }
  0x2c   :  { %v211_v5 = vld [vmem:[%s18596_s7 + $0x12c] sm:$0xf]  ;;  %210 = vst [vmem:[#allocation4 + $0x134] sm:$0xf] %v209_v4  ;;  %214 = vst [vmem:[#allocation4 + $0x13c] sm:$0xff] %v213_v6   ;;  %v229_v13 = vld [vmem:[%s18596_s7 + $0x15c] sm:$0xff]  }
  0x2d   :  { %212 = vst [vmem:[#allocation4 + $0x138] sm:$0xf] %v211_v5  ;;  %v217_v7 = vld [vmem:[%s18596_s7 + $0x150] sm:$0xf]  ;;  %v219_v8 = vld [vmem:[%s18596_s7 + $0x144] sm:$0xf] }
  0x2e   :  { %v221_v9 = vld [vmem:[%s18596_s7 + $0x154] sm:$0xf]  ;;  %218 = vst [vmem:[#allocation4 + $0x144] sm:$0xf] %v217_v7  ;;  %220 = vst [vmem:[#allocation4 + $0x148] sm:$0xf] %v219_v8 }
  0x2f   :  { %222 = vst [vmem:[#allocation4 + $0x14c] sm:$0xf] %v221_v9  ;;  %v223_v10 = vld [vmem:[%s18596_s7 + $0x148] sm:$0xf]  ;;  %v225_v11 = vld [vmem:[%s18596_s7 + $0x158] sm:$0xf] }
  0x30   :  { %v227_v12 = vld [vmem:[%s18596_s7 + $0x14c] sm:$0xf]  ;;  %224 = vst [vmem:[#allocation4 + $0x150] sm:$0xf] %v223_v10  ;;  %226 = vst [vmem:[#allocation4 + $0x154] sm:$0xf] %v225_v11 }
  0x31   :  { %228 = vst [vmem:[#allocation4 + $0x158] sm:$0xf] %v227_v12  ;;  %v233_v14 = vld [vmem:[%s18596_s7 + $0x170] sm:$0xf]  ;;  %v235_v15 = vld [vmem:[%s18596_s7 + $0x164] sm:$0xf] }
  0x32   :  { %230 = vst [vmem:[#allocation4 + $0x15c] sm:$0xff] %v229_v13   ;;  %234 = vst [vmem:[#allocation4 + $0x164] sm:$0xf] %v233_v14  ;;  %v237_v16 = vld [vmem:[%s18596_s7 + $0x174] sm:$0xf]  ;;  %v245_v20 = vld [vmem:[%s18596_s7 + $0x17c] sm:$0xff]  }
  0x33   :  { %236 = vst [vmem:[#allocation4 + $0x168] sm:$0xf] %v235_v15  ;;  %v239_v17 = vld [vmem:[%s18596_s7 + $0x168] sm:$0xf]  ;;  %v241_v18 = vld [vmem:[%s18596_s7 + $0x178] sm:$0xf] }
  0x34   :  { %238 = vst [vmem:[#allocation4 + $0x16c] sm:$0xf] %v237_v16  ;;  %240 = vst [vmem:[#allocation4 + $0x170] sm:$0xf] %v239_v17  ;;  %v243_v19 = vld [vmem:[%s18596_s7 + $0x16c] sm:$0xf] }
  0x35   :  { %242 = vst [vmem:[#allocation4 + $0x174] sm:$0xf] %v241_v18  ;;  %v249_v21 = vld [vmem:[%s18596_s7 + $0x190] sm:$0xf]  ;;  %244 = vst [vmem:[#allocation4 + $0x178] sm:$0xf] %v243_v19 }
  0x36   :  { %246 = vst [vmem:[#allocation4 + $0x17c] sm:$0xff] %v245_v20   ;;  %250 = vst [vmem:[#allocation4 + $0x184] sm:$0xf] %v249_v21  ;;  %v251_v22 = vld [vmem:[%s18596_s7 + $0x184] sm:$0xf]  ;;  %v261_v27 = vld [vmem:[%s18596_s7 + $0x19c] sm:$0xff]  }
  0x37   :  { %v253_v23 = vld [vmem:[%s18596_s7 + $0x194] sm:$0xf]  ;;  %v255_v24 = vld [vmem:[%s18596_s7 + $0x188] sm:$0xf]  ;;  %252 = vst [vmem:[#allocation4 + $0x188] sm:$0xf] %v251_v22 }
  0x38   :  { %254 = vst [vmem:[#allocation4 + $0x18c] sm:$0xf] %v253_v23  ;;  %256 = vst [vmem:[#allocation4 + $0x190] sm:$0xf] %v255_v24  ;;  %v257_v25 = vld [vmem:[%s18596_s7 + $0x198] sm:$0xf] }
  0x39   :  { %v259_v26 = vld [vmem:[%s18596_s7 + $0x18c] sm:$0xf]  ;;  %258 = vst [vmem:[#allocation4 + $0x194] sm:$0xf] %v257_v25  ;;  %262 = vst [vmem:[#allocation4 + $0x19c] sm:$0xff] %v261_v27   ;;  %v277_v34 = vld [vmem:[%s18596_s7 + $0x1bc] sm:$0xff]  }
  0x3a   :  { %260 = vst [vmem:[#allocation4 + $0x198] sm:$0xf] %v259_v26  ;;  %v265_v28 = vld [vmem:[%s18596_s7 + $0x1b0] sm:$0xf]  ;;  %v267_v29 = vld [vmem:[%s18596_s7 + $0x1a4] sm:$0xf] }
  0x3b   :  { %v269_v30 = vld [vmem:[%s18596_s7 + $0x1b4] sm:$0xf]  ;;  %266 = vst [vmem:[#allocation4 + $0x1a4] sm:$0xf] %v265_v28  ;;  %268 = vst [vmem:[#allocation4 + $0x1a8] sm:$0xf] %v267_v29 }
  0x3c   :  { %270 = vst [vmem:[#allocation4 + $0x1ac] sm:$0xf] %v269_v30  ;;  %v271_v31 = vld [vmem:[%s18596_s7 + $0x1a8] sm:$0xf]  ;;  %v273_v32 = vld [vmem:[%s18596_s7 + $0x1b8] sm:$0xf] }
  0x3d   :  { %v275_v33 = vld [vmem:[%s18596_s7 + $0x1ac] sm:$0xf]  ;;  %272 = vst [vmem:[#allocation4 + $0x1b0] sm:$0xf] %v271_v31  ;;  %274 = vst [vmem:[#allocation4 + $0x1b4] sm:$0xf] %v273_v32 }
  0x3e   :  { %276 = vst [vmem:[#allocation4 + $0x1b8] sm:$0xf] %v275_v33  ;;  %v281_v35 = vld [vmem:[%s18596_s7 + $0x1d0] sm:$0xf]  ;;  %v283_v36 = vld [vmem:[%s18596_s7 + $0x1c4] sm:$0xf] }
  0x3f   :  { %278 = vst [vmem:[#allocation4 + $0x1bc] sm:$0xff] %v277_v34   ;;  %282 = vst [vmem:[#allocation4 + $0x1c4] sm:$0xf] %v281_v35  ;;  %v285_v37 = vld [vmem:[%s18596_s7 + $0x1d4] sm:$0xf]  ;;  %v293_v41 = vld [vmem:[%s18596_s7 + $0x1dc] sm:$0xff]  }
  0x40   :  { %284 = vst [vmem:[#allocation4 + $0x1c8] sm:$0xf] %v283_v36  ;;  %v287_v38 = vld [vmem:[%s18596_s7 + $0x1c8] sm:$0xf]  ;;  %v289_v39 = vld [vmem:[%s18596_s7 + $0x1d8] sm:$0xf] }
  0x41   :  { %286 = vst [vmem:[#allocation4 + $0x1cc] sm:$0xf] %v285_v37  ;;  %288 = vst [vmem:[#allocation4 + $0x1d0] sm:$0xf] %v287_v38  ;;  %v291_v40 = vld [vmem:[%s18596_s7 + $0x1cc] sm:$0xf] }
  0x42   :  { %290 = vst [vmem:[#allocation4 + $0x1d4] sm:$0xf] %v289_v39  ;;  %v297_v42 = vld [vmem:[%s18596_s7 + $0x1f0] sm:$0xf]  ;;  %292 = vst [vmem:[#allocation4 + $0x1d8] sm:$0xf] %v291_v40 }
  0x43   :  { %294 = vst [vmem:[#allocation4 + $0x1dc] sm:$0xff] %v293_v41   ;;  %298 = vst [vmem:[#allocation4 + $0x1e4] sm:$0xf] %v297_v42  ;;  %v299_v43 = vld [vmem:[%s18596_s7 + $0x1e4] sm:$0xf] }
  0x44   :  { %v301_v44 = vld [vmem:[%s18596_s7 + $0x1f4] sm:$0xf]  ;;  %v303_v45 = vld [vmem:[%s18596_s7 + $0x1e8] sm:$0xf]  ;;  %300 = vst [vmem:[#allocation4 + $0x1e8] sm:$0xf] %v299_v43 }
  0x45   :  { %302 = vst [vmem:[#allocation4 + $0x1ec] sm:$0xf] %v301_v44  ;;  %304 = vst [vmem:[#allocation4 + $0x1f0] sm:$0xf] %v303_v45  ;;  %v305_v46 = vld [vmem:[%s18596_s7 + $0x1f8] sm:$0xf] }
  0x46   :  { %v307_v47 = vld [vmem:[%s18596_s7 + $0x1ec] sm:$0xf]  ;;  %v309_v48 = vld [vmem:[%s18596_s7 + $0x1fc] sm:$0xf]  ;;  %306 = vst [vmem:[#allocation4 + $0x1f4] sm:$0xf] %v305_v46 }
  0x47   :  { %308 = vst [vmem:[#allocation4 + $0x1f8] sm:$0xf] %v307_v47  ;;  %310 = vst [vmem:[#allocation4 + $0x1fc] sm:$0xf] %v309_v48 }
  0x48   :  { %597 = vsyncadd [#allocation5], 8192  ;;  %v10467_v49 = vld [vmem:[%s18596_s7 + $0x200] sm:$0xf]  ;;  %v10468_v50 = vld [vmem:[%s18596_s7 + $0x210] sm:$0xf] }
  0x49   :  { %619 = vst [vmem:[#allocation4 + $0x200] sm:$0xf] %v10467_v49  ;;  %621 = vst [vmem:[#allocation4 + $0x204] sm:$0xf] %v10468_v50  ;;  %v10469_v51 = vld [vmem:[%s18596_s7 + $0x204] sm:$0xf] }
  0x4a   :  { %v10470_v52 = vld [vmem:[%s18596_s7 + $0x214] sm:$0xf]  ;;  %v10471_v53 = vld [vmem:[%s18596_s7 + $0x208] sm:$0xf]  ;;  %623 = vst [vmem:[#allocation4 + $0x208] sm:$0xf] %v10469_v51 }
  0x4b   :  { %625 = vst [vmem:[#allocation4 + $0x20c] sm:$0xf] %v10470_v52  ;;  %627 = vst [vmem:[#allocation4 + $0x210] sm:$0xf] %v10471_v53  ;;  %v10472_v54 = vld [vmem:[%s18596_s7 + $0x218] sm:$0xf] }
  0x4c   :  { %v10473_v55 = vld [vmem:[%s18596_s7 + $0x20c] sm:$0xf]  ;;  %v10474_v56 = vld [vmem:[%s18596_s7 + $0x21c] sm:$0xff]   ;;  %629 = vst [vmem:[#allocation4 + $0x214] sm:$0xf] %v10472_v54 }
  0x4d   :  { %631 = vst [vmem:[#allocation4 + $0x218] sm:$0xf] %v10473_v55  ;;  %633 = vst [vmem:[#allocation4 + $0x21c] sm:$0xff] %v10474_v56   ;;  %v10476_v57 = vld [vmem:[%s18596_s7 + $0x230] sm:$0xf]  ;;  %v10482_v63 = vld [vmem:[%s18596_s7 + $0x23c] sm:$0xff]  }
  0x4e   :  { %v10477_v58 = vld [vmem:[%s18596_s7 + $0x224] sm:$0xf]  ;;  %v10478_v59 = vld [vmem:[%s18596_s7 + $0x234] sm:$0xf]  ;;  %637 = vst [vmem:[#allocation4 + $0x224] sm:$0xf] %v10476_v57 }
  0x4f   :  { %639 = vst [vmem:[#allocation4 + $0x228] sm:$0xf] %v10477_v58  ;;  %641 = vst [vmem:[#allocation4 + $0x22c] sm:$0xf] %v10478_v59  ;;  %v10479_v60 = vld [vmem:[%s18596_s7 + $0x228] sm:$0xf] }
  0x50   :  { %v10480_v61 = vld [vmem:[%s18596_s7 + $0x238] sm:$0xf]  ;;  %v10481_v62 = vld [vmem:[%s18596_s7 + $0x22c] sm:$0xf]  ;;  %643 = vst [vmem:[#allocation4 + $0x230] sm:$0xf] %v10479_v60 }
  0x51   :  { %645 = vst [vmem:[#allocation4 + $0x234] sm:$0xf] %v10480_v61  ;;  %647 = vst [vmem:[#allocation4 + $0x238] sm:$0xf] %v10481_v62  ;;  %v10484_v0 = vld [vmem:[%s18596_s7 + $0x250] sm:$0xf] }
  0x52   :  { %v10485_v1 = vld [vmem:[%s18596_s7 + $0x244] sm:$0xf]  ;;  %649 = vst [vmem:[#allocation4 + $0x23c] sm:$0xff] %v10482_v63   ;;  %653 = vst [vmem:[#allocation4 + $0x244] sm:$0xf] %v10484_v0  ;;  %v10490_v6 = vld [vmem:[%s18596_s7 + $0x25c] sm:$0xff]  }
  0x53   :  { %655 = vst [vmem:[#allocation4 + $0x248] sm:$0xf] %v10485_v1  ;;  %v10486_v2 = vld [vmem:[%s18596_s7 + $0x254] sm:$0xf]  ;;  %v10487_v3 = vld [vmem:[%s18596_s7 + $0x248] sm:$0xf] }
  0x54   :  { %v10488_v4 = vld [vmem:[%s18596_s7 + $0x258] sm:$0xf]  ;;  %657 = vst [vmem:[#allocation4 + $0x24c] sm:$0xf] %v10486_v2  ;;  %659 = vst [vmem:[#allocation4 + $0x250] sm:$0xf] %v10487_v3 }
  0x55   :  { %661 = vst [vmem:[#allocation4 + $0x254] sm:$0xf] %v10488_v4  ;;  %v10489_v5 = vld [vmem:[%s18596_s7 + $0x24c] sm:$0xf]  ;;  %v10492_v7 = vld [vmem:[%s18596_s7 + $0x270] sm:$0xf] }
  0x56   :  { %663 = vst [vmem:[#allocation4 + $0x258] sm:$0xf] %v10489_v5  ;;  %665 = vst [vmem:[#allocation4 + $0x25c] sm:$0xff] %v10490_v6   ;;  %v10493_v8 = vld [vmem:[%s18596_s7 + $0x264] sm:$0xf]  ;;  %v10498_v13 = vld [vmem:[%s18596_s7 + $0x27c] sm:$0xff]  }
  0x57   :  { %669 = vst [vmem:[#allocation4 + $0x264] sm:$0xf] %v10492_v7  ;;  %v10494_v9 = vld [vmem:[%s18596_s7 + $0x274] sm:$0xf]  ;;  %v10495_v10 = vld [vmem:[%s18596_s7 + $0x268] sm:$0xf] }
  0x58   :  { %671 = vst [vmem:[#allocation4 + $0x268] sm:$0xf] %v10493_v8  ;;  %673 = vst [vmem:[#allocation4 + $0x26c] sm:$0xf] %v10494_v9  ;;  %v10496_v11 = vld [vmem:[%s18596_s7 + $0x278] sm:$0xf] }
  0x59   :  { %675 = vst [vmem:[#allocation4 + $0x270] sm:$0xf] %v10495_v10  ;;  %v10497_v12 = vld [vmem:[%s18596_s7 + $0x26c] sm:$0xf]  ;;  %677 = vst [vmem:[#allocation4 + $0x274] sm:$0xf] %v10496_v11 }
  0x5a   :  { %679 = vst [vmem:[#allocation4 + $0x278] sm:$0xf] %v10497_v12  ;;  %681 = vst [vmem:[#allocation4 + $0x27c] sm:$0xff] %v10498_v13   ;;  %v10500_v14 = vld [vmem:[%s18596_s7 + $0x290] sm:$0xf]  ;;  %v10506_v20 = vld [vmem:[%s18596_s7 + $0x29c] sm:$0xff]  }
  0x5b   :  { %v10501_v15 = vld [vmem:[%s18596_s7 + $0x284] sm:$0xf]  ;;  %v10502_v16 = vld [vmem:[%s18596_s7 + $0x294] sm:$0xf]  ;;  %685 = vst [vmem:[#allocation4 + $0x284] sm:$0xf] %v10500_v14 }
  0x5c   :  { %687 = vst [vmem:[#allocation4 + $0x288] sm:$0xf] %v10501_v15  ;;  %689 = vst [vmem:[#allocation4 + $0x28c] sm:$0xf] %v10502_v16  ;;  %v10503_v17 = vld [vmem:[%s18596_s7 + $0x288] sm:$0xf] }
  0x5d   :  { %v10504_v18 = vld [vmem:[%s18596_s7 + $0x298] sm:$0xf]  ;;  %v10505_v19 = vld [vmem:[%s18596_s7 + $0x28c] sm:$0xf]  ;;  %691 = vst [vmem:[#allocation4 + $0x290] sm:$0xf] %v10503_v17 }
  0x5e   :  { %693 = vst [vmem:[#allocation4 + $0x294] sm:$0xf] %v10504_v18  ;;  %695 = vst [vmem:[#allocation4 + $0x298] sm:$0xf] %v10505_v19  ;;  %v10508_v21 = vld [vmem:[%s18596_s7 + $0x2b0] sm:$0xf] }
  0x5f   :  { %v10509_v22 = vld [vmem:[%s18596_s7 + $0x2a4] sm:$0xf]  ;;  %697 = vst [vmem:[#allocation4 + $0x29c] sm:$0xff] %v10506_v20   ;;  %701 = vst [vmem:[#allocation4 + $0x2a4] sm:$0xf] %v10508_v21  ;;  %v10514_v27 = vld [vmem:[%s18596_s7 + $0x2bc] sm:$0xff]  }
  0x60   :  { %703 = vst [vmem:[#allocation4 + $0x2a8] sm:$0xf] %v10509_v22  ;;  %v10510_v23 = vld [vmem:[%s18596_s7 + $0x2b4] sm:$0xf]  ;;  %v10511_v24 = vld [vmem:[%s18596_s7 + $0x2a8] sm:$0xf] }
  0x61   :  { %v10512_v25 = vld [vmem:[%s18596_s7 + $0x2b8] sm:$0xf]  ;;  %705 = vst [vmem:[#allocation4 + $0x2ac] sm:$0xf] %v10510_v23  ;;  %707 = vst [vmem:[#allocation4 + $0x2b0] sm:$0xf] %v10511_v24 }
  0x62   :  { %709 = vst [vmem:[#allocation4 + $0x2b4] sm:$0xf] %v10512_v25  ;;  %v10513_v26 = vld [vmem:[%s18596_s7 + $0x2ac] sm:$0xf]  ;;  %v10516_v28 = vld [vmem:[%s18596_s7 + $0x2d0] sm:$0xf] }
  0x63   :  { %711 = vst [vmem:[#allocation4 + $0x2b8] sm:$0xf] %v10513_v26  ;;  %713 = vst [vmem:[#allocation4 + $0x2bc] sm:$0xff] %v10514_v27   ;;  %v10517_v29 = vld [vmem:[%s18596_s7 + $0x2c4] sm:$0xf]  ;;  %v10522_v34 = vld [vmem:[%s18596_s7 + $0x2dc] sm:$0xff]  }
  0x64   :  { %717 = vst [vmem:[#allocation4 + $0x2c4] sm:$0xf] %v10516_v28  ;;  %v10518_v30 = vld [vmem:[%s18596_s7 + $0x2d4] sm:$0xf]  ;;  %v10519_v31 = vld [vmem:[%s18596_s7 + $0x2c8] sm:$0xf] }
  0x65   :  { %719 = vst [vmem:[#allocation4 + $0x2c8] sm:$0xf] %v10517_v29  ;;  %721 = vst [vmem:[#allocation4 + $0x2cc] sm:$0xf] %v10518_v30  ;;  %v10520_v32 = vld [vmem:[%s18596_s7 + $0x2d8] sm:$0xf] }
  0x66   :  { %723 = vst [vmem:[#allocation4 + $0x2d0] sm:$0xf] %v10519_v31  ;;  %v10521_v33 = vld [vmem:[%s18596_s7 + $0x2cc] sm:$0xf]  ;;  %725 = vst [vmem:[#allocation4 + $0x2d4] sm:$0xf] %v10520_v32 }
  0x67   :  { %727 = vst [vmem:[#allocation4 + $0x2d8] sm:$0xf] %v10521_v33  ;;  %729 = vst [vmem:[#allocation4 + $0x2dc] sm:$0xff] %v10522_v34   ;;  %v10524_v35 = vld [vmem:[%s18596_s7 + $0x2f0] sm:$0xf]  ;;  %v10530_v41 = vld [vmem:[%s18596_s7 + $0x2fc] sm:$0xff]  }
  0x68   :  { %v10525_v36 = vld [vmem:[%s18596_s7 + $0x2e4] sm:$0xf]  ;;  %v10526_v37 = vld [vmem:[%s18596_s7 + $0x2f4] sm:$0xf]  ;;  %733 = vst [vmem:[#allocation4 + $0x2e4] sm:$0xf] %v10524_v35 }
  0x69   :  { %735 = vst [vmem:[#allocation4 + $0x2e8] sm:$0xf] %v10525_v36  ;;  %737 = vst [vmem:[#allocation4 + $0x2ec] sm:$0xf] %v10526_v37  ;;  %v10527_v38 = vld [vmem:[%s18596_s7 + $0x2e8] sm:$0xf] }
  0x6a   :  { %v10528_v39 = vld [vmem:[%s18596_s7 + $0x2f8] sm:$0xf]  ;;  %v10529_v40 = vld [vmem:[%s18596_s7 + $0x2ec] sm:$0xf]  ;;  %739 = vst [vmem:[#allocation4 + $0x2f0] sm:$0xf] %v10527_v38 }
  0x6b   :  { %741 = vst [vmem:[#allocation4 + $0x2f4] sm:$0xf] %v10528_v39  ;;  %743 = vst [vmem:[#allocation4 + $0x2f8] sm:$0xf] %v10529_v40  ;;  %v10532_v42 = vld [vmem:[%s18596_s7 + $0x310] sm:$0xf] }
  0x6c   :  { %v10533_v43 = vld [vmem:[%s18596_s7 + $0x304] sm:$0xf]  ;;  %745 = vst [vmem:[#allocation4 + $0x2fc] sm:$0xff] %v10530_v41   ;;  %749 = vst [vmem:[#allocation4 + $0x304] sm:$0xf] %v10532_v42  ;;  %v10538_v48 = vld [vmem:[%s18596_s7 + $0x31c] sm:$0xff]  }
  0x6d   :  { %751 = vst [vmem:[#allocation4 + $0x308] sm:$0xf] %v10533_v43  ;;  %v10534_v44 = vld [vmem:[%s18596_s7 + $0x314] sm:$0xf]  ;;  %v10535_v45 = vld [vmem:[%s18596_s7 + $0x308] sm:$0xf] }
  0x6e   :  { %v10536_v46 = vld [vmem:[%s18596_s7 + $0x318] sm:$0xf]  ;;  %753 = vst [vmem:[#allocation4 + $0x30c] sm:$0xf] %v10534_v44  ;;  %755 = vst [vmem:[#allocation4 + $0x310] sm:$0xf] %v10535_v45 }
  0x6f   :  { %757 = vst [vmem:[#allocation4 + $0x314] sm:$0xf] %v10536_v46  ;;  %v10537_v47 = vld [vmem:[%s18596_s7 + $0x30c] sm:$0xf]  ;;  %v10540_v49 = vld [vmem:[%s18596_s7 + $0x330] sm:$0xf] }
  0x70   :  { %759 = vst [vmem:[#allocation4 + $0x318] sm:$0xf] %v10537_v47  ;;  %761 = vst [vmem:[#allocation4 + $0x31c] sm:$0xff] %v10538_v48   ;;  %v10541_v50 = vld [vmem:[%s18596_s7 + $0x324] sm:$0xf]  ;;  %v10546_v55 = vld [vmem:[%s18596_s7 + $0x33c] sm:$0xff]  }
  0x71   :  { %765 = vst [vmem:[#allocation4 + $0x324] sm:$0xf] %v10540_v49  ;;  %v10542_v51 = vld [vmem:[%s18596_s7 + $0x334] sm:$0xf]  ;;  %v10543_v52 = vld [vmem:[%s18596_s7 + $0x328] sm:$0xf] }
  0x72   :  { %767 = vst [vmem:[#allocation4 + $0x328] sm:$0xf] %v10541_v50  ;;  %769 = vst [vmem:[#allocation4 + $0x32c] sm:$0xf] %v10542_v51  ;;  %v10544_v53 = vld [vmem:[%s18596_s7 + $0x338] sm:$0xf] }
  0x73   :  { %771 = vst [vmem:[#allocation4 + $0x330] sm:$0xf] %v10543_v52  ;;  %v10545_v54 = vld [vmem:[%s18596_s7 + $0x32c] sm:$0xf]  ;;  %773 = vst [vmem:[#allocation4 + $0x334] sm:$0xf] %v10544_v53 }
  0x74   :  { %775 = vst [vmem:[#allocation4 + $0x338] sm:$0xf] %v10545_v54  ;;  %777 = vst [vmem:[#allocation4 + $0x33c] sm:$0xff] %v10546_v55   ;;  %v10548_v56 = vld [vmem:[%s18596_s7 + $0x350] sm:$0xf]  ;;  %v10554_v62 = vld [vmem:[%s18596_s7 + $0x35c] sm:$0xff]  }
  0x75   :  { %v10549_v57 = vld [vmem:[%s18596_s7 + $0x344] sm:$0xf]  ;;  %v10550_v58 = vld [vmem:[%s18596_s7 + $0x354] sm:$0xf]  ;;  %781 = vst [vmem:[#allocation4 + $0x344] sm:$0xf] %v10548_v56 }
  0x76   :  { %783 = vst [vmem:[#allocation4 + $0x348] sm:$0xf] %v10549_v57  ;;  %785 = vst [vmem:[#allocation4 + $0x34c] sm:$0xf] %v10550_v58  ;;  %v10551_v59 = vld [vmem:[%s18596_s7 + $0x348] sm:$0xf] }
  0x77   :  { %v10552_v60 = vld [vmem:[%s18596_s7 + $0x358] sm:$0xf]  ;;  %v10553_v61 = vld [vmem:[%s18596_s7 + $0x34c] sm:$0xf]  ;;  %787 = vst [vmem:[#allocation4 + $0x350] sm:$0xf] %v10551_v59 }
  0x78   :  { %789 = vst [vmem:[#allocation4 + $0x354] sm:$0xf] %v10552_v60  ;;  %791 = vst [vmem:[#allocation4 + $0x358] sm:$0xf] %v10553_v61  ;;  %v10556_v63 = vld [vmem:[%s18596_s7 + $0x370] sm:$0xf] }
  0x79   :  { %v10557_v0 = vld [vmem:[%s18596_s7 + $0x364] sm:$0xf]  ;;  %793 = vst [vmem:[#allocation4 + $0x35c] sm:$0xff] %v10554_v62   ;;  %797 = vst [vmem:[#allocation4 + $0x364] sm:$0xf] %v10556_v63  ;;  %v10562_v5 = vld [vmem:[%s18596_s7 + $0x37c] sm:$0xff]  }
  0x7a   :  { %799 = vst [vmem:[#allocation4 + $0x368] sm:$0xf] %v10557_v0  ;;  %v10558_v1 = vld [vmem:[%s18596_s7 + $0x374] sm:$0xf]  ;;  %v10559_v2 = vld [vmem:[%s18596_s7 + $0x368] sm:$0xf] }
  0x7b   :  { %v10560_v3 = vld [vmem:[%s18596_s7 + $0x378] sm:$0xf]  ;;  %801 = vst [vmem:[#allocation4 + $0x36c] sm:$0xf] %v10558_v1  ;;  %803 = vst [vmem:[#allocation4 + $0x370] sm:$0xf] %v10559_v2 }
  0x7c   :  { %805 = vst [vmem:[#allocation4 + $0x374] sm:$0xf] %v10560_v3  ;;  %v10561_v4 = vld [vmem:[%s18596_s7 + $0x36c] sm:$0xf]  ;;  %v10564_v6 = vld [vmem:[%s18596_s7 + $0x390] sm:$0xf] }
  0x7d   :  { %807 = vst [vmem:[#allocation4 + $0x378] sm:$0xf] %v10561_v4  ;;  %809 = vst [vmem:[#allocation4 + $0x37c] sm:$0xff] %v10562_v5   ;;  %v10565_v7 = vld [vmem:[%s18596_s7 + $0x384] sm:$0xf]  ;;  %v10570_v12 = vld [vmem:[%s18596_s7 + $0x39c] sm:$0xff]  }
  0x7e   :  { %813 = vst [vmem:[#allocation4 + $0x384] sm:$0xf] %v10564_v6  ;;  %v10566_v8 = vld [vmem:[%s18596_s7 + $0x394] sm:$0xf]  ;;  %v10567_v9 = vld [vmem:[%s18596_s7 + $0x388] sm:$0xf] }
  0x7f   :  { %815 = vst [vmem:[#allocation4 + $0x388] sm:$0xf] %v10565_v7  ;;  %817 = vst [vmem:[#allocation4 + $0x38c] sm:$0xf] %v10566_v8  ;;  %v10568_v10 = vld [vmem:[%s18596_s7 + $0x398] sm:$0xf] }
  0x80   :  { %819 = vst [vmem:[#allocation4 + $0x390] sm:$0xf] %v10567_v9  ;;  %v10569_v11 = vld [vmem:[%s18596_s7 + $0x38c] sm:$0xf]  ;;  %821 = vst [vmem:[#allocation4 + $0x394] sm:$0xf] %v10568_v10 }
  0x81   :  { %823 = vst [vmem:[#allocation4 + $0x398] sm:$0xf] %v10569_v11  ;;  %825 = vst [vmem:[#allocation4 + $0x39c] sm:$0xff] %v10570_v12   ;;  %v10572_v13 = vld [vmem:[%s18596_s7 + $0x3b0] sm:$0xf]  ;;  %v10578_v19 = vld [vmem:[%s18596_s7 + $0x3bc] sm:$0xff]  }
  0x82   :  { %v10573_v14 = vld [vmem:[%s18596_s7 + $0x3a4] sm:$0xf]  ;;  %v10574_v15 = vld [vmem:[%s18596_s7 + $0x3b4] sm:$0xf]  ;;  %829 = vst [vmem:[#allocation4 + $0x3a4] sm:$0xf] %v10572_v13 }
  0x83   :  { %831 = vst [vmem:[#allocation4 + $0x3a8] sm:$0xf] %v10573_v14  ;;  %833 = vst [vmem:[#allocation4 + $0x3ac] sm:$0xf] %v10574_v15  ;;  %v10575_v16 = vld [vmem:[%s18596_s7 + $0x3a8] sm:$0xf] }
  0x84   :  { %v10576_v17 = vld [vmem:[%s18596_s7 + $0x3b8] sm:$0xf]  ;;  %v10577_v18 = vld [vmem:[%s18596_s7 + $0x3ac] sm:$0xf]  ;;  %835 = vst [vmem:[#allocation4 + $0x3b0] sm:$0xf] %v10575_v16 }
  0x85   :  { %837 = vst [vmem:[#allocation4 + $0x3b4] sm:$0xf] %v10576_v17  ;;  %839 = vst [vmem:[#allocation4 + $0x3b8] sm:$0xf] %v10577_v18  ;;  %v10580_v20 = vld [vmem:[%s18596_s7 + $0x3d0] sm:$0xf] }
  0x86   :  { %v10581_v21 = vld [vmem:[%s18596_s7 + $0x3c4] sm:$0xf]  ;;  %841 = vst [vmem:[#allocation4 + $0x3bc] sm:$0xff] %v10578_v19   ;;  %845 = vst [vmem:[#allocation4 + $0x3c4] sm:$0xf] %v10580_v20  ;;  %v10586_v26 = vld [vmem:[%s18596_s7 + $0x3dc] sm:$0xff]  }
  0x87   :  { %847 = vst [vmem:[#allocation4 + $0x3c8] sm:$0xf] %v10581_v21  ;;  %v10582_v22 = vld [vmem:[%s18596_s7 + $0x3d4] sm:$0xf]  ;;  %v10583_v23 = vld [vmem:[%s18596_s7 + $0x3c8] sm:$0xf] }
  0x88   :  { %v10584_v24 = vld [vmem:[%s18596_s7 + $0x3d8] sm:$0xf]  ;;  %849 = vst [vmem:[#allocation4 + $0x3cc] sm:$0xf] %v10582_v22  ;;  %851 = vst [vmem:[#allocation4 + $0x3d0] sm:$0xf] %v10583_v23 }
  0x89   :  { %853 = vst [vmem:[#allocation4 + $0x3d4] sm:$0xf] %v10584_v24  ;;  %v10585_v25 = vld [vmem:[%s18596_s7 + $0x3cc] sm:$0xf]  ;;  %v10588_v27 = vld [vmem:[%s18596_s7 + $0x3f0] sm:$0xf] }
  0x8a   :  { %855 = vst [vmem:[#allocation4 + $0x3d8] sm:$0xf] %v10585_v25  ;;  %857 = vst [vmem:[#allocation4 + $0x3dc] sm:$0xff] %v10586_v26   ;;  %v10589_v28 = vld [vmem:[%s18596_s7 + $0x3e4] sm:$0xf] }
  0x8b   :  { %861 = vst [vmem:[#allocation4 + $0x3e4] sm:$0xf] %v10588_v27  ;;  %v10590_v29 = vld [vmem:[%s18596_s7 + $0x3f4] sm:$0xf]  ;;  %v10591_v30 = vld [vmem:[%s18596_s7 + $0x3e8] sm:$0xf] }
  0x8c   :  { %863 = vst [vmem:[#allocation4 + $0x3e8] sm:$0xf] %v10589_v28  ;;  %865 = vst [vmem:[#allocation4 + $0x3ec] sm:$0xf] %v10590_v29  ;;  %v10592_v31 = vld [vmem:[%s18596_s7 + $0x3f8] sm:$0xf] }
  0x8d   :  { %867 = vst [vmem:[#allocation4 + $0x3f0] sm:$0xf] %v10591_v30  ;;  %v10593_v32 = vld [vmem:[%s18596_s7 + $0x3ec] sm:$0xf]  ;;  %v10594_v33 = vld [vmem:[%s18596_s7 + $0x3fc] sm:$0xf] }
  0x8e   :  { %869 = vst [vmem:[#allocation4 + $0x3f4] sm:$0xf] %v10592_v31  ;;  %871 = vst [vmem:[#allocation4 + $0x3f8] sm:$0xf] %v10593_v32 }
  0x8f   :  { %873 = vst [vmem:[#allocation4 + $0x3fc] sm:$0xf] %v10594_v33 }
  0x90   :  { %1160 = vsyncadd [#allocation5 + $0x1], 8192  ;;  %v10723_v34 = vld [vmem:[%s18596_s7 + $0x400] sm:$0xf]  ;;  %v10724_v35 = vld [vmem:[%s18596_s7 + $0x410] sm:$0xf] }
  0x91   :  { %1182 = vst [vmem:[#allocation4 + $0x400] sm:$0xf] %v10723_v34  ;;  %1184 = vst [vmem:[#allocation4 + $0x404] sm:$0xf] %v10724_v35  ;;  %v10725_v36 = vld [vmem:[%s18596_s7 + $0x404] sm:$0xf] }
  0x92   :  { %v10726_v37 = vld [vmem:[%s18596_s7 + $0x414] sm:$0xf]  ;;  %v10727_v38 = vld [vmem:[%s18596_s7 + $0x408] sm:$0xf]  ;;  %1186 = vst [vmem:[#allocation4 + $0x408] sm:$0xf] %v10725_v36 }
  0x93   :  { %1188 = vst [vmem:[#allocation4 + $0x40c] sm:$0xf] %v10726_v37  ;;  %1190 = vst [vmem:[#allocation4 + $0x410] sm:$0xf] %v10727_v38  ;;  %v10728_v39 = vld [vmem:[%s18596_s7 + $0x418] sm:$0xf] }
  0x94   :  { %v10729_v40 = vld [vmem:[%s18596_s7 + $0x40c] sm:$0xf]  ;;  %v10730_v41 = vld [vmem:[%s18596_s7 + $0x41c] sm:$0xff]   ;;  %1192 = vst [vmem:[#allocation4 + $0x414] sm:$0xf] %v10728_v39 }
  0x95   :  { %1194 = vst [vmem:[#allocation4 + $0x418] sm:$0xf] %v10729_v40  ;;  %1196 = vst [vmem:[#allocation4 + $0x41c] sm:$0xff] %v10730_v41   ;;  %v10732_v42 = vld [vmem:[%s18596_s7 + $0x430] sm:$0xf]  ;;  %v10738_v48 = vld [vmem:[%s18596_s7 + $0x43c] sm:$0xff]  }
  0x96   :  { %v10733_v43 = vld [vmem:[%s18596_s7 + $0x424] sm:$0xf]  ;;  %v10734_v44 = vld [vmem:[%s18596_s7 + $0x434] sm:$0xf]  ;;  %1200 = vst [vmem:[#allocation4 + $0x424] sm:$0xf] %v10732_v42 }
  0x97   :  { %1202 = vst [vmem:[#allocation4 + $0x428] sm:$0xf] %v10733_v43  ;;  %1204 = vst [vmem:[#allocation4 + $0x42c] sm:$0xf] %v10734_v44  ;;  %v10735_v45 = vld [vmem:[%s18596_s7 + $0x428] sm:$0xf] }
  0x98   :  { %v10736_v46 = vld [vmem:[%s18596_s7 + $0x438] sm:$0xf]  ;;  %v10737_v47 = vld [vmem:[%s18596_s7 + $0x42c] sm:$0xf]  ;;  %1206 = vst [vmem:[#allocation4 + $0x430] sm:$0xf] %v10735_v45 }
  0x99   :  { %1208 = vst [vmem:[#allocation4 + $0x434] sm:$0xf] %v10736_v46  ;;  %1210 = vst [vmem:[#allocation4 + $0x438] sm:$0xf] %v10737_v47  ;;  %v10740_v49 = vld [vmem:[%s18596_s7 + $0x450] sm:$0xf] }
  0x9a   :  { %v10741_v50 = vld [vmem:[%s18596_s7 + $0x444] sm:$0xf]  ;;  %1212 = vst [vmem:[#allocation4 + $0x43c] sm:$0xff] %v10738_v48   ;;  %1216 = vst [vmem:[#allocation4 + $0x444] sm:$0xf] %v10740_v49  ;;  %v10746_v55 = vld [vmem:[%s18596_s7 + $0x45c] sm:$0xff]  }
  0x9b   :  { %1218 = vst [vmem:[#allocation4 + $0x448] sm:$0xf] %v10741_v50  ;;  %v10742_v51 = vld [vmem:[%s18596_s7 + $0x454] sm:$0xf]  ;;  %v10743_v52 = vld [vmem:[%s18596_s7 + $0x448] sm:$0xf] }
  0x9c   :  { %v10744_v53 = vld [vmem:[%s18596_s7 + $0x458] sm:$0xf]  ;;  %1220 = vst [vmem:[#allocation4 + $0x44c] sm:$0xf] %v10742_v51  ;;  %1222 = vst [vmem:[#allocation4 + $0x450] sm:$0xf] %v10743_v52 }
  0x9d   :  { %1224 = vst [vmem:[#allocation4 + $0x454] sm:$0xf] %v10744_v53  ;;  %v10745_v54 = vld [vmem:[%s18596_s7 + $0x44c] sm:$0xf]  ;;  %v10748_v56 = vld [vmem:[%s18596_s7 + $0x470] sm:$0xf] }
  0x9e   :  { %1226 = vst [vmem:[#allocation4 + $0x458] sm:$0xf] %v10745_v54  ;;  %1228 = vst [vmem:[#allocation4 + $0x45c] sm:$0xff] %v10746_v55   ;;  %v10749_v57 = vld [vmem:[%s18596_s7 + $0x464] sm:$0xf]  ;;  %v10754_v62 = vld [vmem:[%s18596_s7 + $0x47c] sm:$0xff]  }
  0x9f   :  { %1232 = vst [vmem:[#allocation4 + $0x464] sm:$0xf] %v10748_v56  ;;  %v10750_v58 = vld [vmem:[%s18596_s7 + $0x474] sm:$0xf]  ;;  %v10751_v59 = vld [vmem:[%s18596_s7 + $0x468] sm:$0xf] }
  0xa0   :  { %1234 = vst [vmem:[#allocation4 + $0x468] sm:$0xf] %v10749_v57  ;;  %1236 = vst [vmem:[#allocation4 + $0x46c] sm:$0xf] %v10750_v58  ;;  %v10752_v60 = vld [vmem:[%s18596_s7 + $0x478] sm:$0xf] }
  0xa1   :  { %1238 = vst [vmem:[#allocation4 + $0x470] sm:$0xf] %v10751_v59  ;;  %v10753_v61 = vld [vmem:[%s18596_s7 + $0x46c] sm:$0xf]  ;;  %1240 = vst [vmem:[#allocation4 + $0x474] sm:$0xf] %v10752_v60 }
  0xa2   :  { %1242 = vst [vmem:[#allocation4 + $0x478] sm:$0xf] %v10753_v61  ;;  %1244 = vst [vmem:[#allocation4 + $0x47c] sm:$0xff] %v10754_v62   ;;  %v10756_v63 = vld [vmem:[%s18596_s7 + $0x490] sm:$0xf]  ;;  %v10762_v5 = vld [vmem:[%s18596_s7 + $0x49c] sm:$0xff]  }
  0xa3   :  { %v10757_v0 = vld [vmem:[%s18596_s7 + $0x484] sm:$0xf]  ;;  %v10758_v1 = vld [vmem:[%s18596_s7 + $0x494] sm:$0xf]  ;;  %1248 = vst [vmem:[#allocation4 + $0x484] sm:$0xf] %v10756_v63 }
  0xa4   :  { %1250 = vst [vmem:[#allocation4 + $0x488] sm:$0xf] %v10757_v0  ;;  %1252 = vst [vmem:[#allocation4 + $0x48c] sm:$0xf] %v10758_v1  ;;  %v10759_v2 = vld [vmem:[%s18596_s7 + $0x488] sm:$0xf] }
  0xa5   :  { %v10760_v3 = vld [vmem:[%s18596_s7 + $0x498] sm:$0xf]  ;;  %v10761_v4 = vld [vmem:[%s18596_s7 + $0x48c] sm:$0xf]  ;;  %1254 = vst [vmem:[#allocation4 + $0x490] sm:$0xf] %v10759_v2 }
  0xa6   :  { %1256 = vst [vmem:[#allocation4 + $0x494] sm:$0xf] %v10760_v3  ;;  %1258 = vst [vmem:[#allocation4 + $0x498] sm:$0xf] %v10761_v4  ;;  %v10764_v6 = vld [vmem:[%s18596_s7 + $0x4b0] sm:$0xf] }
  0xa7   :  { %v10765_v7 = vld [vmem:[%s18596_s7 + $0x4a4] sm:$0xf]  ;;  %1260 = vst [vmem:[#allocation4 + $0x49c] sm:$0xff] %v10762_v5   ;;  %1264 = vst [vmem:[#allocation4 + $0x4a4] sm:$0xf] %v10764_v6  ;;  %v10770_v12 = vld [vmem:[%s18596_s7 + $0x4bc] sm:$0xff]  }
  0xa8   :  { %1266 = vst [vmem:[#allocation4 + $0x4a8] sm:$0xf] %v10765_v7  ;;  %v10766_v8 = vld [vmem:[%s18596_s7 + $0x4b4] sm:$0xf]  ;;  %v10767_v9 = vld [vmem:[%s18596_s7 + $0x4a8] sm:$0xf] }
  0xa9   :  { %v10768_v10 = vld [vmem:[%s18596_s7 + $0x4b8] sm:$0xf]  ;;  %1268 = vst [vmem:[#allocation4 + $0x4ac] sm:$0xf] %v10766_v8  ;;  %1270 = vst [vmem:[#allocation4 + $0x4b0] sm:$0xf] %v10767_v9 }
  0xaa   :  { %1272 = vst [vmem:[#allocation4 + $0x4b4] sm:$0xf] %v10768_v10  ;;  %v10769_v11 = vld [vmem:[%s18596_s7 + $0x4ac] sm:$0xf]  ;;  %v10772_v13 = vld [vmem:[%s18596_s7 + $0x4d0] sm:$0xf] }
  0xab   :  { %1274 = vst [vmem:[#allocation4 + $0x4b8] sm:$0xf] %v10769_v11  ;;  %1276 = vst [vmem:[#allocation4 + $0x4bc] sm:$0xff] %v10770_v12   ;;  %v10773_v14 = vld [vmem:[%s18596_s7 + $0x4c4] sm:$0xf]  ;;  %v10778_v19 = vld [vmem:[%s18596_s7 + $0x4dc] sm:$0xff]  }
  0xac   :  { %1280 = vst [vmem:[#allocation4 + $0x4c4] sm:$0xf] %v10772_v13  ;;  %v10774_v15 = vld [vmem:[%s18596_s7 + $0x4d4] sm:$0xf]  ;;  %v10775_v16 = vld [vmem:[%s18596_s7 + $0x4c8] sm:$0xf] }
  0xad   :  { %1282 = vst [vmem:[#allocation4 + $0x4c8] sm:$0xf] %v10773_v14  ;;  %1284 = vst [vmem:[#allocation4 + $0x4cc] sm:$0xf] %v10774_v15  ;;  %v10776_v17 = vld [vmem:[%s18596_s7 + $0x4d8] sm:$0xf] }
  0xae   :  { %1286 = vst [vmem:[#allocation4 + $0x4d0] sm:$0xf] %v10775_v16  ;;  %v10777_v18 = vld [vmem:[%s18596_s7 + $0x4cc] sm:$0xf]  ;;  %1288 = vst [vmem:[#allocation4 + $0x4d4] sm:$0xf] %v10776_v17 }
  0xaf   :  { %1290 = vst [vmem:[#allocation4 + $0x4d8] sm:$0xf] %v10777_v18  ;;  %1292 = vst [vmem:[#allocation4 + $0x4dc] sm:$0xff] %v10778_v19   ;;  %v10780_v20 = vld [vmem:[%s18596_s7 + $0x4f0] sm:$0xf]  ;;  %v10786_v26 = vld [vmem:[%s18596_s7 + $0x4fc] sm:$0xff]  }
  0xb0   :  { %v10781_v21 = vld [vmem:[%s18596_s7 + $0x4e4] sm:$0xf]  ;;  %v10782_v22 = vld [vmem:[%s18596_s7 + $0x4f4] sm:$0xf]  ;;  %1296 = vst [vmem:[#allocation4 + $0x4e4] sm:$0xf] %v10780_v20 }
  0xb1   :  { %1298 = vst [vmem:[#allocation4 + $0x4e8] sm:$0xf] %v10781_v21  ;;  %1300 = vst [vmem:[#allocation4 + $0x4ec] sm:$0xf] %v10782_v22  ;;  %v10783_v23 = vld [vmem:[%s18596_s7 + $0x4e8] sm:$0xf] }
  0xb2   :  { %v10784_v24 = vld [vmem:[%s18596_s7 + $0x4f8] sm:$0xf]  ;;  %v10785_v25 = vld [vmem:[%s18596_s7 + $0x4ec] sm:$0xf]  ;;  %1302 = vst [vmem:[#allocation4 + $0x4f0] sm:$0xf] %v10783_v23 }
  0xb3   :  { %1304 = vst [vmem:[#allocation4 + $0x4f4] sm:$0xf] %v10784_v24  ;;  %1306 = vst [vmem:[#allocation4 + $0x4f8] sm:$0xf] %v10785_v25  ;;  %v10788_v27 = vld [vmem:[%s18596_s7 + $0x510] sm:$0xf] }
  0xb4   :  { %v10789_v28 = vld [vmem:[%s18596_s7 + $0x504] sm:$0xf]  ;;  %1308 = vst [vmem:[#allocation4 + $0x4fc] sm:$0xff] %v10786_v26   ;;  %1312 = vst [vmem:[#allocation4 + $0x504] sm:$0xf] %v10788_v27  ;;  %v10794_v33 = vld [vmem:[%s18596_s7 + $0x51c] sm:$0xff]  }
  0xb5   :  { %1314 = vst [vmem:[#allocation4 + $0x508] sm:$0xf] %v10789_v28  ;;  %v10790_v29 = vld [vmem:[%s18596_s7 + $0x514] sm:$0xf]  ;;  %v10791_v30 = vld [vmem:[%s18596_s7 + $0x508] sm:$0xf] }
  0xb6   :  { %v10792_v31 = vld [vmem:[%s18596_s7 + $0x518] sm:$0xf]  ;;  %1316 = vst [vmem:[#allocation4 + $0x50c] sm:$0xf] %v10790_v29  ;;  %1318 = vst [vmem:[#allocation4 + $0x510] sm:$0xf] %v10791_v30 }
  0xb7   :  { %1320 = vst [vmem:[#allocation4 + $0x514] sm:$0xf] %v10792_v31  ;;  %v10793_v32 = vld [vmem:[%s18596_s7 + $0x50c] sm:$0xf]  ;;  %v10796_v34 = vld [vmem:[%s18596_s7 + $0x530] sm:$0xf] }
  0xb8   :  { %1322 = vst [vmem:[#allocation4 + $0x518] sm:$0xf] %v10793_v32  ;;  %1324 = vst [vmem:[#allocation4 + $0x51c] sm:$0xff] %v10794_v33   ;;  %v10797_v35 = vld [vmem:[%s18596_s7 + $0x524] sm:$0xf]  ;;  %v10802_v40 = vld [vmem:[%s18596_s7 + $0x53c] sm:$0xff]  }
  0xb9   :  { %1328 = vst [vmem:[#allocation4 + $0x524] sm:$0xf] %v10796_v34  ;;  %v10798_v36 = vld [vmem:[%s18596_s7 + $0x534] sm:$0xf]  ;;  %v10799_v37 = vld [vmem:[%s18596_s7 + $0x528] sm:$0xf] }
  0xba   :  { %1330 = vst [vmem:[#allocation4 + $0x528] sm:$0xf] %v10797_v35  ;;  %1332 = vst [vmem:[#allocation4 + $0x52c] sm:$0xf] %v10798_v36  ;;  %v10800_v38 = vld [vmem:[%s18596_s7 + $0x538] sm:$0xf] }
  0xbb   :  { %1334 = vst [vmem:[#allocation4 + $0x530] sm:$0xf] %v10799_v37  ;;  %v10801_v39 = vld [vmem:[%s18596_s7 + $0x52c] sm:$0xf]  ;;  %1336 = vst [vmem:[#allocation4 + $0x534] sm:$0xf] %v10800_v38 }
  0xbc   :  { %1338 = vst [vmem:[#allocation4 + $0x538] sm:$0xf] %v10801_v39  ;;  %1340 = vst [vmem:[#allocation4 + $0x53c] sm:$0xff] %v10802_v40   ;;  %v10804_v41 = vld [vmem:[%s18596_s7 + $0x550] sm:$0xf]  ;;  %v10810_v47 = vld [vmem:[%s18596_s7 + $0x55c] sm:$0xff]  }
  0xbd   :  { %v10805_v42 = vld [vmem:[%s18596_s7 + $0x544] sm:$0xf]  ;;  %v10806_v43 = vld [vmem:[%s18596_s7 + $0x554] sm:$0xf]  ;;  %1344 = vst [vmem:[#allocation4 + $0x544] sm:$0xf] %v10804_v41 }
  0xbe   :  { %1346 = vst [vmem:[#allocation4 + $0x548] sm:$0xf] %v10805_v42  ;;  %1348 = vst [vmem:[#allocation4 + $0x54c] sm:$0xf] %v10806_v43  ;;  %v10807_v44 = vld [vmem:[%s18596_s7 + $0x548] sm:$0xf] }
  0xbf   :  { %v10808_v45 = vld [vmem:[%s18596_s7 + $0x558] sm:$0xf]  ;;  %v10809_v46 = vld [vmem:[%s18596_s7 + $0x54c] sm:$0xf]  ;;  %1350 = vst [vmem:[#allocation4 + $0x550] sm:$0xf] %v10807_v44 }
  0xc0   :  { %1352 = vst [vmem:[#allocation4 + $0x554] sm:$0xf] %v10808_v45  ;;  %1354 = vst [vmem:[#allocation4 + $0x558] sm:$0xf] %v10809_v46  ;;  %v10812_v48 = vld [vmem:[%s18596_s7 + $0x570] sm:$0xf] }
  0xc1   :  { %v10813_v49 = vld [vmem:[%s18596_s7 + $0x564] sm:$0xf]  ;;  %1356 = vst [vmem:[#allocation4 + $0x55c] sm:$0xff] %v10810_v47   ;;  %1360 = vst [vmem:[#allocation4 + $0x564] sm:$0xf] %v10812_v48  ;;  %v10818_v54 = vld [vmem:[%s18596_s7 + $0x57c] sm:$0xff]  }
  0xc2   :  { %1362 = vst [vmem:[#allocation4 + $0x568] sm:$0xf] %v10813_v49  ;;  %v10814_v50 = vld [vmem:[%s18596_s7 + $0x574] sm:$0xf]  ;;  %v10815_v51 = vld [vmem:[%s18596_s7 + $0x568] sm:$0xf] }
  0xc3   :  { %v10816_v52 = vld [vmem:[%s18596_s7 + $0x578] sm:$0xf]  ;;  %1364 = vst [vmem:[#allocation4 + $0x56c] sm:$0xf] %v10814_v50  ;;  %1366 = vst [vmem:[#allocation4 + $0x570] sm:$0xf] %v10815_v51 }
  0xc4   :  { %1368 = vst [vmem:[#allocation4 + $0x574] sm:$0xf] %v10816_v52  ;;  %v10817_v53 = vld [vmem:[%s18596_s7 + $0x56c] sm:$0xf]  ;;  %v10820_v55 = vld [vmem:[%s18596_s7 + $0x590] sm:$0xf] }
  0xc5   :  { %1370 = vst [vmem:[#allocation4 + $0x578] sm:$0xf] %v10817_v53  ;;  %1372 = vst [vmem:[#allocation4 + $0x57c] sm:$0xff] %v10818_v54   ;;  %v10821_v56 = vld [vmem:[%s18596_s7 + $0x584] sm:$0xf]  ;;  %v10826_v61 = vld [vmem:[%s18596_s7 + $0x59c] sm:$0xff]  }
  0xc6   :  { %1376 = vst [vmem:[#allocation4 + $0x584] sm:$0xf] %v10820_v55  ;;  %v10822_v57 = vld [vmem:[%s18596_s7 + $0x594] sm:$0xf]  ;;  %v10823_v58 = vld [vmem:[%s18596_s7 + $0x588] sm:$0xf] }
  0xc7   :  { %1378 = vst [vmem:[#allocation4 + $0x588] sm:$0xf] %v10821_v56  ;;  %1380 = vst [vmem:[#allocation4 + $0x58c] sm:$0xf] %v10822_v57  ;;  %v10824_v59 = vld [vmem:[%s18596_s7 + $0x598] sm:$0xf] }
  0xc8   :  { %1382 = vst [vmem:[#allocation4 + $0x590] sm:$0xf] %v10823_v58  ;;  %v10825_v60 = vld [vmem:[%s18596_s7 + $0x58c] sm:$0xf]  ;;  %1384 = vst [vmem:[#allocation4 + $0x594] sm:$0xf] %v10824_v59 }
  0xc9   :  { %1386 = vst [vmem:[#allocation4 + $0x598] sm:$0xf] %v10825_v60  ;;  %1388 = vst [vmem:[#allocation4 + $0x59c] sm:$0xff] %v10826_v61   ;;  %v10828_v62 = vld [vmem:[%s18596_s7 + $0x5b0] sm:$0xf]  ;;  %v10834_v4 = vld [vmem:[%s18596_s7 + $0x5bc] sm:$0xff]  }
  0xca   :  { %v10829_v63 = vld [vmem:[%s18596_s7 + $0x5a4] sm:$0xf]  ;;  %v10830_v0 = vld [vmem:[%s18596_s7 + $0x5b4] sm:$0xf]  ;;  %1392 = vst [vmem:[#allocation4 + $0x5a4] sm:$0xf] %v10828_v62 }
  0xcb   :  { %1394 = vst [vmem:[#allocation4 + $0x5a8] sm:$0xf] %v10829_v63  ;;  %1396 = vst [vmem:[#allocation4 + $0x5ac] sm:$0xf] %v10830_v0  ;;  %v10831_v1 = vld [vmem:[%s18596_s7 + $0x5a8] sm:$0xf] }
  0xcc   :  { %v10832_v2 = vld [vmem:[%s18596_s7 + $0x5b8] sm:$0xf]  ;;  %v10833_v3 = vld [vmem:[%s18596_s7 + $0x5ac] sm:$0xf]  ;;  %1398 = vst [vmem:[#allocation4 + $0x5b0] sm:$0xf] %v10831_v1 }
  0xcd   :  { %1400 = vst [vmem:[#allocation4 + $0x5b4] sm:$0xf] %v10832_v2  ;;  %1402 = vst [vmem:[#allocation4 + $0x5b8] sm:$0xf] %v10833_v3  ;;  %v10836_v5 = vld [vmem:[%s18596_s7 + $0x5d0] sm:$0xf] }
  0xce   :  { %v10837_v6 = vld [vmem:[%s18596_s7 + $0x5c4] sm:$0xf]  ;;  %1404 = vst [vmem:[#allocation4 + $0x5bc] sm:$0xff] %v10834_v4   ;;  %1408 = vst [vmem:[#allocation4 + $0x5c4] sm:$0xf] %v10836_v5  ;;  %v10842_v11 = vld [vmem:[%s18596_s7 + $0x5dc] sm:$0xff]  }
  0xcf   :  { %1410 = vst [vmem:[#allocation4 + $0x5c8] sm:$0xf] %v10837_v6  ;;  %v10838_v7 = vld [vmem:[%s18596_s7 + $0x5d4] sm:$0xf]  ;;  %v10839_v8 = vld [vmem:[%s18596_s7 + $0x5c8] sm:$0xf] }
  0xd0   :  { %v10840_v9 = vld [vmem:[%s18596_s7 + $0x5d8] sm:$0xf]  ;;  %1412 = vst [vmem:[#allocation4 + $0x5cc] sm:$0xf] %v10838_v7  ;;  %1414 = vst [vmem:[#allocation4 + $0x5d0] sm:$0xf] %v10839_v8 }
  0xd1   :  { %1416 = vst [vmem:[#allocation4 + $0x5d4] sm:$0xf] %v10840_v9  ;;  %v10841_v10 = vld [vmem:[%s18596_s7 + $0x5cc] sm:$0xf]  ;;  %v10844_v12 = vld [vmem:[%s18596_s7 + $0x5f0] sm:$0xf] }
  0xd2   :  { %1418 = vst [vmem:[#allocation4 + $0x5d8] sm:$0xf] %v10841_v10  ;;  %1420 = vst [vmem:[#allocation4 + $0x5dc] sm:$0xff] %v10842_v11   ;;  %v10845_v13 = vld [vmem:[%s18596_s7 + $0x5e4] sm:$0xf] }
  0xd3   :  { %1424 = vst [vmem:[#allocation4 + $0x5e4] sm:$0xf] %v10844_v12  ;;  %v10846_v14 = vld [vmem:[%s18596_s7 + $0x5f4] sm:$0xf]  ;;  %v10847_v15 = vld [vmem:[%s18596_s7 + $0x5e8] sm:$0xf] }
  0xd4   :  { %1426 = vst [vmem:[#allocation4 + $0x5e8] sm:$0xf] %v10845_v13  ;;  %1428 = vst [vmem:[#allocation4 + $0x5ec] sm:$0xf] %v10846_v14  ;;  %v10848_v16 = vld [vmem:[%s18596_s7 + $0x5f8] sm:$0xf] }
  0xd5   :  { %1430 = vst [vmem:[#allocation4 + $0x5f0] sm:$0xf] %v10847_v15  ;;  %v10849_v17 = vld [vmem:[%s18596_s7 + $0x5ec] sm:$0xf]  ;;  %v10850_v18 = vld [vmem:[%s18596_s7 + $0x5fc] sm:$0xf] }
  0xd6   :  { %1432 = vst [vmem:[#allocation4 + $0x5f4] sm:$0xf] %v10848_v16  ;;  %1434 = vst [vmem:[#allocation4 + $0x5f8] sm:$0xf] %v10849_v17 }
  0xd7   :  { %1436 = vst [vmem:[#allocation4 + $0x5fc] sm:$0xf] %v10850_v18 }
  0xd8   :  { %1723 = vsyncadd [#allocation5 + $0x2], 8192  ;;  %v10979_v19 = vld [vmem:[%s18596_s7 + $0x600] sm:$0xf]  ;;  %v10980_v20 = vld [vmem:[%s18596_s7 + $0x610] sm:$0xf] }
  0xd9   :  { %1745 = vst [vmem:[#allocation4 + $0x600] sm:$0xf] %v10979_v19  ;;  %1747 = vst [vmem:[#allocation4 + $0x604] sm:$0xf] %v10980_v20  ;;  %v10981_v21 = vld [vmem:[%s18596_s7 + $0x604] sm:$0xf] }
  0xda   :  { %v10982_v22 = vld [vmem:[%s18596_s7 + $0x614] sm:$0xf]  ;;  %v10983_v23 = vld [vmem:[%s18596_s7 + $0x608] sm:$0xf]  ;;  %1749 = vst [vmem:[#allocation4 + $0x608] sm:$0xf] %v10981_v21 }
  0xdb   :  { %1751 = vst [vmem:[#allocation4 + $0x60c] sm:$0xf] %v10982_v22  ;;  %1753 = vst [vmem:[#allocation4 + $0x610] sm:$0xf] %v10983_v23  ;;  %v10984_v24 = vld [vmem:[%s18596_s7 + $0x618] sm:$0xf] }
  0xdc   :  { %v10985_v25 = vld [vmem:[%s18596_s7 + $0x60c] sm:$0xf]  ;;  %v10986_v26 = vld [vmem:[%s18596_s7 + $0x61c] sm:$0xff]   ;;  %1755 = vst [vmem:[#allocation4 + $0x614] sm:$0xf] %v10984_v24 }
  0xdd   :  { %1757 = vst [vmem:[#allocation4 + $0x618] sm:$0xf] %v10985_v25  ;;  %1759 = vst [vmem:[#allocation4 + $0x61c] sm:$0xff] %v10986_v26   ;;  %v10988_v27 = vld [vmem:[%s18596_s7 + $0x630] sm:$0xf]  ;;  %v10994_v33 = vld [vmem:[%s18596_s7 + $0x63c] sm:$0xff]  }
  0xde   :  { %v10989_v28 = vld [vmem:[%s18596_s7 + $0x624] sm:$0xf]  ;;  %v10990_v29 = vld [vmem:[%s18596_s7 + $0x634] sm:$0xf]  ;;  %1763 = vst [vmem:[#allocation4 + $0x624] sm:$0xf] %v10988_v27 }
  0xdf   :  { %1765 = vst [vmem:[#allocation4 + $0x628] sm:$0xf] %v10989_v28  ;;  %1767 = vst [vmem:[#allocation4 + $0x62c] sm:$0xf] %v10990_v29  ;;  %v10991_v30 = vld [vmem:[%s18596_s7 + $0x628] sm:$0xf] }
  0xe0   :  { %v10992_v31 = vld [vmem:[%s18596_s7 + $0x638] sm:$0xf]  ;;  %v10993_v32 = vld [vmem:[%s18596_s7 + $0x62c] sm:$0xf]  ;;  %1769 = vst [vmem:[#allocation4 + $0x630] sm:$0xf] %v10991_v30 }
  0xe1   :  { %1771 = vst [vmem:[#allocation4 + $0x634] sm:$0xf] %v10992_v31  ;;  %1773 = vst [vmem:[#allocation4 + $0x638] sm:$0xf] %v10993_v32  ;;  %v10996_v34 = vld [vmem:[%s18596_s7 + $0x650] sm:$0xf] }
  0xe2   :  { %v10997_v35 = vld [vmem:[%s18596_s7 + $0x644] sm:$0xf]  ;;  %1775 = vst [vmem:[#allocation4 + $0x63c] sm:$0xff] %v10994_v33   ;;  %1779 = vst [vmem:[#allocation4 + $0x644] sm:$0xf] %v10996_v34  ;;  %v11002_v40 = vld [vmem:[%s18596_s7 + $0x65c] sm:$0xff]  }
  0xe3   :  { %1781 = vst [vmem:[#allocation4 + $0x648] sm:$0xf] %v10997_v35  ;;  %v10998_v36 = vld [vmem:[%s18596_s7 + $0x654] sm:$0xf]  ;;  %v10999_v37 = vld [vmem:[%s18596_s7 + $0x648] sm:$0xf] }
  0xe4   :  { %v11000_v38 = vld [vmem:[%s18596_s7 + $0x658] sm:$0xf]  ;;  %1783 = vst [vmem:[#allocation4 + $0x64c] sm:$0xf] %v10998_v36  ;;  %1785 = vst [vmem:[#allocation4 + $0x650] sm:$0xf] %v10999_v37 }
  0xe5   :  { %1787 = vst [vmem:[#allocation4 + $0x654] sm:$0xf] %v11000_v38  ;;  %v11001_v39 = vld [vmem:[%s18596_s7 + $0x64c] sm:$0xf]  ;;  %v11004_v41 = vld [vmem:[%s18596_s7 + $0x670] sm:$0xf] }
  0xe6   :  { %1789 = vst [vmem:[#allocation4 + $0x658] sm:$0xf] %v11001_v39  ;;  %1791 = vst [vmem:[#allocation4 + $0x65c] sm:$0xff] %v11002_v40   ;;  %v11005_v42 = vld [vmem:[%s18596_s7 + $0x664] sm:$0xf]  ;;  %v11010_v47 = vld [vmem:[%s18596_s7 + $0x67c] sm:$0xff]  }
  0xe7   :  { %1795 = vst [vmem:[#allocation4 + $0x664] sm:$0xf] %v11004_v41  ;;  %v11006_v43 = vld [vmem:[%s18596_s7 + $0x674] sm:$0xf]  ;;  %v11007_v44 = vld [vmem:[%s18596_s7 + $0x668] sm:$0xf] }
  0xe8   :  { %1797 = vst [vmem:[#allocation4 + $0x668] sm:$0xf] %v11005_v42  ;;  %1799 = vst [vmem:[#allocation4 + $0x66c] sm:$0xf] %v11006_v43  ;;  %v11008_v45 = vld [vmem:[%s18596_s7 + $0x678] sm:$0xf] }
  0xe9   :  { %1801 = vst [vmem:[#allocation4 + $0x670] sm:$0xf] %v11007_v44  ;;  %v11009_v46 = vld [vmem:[%s18596_s7 + $0x66c] sm:$0xf]  ;;  %1803 = vst [vmem:[#allocation4 + $0x674] sm:$0xf] %v11008_v45 }
  0xea   :  { %1805 = vst [vmem:[#allocation4 + $0x678] sm:$0xf] %v11009_v46  ;;  %1807 = vst [vmem:[#allocation4 + $0x67c] sm:$0xff] %v11010_v47   ;;  %v11012_v48 = vld [vmem:[%s18596_s7 + $0x690] sm:$0xf]  ;;  %v11018_v54 = vld [vmem:[%s18596_s7 + $0x69c] sm:$0xff]  }
  0xeb   :  { %v11013_v49 = vld [vmem:[%s18596_s7 + $0x684] sm:$0xf]  ;;  %v11014_v50 = vld [vmem:[%s18596_s7 + $0x694] sm:$0xf]  ;;  %1811 = vst [vmem:[#allocation4 + $0x684] sm:$0xf] %v11012_v48 }
  0xec   :  { %1813 = vst [vmem:[#allocation4 + $0x688] sm:$0xf] %v11013_v49  ;;  %1815 = vst [vmem:[#allocation4 + $0x68c] sm:$0xf] %v11014_v50  ;;  %v11015_v51 = vld [vmem:[%s18596_s7 + $0x688] sm:$0xf] }
  0xed   :  { %v11016_v52 = vld [vmem:[%s18596_s7 + $0x698] sm:$0xf]  ;;  %v11017_v53 = vld [vmem:[%s18596_s7 + $0x68c] sm:$0xf]  ;;  %1817 = vst [vmem:[#allocation4 + $0x690] sm:$0xf] %v11015_v51 }
  0xee   :  { %1819 = vst [vmem:[#allocation4 + $0x694] sm:$0xf] %v11016_v52  ;;  %1821 = vst [vmem:[#allocation4 + $0x698] sm:$0xf] %v11017_v53  ;;  %v11020_v55 = vld [vmem:[%s18596_s7 + $0x6b0] sm:$0xf] }
  0xef   :  { %v11021_v56 = vld [vmem:[%s18596_s7 + $0x6a4] sm:$0xf]  ;;  %1823 = vst [vmem:[#allocation4 + $0x69c] sm:$0xff] %v11018_v54   ;;  %1827 = vst [vmem:[#allocation4 + $0x6a4] sm:$0xf] %v11020_v55  ;;  %v11026_v61 = vld [vmem:[%s18596_s7 + $0x6bc] sm:$0xff]  }
  0xf0   :  { %1829 = vst [vmem:[#allocation4 + $0x6a8] sm:$0xf] %v11021_v56  ;;  %v11022_v57 = vld [vmem:[%s18596_s7 + $0x6b4] sm:$0xf]  ;;  %v11023_v58 = vld [vmem:[%s18596_s7 + $0x6a8] sm:$0xf] }
  0xf1   :  { %v11024_v59 = vld [vmem:[%s18596_s7 + $0x6b8] sm:$0xf]  ;;  %1831 = vst [vmem:[#allocation4 + $0x6ac] sm:$0xf] %v11022_v57  ;;  %1833 = vst [vmem:[#allocation4 + $0x6b0] sm:$0xf] %v11023_v58 }
  0xf2   :  { %1835 = vst [vmem:[#allocation4 + $0x6b4] sm:$0xf] %v11024_v59  ;;  %v11025_v60 = vld [vmem:[%s18596_s7 + $0x6ac] sm:$0xf]  ;;  %v11028_v62 = vld [vmem:[%s18596_s7 + $0x6d0] sm:$0xf] }
  0xf3   :  { %1837 = vst [vmem:[#allocation4 + $0x6b8] sm:$0xf] %v11025_v60  ;;  %1839 = vst [vmem:[#allocation4 + $0x6bc] sm:$0xff] %v11026_v61   ;;  %v11029_v63 = vld [vmem:[%s18596_s7 + $0x6c4] sm:$0xf]  ;;  %v11034_v4 = vld [vmem:[%s18596_s7 + $0x6dc] sm:$0xff]  }
  0xf4   :  { %1843 = vst [vmem:[#allocation4 + $0x6c4] sm:$0xf] %v11028_v62  ;;  %v11030_v0 = vld [vmem:[%s18596_s7 + $0x6d4] sm:$0xf]  ;;  %v11031_v1 = vld [vmem:[%s18596_s7 + $0x6c8] sm:$0xf] }
  0xf5   :  { %1845 = vst [vmem:[#allocation4 + $0x6c8] sm:$0xf] %v11029_v63  ;;  %1847 = vst [vmem:[#allocation4 + $0x6cc] sm:$0xf] %v11030_v0  ;;  %v11032_v2 = vld [vmem:[%s18596_s7 + $0x6d8] sm:$0xf] }
  0xf6   :  { %1849 = vst [vmem:[#allocation4 + $0x6d0] sm:$0xf] %v11031_v1  ;;  %v11033_v3 = vld [vmem:[%s18596_s7 + $0x6cc] sm:$0xf]  ;;  %1851 = vst [vmem:[#allocation4 + $0x6d4] sm:$0xf] %v11032_v2 }
  0xf7   :  { %1853 = vst [vmem:[#allocation4 + $0x6d8] sm:$0xf] %v11033_v3  ;;  %1855 = vst [vmem:[#allocation4 + $0x6dc] sm:$0xff] %v11034_v4   ;;  %v11036_v5 = vld [vmem:[%s18596_s7 + $0x6f0] sm:$0xf]  ;;  %v11042_v11 = vld [vmem:[%s18596_s7 + $0x6fc] sm:$0xff]  }
  0xf8   :  { %v11037_v6 = vld [vmem:[%s18596_s7 + $0x6e4] sm:$0xf]  ;;  %v11038_v7 = vld [vmem:[%s18596_s7 + $0x6f4] sm:$0xf]  ;;  %1859 = vst [vmem:[#allocation4 + $0x6e4] sm:$0xf] %v11036_v5 }
  0xf9   :  { %1861 = vst [vmem:[#allocation4 + $0x6e8] sm:$0xf] %v11037_v6  ;;  %1863 = vst [vmem:[#allocation4 + $0x6ec] sm:$0xf] %v11038_v7  ;;  %v11039_v8 = vld [vmem:[%s18596_s7 + $0x6e8] sm:$0xf] }
  0xfa   :  { %v11040_v9 = vld [vmem:[%s18596_s7 + $0x6f8] sm:$0xf]  ;;  %v11041_v10 = vld [vmem:[%s18596_s7 + $0x6ec] sm:$0xf]  ;;  %1865 = vst [vmem:[#allocation4 + $0x6f0] sm:$0xf] %v11039_v8 }
  0xfb   :  { %1867 = vst [vmem:[#allocation4 + $0x6f4] sm:$0xf] %v11040_v9  ;;  %1869 = vst [vmem:[#allocation4 + $0x6f8] sm:$0xf] %v11041_v10  ;;  %v11044_v12 = vld [vmem:[%s18596_s7 + $0x710] sm:$0xf] }
  0xfc   :  { %v11045_v13 = vld [vmem:[%s18596_s7 + $0x704] sm:$0xf]  ;;  %1871 = vst [vmem:[#allocation4 + $0x6fc] sm:$0xff] %v11042_v11   ;;  %1875 = vst [vmem:[#allocation4 + $0x704] sm:$0xf] %v11044_v12  ;;  %v11050_v18 = vld [vmem:[%s18596_s7 + $0x71c] sm:$0xff]  }
  0xfd   :  { %1877 = vst [vmem:[#allocation4 + $0x708] sm:$0xf] %v11045_v13  ;;  %v11046_v14 = vld [vmem:[%s18596_s7 + $0x714] sm:$0xf]  ;;  %v11047_v15 = vld [vmem:[%s18596_s7 + $0x708] sm:$0xf] }
  0xfe   :  { %v11048_v16 = vld [vmem:[%s18596_s7 + $0x718] sm:$0xf]  ;;  %1879 = vst [vmem:[#allocation4 + $0x70c] sm:$0xf] %v11046_v14  ;;  %1881 = vst [vmem:[#allocation4 + $0x710] sm:$0xf] %v11047_v15 }
  0xff   :  { %1883 = vst [vmem:[#allocation4 + $0x714] sm:$0xf] %v11048_v16  ;;  %v11049_v17 = vld [vmem:[%s18596_s7 + $0x70c] sm:$0xf]  ;;  %v11052_v19 = vld [vmem:[%s18596_s7 + $0x730] sm:$0xf] }
 0x100   :  { %1885 = vst [vmem:[#allocation4 + $0x718] sm:$0xf] %v11049_v17  ;;  %1887 = vst [vmem:[#allocation4 + $0x71c] sm:$0xff] %v11050_v18   ;;  %v11053_v20 = vld [vmem:[%s18596_s7 + $0x724] sm:$0xf]  ;;  %v11058_v25 = vld [vmem:[%s18596_s7 + $0x73c] sm:$0xff]  }
 0x101   :  { %1891 = vst [vmem:[#allocation4 + $0x724] sm:$0xf] %v11052_v19  ;;  %v11054_v21 = vld [vmem:[%s18596_s7 + $0x734] sm:$0xf]  ;;  %v11055_v22 = vld [vmem:[%s18596_s7 + $0x728] sm:$0xf] }
 0x102   :  { %1893 = vst [vmem:[#allocation4 + $0x728] sm:$0xf] %v11053_v20  ;;  %1895 = vst [vmem:[#allocation4 + $0x72c] sm:$0xf] %v11054_v21  ;;  %v11056_v23 = vld [vmem:[%s18596_s7 + $0x738] sm:$0xf] }
 0x103   :  { %1897 = vst [vmem:[#allocation4 + $0x730] sm:$0xf] %v11055_v22  ;;  %v11057_v24 = vld [vmem:[%s18596_s7 + $0x72c] sm:$0xf]  ;;  %1899 = vst [vmem:[#allocation4 + $0x734] sm:$0xf] %v11056_v23 }
 0x104   :  { %1901 = vst [vmem:[#allocation4 + $0x738] sm:$0xf] %v11057_v24  ;;  %1903 = vst [vmem:[#allocation4 + $0x73c] sm:$0xff] %v11058_v25   ;;  %v11060_v26 = vld [vmem:[%s18596_s7 + $0x750] sm:$0xf]  ;;  %v11066_v32 = vld [vmem:[%s18596_s7 + $0x75c] sm:$0xff]  }
 0x105   :  { %v11061_v27 = vld [vmem:[%s18596_s7 + $0x744] sm:$0xf]  ;;  %v11062_v28 = vld [vmem:[%s18596_s7 + $0x754] sm:$0xf]  ;;  %1907 = vst [vmem:[#allocation4 + $0x744] sm:$0xf] %v11060_v26 }
 0x106   :  { %1909 = vst [vmem:[#allocation4 + $0x748] sm:$0xf] %v11061_v27  ;;  %1911 = vst [vmem:[#allocation4 + $0x74c] sm:$0xf] %v11062_v28  ;;  %v11063_v29 = vld [vmem:[%s18596_s7 + $0x748] sm:$0xf] }
 0x107   :  { %v11064_v30 = vld [vmem:[%s18596_s7 + $0x758] sm:$0xf]  ;;  %v11065_v31 = vld [vmem:[%s18596_s7 + $0x74c] sm:$0xf]  ;;  %1913 = vst [vmem:[#allocation4 + $0x750] sm:$0xf] %v11063_v29 }
 0x108   :  { %1915 = vst [vmem:[#allocation4 + $0x754] sm:$0xf] %v11064_v30  ;;  %1917 = vst [vmem:[#allocation4 + $0x758] sm:$0xf] %v11065_v31  ;;  %v11068_v33 = vld [vmem:[%s18596_s7 + $0x770] sm:$0xf] }
 0x109   :  { %v11069_v34 = vld [vmem:[%s18596_s7 + $0x764] sm:$0xf]  ;;  %1919 = vst [vmem:[#allocation4 + $0x75c] sm:$0xff] %v11066_v32   ;;  %1923 = vst [vmem:[#allocation4 + $0x764] sm:$0xf] %v11068_v33  ;;  %v11074_v39 = vld [vmem:[%s18596_s7 + $0x77c] sm:$0xff]  }
 0x10a   :  { %1925 = vst [vmem:[#allocation4 + $0x768] sm:$0xf] %v11069_v34  ;;  %v11070_v35 = vld [vmem:[%s18596_s7 + $0x774] sm:$0xf]  ;;  %v11071_v36 = vld [vmem:[%s18596_s7 + $0x768] sm:$0xf] }
 0x10b   :  { %v11072_v37 = vld [vmem:[%s18596_s7 + $0x778] sm:$0xf]  ;;  %1927 = vst [vmem:[#allocation4 + $0x76c] sm:$0xf] %v11070_v35  ;;  %1929 = vst [vmem:[#allocation4 + $0x770] sm:$0xf] %v11071_v36 }
 0x10c   :  { %1931 = vst [vmem:[#allocation4 + $0x774] sm:$0xf] %v11072_v37  ;;  %v11073_v38 = vld [vmem:[%s18596_s7 + $0x76c] sm:$0xf]  ;;  %v11076_v40 = vld [vmem:[%s18596_s7 + $0x790] sm:$0xf] }
 0x10d   :  { %1933 = vst [vmem:[#allocation4 + $0x778] sm:$0xf] %v11073_v38  ;;  %1935 = vst [vmem:[#allocation4 + $0x77c] sm:$0xff] %v11074_v39   ;;  %v11077_v41 = vld [vmem:[%s18596_s7 + $0x784] sm:$0xf]  ;;  %v11082_v46 = vld [vmem:[%s18596_s7 + $0x79c] sm:$0xff]  }
 0x10e   :  { %1939 = vst [vmem:[#allocation4 + $0x784] sm:$0xf] %v11076_v40  ;;  %v11078_v42 = vld [vmem:[%s18596_s7 + $0x794] sm:$0xf]  ;;  %v11079_v43 = vld [vmem:[%s18596_s7 + $0x788] sm:$0xf] }
 0x10f   :  { %1941 = vst [vmem:[#allocation4 + $0x788] sm:$0xf] %v11077_v41  ;;  %1943 = vst [vmem:[#allocation4 + $0x78c] sm:$0xf] %v11078_v42  ;;  %v11080_v44 = vld [vmem:[%s18596_s7 + $0x798] sm:$0xf] }
 0x110   :  { %1945 = vst [vmem:[#allocation4 + $0x790] sm:$0xf] %v11079_v43  ;;  %v11081_v45 = vld [vmem:[%s18596_s7 + $0x78c] sm:$0xf]  ;;  %1947 = vst [vmem:[#allocation4 + $0x794] sm:$0xf] %v11080_v44 }
 0x111   :  { %1949 = vst [vmem:[#allocation4 + $0x798] sm:$0xf] %v11081_v45  ;;  %1951 = vst [vmem:[#allocation4 + $0x79c] sm:$0xff] %v11082_v46   ;;  %v11084_v47 = vld [vmem:[%s18596_s7 + $0x7b0] sm:$0xf]  ;;  %v11090_v53 = vld [vmem:[%s18596_s7 + $0x7bc] sm:$0xff]  }
 0x112   :  { %v11085_v48 = vld [vmem:[%s18596_s7 + $0x7a4] sm:$0xf]  ;;  %v11086_v49 = vld [vmem:[%s18596_s7 + $0x7b4] sm:$0xf]  ;;  %1955 = vst [vmem:[#allocation4 + $0x7a4] sm:$0xf] %v11084_v47 }
 0x113   :  { %1957 = vst [vmem:[#allocation4 + $0x7a8] sm:$0xf] %v11085_v48  ;;  %1959 = vst [vmem:[#allocation4 + $0x7ac] sm:$0xf] %v11086_v49  ;;  %v11087_v50 = vld [vmem:[%s18596_s7 + $0x7a8] sm:$0xf] }
 0x114   :  { %v11088_v51 = vld [vmem:[%s18596_s7 + $0x7b8] sm:$0xf]  ;;  %v11089_v52 = vld [vmem:[%s18596_s7 + $0x7ac] sm:$0xf]  ;;  %1961 = vst [vmem:[#allocation4 + $0x7b0] sm:$0xf] %v11087_v50 }
 0x115   :  { %1963 = vst [vmem:[#allocation4 + $0x7b4] sm:$0xf] %v11088_v51  ;;  %1965 = vst [vmem:[#allocation4 + $0x7b8] sm:$0xf] %v11089_v52  ;;  %v11092_v54 = vld [vmem:[%s18596_s7 + $0x7d0] sm:$0xf] }
 0x116   :  { %v11093_v55 = vld [vmem:[%s18596_s7 + $0x7c4] sm:$0xf]  ;;  %1967 = vst [vmem:[#allocation4 + $0x7bc] sm:$0xff] %v11090_v53   ;;  %1971 = vst [vmem:[#allocation4 + $0x7c4] sm:$0xf] %v11092_v54  ;;  %v11098_v60 = vld [vmem:[%s18596_s7 + $0x7dc] sm:$0xff]  }
 0x117   :  { %1973 = vst [vmem:[#allocation4 + $0x7c8] sm:$0xf] %v11093_v55  ;;  %v11094_v56 = vld [vmem:[%s18596_s7 + $0x7d4] sm:$0xf]  ;;  %v11095_v57 = vld [vmem:[%s18596_s7 + $0x7c8] sm:$0xf] }
 0x118   :  { %v11096_v58 = vld [vmem:[%s18596_s7 + $0x7d8] sm:$0xf]  ;;  %1975 = vst [vmem:[#allocation4 + $0x7cc] sm:$0xf] %v11094_v56  ;;  %1977 = vst [vmem:[#allocation4 + $0x7d0] sm:$0xf] %v11095_v57 }
 0x119   :  { %1979 = vst [vmem:[#allocation4 + $0x7d4] sm:$0xf] %v11096_v58  ;;  %v11097_v59 = vld [vmem:[%s18596_s7 + $0x7cc] sm:$0xf]  ;;  %v11100_v61 = vld [vmem:[%s18596_s7 + $0x7f0] sm:$0xf] }
 0x11a   :  { %1981 = vst [vmem:[#allocation4 + $0x7d8] sm:$0xf] %v11097_v59  ;;  %1983 = vst [vmem:[#allocation4 + $0x7dc] sm:$0xff] %v11098_v60   ;;  %v11101_v62 = vld [vmem:[%s18596_s7 + $0x7e4] sm:$0xf] }
 0x11b   :  { %1987 = vst [vmem:[#allocation4 + $0x7e4] sm:$0xf] %v11100_v61  ;;  %v11102_v63 = vld [vmem:[%s18596_s7 + $0x7f4] sm:$0xf]  ;;  %v11103_v0 = vld [vmem:[%s18596_s7 + $0x7e8] sm:$0xf] }
 0x11c   :  { %1989 = vst [vmem:[#allocation4 + $0x7e8] sm:$0xf] %v11101_v62  ;;  %1991 = vst [vmem:[#allocation4 + $0x7ec] sm:$0xf] %v11102_v63  ;;  %v11104_v1 = vld [vmem:[%s18596_s7 + $0x7f8] sm:$0xf] }
 0x11d   :  { %1993 = vst [vmem:[#allocation4 + $0x7f0] sm:$0xf] %v11103_v0  ;;  %v11105_v2 = vld [vmem:[%s18596_s7 + $0x7ec] sm:$0xf]  ;;  %v11106_v3 = vld [vmem:[%s18596_s7 + $0x7fc] sm:$0xf] }
 0x11e   :  { %1995 = vst [vmem:[#allocation4 + $0x7f4] sm:$0xf] %v11104_v1  ;;  %1997 = vst [vmem:[#allocation4 + $0x7f8] sm:$0xf] %v11105_v2 }
 0x11f   :  { %1999 = vst [vmem:[#allocation4 + $0x7fc] sm:$0xf] %v11106_v3 }
 0x120   :  { %2286 = vsyncadd [#allocation5 + $0x3], 8192  ;;  %v15700_v4 = vld [vmem:[%s18590_s1 + $0x40] sm:$0xff]   ;;  %v15712_v6 = vld [vmem:[%s18590_s1 + $0x48] sm:$0xff]   ;;  %v14276_v30 = vmov 0.0|0.0   ;;  %vm14277_vm0 = vmmov 0  }
 0x121   :  { %v15705_v5 = vld [vmem:[%s18590_s1] sm:$0xff]   ;;  %11645 = vmatprep.subr.bf16.mxu0 %v15700_v4  ;;  %11691 = vmatprep.subr.bf16.mxu1 %v15700_v4  ;;  %v15719_v7 = vld [vmem:[%s18590_s1 + $0x8] sm:$0xff]   ;;  %v15726_v8 = vld [vmem:[%s18590_s1 + $0x50] sm:$0xff]   ;;  %v14278_v55 = vmov 0.0   ;;  %vm2705_vm1 = vcmask 261120   ;;  %vm7037_vm2 = vcmask 523264  }
 0x122   :  { %11646 = vmatpush3.bf16.msra.mxu0 %v15705_v5  ;;  %11692 = vmatpush3.bf16.msra.mxu1 %v15705_v5  ;;  %v15733_v9 = vld [vmem:[%s18590_s1 + $0x10] sm:$0xff]   ;;  %v15740_v10 = vld [vmem:[%s18590_s1 + $0x58] sm:$0xff]   ;;  %v15754_v12 = vld [vmem:[%s18590_s1 + $0x60] sm:$0xff]   ;;  %vm8264_vm3 = vcmask 519168  }
 0x123   :  { %11647 = vmatprep.subr.bf16.mxu0 %v15712_v6  ;;  %11693 = vmatprep.subr.bf16.mxu1 %v15712_v6  ;;  %v15747_v11 = vld [vmem:[%s18590_s1 + $0x18] sm:$0xff]   ;;  %v15761_v13 = vld [vmem:[%s18590_s1 + $0x20] sm:$0xff]   ;;  %v15768_v14 = vld [vmem:[%s18590_s1 + $0x68] sm:$0xff]  }
 0x124   :  { %v13961_v15 = vld [vmem:[%s18589_s0 + $0x4] ss:$8 sps:$4 sm:$0xff]   ;;  %v15788_v18 = vld [vmem:[%s18590_s1 + $0x70] sm:$0xff]   ;;  %v15802_v20 = vld [vmem:[%s18590_s1 + $0x78] sm:$0xff]  }
 0x125   :  { %v13964_v16 = vld [vmem:[%s18589_s0 + $0x4c] ss:$8 sps:$4 sm:$0xff]   ;;  %2510 = vmatprep.mubr.bf16.mxu0 %v13961_v15  ;;  %v15809_v21 = vld [vmem:[%s18590_s1 + $0x38] sm:$0xff]   ;;  %v11144_v22 = vld [vmem:[%s18592_s3 + $0x20] sm:$0xff] }
 0x126   :  { %11648 = vmatpush3.bf16.msra.mxu0 %v15719_v7  ;;  %11694 = vmatpush3.bf16.msra.mxu1 %v15719_v7  ;;  %v15781_v17 = vld [vmem:[%s18590_s1 + $0x28] sm:$0xff]   ;;  %v15795_v19 = vld [vmem:[%s18590_s1 + $0x30] sm:$0xff]   ;;  %v13967_v27 = vld [vmem:[%s18589_s0 + $0x5c] ss:$8 sps:$4 sm:$0xff]  }
 0x127   :  { %11649 = vmatprep.subr.bf16.mxu0 %v15726_v8  ;;  %11695 = vmatprep.subr.bf16.mxu1 %v15726_v8  ;;  %v11145_v23 = vld [vmem:[%s18592_s3 + $0x28] sm:$0xff]  ;;  %v13965_v26 = vld [vmem:[%s18589_s0 + $0x14] ss:$8 sps:$4 sm:$0xff]   ;;  %v13969_v32 = vld [vmem:[%s18589_s0 + $0x10] ss:$8 sps:$4 sm:$0xff]  }
 0x128   :  { %2651 = vmatprep.mubr.bf16.mxu1 %v13964_v16  ;;  %v13959_v24 = vld [vmem:[%s18589_s0] ss:$8 sps:$4 sm:$0xff]   ;;  %v11146_v28 = vld [vmem:[%s18592_s3 + $0x30] sm:$0xff]  ;;  %v11147_v29 = vld [vmem:[%s18592_s3 + $0x38] sm:$0xff]  ;;  %v13571_v31 = vpack.c.bf16 %v11145_v23, %v11144_v22 }
 0x129   :  { %v13962_v25 = vld [vmem:[%s18589_s0 + $0x48] ss:$8 sps:$4 sm:$0xff]   ;;  %v13970_v33 = vld [vmem:[%s18589_s0 + $0x58] ss:$8 sps:$4 sm:$0xff]   ;;  %v13574_v34 = vpack.c.bf16 %v11147_v29, %v11146_v28  ;;  %v13971_v35 = vld [vmem:[%s18589_s0 + $0x24] ss:$8 sps:$4 sm:$0xff]  }
 0x12a   :  { %11650 = vmatpush3.bf16.msra.mxu0 %v15733_v9  ;;  %11696 = vmatpush3.bf16.msra.mxu1 %v15733_v9  ;;  %v13973_v36 = vld [vmem:[%s18589_s0 + $0x6c] ss:$8 sps:$4 sm:$0xff]   ;;  %v13975_v37 = vld [vmem:[%s18589_s0 + $0x20] ss:$8 sps:$4 sm:$0xff]   ;;  %v13979_v40 = vld [vmem:[%s18589_s0 + $0x7c] ss:$8 sps:$4 sm:$0xff]  }
 0x12b   :  { %11651 = vmatprep.subr.bf16.mxu0 %v15740_v10  ;;  %11697 = vmatprep.subr.bf16.mxu1 %v15740_v10  ;;  %v13976_v38 = vld [vmem:[%s18589_s0 + $0x68] ss:$8 sps:$4 sm:$0xff]   ;;  %v13977_v39 = vld [vmem:[%s18589_s0 + $0x34] ss:$8 sps:$4 sm:$0xff]   ;;  %v2328_v41 = vld [vmem:[%s18589_s0 + $0x40] sm:$0xff] }
 0x12c   :  { %v2571_v42 = vld [vmem:[%s18589_s0 + $0x88] sm:$0xff]  ;;  %v13981_v43 = vld [vmem:[%s18589_s0 + $0x30] ss:$8 sps:$4 sm:$0xff]   ;;  %v11117_v45 = vcombine.high %v2328_v41, %v2328_v41  ;;  %v11116_v47 = vcombine.low %v2328_v41, %v2328_v41  ;;  %v2559_v49 = vld [vmem:[%s18592_s3] sm:$0xff] }
 0x12d   :  { %v13982_v44 = vld [vmem:[%s18589_s0 + $0x78] ss:$8 sps:$4 sm:$0xff]   ;;  %v11143_v46 = vcombine.high %v2571_v42, %v2571_v42  ;;  %v11142_v48 = vcombine.low %v2571_v42, %v2571_v42  ;;  %v2560_v50 = vld [vmem:[%s18592_s3 + $0x8] sm:$0xff]  ;;  %v2561_v52 = vld [vmem:[%s18592_s3 + $0x10] sm:$0xff] }
 0x12e   :  { %11652 = vmatpush3.bf16.msra.mxu0 %v15747_v11  ;;  %11698 = vmatpush3.bf16.msra.mxu1 %v15747_v11  ;;  %v13577_v51 = vpack.c.bf16 %v2560_v50, %v2559_v49  ;;  %v2562_v53 = vld [vmem:[%s18592_s3 + $0x18] sm:$0xff]  ;;  %v15900_v58 = vld [vmem:[%s18591_s2] ss:$0 sm:$0xff] }
 0x12f   :  { %11653 = vmatprep.subr.bf16.mxu0 %v15754_v12  ;;  %11699 = vmatprep.subr.bf16.mxu1 %v15754_v12  ;;  %v13580_v54 = vpack.c.bf16 %v2562_v53, %v2561_v52 }
 0x132   :  { %11654 = vmatpush3.bf16.msra.mxu0 %v15761_v13  ;;  %11700 = vmatpush3.bf16.msra.mxu1 %v15761_v13 }
 0x133   :  { %11655 = vmatprep.subr.bf16.mxu0 %v15768_v14  ;;  %11701 = vmatprep.subr.bf16.mxu1 %v15768_v14 }
 0x136   :  { %11656 = vmatpush3.bf16.msra.mxu0 %v15781_v17  ;;  %11702 = vmatpush3.bf16.msra.mxu1 %v15781_v17 }
 0x137   :  { %11657 = vmatprep.subr.bf16.mxu0 %v15788_v18  ;;  %11703 = vmatprep.subr.bf16.mxu1 %v15788_v18 }
 0x13a   :  { %11658 = vmatpush3.bf16.msra.mxu0 %v15795_v19  ;;  %11704 = vmatpush3.bf16.msra.mxu1 %v15795_v19 }
 0x13b   :  { %11659 = vmatprep.subr.bf16.mxu0 %v15802_v20  ;;  %11705 = vmatprep.subr.bf16.mxu1 %v15802_v20 }
 0x13e   :  { %11660 = vmatpush3.bf16.msra.mxu0 %v15809_v21  ;;  %11706 = vmatpush3.bf16.msra.mxu1 %v15809_v21 }
 0x13f   :  { %13570 = vmatprep.subr.bf16.mxu0 %v14276_v30  ;;  %13576 = vmatprep.subr.bf16.mxu1 %v14276_v30 }
 0x141   :  { %2511 = vmatmul.mubr.bf16.vlgmr.msra.gmra.mrb[0].mxu0 %v13959_v24  ;;  %2652 = vmatmul.mubr.bf16.vlgmr.msra.gmra.mrb[0].mxu1 %v13962_v25 }
 0x142   :  { %2518 = vmatprep.mubr.bf16.mxu0 %v13965_v26  ;;  %2659 = vmatprep.mubr.bf16.mxu1 %v13967_v27 }
 0x143   :  { %13572 = vmatpush3.bf16.msra.mxu0 %v13571_v31  ;;  %13578 = vmatpush3.bf16.msra.mxu1 %v13577_v51 }
 0x144   :  { %13573 = vmatprep.subr.bf16.mxu0 %v14276_v30  ;;  %13579 = vmatprep.subr.bf16.mxu1 %v14276_v30 }
 0x147   :  { %13575 = vmatpush3.bf16.msra.mxu0 %v13574_v34  ;;  %13581 = vmatpush3.bf16.msra.mxu1 %v13580_v54 }
 0x148   :  { %11763 = vmatprep.subr.bf16.mxu0 %v15700_v4  ;;  %13874 = vmatprep.subr.bf16.mxu1 %v15700_v4 }
 0x149   :  { %2519 = vmatmul.mubr.bf16.gmra.mrb[4].mxu0 %v13969_v32  ;;  %2660 = vmatmul.mubr.bf16.gmra.mrb[4].mxu1 %v13970_v33 }
 0x14a   :  { %2526 = vmatprep.mubr.bf16.mxu0 %v13971_v35  ;;  %2667 = vmatprep.mubr.bf16.mxu1 %v13973_v36 }
 0x151   :  { %2527 = vmatmul.mubr.bf16.gmra.mrb[8].mxu0 %v13975_v37  ;;  %2668 = vmatmul.mubr.bf16.gmra.mrb[8].mxu1 %v13976_v38 }
 0x152   :  { %2534 = vmatprep.mubr.bf16.mxu0 %v13977_v39  ;;  %2675 = vmatprep.mubr.bf16.mxu1 %v13979_v40 }
 0x159   :  { %2535 = vmatmul.mubr.bf16.gmra.mrb[12].mxu0 %v13981_v43  ;;  %2676 = vmatmul.mubr.bf16.gmra.mrb[12].mxu1 %v13982_v44 }
 0x15a   :  { %2542 = vmatprep.mubr.bf16.mxu0 %v11117_v45  ;;  %2683 = vmatprep.mubr.bf16.mxu1 %v11143_v46 }
 0x161   :  { %2543 = vmatmul.mubr.bf16.gmra.mrb[16].mxu0 %v11116_v47  ;;  %2684 = vmatmul.mubr.bf16.gmra.mrb[16].mxu1 %v11142_v48 }
 0x162   :  { %12793 = vmatprep.mubr.msk.f32.mxu0 %vm14277_vm0, %v14278_v55  ;;  %12828 = vmatprep.mubr.msk.f32.mxu1 %vm14277_vm0, %v14278_v55 }
 0x214   :  { %v11661_v56 = vpop.f32.mrb[0].mxu0  ;;  %v11707_v57 = vpop.f32.mrb[0].mxu1 }
 0x215   :  { %v11662_v59 = vpop.f32.mrb[1].mxu0  ;;  %v11708_v60 = vpop.f32.mrb[1].mxu1 }
 0x216   :  { %v11663_v61 = vadd.f32 %v11662_v59, %v11661_v56  ;;  %v11709_v62 = vadd.f32 %v11708_v60, %v11707_v57  ;;  %v11710_v63 = vpop.f32.mrb[2].mxu1  ;;  %v11664_v0 = vpop.f32.mrb[2].mxu0 }
 0x217   :  { %v11711_v1 = vpop.f32.mrb[3].mxu1  ;;  %v11665_v2 = vpop.f32.mrb[3].mxu0 }
 0x218   :  { %v2513_v3 = vadd.f32 %v11663_v61, %v15900_v58  ;;  %v2654_v15 = vadd.f32 %v11709_v62, %v15900_v58  ;;  %v11712_v16 = vadd.f32 %v11711_v1, %v11710_v63  ;;  %v11666_v22 = vadd.f32 %v11665_v2, %v11664_v0 }
 0x21a   :  { %v2550_v23 = vmax.f32 %v2513_v3, 0.0  ;;  %v2691_v24 = vmax.f32 %v2654_v15, 0.0  ;;  %v2657_v25 = vadd.f32 %v11712_v16, %v15900_v58  ;;  %v2516_v26 = vadd.f32 %v11666_v22, %v15900_v58 }
 0x21c   :  { %v2551_v27 = vmax.f32 %v2516_v26, 0.0  ;;  %v11667_v28 = vpop.f32.mrb[4].mxu0  ;;  %v11713_v29 = vpop.f32.mrb[4].mxu1  ;;  %12794 = vmatmul.mubr.msk.f32.vlgmr.msra.gmra.mrb[20].mxu0 %vm2705_vm1, %v2691_v24  ;;  %12829 = vmatmul.mubr.msk.f32.vlgmr.msra.gmra.mrb[20].mxu1 %vm2705_vm1, %v2550_v23  ;;  %v2692_v33 = vmax.f32 %v2657_v25, 0.0 }
 0x21d   :  { %11764 = vmatpush3.bf16.msra.mxu0 %v15705_v5  ;;  %v11668_v31 = vpop.f32.mrb[5].mxu0  ;;  %v11714_v32 = vpop.f32.mrb[5].mxu1  ;;  %12796 = vmatprep.mubr.msk.f32.mxu0 %vm14277_vm0, %v14278_v55 }
 0x21e   :  { %v11669_v34 = vadd.f32 %v11668_v31, %v11667_v28  ;;  %v11715_v35 = vadd.f32 %v11714_v32, %v11713_v29  ;;  %v11716_v36 = vpop.f32.mrb[6].mxu1  ;;  %12831 = vmatprep.mubr.msk.f32.mxu1 %vm14277_vm0, %v14278_v55  ;;  %v11670_v37 = vpop.f32.mrb[6].mxu0  ;;  %11765 = vmatprep.subr.bf16.mxu0 %v15712_v6 }
 0x21f   :  { %v11717_v38 = vpop.f32.mrb[7].mxu1  ;;  %v11671_v39 = vpop.f32.mrb[7].mxu0  ;;  %13882 = vmatpush3.bf16.msra.mxu1 %v15705_v5 }
 0x220   :  { %v2521_v40 = vadd.f32 %v11669_v34, %v15900_v58  ;;  %v2662_v41 = vadd.f32 %v11715_v35, %v15900_v58  ;;  %v11718_v42 = vadd.f32 %v11717_v38, %v11716_v36  ;;  %12797 = vmatmul.mubr.msk.f32.gmra.mrb[22].mxu0 %vm2705_vm1, %v2692_v33  ;;  %12832 = vmatmul.mubr.msk.f32.gmra.mrb[22].mxu1 %vm2705_vm1, %v2551_v27 }
 0x221   :  { %v11672_v43 = vadd.f32 %v11671_v39, %v11670_v37  ;;  %11766 = vmatpush3.bf16.msra.mxu0 %v15719_v7  ;;  %12799 = vmatprep.mubr.msk.f32.mxu0 %vm14277_vm0, %v14278_v55 }
 0x222   :  { %v2552_v44 = vmax.f32 %v2521_v40, 0.0  ;;  %v2693_v45 = vmax.f32 %v2662_v41, 0.0  ;;  %v2665_v46 = vadd.f32 %v11718_v42, %v15900_v58  ;;  %12834 = vmatprep.mubr.msk.f32.mxu1 %vm14277_vm0, %v14278_v55  ;;  %11767 = vmatprep.subr.bf16.mxu0 %v15726_v8 }
 0x223   :  { %v2524_v5 = vadd.f32 %v11672_v43, %v15900_v58  ;;  %13875 = vmatprep.subr.bf16.mxu1 %v15712_v6 }
 0x224   :  { %v11673_v47 = vpop.f32.mrb[8].mxu0  ;;  %v11719_v48 = vpop.f32.mrb[8].mxu1  ;;  %12800 = vmatmul.mubr.msk.f32.gmra.mrb[24].mxu0 %vm2705_vm1, %v2693_v45  ;;  %12835 = vmatmul.mubr.msk.f32.gmra.mrb[24].mxu1 %vm2705_vm1, %v2552_v44  ;;  %v2694_v52 = vmax.f32 %v2665_v46, 0.0 }
 0x225   :  { %v2553_v49 = vmax.f32 %v2524_v5, 0.0  ;;  %v11674_v50 = vpop.f32.mrb[9].mxu0  ;;  %v11720_v51 = vpop.f32.mrb[9].mxu1  ;;  %11768 = vmatpush3.bf16.msra.mxu0 %v15733_v9  ;;  %12802 = vmatprep.mubr.msk.f32.mxu0 %vm14277_vm0, %v14278_v55 }
 0x226   :  { %v11675_v53 = vadd.f32 %v11674_v50, %v11673_v47  ;;  %v11721_v54 = vadd.f32 %v11720_v51, %v11719_v48  ;;  %v11722_v56 = vpop.f32.mrb[10].mxu1  ;;  %12837 = vmatprep.mubr.msk.f32.mxu1 %vm14277_vm0, %v14278_v55  ;;  %v11676_v6 = vpop.f32.mrb[10].mxu0  ;;  %11769 = vmatprep.subr.bf16.mxu0 %v15740_v10  ;;  %v2988_v47 = vld [vmem:[%s18589_s0 + $0xd0] sm:$0xff] }
 0x227   :  { %v11723_v57 = vpop.f32.mrb[11].mxu1  ;;  %v11677_v59 = vpop.f32.mrb[11].mxu0  ;;  %13883 = vmatpush3.bf16.msra.mxu1 %v15719_v7  ;;  %v11175_v51 = vcombine.high %v2988_v47, %v2988_v47 }
 0x228   :  { %v2529_v60 = vadd.f32 %v11675_v53, %v15900_v58  ;;  %v2670_v61 = vadd.f32 %v11721_v54, %v15900_v58  ;;  %v11724_v62 = vadd.f32 %v11723_v57, %v11722_v56  ;;  %12803 = vmatmul.mubr.msk.f32.gmra.mrb[26].mxu0 %vm2705_vm1, %v2694_v52  ;;  %12838 = vmatmul.mubr.msk.f32.gmra.mrb[26].mxu1 %vm2705_vm1, %v2553_v49  ;;  %v13987_v52 = vld [vmem:[%s18589_s0 + $0x90] ss:$8 sps:$4 sm:$0xff]   ;;  %v13990_v53 = vld [vmem:[%s18589_s0 + $0xa4] ss:$8 sps:$4 sm:$0xff]   ;;  %v13992_v54 = vld [vmem:[%s18589_s0 + $0xa0] ss:$8 sps:$4 sm:$0xff]  }
 0x229   :  { %v11678_v63 = vadd.f32 %v11677_v59, %v11676_v6  ;;  %11770 = vmatpush3.bf16.msra.mxu0 %v15747_v11  ;;  %12805 = vmatprep.mubr.msk.f32.mxu0 %vm14277_vm0, %v14278_v55  ;;  %v13993_v56 = vld [vmem:[%s18589_s0 + $0xb4] ss:$8 sps:$4 sm:$0xff]   ;;  %v13995_v6 = vld [vmem:[%s18589_s0 + $0xb0] ss:$8 sps:$4 sm:$0xff]   ;;  %v13996_v57 = vld [vmem:[%s18589_s0 + $0xc4] ss:$8 sps:$4 sm:$0xff]  }
 0x22a   :  { %v2554_v0 = vmax.f32 %v2529_v60, 0.0  ;;  %v2695_v1 = vmax.f32 %v2670_v61, 0.0  ;;  %v2673_v2 = vadd.f32 %v11724_v62, %v15900_v58  ;;  %12840 = vmatprep.mubr.msk.f32.mxu1 %vm14277_vm0, %v14278_v55  ;;  %11771 = vmatprep.subr.bf16.mxu0 %v15754_v12  ;;  %v13998_v59 = vld [vmem:[%s18589_s0 + $0xc0] ss:$8 sps:$4 sm:$0xff]  }
 0x22b   :  { %v2532_v7 = vadd.f32 %v11678_v63, %v15900_v58  ;;  %13876 = vmatprep.subr.bf16.mxu1 %v15726_v8  ;;  %v11176_v60 = vld [vmem:[%s18592_s3 + $0x40] sm:$0xff]  ;;  %v11177_v61 = vld [vmem:[%s18592_s3 + $0x48] sm:$0xff]  ;;  %v11178_v63 = vld [vmem:[%s18592_s3 + $0x50] sm:$0xff] }
 0x22c   :  { %v11679_v3 = vpop.f32.mrb[12].mxu0  ;;  %v11725_v15 = vpop.f32.mrb[12].mxu1  ;;  %12806 = vmatmul.mubr.msk.f32.gmra.mrb[28].mxu0 %vm2705_vm1, %v2695_v1  ;;  %12841 = vmatmul.mubr.msk.f32.gmra.mrb[28].mxu1 %vm2705_vm1, %v2554_v0  ;;  %v2696_v24 = vmax.f32 %v2673_v2, 0.0  ;;  %v13583_v62 = vpack.c.bf16 %v11177_v61, %v11176_v60  ;;  %v11179_v0 = vld [vmem:[%s18592_s3 + $0x58] sm:$0xff] }
 0x22d   :  { %v2555_v16 = vmax.f32 %v2532_v7, 0.0  ;;  %v11680_v22 = vpop.f32.mrb[13].mxu0  ;;  %v11726_v23 = vpop.f32.mrb[13].mxu1  ;;  %11772 = vmatpush3.bf16.msra.mxu0 %v15761_v13  ;;  %12808 = vmatprep.mubr.msk.f32.mxu0 %vm14277_vm0, %v14278_v55  ;;  %v13586_v1 = vpack.c.bf16 %v11179_v0, %v11178_v63 }
 0x22e   :  { %v11681_v25 = vadd.f32 %v11680_v22, %v11679_v3  ;;  %v11727_v26 = vadd.f32 %v11726_v23, %v11725_v15  ;;  %v11728_v27 = vpop.f32.mrb[14].mxu1  ;;  %12843 = vmatprep.mubr.msk.f32.mxu1 %vm14277_vm0, %v14278_v55  ;;  %v11682_v8 = vpop.f32.mrb[14].mxu0  ;;  %11773 = vmatprep.subr.bf16.mxu0 %v15768_v14 }
 0x22f   :  { %v11729_v28 = vpop.f32.mrb[15].mxu1  ;;  %v11683_v29 = vpop.f32.mrb[15].mxu0  ;;  %13884 = vmatpush3.bf16.msra.mxu1 %v15733_v9 }
 0x230   :  { %v2537_v31 = vadd.f32 %v11681_v25, %v15900_v58  ;;  %v2678_v32 = vadd.f32 %v11727_v26, %v15900_v58  ;;  %v11730_v33 = vadd.f32 %v11729_v28, %v11728_v27  ;;  %12809 = vmatmul.mubr.msk.f32.gmra.mrb[30].mxu0 %vm2705_vm1, %v2696_v24  ;;  %12844 = vmatmul.mubr.msk.f32.gmra.mrb[30].mxu1 %vm2705_vm1, %v2555_v16 }
 0x231   :  { %v11684_v34 = vadd.f32 %v11683_v29, %v11682_v8  ;;  %12811 = vmatprep.mubr.msk.f32.mxu0 %vm14277_vm0, %v14278_v55  ;;  %12846 = vmatprep.mubr.msk.f32.mxu1 %vm14277_vm0, %v14278_v55 }
 0x232   :  { %v2556_v35 = vmax.f32 %v2537_v31, 0.0  ;;  %v2697_v36 = vmax.f32 %v2678_v32, 0.0  ;;  %v2681_v9 = vadd.f32 %v11730_v33, %v15900_v58  ;;  %11774 = vmatpush3.bf16.msra.mxu0 %v15781_v17  ;;  %13877 = vmatprep.subr.bf16.mxu1 %v15740_v10 }
 0x233   :  { %v2540_v37 = vadd.f32 %v11684_v34, %v15900_v58  ;;  %11775 = vmatprep.subr.bf16.mxu0 %v15788_v18  ;;  %13885 = vmatpush3.bf16.msra.mxu1 %v15747_v11 }
 0x234   :  { %v11685_v38 = vpop.f32.mrb[16].mxu0  ;;  %v11731_v39 = vpop.f32.mrb[16].mxu1  ;;  %12812 = vmatmul.mubr.msk.f32.gmra.mrb[32].mxu0 %vm2705_vm1, %v2697_v36  ;;  %12847 = vmatmul.mubr.msk.f32.gmra.mrb[32].mxu1 %vm2705_vm1, %v2556_v35  ;;  %v2698_v10 = vmax.f32 %v2681_v9, 0.0 }
 0x235   :  { %v2557_v40 = vmax.f32 %v2540_v37, 0.0  ;;  %v11686_v41 = vpop.f32.mrb[17].mxu0  ;;  %v11732_v42 = vpop.f32.mrb[17].mxu1  ;;  %12814 = vmatprep.mubr.msk.f32.mxu0 %vm14277_vm0, %v14278_v55  ;;  %12849 = vmatprep.mubr.msk.f32.mxu1 %vm14277_vm0, %v14278_v55 }
 0x236   :  { %v11687_v43 = vadd.f32 %v11686_v41, %v11685_v38  ;;  %v11733_v44 = vadd.f32 %v11732_v42, %v11731_v39  ;;  %v11734_v45 = vpop.f32.mrb[18].mxu1  ;;  %11776 = vmatpush3.bf16.msra.mxu0 %v15795_v19  ;;  %13878 = vmatprep.subr.bf16.mxu1 %v15754_v12  ;;  %v11688_v11 = vpop.f32.mrb[18].mxu0  ;;  %v13989_v12 = vld [vmem:[%s18589_s0 + $0x94] ss:$8 sps:$4 sm:$0xff]  }
 0x237   :  { %v11735_v46 = vpop.f32.mrb[19].mxu1  ;;  %11777 = vmatprep.subr.bf16.mxu0 %v15802_v20  ;;  %13886 = vmatpush3.bf16.msra.mxu1 %v15761_v13  ;;  %v11689_v5 = vpop.f32.mrb[19].mxu0 }
 0x238   :  { %v2545_v48 = vadd.f32 %v11687_v43, %v15900_v58  ;;  %v2686_v49 = vadd.f32 %v11733_v44, %v15900_v58  ;;  %12815 = vmatmul.mubr.msk.f32.gmra.mrb[34].mxu0 %vm2705_vm1, %v2698_v10  ;;  %12850 = vmatmul.mubr.msk.f32.gmra.mrb[34].mxu1 %vm2705_vm1, %v2557_v40 }
 0x239   :  { %12817 = vmatprep.mubr.msk.f32.mxu0 %vm14277_vm0, %v14278_v55  ;;  %12852 = vmatprep.mubr.msk.f32.mxu1 %vm14277_vm0, %v14278_v55 }
 0x23a   :  { %v2558_v13 = vmax.f32 %v2545_v48, 0.0  ;;  %v2699_v50 = vmax.f32 %v2686_v49, 0.0  ;;  %11778 = vmatpush3.bf16.msra.mxu0 %v15809_v21  ;;  %13879 = vmatprep.subr.bf16.mxu1 %v15768_v14  ;;  %v11174_v14 = vcombine.low %v2988_v47, %v2988_v47 }
 0x23b   :  { %13887 = vmatpush3.bf16.msra.mxu1 %v15781_v17  ;;  %13588 = vmatprep.subr.bf16.mxu0 %v14276_v30 }
 0x23c   :  { %12818 = vmatmul.mubr.msk.f32.gmra.mrb[36].mxu0 %vm2705_vm1, %v2699_v50  ;;  %12853 = vmatmul.mubr.msk.f32.gmra.mrb[36].mxu1 %vm2705_vm1, %v2558_v13 }
 0x23d   :  { %3068 = vmatprep.mubr.bf16.mxu0 %v13989_v12  ;;  %13880 = vmatprep.subr.bf16.mxu1 %v15788_v18 }
 0x23e   :  { %3100 = vmatprep.mubr.bf16.mxu1 %v11175_v51 }
 0x23f   :  { %13888 = vmatpush3.bf16.msra.mxu1 %v15795_v19 }
 0x240   :  { %3069 = vmatmul.mubr.bf16.vlgmr.msra.gmra.mrb[40].mxu0 %v13987_v52  ;;  %13881 = vmatprep.subr.bf16.mxu1 %v15802_v20 }
 0x241   :  { %3076 = vmatprep.mubr.bf16.mxu0 %v13990_v53 }
 0x243   :  { %13889 = vmatpush3.bf16.msra.mxu1 %v15809_v21 }
 0x244   :  { %13582 = vmatprep.subr.bf16.mxu1 %v14276_v30 }
 0x246   :  { %3101 = vmatmul.mubr.bf16.vlgmr.msra.gmra.mrb[40].mxu1 %v11174_v14 }
 0x247   :  { %12863 = vmatprep.mubr.msk.f32.mxu1 %vm14277_vm0, %v14278_v55  ;;  %13584 = vmatpush3.bf16.msra.mxu1 %v13583_v62 }
 0x248   :  { %3077 = vmatmul.mubr.bf16.gmra.mrb[44].mxu0 %v13992_v54  ;;  %13585 = vmatprep.subr.bf16.mxu1 %v14276_v30 }
 0x249   :  { %3084 = vmatprep.mubr.bf16.mxu0 %v13993_v56 }
 0x24b   :  { %13587 = vmatpush3.bf16.msra.mxu1 %v13586_v1 }
 0x24c   :  { %11822 = vmatprep.subr.bf16.mxu1 %v15700_v4 }
 0x250   :  { %3085 = vmatmul.mubr.bf16.gmra.mrb[48].mxu0 %v13995_v6 }
 0x251   :  { %3092 = vmatprep.mubr.bf16.mxu0 %v13996_v57 }
 0x258   :  { %3093 = vmatmul.mubr.bf16.gmra.mrb[52].mxu0 %v13998_v59 }
 0x259   :  { %12898 = vmatprep.mubr.msk.f32.mxu0 %vm14277_vm0, %v14278_v55 }
 0x2ef   :  { %v2799_v2 = vpop.f32.mrb[20].mxu0  ;;  %v2936_v7 = vpop.f32.mrb[20].mxu1 }
 0x2f0   :  { %v16047_v3 = vadd.f32 %v2936_v7, %v2799_v2  ;;  %v12795_v15 = vpop.f32.mrb[21].mxu0  ;;  %v12830_v16 = vpop.f32.mrb[21].mxu1 }
 0x2f1   :  { %v16073_v16 = vld [vmem:[%s18590_s1] sm:$0xff]  }
 0x2f3   :  { %v2804_v22 = vpop.f32.mrb[22].mxu0  ;;  %v2941_v23 = vpop.f32.mrb[22].mxu1 }
 0x2f4   :  { %v16049_v24 = vadd.f32 %v2941_v23, %v2804_v22  ;;  %v12798_v25 = vpop.f32.mrb[23].mxu0  ;;  %v12833_v26 = vpop.f32.mrb[23].mxu1 }
 0x2f7   :  { %v2809_v27 = vpop.f32.mrb[24].mxu0  ;;  %v2946_v8 = vpop.f32.mrb[24].mxu1 }
 0x2f8   :  { %v16051_v28 = vadd.f32 %v2946_v8, %v2809_v27  ;;  %v12801_v29 = vpop.f32.mrb[25].mxu0  ;;  %v12836_v31 = vpop.f32.mrb[25].mxu1  ;;  %v16081_v8 = vld [vmem:[%s18590_s1 + $0x48] sm:$0xff]  }
 0x2fb   :  { %v2814_v32 = vpop.f32.mrb[26].mxu0  ;;  %v2951_v4 = vpop.f32.mrb[26].mxu1 }
 0x2fc   :  { %v16053_v33 = vadd.f32 %v2951_v4, %v2814_v32  ;;  %v12804_v34 = vpop.f32.mrb[27].mxu0  ;;  %v12839_v35 = vpop.f32.mrb[27].mxu1  ;;  %v16089_v4 = vld [vmem:[%s18590_s1 + $0x8] sm:$0xff]  }
 0x2fd   :  { %v16097_v35 = vld [vmem:[%s18590_s1 + $0x50] sm:$0xff]  }
 0x2ff   :  { %v2819_v36 = vpop.f32.mrb[28].mxu0  ;;  %v2956_v9 = vpop.f32.mrb[28].mxu1 }
 0x300   :  { %v16055_v37 = vadd.f32 %v2956_v9, %v2819_v36  ;;  %v12807_v38 = vpop.f32.mrb[29].mxu0  ;;  %v12842_v39 = vpop.f32.mrb[29].mxu1 }
 0x301   :  { %v16105_v39 = vld [vmem:[%s18590_s1 + $0x10] sm:$0xff]  }
 0x303   :  { %v2824_v40 = vpop.f32.mrb[30].mxu0  ;;  %v2961_v41 = vpop.f32.mrb[30].mxu1 }
 0x304   :  { %v12810_v42 = vpop.f32.mrb[31].mxu0  ;;  %v12845_v10 = vpop.f32.mrb[31].mxu1  ;;  %v16057_v43 = vadd.f32 %v2961_v41, %v2824_v40 }
 0x305   :  { %v16113_v42 = vld [vmem:[%s18590_s1 + $0x58] sm:$0xff]  }
 0x307   :  { %v2829_v44 = vpop.f32.mrb[32].mxu0  ;;  %v2966_v45 = vpop.f32.mrb[32].mxu1 }
 0x308   :  { %v12813_v11 = vpop.f32.mrb[33].mxu0  ;;  %v12848_v46 = vpop.f32.mrb[33].mxu1  ;;  %v16059_v5 = vadd.f32 %v2966_v45, %v2829_v44 }
 0x309   :  { %v16121_v46 = vld [vmem:[%s18590_s1 + $0x18] sm:$0xff]  }
 0x30b   :  { %v2834_v47 = vpop.f32.mrb[34].mxu0  ;;  %v2971_v48 = vpop.f32.mrb[34].mxu1 }
 0x30c   :  { %v12816_v49 = vpop.f32.mrb[35].mxu0  ;;  %v12851_v12 = vpop.f32.mrb[35].mxu1  ;;  %v16061_v13 = vadd.f32 %v2971_v48, %v2834_v47  ;;  %v16129_v48 = vld [vmem:[%s18590_s1 + $0x60] sm:$0xff]  }
 0x30f   :  { %v2839_v50 = vpop.f32.mrb[36].mxu0  ;;  %v2976_v51 = vpop.f32.mrb[36].mxu1 }
 0x310   :  { %v12819_v52 = vpop.f32.mrb[37].mxu0  ;;  %v12854_v53 = vpop.f32.mrb[37].mxu1  ;;  %v16063_v14 = vadd.f32 %v2976_v51, %v2839_v50  ;;  %v16137_v51 = vld [vmem:[%s18590_s1 + $0x20] sm:$0xff]  }
 0x313   :  { %v11779_v54 = vpop.f32.mrb[40].mxu0 }
 0x314   :  { %v11780_v56 = vpop.f32.mrb[41].mxu0 }
 0x315   :  { %v11781_v6 = vadd.f32 %v11780_v56, %v11779_v54  ;;  %v11782_v57 = vpop.f32.mrb[42].mxu0  ;;  %v16145_v56 = vld [vmem:[%s18590_s1 + $0x68] sm:$0xff]  }
 0x316   :  { %v11783_v59 = vpop.f32.mrb[43].mxu0 }
 0x317   :  { %v3071_v60 = vadd.f32 %v11781_v6, %v15900_v58  ;;  %v11784_v61 = vadd.f32 %v11783_v59, %v11782_v57 }
 0x319   :  { %v3108_v62 = vmax.f32 %v3071_v60, 0.0  ;;  %v3074_v63 = vadd.f32 %v11784_v61, %v15900_v58  ;;  %v11803_v0 = vpop.f32.mrb[40].mxu1 }
 0x31a   :  { %v11804_v1 = vpop.f32.mrb[41].mxu1 }
 0x31b   :  { %v11785_v2 = vpop.f32.mrb[44].mxu0  ;;  %12864 = vmatmul.mubr.msk.f32.vlgmr.msra.gmra.mrb[38].mxu1 %vm2705_vm1, %v3108_v62  ;;  %v16068_v7 = vadd.f32 %v11804_v1, %v11803_v0  ;;  %v11806_v15 = vpop.f32.mrb[42].mxu1  ;;  %v3109_v25 = vmax.f32 %v3074_v63, 0.0  ;;  %v14009_v1 = vld [vmem:[%s18589_s0 + $0xf8] ss:$8 sps:$4 sm:$0xff]  }
 0x31c   :  { %11823 = vmatpush3.bf16.msra.mxu1 %v16073_v16  ;;  %v11786_v22 = vpop.f32.mrb[45].mxu0  ;;  %12866 = vmatprep.mubr.msk.f32.mxu1 %vm14277_vm0, %v14278_v55  ;;  %v11807_v23 = vpop.f32.mrb[43].mxu1  ;;  %v14012_v15 = vld [vmem:[%s18589_s0 + $0x108] ss:$8 sps:$4 sm:$0xff]  }
 0x31d   :  { %v11787_v26 = vadd.f32 %v11786_v22, %v11785_v2  ;;  %v11788_v27 = vpop.f32.mrb[46].mxu0  ;;  %11824 = vmatprep.subr.bf16.mxu1 %v16081_v8  ;;  %v3103_v62 = vadd.f32 %v16068_v7, %v15900_v58  ;;  %v14010_v2 = vld [vmem:[%s18589_s0 + $0x10c] ss:$8 sps:$4 sm:$0xff]   ;;  %v3276_v7 = vld [vmem:[%s18589_s0 + $0x118] sm:$0xff] }
 0x31e   :  { %v11789_v29 = vpop.f32.mrb[47].mxu0  ;;  %v11198_v22 = vcombine.high %v3276_v7, %v3276_v7  ;;  %v11197_v23 = vcombine.low %v3276_v7, %v3276_v7 }
 0x31f   :  { %v3079_v31 = vadd.f32 %v11787_v26, %v15900_v58  ;;  %12867 = vmatmul.mubr.msk.f32.gmra.mrb[44].mxu1 %vm2705_vm1, %v3109_v25  ;;  %v11790_v32 = vadd.f32 %v11789_v29, %v11788_v27  ;;  %v3116_v0 = vmax.f32 %v3103_v62, 0.0  ;;  %v11199_v25 = vld [vmem:[%s18592_s3 + $0x60] sm:$0xff]  ;;  %v11200_v26 = vld [vmem:[%s18592_s3 + $0x68] sm:$0xff]  ;;  %v11201_v29 = vld [vmem:[%s18592_s3 + $0x70] sm:$0xff] }
 0x320   :  { %11825 = vmatpush3.bf16.msra.mxu1 %v16089_v4  ;;  %12869 = vmatprep.mubr.msk.f32.mxu1 %vm14277_vm0, %v14278_v55  ;;  %v13589_v27 = vpack.c.bf16 %v11200_v26, %v11199_v25 }
 0x321   :  { %v3110_v34 = vmax.f32 %v3079_v31, 0.0  ;;  %11826 = vmatprep.subr.bf16.mxu1 %v16097_v35  ;;  %v3082_v36 = vadd.f32 %v11790_v32, %v15900_v58  ;;  %v11202_v31 = vld [vmem:[%s18592_s3 + $0x78] sm:$0xff] }
 0x322   :  { %13590 = vmatpush3.bf16.msra.mxu0 %v13589_v27  ;;  %v13592_v32 = vpack.c.bf16 %v11202_v31, %v11201_v29 }
 0x323   :  { %v11791_v9 = vpop.f32.mrb[48].mxu0  ;;  %12870 = vmatmul.mubr.msk.f32.gmra.mrb[46].mxu1 %vm2705_vm1, %v3110_v34  ;;  %v3111_v41 = vmax.f32 %v3082_v36, 0.0  ;;  %13591 = vmatprep.subr.bf16.mxu0 %v14276_v30  ;;  %v16213_v34 = vld [vmem:[%s18590_s1 + $0x40] sm:$0xff]  }
 0x324   :  { %v11792_v38 = vpop.f32.mrb[49].mxu0  ;;  %11827 = vmatpush3.bf16.msra.mxu1 %v16105_v39  ;;  %12872 = vmatprep.mubr.msk.f32.mxu1 %vm14277_vm0, %v14278_v55 }
 0x325   :  { %v11794_v40 = vpop.f32.mrb[50].mxu0  ;;  %11828 = vmatprep.subr.bf16.mxu1 %v16113_v42  ;;  %v11793_v10 = vadd.f32 %v11792_v38, %v11791_v9 }
 0x326   :  { %v11795_v44 = vpop.f32.mrb[51].mxu0  ;;  %13593 = vmatpush3.bf16.msra.mxu0 %v13592_v32 }
 0x327   :  { %12873 = vmatmul.mubr.msk.f32.gmra.mrb[48].mxu1 %vm2705_vm1, %v3111_v41  ;;  %v3087_v45 = vadd.f32 %v11793_v10, %v15900_v58  ;;  %v11796_v11 = vadd.f32 %v11795_v44, %v11794_v40  ;;  %11881 = vmatprep.subr.bf16.mxu0 %v16213_v34 }
 0x328   :  { %11829 = vmatpush3.bf16.msra.mxu1 %v16121_v46  ;;  %12875 = vmatprep.mubr.msk.f32.mxu1 %vm14277_vm0, %v14278_v55 }
 0x329   :  { %v3112_v47 = vmax.f32 %v3087_v45, 0.0  ;;  %11830 = vmatprep.subr.bf16.mxu1 %v16129_v48  ;;  %v3090_v49 = vadd.f32 %v11796_v11, %v15900_v58 }
 0x32b   :  { %v11797_v12 = vpop.f32.mrb[52].mxu0  ;;  %12876 = vmatmul.mubr.msk.f32.gmra.mrb[50].mxu1 %vm2705_vm1, %v3112_v47  ;;  %v3113_v54 = vmax.f32 %v3090_v49, 0.0 }
 0x32c   :  { %v11798_v50 = vpop.f32.mrb[53].mxu0  ;;  %11831 = vmatpush3.bf16.msra.mxu1 %v16137_v51  ;;  %12878 = vmatprep.mubr.msk.f32.mxu1 %vm14277_vm0, %v14278_v55 }
 0x32d   :  { %v11799_v52 = vadd.f32 %v11798_v50, %v11797_v12  ;;  %v11800_v53 = vpop.f32.mrb[54].mxu0  ;;  %11832 = vmatprep.subr.bf16.mxu1 %v16145_v56 }
 0x32e   :  { %v11801_v6 = vpop.f32.mrb[55].mxu0 }
 0x32f   :  { %v3095_v57 = vadd.f32 %v11799_v52, %v15900_v58  ;;  %v11802_v59 = vadd.f32 %v11801_v6, %v11800_v53  ;;  %12879 = vmatmul.mubr.msk.f32.gmra.mrb[52].mxu1 %vm2705_vm1, %v3113_v54 }
 0x330   :  { %12881 = vmatprep.mubr.msk.f32.mxu1 %vm14277_vm0, %v14278_v55  ;;  %11833 = vmatpush3.bf16.msra.mxu1 %v15781_v17  ;;  %v14003_v17 = vld [vmem:[%s18589_s0 + $0xdc] ss:$8 sps:$4 sm:$0xff]  }
 0x331   :  { %v3114_v60 = vmax.f32 %v3095_v57, 0.0  ;;  %v3098_v61 = vadd.f32 %v11802_v59, %v15900_v58  ;;  %11834 = vmatprep.subr.bf16.mxu1 %v15788_v18  ;;  %v14001_v18 = vld [vmem:[%s18589_s0 + $0xd8] ss:$8 sps:$4 sm:$0xff]  }
 0x333   :  { %12882 = vmatmul.mubr.msk.f32.gmra.mrb[54].mxu1 %vm2705_vm1, %v3114_v60  ;;  %v3115_v63 = vmax.f32 %v3098_v61, 0.0 }
 0x334   :  { %12884 = vmatprep.mubr.msk.f32.mxu1 %vm14277_vm0, %v14278_v55  ;;  %11835 = vmatpush3.bf16.msra.mxu1 %v15795_v19  ;;  %v14004_v19 = vld [vmem:[%s18589_s0 + $0xec] ss:$8 sps:$4 sm:$0xff]  }
 0x335   :  { %11836 = vmatprep.subr.bf16.mxu1 %v15802_v20  ;;  %v14006_v20 = vld [vmem:[%s18589_s0 + $0xe8] ss:$8 sps:$4 sm:$0xff]  }
 0x337   :  { %12885 = vmatmul.mubr.msk.f32.gmra.mrb[56].mxu1 %vm2705_vm1, %v3115_v63 }
 0x338   :  { %12887 = vmatprep.mubr.msk.f32.mxu1 %vm14277_vm0, %v14278_v55  ;;  %11837 = vmatpush3.bf16.msra.mxu1 %v15809_v21  ;;  %v14007_v21 = vld [vmem:[%s18589_s0 + $0xfc] ss:$8 sps:$4 sm:$0xff]  }
 0x339   :  { %13594 = vmatprep.subr.bf16.mxu1 %v14276_v30 }
 0x33b   :  { %12888 = vmatmul.mubr.msk.f32.gmra.mrb[58].mxu1 %vm2705_vm1, %v3116_v0 }
 0x33c   :  { %3356 = vmatprep.mubr.bf16.mxu1 %v14003_v17 }
 0x33f   :  { %3357 = vmatmul.mubr.bf16.vlgmr.msra.gmra.mrb[60].mxu1 %v14001_v18 }
 0x340   :  { %3364 = vmatprep.mubr.bf16.mxu1 %v14004_v19 }
 0x347   :  { %3365 = vmatmul.mubr.bf16.gmra.mrb[64].mxu1 %v14006_v20 }
 0x348   :  { %3372 = vmatprep.mubr.bf16.mxu1 %v14007_v21 }
 0x34f   :  { %3373 = vmatmul.mubr.bf16.gmra.mrb[68].mxu1 %v14009_v1 }
 0x350   :  { %3380 = vmatprep.mubr.bf16.mxu1 %v14010_v2 }
 0x357   :  { %3381 = vmatmul.mubr.bf16.gmra.mrb[72].mxu1 %v14012_v15 }
 0x358   :  { %3388 = vmatprep.mubr.bf16.mxu1 %v11198_v22 }
 0x35f   :  { %3389 = vmatmul.mubr.bf16.gmra.mrb[76].mxu1 %v11197_v23 }
 0x360   :  { %12933 = vmatprep.mubr.msk.f32.mxu1 %vm14277_vm0, %v14278_v55 }
 0x3ee   :  { %v3215_v36 = vpop.f32.mrb[38].mxu1 }
 0x3ef   :  { %v12865_v9 = vpop.f32.mrb[39].mxu1  ;;  %v16217_v38 = vadd.f32 %v3215_v36, %v16047_v3 }
 0x3f2   :  { %v3220_v40 = vpop.f32.mrb[44].mxu1 }
 0x3f3   :  { %v12868_v41 = vpop.f32.mrb[45].mxu1  ;;  %v16220_v10 = vadd.f32 %v3220_v40, %v16049_v24 }
 0x3f6   :  { %v3225_v44 = vpop.f32.mrb[46].mxu1 }
 0x3f7   :  { %v12871_v45 = vpop.f32.mrb[47].mxu1  ;;  %v16223_v11 = vadd.f32 %v3225_v44, %v16051_v28 }
 0x3fa   :  { %v3230_v47 = vpop.f32.mrb[48].mxu1 }
 0x3fb   :  { %v12874_v49 = vpop.f32.mrb[49].mxu1  ;;  %v16226_v12 = vadd.f32 %v3230_v47, %v16053_v33 }
 0x3fe   :  { %v3235_v50 = vpop.f32.mrb[50].mxu1 }
 0x3ff   :  { %v12877_v52 = vpop.f32.mrb[51].mxu1  ;;  %v16229_v3 = vadd.f32 %v3235_v50, %v16055_v37 }
 0x402   :  { %v3240_v53 = vpop.f32.mrb[52].mxu1 }
 0x403   :  { %v16232_v54 = vadd.f32 %v3240_v53, %v16057_v43  ;;  %v12880_v24 = vpop.f32.mrb[53].mxu1 }
 0x406   :  { %v3245_v6 = vpop.f32.mrb[54].mxu1 }
 0x407   :  { %v16235_v57 = vadd.f32 %v3245_v6, %v16059_v5  ;;  %v12883_v28 = vpop.f32.mrb[55].mxu1 }
 0x40a   :  { %v3250_v59 = vpop.f32.mrb[56].mxu1 }
 0x40b   :  { %v16238_v60 = vadd.f32 %v3250_v59, %v16061_v13  ;;  %v12886_v33 = vpop.f32.mrb[57].mxu1  ;;  %v16281_v59 = vld [vmem:[%s18590_s1 + $0x28] sm:$0xff]  }
 0x40e   :  { %v3255_v61 = vpop.f32.mrb[58].mxu1 }
 0x40f   :  { %v16241_v62 = vadd.f32 %v3255_v61, %v16063_v14  ;;  %v12889_v37 = vpop.f32.mrb[59].mxu1 }
 0x410   :  { %v16288_v37 = vld [vmem:[%s18590_s1 + $0x70] sm:$0xff]  }
 0x412   :  { %v11838_v63 = vpop.f32.mrb[60].mxu1 }
 0x413   :  { %v11839_v0 = vpop.f32.mrb[61].mxu1 }
 0x414   :  { %v11840_v43 = vadd.f32 %v11839_v0, %v11838_v63  ;;  %v11841_v17 = vpop.f32.mrb[62].mxu1 }
 0x415   :  { %v11842_v18 = vpop.f32.mrb[63].mxu1 }
 0x416   :  { %v3359_v19 = vadd.f32 %v11840_v43, %v15900_v58  ;;  %v11843_v5 = vadd.f32 %v11842_v18, %v11841_v17  ;;  %v16297_v43 = vld [vmem:[%s18590_s1 + $0x30] sm:$0xff]  }
 0x418   :  { %v3396_v20 = vmax.f32 %v3359_v19, 0.0  ;;  %v3362_v21 = vadd.f32 %v11843_v5, %v15900_v58  ;;  %v16303_v5 = vld [vmem:[%s18590_s1 + $0x78] sm:$0xff]  }
 0x41a   :  { %v11844_v1 = vpop.f32.mrb[64].mxu1  ;;  %12899 = vmatmul.mubr.msk.f32.vlgmr.msra.gmra.mrb[38].mxu0 %vm2705_vm1, %v3396_v20  ;;  %v3397_v14 = vmax.f32 %v3362_v21, 0.0 }
 0x41b   :  { %11882 = vmatpush3.bf16.msra.mxu0 %v16073_v16  ;;  %v11845_v13 = vpop.f32.mrb[65].mxu1  ;;  %12901 = vmatprep.mubr.msk.f32.mxu0 %vm14277_vm0, %v14278_v55 }
 0x41c   :  { %v11846_v2 = vadd.f32 %v11845_v13, %v11844_v1  ;;  %v11847_v7 = vpop.f32.mrb[66].mxu1  ;;  %11883 = vmatprep.subr.bf16.mxu0 %v16081_v8  ;;  %v16313_v1 = vld [vmem:[%s18590_s1 + $0x38] sm:$0xff]   ;;  %v14017_v13 = vld [vmem:[%s18589_s0 + $0x124] ss:$8 sps:$4 sm:$0xff]  }
 0x41d   :  { %v11848_v15 = vpop.f32.mrb[67].mxu1 }
 0x41e   :  { %v3367_v22 = vadd.f32 %v11846_v2, %v15900_v58  ;;  %v11849_v23 = vadd.f32 %v11848_v15, %v11847_v7  ;;  %12902 = vmatmul.mubr.msk.f32.gmra.mrb[56].mxu0 %vm2705_vm1, %v3397_v14  ;;  %v14018_v2 = vld [vmem:[%s18589_s0 + $0x134] ss:$8 sps:$4 sm:$0xff]   ;;  %v14020_v7 = vld [vmem:[%s18589_s0 + $0x130] ss:$8 sps:$4 sm:$0xff]   ;;  %v14021_v15 = vld [vmem:[%s18589_s0 + $0x144] ss:$8 sps:$4 sm:$0xff]  }
 0x41f   :  { %11884 = vmatpush3.bf16.msra.mxu0 %v16089_v4  ;;  %12904 = vmatprep.mubr.msk.f32.mxu0 %vm14277_vm0, %v14278_v55 }
 0x420   :  { %v3398_v25 = vmax.f32 %v3367_v22, 0.0  ;;  %v3370_v26 = vadd.f32 %v11849_v23, %v15900_v58  ;;  %11885 = vmatprep.subr.bf16.mxu0 %v16097_v35  ;;  %v14023_v22 = vld [vmem:[%s18589_s0 + $0x140] ss:$8 sps:$4 sm:$0xff]   ;;  %v14024_v23 = vld [vmem:[%s18589_s0 + $0x154] ss:$8 sps:$4 sm:$0xff]  }
 0x422   :  { %v11850_v27 = vpop.f32.mrb[68].mxu1  ;;  %12905 = vmatmul.mubr.msk.f32.gmra.mrb[58].mxu0 %vm2705_vm1, %v3398_v25  ;;  %v3399_v31 = vmax.f32 %v3370_v26, 0.0  ;;  %v3564_v25 = vld [vmem:[%s18589_s0 + $0x160] sm:$0xff]  ;;  %v14026_v26 = vld [vmem:[%s18589_s0 + $0x150] ss:$8 sps:$4 sm:$0xff]  }
 0x423   :  { %v11851_v29 = vpop.f32.mrb[69].mxu1  ;;  %11886 = vmatpush3.bf16.msra.mxu0 %v16105_v39  ;;  %12907 = vmatprep.mubr.msk.f32.mxu0 %vm14277_vm0, %v14278_v55 }
 0x424   :  { %v11852_v32 = vadd.f32 %v11851_v29, %v11850_v27  ;;  %v11853_v36 = vpop.f32.mrb[70].mxu1  ;;  %11887 = vmatprep.subr.bf16.mxu0 %v16113_v42  ;;  %v11221_v27 = vcombine.high %v3564_v25, %v3564_v25  ;;  %v11220_v29 = vcombine.low %v3564_v25, %v3564_v25 }
 0x425   :  { %v11854_v9 = vpop.f32.mrb[71].mxu1 }
 0x426   :  { %v3375_v40 = vadd.f32 %v11852_v32, %v15900_v58  ;;  %v11855_v41 = vadd.f32 %v11854_v9, %v11853_v36  ;;  %12908 = vmatmul.mubr.msk.f32.gmra.mrb[60].mxu0 %vm2705_vm1, %v3399_v31  ;;  %v11222_v31 = vld [vmem:[%s18592_s3 + $0x80] sm:$0xff]  ;;  %v11223_v32 = vld [vmem:[%s18592_s3 + $0x88] sm:$0xff]  ;;  %v11224_v9 = vld [vmem:[%s18592_s3 + $0x90] sm:$0xff] }
 0x427   :  { %11888 = vmatpush3.bf16.msra.mxu0 %v16121_v46  ;;  %12910 = vmatprep.mubr.msk.f32.mxu0 %vm14277_vm0, %v14278_v55  ;;  %v13595_v36 = vpack.c.bf16 %v11223_v32, %v11222_v31 }
 0x428   :  { %v3400_v44 = vmax.f32 %v3375_v40, 0.0  ;;  %v3378_v45 = vadd.f32 %v11855_v41, %v15900_v58  ;;  %11889 = vmatprep.subr.bf16.mxu0 %v16129_v48  ;;  %v11225_v40 = vld [vmem:[%s18592_s3 + $0x98] sm:$0xff] }
 0x429   :  { %13596 = vmatpush3.bf16.msra.mxu1 %v13595_v36  ;;  %v13598_v41 = vpack.c.bf16 %v11225_v40, %v11224_v9 }
 0x42a   :  { %v11856_v47 = vpop.f32.mrb[72].mxu1  ;;  %12911 = vmatmul.mubr.msk.f32.gmra.mrb[62].mxu0 %vm2705_vm1, %v3400_v44  ;;  %v3401_v50 = vmax.f32 %v3378_v45, 0.0  ;;  %13597 = vmatprep.subr.bf16.mxu1 %v14276_v30 }
 0x42b   :  { %v11857_v49 = vpop.f32.mrb[73].mxu1  ;;  %11890 = vmatpush3.bf16.msra.mxu0 %v16137_v51  ;;  %12913 = vmatprep.mubr.msk.f32.mxu0 %vm14277_vm0, %v14278_v55 }
 0x42c   :  { %v11858_v52 = vadd.f32 %v11857_v49, %v11856_v47  ;;  %v11859_v53 = vpop.f32.mrb[74].mxu1  ;;  %11891 = vmatprep.subr.bf16.mxu0 %v16145_v56 }
 0x42d   :  { %v11860_v24 = vpop.f32.mrb[75].mxu1  ;;  %13599 = vmatpush3.bf16.msra.mxu1 %v13598_v41 }
 0x42e   :  { %v3383_v6 = vadd.f32 %v11858_v52, %v15900_v58  ;;  %v11861_v28 = vadd.f32 %v11860_v24, %v11859_v53  ;;  %12914 = vmatmul.mubr.msk.f32.gmra.mrb[64].mxu0 %vm2705_vm1, %v3401_v50  ;;  %11940 = vmatprep.subr.bf16.mxu1 %v16213_v34 }
 0x42f   :  { %12916 = vmatprep.mubr.msk.f32.mxu0 %vm14277_vm0, %v14278_v55  ;;  %11892 = vmatpush3.bf16.msra.mxu0 %v16281_v59 }
 0x430   :  { %v3402_v33 = vmax.f32 %v3383_v6, 0.0  ;;  %v3386_v61 = vadd.f32 %v11861_v28, %v15900_v58  ;;  %11893 = vmatprep.subr.bf16.mxu0 %v16288_v37 }
 0x432   :  { %v11862_v63 = vpop.f32.mrb[76].mxu1  ;;  %12917 = vmatmul.mubr.msk.f32.gmra.mrb[66].mxu0 %vm2705_vm1, %v3402_v33  ;;  %v3403_v17 = vmax.f32 %v3386_v61, 0.0 }
 0x433   :  { %v11863_v0 = vpop.f32.mrb[77].mxu1  ;;  %12919 = vmatprep.mubr.msk.f32.mxu0 %vm14277_vm0, %v14278_v55  ;;  %11894 = vmatpush3.bf16.msra.mxu0 %v16297_v43 }
 0x434   :  { %v11864_v18 = vadd.f32 %v11863_v0, %v11862_v63  ;;  %v11865_v19 = vpop.f32.mrb[78].mxu1  ;;  %11895 = vmatprep.subr.bf16.mxu0 %v16303_v5 }
 0x435   :  { %v11866_v20 = vpop.f32.mrb[79].mxu1 }
 0x436   :  { %v3391_v21 = vadd.f32 %v11864_v18, %v15900_v58  ;;  %12920 = vmatmul.mubr.msk.f32.gmra.mrb[68].mxu0 %vm2705_vm1, %v3403_v17  ;;  %v14015_v58 = vld [vmem:[%s18589_s0 + $0x120] ss:$8 sps:$4 sm:$0xff]  }
 0x437   :  { %12922 = vmatprep.mubr.msk.f32.mxu0 %vm14277_vm0, %v14278_v55  ;;  %11896 = vmatpush3.bf16.msra.mxu0 %v16313_v1 }
 0x438   :  { %v3404_v14 = vmax.f32 %v3391_v21, 0.0  ;;  %13600 = vmatprep.subr.bf16.mxu0 %v14276_v30 }
 0x43a   :  { %12923 = vmatmul.mubr.msk.f32.gmra.mrb[70].mxu0 %vm2705_vm1, %v3404_v14 }
 0x43b   :  { %3644 = vmatprep.mubr.bf16.mxu0 %v14017_v13 }
 0x43e   :  { %3645 = vmatmul.mubr.bf16.vlgmr.msra.gmra.mrb[72].mxu0 %v14015_v58 }
 0x43f   :  { %3652 = vmatprep.mubr.bf16.mxu0 %v14018_v2 }
 0x446   :  { %3653 = vmatmul.mubr.bf16.gmra.mrb[76].mxu0 %v14020_v7 }
 0x447   :  { %3660 = vmatprep.mubr.bf16.mxu0 %v14021_v15 }
 0x44e   :  { %3661 = vmatmul.mubr.bf16.gmra.mrb[80].mxu0 %v14023_v22 }
 0x44f   :  { %3668 = vmatprep.mubr.bf16.mxu0 %v14024_v23 }
 0x456   :  { %3669 = vmatmul.mubr.bf16.gmra.mrb[84].mxu0 %v14026_v26 }
 0x457   :  { %3676 = vmatprep.mubr.bf16.mxu0 %v11221_v27 }
 0x45e   :  { %3677 = vmatmul.mubr.bf16.gmra.mrb[88].mxu0 %v11220_v29 }
 0x45f   :  { %12968 = vmatprep.mubr.msk.f32.mxu0 %vm14277_vm0, %v14278_v55 }
 0x4ed   :  { %v3503_v44 = vpop.f32.mrb[38].mxu0 }
 0x4ee   :  { %v16362_v45 = vadd.f32 %v3503_v44, %v16217_v38  ;;  %v12900_v47 = vpop.f32.mrb[39].mxu0 }
 0x4f1   :  { %v3508_v49 = vpop.f32.mrb[56].mxu0 }
 0x4f2   :  { %v16365_v50 = vadd.f32 %v3508_v49, %v16220_v10  ;;  %v12903_v52 = vpop.f32.mrb[57].mxu0 }
 0x4f5   :  { %v3513_v53 = vpop.f32.mrb[58].mxu0 }
 0x4f6   :  { %v16368_v24 = vadd.f32 %v3513_v53, %v16223_v11  ;;  %v12906_v6 = vpop.f32.mrb[59].mxu0 }
 0x4f9   :  { %v3518_v28 = vpop.f32.mrb[60].mxu0 }
 0x4fa   :  { %v16371_v33 = vadd.f32 %v3518_v28, %v16226_v12  ;;  %v12909_v61 = vpop.f32.mrb[61].mxu0 }
 0x4fd   :  { %v3523_v63 = vpop.f32.mrb[62].mxu0 }
 0x4fe   :  { %v16374_v38 = vadd.f32 %v3523_v63, %v16229_v3  ;;  %v12912_v0 = vpop.f32.mrb[63].mxu0 }
 0x501   :  { %v3528_v17 = vpop.f32.mrb[64].mxu0 }
 0x502   :  { %v16377_v10 = vadd.f32 %v3528_v17, %v16232_v54  ;;  %v12915_v18 = vpop.f32.mrb[65].mxu0 }
 0x505   :  { %v3533_v19 = vpop.f32.mrb[66].mxu0 }
 0x506   :  { %v16380_v11 = vadd.f32 %v3533_v19, %v16235_v57  ;;  %v12918_v20 = vpop.f32.mrb[67].mxu0  ;;  %v16391_v57 = vld [vmem:[%s18591_s2] ss:$0 sm:$0xff] }
 0x509   :  { %v3538_v21 = vpop.f32.mrb[68].mxu0 }
 0x50a   :  { %v16383_v12 = vadd.f32 %v3538_v21, %v16238_v60  ;;  %v12921_v13 = vpop.f32.mrb[69].mxu0 }
 0x50d   :  { %v3543_v14 = vpop.f32.mrb[70].mxu0 }
 0x50e   :  { %v16386_v3 = vadd.f32 %v3543_v14, %v16241_v62  ;;  %v12924_v58 = vpop.f32.mrb[71].mxu0 }
 0x511   :  { %v11897_v2 = vpop.f32.mrb[72].mxu0 }
 0x512   :  { %v11898_v7 = vpop.f32.mrb[73].mxu0 }
 0x513   :  { %v11899_v54 = vadd.f32 %v11898_v7, %v11897_v2  ;;  %v11900_v15 = vpop.f32.mrb[74].mxu0 }
 0x514   :  { %v11901_v22 = vpop.f32.mrb[75].mxu0 }
 0x515   :  { %v3647_v23 = vadd.f32 %v16391_v57, %v11899_v54  ;;  %v11902_v60 = vadd.f32 %v11901_v22, %v11900_v15 }
 0x517   :  { %v3684_v25 = vmax.f32 %v3647_v23, 0.0  ;;  %v3650_v26 = vadd.f32 %v16391_v57, %v11902_v60 }
 0x519   :  { %v11903_v27 = vpop.f32.mrb[76].mxu0  ;;  %12934 = vmatmul.mubr.msk.f32.vlgmr.msra.gmra.mrb[80].mxu1 %vm2705_vm1, %v3684_v25  ;;  %v3685_v29 = vmax.f32 %v3650_v26, 0.0 }
 0x51a   :  { %11941 = vmatpush3.bf16.msra.mxu1 %v16073_v16  ;;  %v11904_v62 = vpop.f32.mrb[77].mxu0  ;;  %12936 = vmatprep.mubr.msk.f32.mxu1 %vm14277_vm0, %v14278_v55 }
 0x51b   :  { %v11905_v31 = vadd.f32 %v11904_v62, %v11903_v27  ;;  %v11906_v32 = vpop.f32.mrb[78].mxu0  ;;  %11942 = vmatprep.subr.bf16.mxu1 %v16081_v8  ;;  %v14031_v62 = vld [vmem:[%s18589_s0 + $0x16c] ss:$8 sps:$4 sm:$0xff]  }
 0x51c   :  { %v11907_v36 = vpop.f32.mrb[79].mxu0 }
 0x51d   :  { %v3655_v9 = vadd.f32 %v16391_v57, %v11905_v31  ;;  %v11908_v40 = vadd.f32 %v11907_v36, %v11906_v32  ;;  %12937 = vmatmul.mubr.msk.f32.gmra.mrb[82].mxu1 %vm2705_vm1, %v3685_v29  ;;  %v14029_v31 = vld [vmem:[%s18589_s0 + $0x168] ss:$8 sps:$4 sm:$0xff]   ;;  %v14032_v32 = vld [vmem:[%s18589_s0 + $0x17c] ss:$8 sps:$4 sm:$0xff]   ;;  %v14034_v36 = vld [vmem:[%s18589_s0 + $0x178] ss:$8 sps:$4 sm:$0xff]  }
 0x51e   :  { %11943 = vmatpush3.bf16.msra.mxu1 %v16089_v4  ;;  %12939 = vmatprep.mubr.msk.f32.mxu1 %vm14277_vm0, %v14278_v55 }
 0x51f   :  { %v3686_v41 = vmax.f32 %v3655_v9, 0.0  ;;  %v3658_v44 = vadd.f32 %v16391_v57, %v11908_v40  ;;  %11944 = vmatprep.subr.bf16.mxu1 %v16097_v35  ;;  %v14035_v9 = vld [vmem:[%s18589_s0 + $0x18c] ss:$8 sps:$4 sm:$0xff]   ;;  %v14037_v40 = vld [vmem:[%s18589_s0 + $0x188] ss:$8 sps:$4 sm:$0xff]  }
 0x521   :  { %v11909_v47 = vpop.f32.mrb[80].mxu0  ;;  %12940 = vmatmul.mubr.msk.f32.gmra.mrb[84].mxu1 %vm2705_vm1, %v3686_v41  ;;  %v3687_v52 = vmax.f32 %v3658_v44, 0.0  ;;  %v14038_v41 = vld [vmem:[%s18589_s0 + $0x19c] ss:$8 sps:$4 sm:$0xff]   ;;  %v3852_v44 = vld [vmem:[%s18589_s0 + $0x1a8] sm:$0xff] }
 0x522   :  { %v11910_v49 = vpop.f32.mrb[81].mxu0  ;;  %11945 = vmatpush3.bf16.msra.mxu1 %v16105_v39  ;;  %12942 = vmatprep.mubr.msk.f32.mxu1 %vm14277_vm0, %v14278_v55 }
 0x523   :  { %v11911_v53 = vadd.f32 %v11910_v49, %v11909_v47  ;;  %v11912_v6 = vpop.f32.mrb[82].mxu0  ;;  %11946 = vmatprep.subr.bf16.mxu1 %v16113_v42  ;;  %v14040_v47 = vld [vmem:[%s18589_s0 + $0x198] ss:$8 sps:$4 sm:$0xff]   ;;  %v11244_v49 = vcombine.high %v3852_v44, %v3852_v44 }
 0x524   :  { %v11913_v28 = vpop.f32.mrb[83].mxu0 }
 0x525   :  { %v3663_v61 = vadd.f32 %v16391_v57, %v11911_v53  ;;  %v11914_v63 = vadd.f32 %v11913_v28, %v11912_v6  ;;  %12943 = vmatmul.mubr.msk.f32.gmra.mrb[86].mxu1 %vm2705_vm1, %v3687_v52  ;;  %v11243_v52 = vcombine.low %v3852_v44, %v3852_v44  ;;  %v11245_v53 = vld [vmem:[%s18592_s3 + $0xa0] sm:$0xff]  ;;  %v11246_v6 = vld [vmem:[%s18592_s3 + $0xa8] sm:$0xff] }
 0x526   :  { %11947 = vmatpush3.bf16.msra.mxu1 %v16121_v46  ;;  %12945 = vmatprep.mubr.msk.f32.mxu1 %vm14277_vm0, %v14278_v55  ;;  %v13601_v28 = vpack.c.bf16 %v11246_v6, %v11245_v53 }
 0x527   :  { %v3688_v0 = vmax.f32 %v3663_v61, 0.0  ;;  %v3666_v17 = vadd.f32 %v16391_v57, %v11914_v63  ;;  %11948 = vmatprep.subr.bf16.mxu1 %v16129_v48  ;;  %v11247_v61 = vld [vmem:[%s18592_s3 + $0xb0] sm:$0xff]  ;;  %v11248_v63 = vld [vmem:[%s18592_s3 + $0xb8] sm:$0xff] }
 0x528   :  { %13602 = vmatpush3.bf16.msra.mxu0 %v13601_v28 }
 0x529   :  { %v11915_v18 = vpop.f32.mrb[84].mxu0  ;;  %12946 = vmatmul.mubr.msk.f32.gmra.mrb[88].mxu1 %vm2705_vm1, %v3688_v0  ;;  %v3689_v20 = vmax.f32 %v3666_v17, 0.0  ;;  %13603 = vmatprep.subr.bf16.mxu0 %v14276_v30  ;;  %v13604_v0 = vpack.c.bf16 %v11248_v63, %v11247_v61 }
 0x52a   :  { %v11916_v19 = vpop.f32.mrb[85].mxu0  ;;  %11949 = vmatpush3.bf16.msra.mxu1 %v16137_v51  ;;  %12948 = vmatprep.mubr.msk.f32.mxu1 %vm14277_vm0, %v14278_v55 }
 0x52b   :  { %v11917_v21 = vadd.f32 %v11916_v19, %v11915_v18  ;;  %v11918_v13 = vpop.f32.mrb[86].mxu0  ;;  %11950 = vmatprep.subr.bf16.mxu1 %v16145_v56 }
 0x52c   :  { %v11919_v14 = vpop.f32.mrb[87].mxu0  ;;  %13605 = vmatpush3.bf16.msra.mxu0 %v13604_v0 }
 0x52d   :  { %v3671_v58 = vadd.f32 %v16391_v57, %v11917_v21  ;;  %v11920_v2 = vadd.f32 %v11919_v14, %v11918_v13  ;;  %12949 = vmatmul.mubr.msk.f32.gmra.mrb[90].mxu1 %vm2705_vm1, %v3689_v20  ;;  %11999 = vmatprep.subr.bf16.mxu0 %v16213_v34 }
 0x52e   :  { %12951 = vmatprep.mubr.msk.f32.mxu1 %vm14277_vm0, %v14278_v55  ;;  %11951 = vmatpush3.bf16.msra.mxu1 %v16281_v59 }
 0x52f   :  { %v3690_v7 = vmax.f32 %v3671_v58, 0.0  ;;  %v3674_v54 = vadd.f32 %v16391_v57, %v11920_v2  ;;  %11952 = vmatprep.subr.bf16.mxu1 %v16288_v37 }
 0x531   :  { %v11921_v15 = vpop.f32.mrb[88].mxu0  ;;  %12952 = vmatmul.mubr.msk.f32.gmra.mrb[92].mxu1 %vm2705_vm1, %v3690_v7  ;;  %v3691_v23 = vmax.f32 %v3674_v54, 0.0 }
 0x532   :  { %v11922_v22 = vpop.f32.mrb[89].mxu0  ;;  %12954 = vmatprep.mubr.msk.f32.mxu1 %vm14277_vm0, %v14278_v55  ;;  %11953 = vmatpush3.bf16.msra.mxu1 %v16297_v43 }
 0x533   :  { %v11923_v60 = vadd.f32 %v11922_v22, %v11921_v15  ;;  %v11924_v25 = vpop.f32.mrb[90].mxu0  ;;  %11954 = vmatprep.subr.bf16.mxu1 %v16303_v5 }
 0x534   :  { %v11925_v26 = vpop.f32.mrb[91].mxu0 }
 0x535   :  { %v3679_v27 = vadd.f32 %v16391_v57, %v11923_v60  ;;  %12955 = vmatmul.mubr.msk.f32.gmra.mrb[94].mxu1 %vm2705_vm1, %v3691_v23 }
 0x536   :  { %12957 = vmatprep.mubr.msk.f32.mxu1 %vm14277_vm0, %v14278_v55  ;;  %11955 = vmatpush3.bf16.msra.mxu1 %v16313_v1 }
 0x537   :  { %v3692_v29 = vmax.f32 %v3679_v27, 0.0  ;;  %13606 = vmatprep.subr.bf16.mxu1 %v14276_v30 }
 0x539   :  { %12958 = vmatmul.mubr.msk.f32.gmra.mrb[96].mxu1 %vm2705_vm1, %v3692_v29 }
 0x53a   :  { %3932 = vmatprep.mubr.bf16.mxu1 %v14031_v62 }
 0x53d   :  { %3933 = vmatmul.mubr.bf16.vlgmr.msra.gmra.mrb[100].mxu1 %v14029_v31 }
 0x53e   :  { %3940 = vmatprep.mubr.bf16.mxu1 %v14032_v32 }
 0x545   :  { %3941 = vmatmul.mubr.bf16.gmra.mrb[104].mxu1 %v14034_v36 }
 0x546   :  { %3948 = vmatprep.mubr.bf16.mxu1 %v14035_v9 }
 0x54d   :  { %3949 = vmatmul.mubr.bf16.gmra.mrb[108].mxu1 %v14037_v40 }
 0x54e   :  { %3956 = vmatprep.mubr.bf16.mxu1 %v14038_v41 }
 0x555   :  { %3957 = vmatmul.mubr.bf16.gmra.mrb[112].mxu1 %v14040_v47 }
 0x556   :  { %3964 = vmatprep.mubr.bf16.mxu1 %v11244_v49 }
 0x55d   :  { %3965 = vmatmul.mubr.bf16.gmra.mrb[116].mxu1 %v11243_v52 }
 0x55e   :  { %13003 = vmatprep.mubr.msk.f32.mxu1 %vm14277_vm0, %v14278_v55 }
 0x5ec   :  { %v3791_v17 = vpop.f32.mrb[80].mxu1 }
 0x5ed   :  { %v16487_v18 = vadd.f32 %v3791_v17, %v16362_v45  ;;  %v12935_v19 = vpop.f32.mrb[81].mxu1 }
 0x5f0   :  { %v3796_v20 = vpop.f32.mrb[82].mxu1 }
 0x5f1   :  { %v16490_v21 = vadd.f32 %v3796_v20, %v16365_v50  ;;  %v12938_v13 = vpop.f32.mrb[83].mxu1 }
 0x5f4   :  { %v3801_v14 = vpop.f32.mrb[84].mxu1 }
 0x5f5   :  { %v16493_v58 = vadd.f32 %v3801_v14, %v16368_v24  ;;  %v12941_v2 = vpop.f32.mrb[85].mxu1 }
 0x5f8   :  { %v3806_v7 = vpop.f32.mrb[86].mxu1 }
 0x5f9   :  { %v16496_v54 = vadd.f32 %v3806_v7, %v16371_v33  ;;  %v12944_v15 = vpop.f32.mrb[87].mxu1 }
 0x5fc   :  { %v3811_v22 = vpop.f32.mrb[88].mxu1 }
 0x5fd   :  { %v16499_v45 = vadd.f32 %v3811_v22, %v16374_v38  ;;  %v12947_v23 = vpop.f32.mrb[89].mxu1 }
 0x600   :  { %v3816_v60 = vpop.f32.mrb[90].mxu1 }
 0x601   :  { %v16502_v50 = vadd.f32 %v3816_v60, %v16377_v10  ;;  %v12950_v25 = vpop.f32.mrb[91].mxu1 }
 0x604   :  { %v3821_v26 = vpop.f32.mrb[92].mxu1 }
 0x605   :  { %v16505_v24 = vadd.f32 %v3821_v26, %v16380_v11  ;;  %v12953_v27 = vpop.f32.mrb[93].mxu1 }
 0x608   :  { %v3826_v62 = vpop.f32.mrb[94].mxu1 }
 0x609   :  { %v16508_v33 = vadd.f32 %v3826_v62, %v16383_v12  ;;  %v12956_v29 = vpop.f32.mrb[95].mxu1 }
 0x60c   :  { %v3831_v31 = vpop.f32.mrb[96].mxu1 }
 0x60d   :  { %v16511_v38 = vadd.f32 %v3831_v31, %v16386_v3  ;;  %v12959_v32 = vpop.f32.mrb[97].mxu1 }
 0x610   :  { %v11956_v36 = vpop.f32.mrb[100].mxu1 }
 0x611   :  { %v11957_v9 = vpop.f32.mrb[101].mxu1 }
 0x612   :  { %v11958_v10 = vadd.f32 %v11957_v9, %v11956_v36  ;;  %v11959_v40 = vpop.f32.mrb[102].mxu1  ;;  %v14045_v36 = vld [vmem:[%s18589_s0 + $0x1b4] ss:$8 sps:$4 sm:$0xff]  }
 0x613   :  { %v11960_v41 = vpop.f32.mrb[103].mxu1 }
 0x614   :  { %v3935_v44 = vadd.f32 %v16391_v57, %v11958_v10  ;;  %v11961_v11 = vadd.f32 %v11960_v41, %v11959_v40  ;;  %v14043_v10 = vld [vmem:[%s18589_s0 + $0x1b0] ss:$8 sps:$4 sm:$0xff]   ;;  %v14046_v40 = vld [vmem:[%s18589_s0 + $0x1c4] ss:$8 sps:$4 sm:$0xff]   ;;  %v14048_v41 = vld [vmem:[%s18589_s0 + $0x1c0] ss:$8 sps:$4 sm:$0xff]  }
 0x616   :  { %v3972_v47 = vmax.f32 %v3935_v44, 0.0  ;;  %v3938_v49 = vadd.f32 %v16391_v57, %v11961_v11  ;;  %v14049_v44 = vld [vmem:[%s18589_s0 + $0x1d4] ss:$8 sps:$4 sm:$0xff]   ;;  %v14051_v11 = vld [vmem:[%s18589_s0 + $0x1d0] ss:$8 sps:$4 sm:$0xff]  }
 0x618   :  { %v11962_v52 = vpop.f32.mrb[104].mxu1  ;;  %12969 = vmatmul.mubr.msk.f32.vlgmr.msra.gmra.mrb[92].mxu0 %vm2705_vm1, %v3972_v47  ;;  %v3973_v3 = vmax.f32 %v3938_v49, 0.0  ;;  %v14052_v47 = vld [vmem:[%s18589_s0 + $0x1e4] ss:$8 sps:$4 sm:$0xff]   ;;  %v4140_v49 = vld [vmem:[%s18589_s0 + $0x1f0] sm:$0xff] }
 0x619   :  { %12000 = vmatpush3.bf16.msra.mxu0 %v16073_v16  ;;  %v11963_v12 = vpop.f32.mrb[105].mxu1  ;;  %12971 = vmatprep.mubr.msk.f32.mxu0 %vm14277_vm0, %v14278_v55 }
 0x61a   :  { %v11964_v53 = vadd.f32 %v11963_v12, %v11962_v52  ;;  %v11965_v6 = vpop.f32.mrb[106].mxu1  ;;  %12001 = vmatprep.subr.bf16.mxu0 %v16081_v8  ;;  %v14054_v52 = vld [vmem:[%s18589_s0 + $0x1e0] ss:$8 sps:$4 sm:$0xff]   ;;  %v11267_v12 = vcombine.high %v4140_v49, %v4140_v49 }
 0x61b   :  { %v11966_v28 = vpop.f32.mrb[107].mxu1 }
 0x61c   :  { %v3943_v61 = vadd.f32 %v16391_v57, %v11964_v53  ;;  %v11967_v63 = vadd.f32 %v11966_v28, %v11965_v6  ;;  %12972 = vmatmul.mubr.msk.f32.gmra.mrb[94].mxu0 %vm2705_vm1, %v3973_v3  ;;  %v11266_v3 = vcombine.low %v4140_v49, %v4140_v49  ;;  %v11268_v53 = vld [vmem:[%s18592_s3 + $0xc0] sm:$0xff]  ;;  %v11269_v6 = vld [vmem:[%s18592_s3 + $0xc8] sm:$0xff] }
 0x61d   :  { %12002 = vmatpush3.bf16.msra.mxu0 %v16089_v4  ;;  %12974 = vmatprep.mubr.msk.f32.mxu0 %vm14277_vm0, %v14278_v55  ;;  %v13607_v28 = vpack.c.bf16 %v11269_v6, %v11268_v53  ;;  %v16655_v49 = vld [vmem:[%s18590_s1 + $0x8] sm:$0xff]  }
 0x61e   :  { %v3974_v16 = vmax.f32 %v3943_v61, 0.0  ;;  %v3946_v0 = vadd.f32 %v16391_v57, %v11967_v63  ;;  %12003 = vmatprep.subr.bf16.mxu0 %v16097_v35  ;;  %v11270_v61 = vld [vmem:[%s18592_s3 + $0xd0] sm:$0xff]  ;;  %v11271_v63 = vld [vmem:[%s18592_s3 + $0xd8] sm:$0xff] }
 0x61f   :  { %13608 = vmatpush3.bf16.msra.mxu1 %v13607_v28  ;;  %v16671_v28 = vld [vmem:[%s18590_s1 + $0x10] sm:$0xff]  }
 0x620   :  { %v11968_v17 = vpop.f32.mrb[108].mxu1  ;;  %12975 = vmatmul.mubr.msk.f32.gmra.mrb[96].mxu0 %vm2705_vm1, %v3974_v16  ;;  %v3975_v19 = vmax.f32 %v3946_v0, 0.0  ;;  %13609 = vmatprep.subr.bf16.mxu1 %v14276_v30  ;;  %v13610_v16 = vpack.c.bf16 %v11271_v63, %v11270_v61 }
 0x621   :  { %v11969_v8 = vpop.f32.mrb[109].mxu1  ;;  %12004 = vmatpush3.bf16.msra.mxu0 %v16105_v39  ;;  %12977 = vmatprep.mubr.msk.f32.mxu0 %vm14277_vm0, %v14278_v55 }
 0x622   :  { %v11970_v20 = vadd.f32 %v11969_v8, %v11968_v17  ;;  %v11971_v4 = vpop.f32.mrb[110].mxu1  ;;  %12005 = vmatprep.subr.bf16.mxu0 %v16113_v42 }
 0x623   :  { %v11972_v13 = vpop.f32.mrb[111].mxu1  ;;  %13611 = vmatpush3.bf16.msra.mxu1 %v13610_v16 }
 0x624   :  { %v3951_v14 = vadd.f32 %v16391_v57, %v11970_v20  ;;  %v11973_v2 = vadd.f32 %v11972_v13, %v11971_v4  ;;  %12978 = vmatmul.mubr.msk.f32.gmra.mrb[98].mxu0 %vm2705_vm1, %v3975_v19  ;;  %12058 = vmatprep.subr.bf16.mxu1 %v16213_v34 }
 0x625   :  { %12006 = vmatpush3.bf16.msra.mxu0 %v16121_v46  ;;  %12980 = vmatprep.mubr.msk.f32.mxu0 %vm14277_vm0, %v14278_v55 }
 0x626   :  { %v3976_v35 = vmax.f32 %v3951_v14, 0.0  ;;  %v3954_v39 = vadd.f32 %v16391_v57, %v11973_v2  ;;  %12007 = vmatprep.subr.bf16.mxu0 %v16129_v48 }
 0x628   :  { %v11974_v7 = vpop.f32.mrb[112].mxu1  ;;  %12981 = vmatmul.mubr.msk.f32.gmra.mrb[100].mxu0 %vm2705_vm1, %v3976_v35  ;;  %v3977_v15 = vmax.f32 %v3954_v39, 0.0 }
 0x629   :  { %v11975_v42 = vpop.f32.mrb[113].mxu1  ;;  %12008 = vmatpush3.bf16.msra.mxu0 %v16137_v51  ;;  %12983 = vmatprep.mubr.msk.f32.mxu0 %vm14277_vm0, %v14278_v55 }
 0x62a   :  { %v11976_v22 = vadd.f32 %v11975_v42, %v11974_v7  ;;  %v11977_v46 = vpop.f32.mrb[114].mxu1  ;;  %12009 = vmatprep.subr.bf16.mxu0 %v16145_v56 }
 0x62b   :  { %v11978_v23 = vpop.f32.mrb[115].mxu1 }
 0x62c   :  { %v3959_v60 = vadd.f32 %v16391_v57, %v11976_v22  ;;  %v11979_v25 = vadd.f32 %v11978_v23, %v11977_v46  ;;  %12984 = vmatmul.mubr.msk.f32.gmra.mrb[102].mxu0 %vm2705_vm1, %v3977_v15 }
 0x62d   :  { %12986 = vmatprep.mubr.msk.f32.mxu0 %vm14277_vm0, %v14278_v55  ;;  %12010 = vmatpush3.bf16.msra.mxu0 %v16281_v59 }
 0x62e   :  { %v3978_v48 = vmax.f32 %v3959_v60, 0.0  ;;  %v3962_v51 = vadd.f32 %v16391_v57, %v11979_v25  ;;  %12011 = vmatprep.subr.bf16.mxu0 %v16288_v37 }
 0x630   :  { %v11980_v26 = vpop.f32.mrb[116].mxu1  ;;  %12987 = vmatmul.mubr.msk.f32.gmra.mrb[104].mxu0 %vm2705_vm1, %v3978_v48  ;;  %v3979_v27 = vmax.f32 %v3962_v51, 0.0 }
 0x631   :  { %v11981_v56 = vpop.f32.mrb[117].mxu1  ;;  %12989 = vmatprep.mubr.msk.f32.mxu0 %vm14277_vm0, %v14278_v55  ;;  %12012 = vmatpush3.bf16.msra.mxu0 %v16297_v43 }
 0x632   :  { %v11982_v62 = vadd.f32 %v11981_v56, %v11980_v26  ;;  %v11983_v29 = vpop.f32.mrb[118].mxu1  ;;  %12013 = vmatprep.subr.bf16.mxu0 %v16303_v5 }
 0x633   :  { %v11984_v31 = vpop.f32.mrb[119].mxu1 }
 0x634   :  { %v3967_v32 = vadd.f32 %v16391_v57, %v11982_v62  ;;  %12990 = vmatmul.mubr.msk.f32.gmra.mrb[106].mxu0 %vm2705_vm1, %v3979_v27 }
 0x635   :  { %12992 = vmatprep.mubr.msk.f32.mxu0 %vm14277_vm0, %v14278_v55  ;;  %12014 = vmatpush3.bf16.msra.mxu0 %v16313_v1 }
 0x636   :  { %v3980_v9 = vmax.f32 %v3967_v32, 0.0  ;;  %13612 = vmatprep.subr.bf16.mxu0 %v14276_v30 }
 0x638   :  { %12993 = vmatmul.mubr.msk.f32.gmra.mrb[108].mxu0 %vm2705_vm1, %v3980_v9 }
 0x639   :  { %4220 = vmatprep.mubr.bf16.mxu0 %v14045_v36 }
 0x63c   :  { %4221 = vmatmul.mubr.bf16.vlgmr.msra.gmra.mrb[112].mxu0 %v14043_v10 }
 0x63d   :  { %4228 = vmatprep.mubr.bf16.mxu0 %v14046_v40 }
 0x644   :  { %4229 = vmatmul.mubr.bf16.gmra.mrb[116].mxu0 %v14048_v41  ;;  %v16647_v41 = vld [vmem:[%s18590_s1 + $0x48] sm:$0xff]  }
 0x645   :  { %4236 = vmatprep.mubr.bf16.mxu0 %v14049_v44 }
 0x64c   :  { %4237 = vmatmul.mubr.bf16.gmra.mrb[120].mxu0 %v14051_v11 }
 0x64d   :  { %4244 = vmatprep.mubr.bf16.mxu0 %v14052_v47 }
 0x654   :  { %4245 = vmatmul.mubr.bf16.gmra.mrb[124].mxu0 %v14054_v52 }
 0x655   :  { %4252 = vmatprep.mubr.bf16.mxu0 %v11267_v12 }
 0x65c   :  { %4253 = vmatmul.mubr.bf16.gmra.mrb[128].mxu0 %v11266_v3  ;;  %v16664_v3 = vld [vmem:[%s18590_s1 + $0x50] sm:$0xff]  }
 0x65d   :  { %13038 = vmatprep.mubr.msk.f32.mxu0 %vm14277_vm0, %v14278_v55 }
 0x6eb   :  { %v4079_v0 = vpop.f32.mrb[92].mxu0 }
 0x6ec   :  { %v16607_v17 = vadd.f32 %v4079_v0, %v16487_v18  ;;  %v12970_v8 = vpop.f32.mrb[93].mxu0  ;;  %v16679_v0 = vld [vmem:[%s18590_s1 + $0x58] sm:$0xff]  }
 0x6ef   :  { %v4084_v19 = vpop.f32.mrb[94].mxu0 }
 0x6f0   :  { %v16610_v20 = vadd.f32 %v4084_v19, %v16490_v21  ;;  %v12973_v4 = vpop.f32.mrb[95].mxu0 }
 0x6f3   :  { %v4089_v13 = vpop.f32.mrb[96].mxu0 }
 0x6f4   :  { %v16613_v14 = vadd.f32 %v4089_v13, %v16493_v58  ;;  %v12976_v2 = vpop.f32.mrb[97].mxu0  ;;  %v16687_v13 = vld [vmem:[%s18590_s1 + $0x18] sm:$0xff]  }
 0x6f7   :  { %v4094_v35 = vpop.f32.mrb[98].mxu0 }
 0x6f8   :  { %v16616_v39 = vadd.f32 %v4094_v35, %v16496_v54  ;;  %v12979_v34 = vpop.f32.mrb[99].mxu0 }
 0x6f9   :  { %v16696_v34 = vld [vmem:[%s18590_s1 + $0x60] sm:$0xff]  }
 0x6fb   :  { %v4099_v7 = vpop.f32.mrb[100].mxu0 }
 0x6fc   :  { %v16619_v18 = vadd.f32 %v4099_v7, %v16499_v45  ;;  %v12982_v42 = vpop.f32.mrb[101].mxu0 }
 0x6ff   :  { %v4104_v15 = vpop.f32.mrb[102].mxu0 }
 0x700   :  { %v16622_v21 = vadd.f32 %v4104_v15, %v16502_v50  ;;  %v12985_v22 = vpop.f32.mrb[103].mxu0  ;;  %v16703_v15 = vld [vmem:[%s18590_s1 + $0x20] sm:$0xff]  }
 0x703   :  { %v4109_v46 = vpop.f32.mrb[104].mxu0 }
 0x704   :  { %v16625_v58 = vadd.f32 %v4109_v46, %v16505_v24  ;;  %v12988_v23 = vpop.f32.mrb[105].mxu0 }
 0x707   :  { %v4114_v60 = vpop.f32.mrb[106].mxu0 }
 0x708   :  { %v16628_v54 = vadd.f32 %v4114_v60, %v16508_v33  ;;  %v12991_v25 = vpop.f32.mrb[107].mxu0  ;;  %v16639_v33 = vld [vmem:[%s18590_s1] sm:$0xff]   ;;  %v16711_v60 = vld [vmem:[%s18590_s1 + $0x68] sm:$0xff]  }
 0x70b   :  { %v4119_v48 = vpop.f32.mrb[108].mxu0 }
 0x70c   :  { %v16631_v45 = vadd.f32 %v4119_v48, %v16511_v38  ;;  %v12994_v51 = vpop.f32.mrb[109].mxu0 }
 0x70f   :  { %v12015_v26 = vpop.f32.mrb[112].mxu0 }
 0x710   :  { %v12016_v56 = vpop.f32.mrb[113].mxu0 }
 0x711   :  { %v12017_v50 = vadd.f32 %v12016_v56, %v12015_v26  ;;  %v12018_v27 = vpop.f32.mrb[114].mxu0 }
 0x712   :  { %v12019_v62 = vpop.f32.mrb[115].mxu0 }
 0x713   :  { %v4223_v29 = vadd.f32 %v16391_v57, %v12017_v50  ;;  %v12020_v24 = vadd.f32 %v12019_v62, %v12018_v27 }
 0x715   :  { %v4260_v31 = vmax.f32 %v4223_v29, 0.0  ;;  %v4226_v32 = vadd.f32 %v16391_v57, %v12020_v24 }
 0x717   :  { %v12021_v36 = vpop.f32.mrb[116].mxu0  ;;  %13004 = vmatmul.mubr.msk.f32.vlgmr.msra.gmra.mrb[98].mxu1 %vm2705_vm1, %v4260_v31  ;;  %v4261_v9 = vmax.f32 %v4226_v32, 0.0  ;;  %v14060_v32 = vld [vmem:[%s18589_s0 + $0x20c] ss:$8 sps:$4 sm:$0xff]  }
 0x718   :  { %12059 = vmatpush3.bf16.msra.mxu1 %v16639_v33  ;;  %v12022_v38 = vpop.f32.mrb[117].mxu0  ;;  %13006 = vmatprep.mubr.msk.f32.mxu1 %vm14277_vm0, %v14278_v55 }
 0x719   :  { %v12023_v10 = vadd.f32 %v12022_v38, %v12021_v36  ;;  %v12024_v40 = vpop.f32.mrb[118].mxu0  ;;  %12060 = vmatprep.subr.bf16.mxu1 %v16647_v41  ;;  %v14063_v36 = vld [vmem:[%s18589_s0 + $0x21c] ss:$8 sps:$4 sm:$0xff]   ;;  %v14065_v38 = vld [vmem:[%s18589_s0 + $0x218] ss:$8 sps:$4 sm:$0xff]  }
 0x71a   :  { %v12025_v44 = vpop.f32.mrb[119].mxu0 }
 0x71b   :  { %v4231_v11 = vadd.f32 %v16391_v57, %v12023_v10  ;;  %v12026_v47 = vadd.f32 %v12025_v44, %v12024_v40  ;;  %13007 = vmatmul.mubr.msk.f32.gmra.mrb[120].mxu1 %vm2705_vm1, %v4261_v9  ;;  %v14066_v9 = vld [vmem:[%s18589_s0 + $0x22c] ss:$8 sps:$4 sm:$0xff]   ;;  %v4428_v10 = vld [vmem:[%s18589_s0 + $0x238] sm:$0xff]  ;;  %v14068_v40 = vld [vmem:[%s18589_s0 + $0x228] ss:$8 sps:$4 sm:$0xff]  }
 0x71c   :  { %12061 = vmatpush3.bf16.msra.mxu1 %v16655_v49  ;;  %13009 = vmatprep.mubr.msk.f32.mxu1 %vm14277_vm0, %v14278_v55  ;;  %v11290_v44 = vcombine.high %v4428_v10, %v4428_v10 }
 0x71d   :  { %v4262_v52 = vmax.f32 %v4231_v11, 0.0  ;;  %v4234_v12 = vadd.f32 %v16391_v57, %v12026_v47  ;;  %12062 = vmatprep.subr.bf16.mxu1 %v16664_v3  ;;  %v11289_v11 = vcombine.low %v4428_v10, %v4428_v10  ;;  %v11291_v47 = vld [vmem:[%s18592_s3 + $0xe0] sm:$0xff] }
 0x71f   :  { %v12027_v53 = vpop.f32.mrb[120].mxu0  ;;  %13010 = vmatmul.mubr.msk.f32.gmra.mrb[122].mxu1 %vm2705_vm1, %v4262_v52  ;;  %v4263_v61 = vmax.f32 %v4234_v12, 0.0  ;;  %v11292_v52 = vld [vmem:[%s18592_s3 + $0xe8] sm:$0xff] }
 0x720   :  { %v12028_v6 = vpop.f32.mrb[121].mxu0  ;;  %12063 = vmatpush3.bf16.msra.mxu1 %v16671_v28  ;;  %13012 = vmatprep.mubr.msk.f32.mxu1 %vm14277_vm0, %v14278_v55  ;;  %v13613_v12 = vpack.c.bf16 %v11292_v52, %v11291_v47 }
 0x721   :  { %v12029_v63 = vadd.f32 %v12028_v6, %v12027_v53  ;;  %v12030_v16 = vpop.f32.mrb[122].mxu0  ;;  %12064 = vmatprep.subr.bf16.mxu1 %v16679_v0  ;;  %v11293_v53 = vld [vmem:[%s18592_s3 + $0xf0] sm:$0xff]  ;;  %v11294_v6 = vld [vmem:[%s18592_s3 + $0xf8] sm:$0xff] }
 0x722   :  { %v12031_v8 = vpop.f32.mrb[123].mxu0  ;;  %13614 = vmatpush3.bf16.msra.mxu0 %v13613_v12 }
 0x723   :  { %v4239_v19 = vadd.f32 %v16391_v57, %v12029_v63  ;;  %v12032_v4 = vadd.f32 %v12031_v8, %v12030_v16  ;;  %13013 = vmatmul.mubr.msk.f32.gmra.mrb[124].mxu1 %vm2705_vm1, %v4263_v61  ;;  %13615 = vmatprep.subr.bf16.mxu0 %v14276_v30  ;;  %v13616_v61 = vpack.c.bf16 %v11294_v6, %v11293_v53  ;;  %v16778_v63 = vld [vmem:[%s18590_s1 + $0x40] sm:$0xff]  }
 0x724   :  { %12065 = vmatpush3.bf16.msra.mxu1 %v16687_v13  ;;  %13015 = vmatprep.mubr.msk.f32.mxu1 %vm14277_vm0, %v14278_v55 }
 0x725   :  { %v4264_v2 = vmax.f32 %v4239_v19, 0.0  ;;  %v4242_v35 = vadd.f32 %v16391_v57, %v12032_v4  ;;  %12066 = vmatprep.subr.bf16.mxu1 %v16696_v34 }
 0x726   :  { %13617 = vmatpush3.bf16.msra.mxu0 %v13616_v61 }
 0x727   :  { %v12033_v7 = vpop.f32.mrb[124].mxu0  ;;  %13016 = vmatmul.mubr.msk.f32.gmra.mrb[126].mxu1 %vm2705_vm1, %v4264_v2  ;;  %v4265_v22 = vmax.f32 %v4242_v35, 0.0  ;;  %12117 = vmatprep.subr.bf16.mxu0 %v16778_v63 }
 0x728   :  { %v12034_v42 = vpop.f32.mrb[125].mxu0  ;;  %12067 = vmatpush3.bf16.msra.mxu1 %v16703_v15  ;;  %13018 = vmatprep.mubr.msk.f32.mxu1 %vm14277_vm0, %v14278_v55 }
 0x729   :  { %v12035_v46 = vadd.f32 %v12034_v42, %v12033_v7  ;;  %v12036_v23 = vpop.f32.mrb[126].mxu0  ;;  %12068 = vmatprep.subr.bf16.mxu1 %v16711_v60 }
 0x72a   :  { %v12037_v25 = vpop.f32.mrb[127].mxu0 }
 0x72b   :  { %v4247_v48 = vadd.f32 %v16391_v57, %v12035_v46  ;;  %v12038_v51 = vadd.f32 %v12037_v25, %v12036_v23  ;;  %13019 = vmatmul.mubr.msk.f32.gmra.mrb[128].mxu1 %vm2705_vm1, %v4265_v22 }
 0x72c   :  { %13021 = vmatprep.mubr.msk.f32.mxu1 %vm14277_vm0, %v14278_v55  ;;  %12069 = vmatpush3.bf16.msra.mxu1 %v16281_v59 }
 0x72d   :  { %v4266_v26 = vmax.f32 %v4247_v48, 0.0  ;;  %v4250_v56 = vadd.f32 %v16391_v57, %v12038_v51  ;;  %12070 = vmatprep.subr.bf16.mxu1 %v16288_v37  ;;  %v14059_v37 = vld [vmem:[%s18589_s0 + $0x1fc] ss:$8 sps:$4 sm:$0xff]  }
 0x72f   :  { %v12039_v50 = vpop.f32.mrb[128].mxu0  ;;  %13022 = vmatmul.mubr.msk.f32.gmra.mrb[130].mxu1 %vm2705_vm1, %v4266_v26  ;;  %v4267_v62 = vmax.f32 %v4250_v56, 0.0 }
 0x730   :  { %v12040_v27 = vpop.f32.mrb[129].mxu0  ;;  %13024 = vmatprep.mubr.msk.f32.mxu1 %vm14277_vm0, %v14278_v55  ;;  %12071 = vmatpush3.bf16.msra.mxu1 %v16297_v43 }
 0x731   :  { %v12041_v29 = vadd.f32 %v12040_v27, %v12039_v50  ;;  %v12042_v24 = vpop.f32.mrb[130].mxu0  ;;  %12072 = vmatprep.subr.bf16.mxu1 %v16303_v5  ;;  %v14057_v5 = vld [vmem:[%s18589_s0 + $0x1f8] ss:$8 sps:$4 sm:$0xff]  }
 0x732   :  { %v12043_v59 = vpop.f32.mrb[131].mxu0 }
 0x733   :  { %v4255_v31 = vadd.f32 %v16391_v57, %v12041_v29  ;;  %13025 = vmatmul.mubr.msk.f32.gmra.mrb[132].mxu1 %vm2705_vm1, %v4267_v62 }
 0x734   :  { %13027 = vmatprep.mubr.msk.f32.mxu1 %vm14277_vm0, %v14278_v55  ;;  %12073 = vmatpush3.bf16.msra.mxu1 %v16313_v1  ;;  %v14062_v1 = vld [vmem:[%s18589_s0 + $0x208] ss:$8 sps:$4 sm:$0xff]  }
 0x735   :  { %v4268_v43 = vmax.f32 %v4255_v31, 0.0  ;;  %13618 = vmatprep.subr.bf16.mxu1 %v14276_v30 }
 0x737   :  { %13028 = vmatmul.mubr.msk.f32.gmra.mrb[134].mxu1 %vm2705_vm1, %v4268_v43 }
 0x738   :  { %4508 = vmatprep.mubr.bf16.mxu1 %v14059_v37 }
 0x73b   :  { %4509 = vmatmul.mubr.bf16.vlgmr.msra.gmra.mrb[136].mxu1 %v14057_v5 }
 0x73c   :  { %4516 = vmatprep.mubr.bf16.mxu1 %v14060_v32 }
 0x743   :  { %4517 = vmatmul.mubr.bf16.gmra.mrb[140].mxu1 %v14062_v1 }
 0x744   :  { %4524 = vmatprep.mubr.bf16.mxu1 %v14063_v36 }
 0x74b   :  { %4525 = vmatmul.mubr.bf16.gmra.mrb[144].mxu1 %v14065_v38 }
 0x74c   :  { %4532 = vmatprep.mubr.bf16.mxu1 %v14066_v9 }
 0x753   :  { %4533 = vmatmul.mubr.bf16.gmra.mrb[148].mxu1 %v14068_v40 }
 0x754   :  { %4540 = vmatprep.mubr.bf16.mxu1 %v11290_v44 }
 0x75b   :  { %4541 = vmatmul.mubr.bf16.gmra.mrb[152].mxu1 %v11289_v11 }
 0x75c   :  { %13073 = vmatprep.mubr.msk.f32.mxu1 %vm14277_vm0, %v14278_v55 }
 0x7ea   :  { %v4367_v16 = vpop.f32.mrb[98].mxu1 }
 0x7eb   :  { %v16782_v8 = vadd.f32 %v4367_v16, %v16607_v17  ;;  %v13005_v19 = vpop.f32.mrb[99].mxu1 }
 0x7ee   :  { %v4372_v4 = vpop.f32.mrb[120].mxu1 }
 0x7ef   :  { %v16785_v2 = vadd.f32 %v4372_v4, %v16610_v20  ;;  %v13008_v35 = vpop.f32.mrb[121].mxu1 }
 0x7f2   :  { %v4377_v7 = vpop.f32.mrb[122].mxu1 }
 0x7f3   :  { %v16788_v42 = vadd.f32 %v4377_v7, %v16613_v14  ;;  %v13011_v22 = vpop.f32.mrb[123].mxu1 }
 0x7f6   :  { %v4382_v46 = vpop.f32.mrb[124].mxu1 }
 0x7f7   :  { %v16791_v23 = vadd.f32 %v4382_v46, %v16616_v39  ;;  %v13014_v25 = vpop.f32.mrb[125].mxu1 }
 0x7fa   :  { %v4387_v48 = vpop.f32.mrb[126].mxu1 }
 0x7fb   :  { %v16794_v17 = vadd.f32 %v4387_v48, %v16619_v18  ;;  %v13017_v51 = vpop.f32.mrb[127].mxu1 }
 0x7fe   :  { %v4392_v26 = vpop.f32.mrb[128].mxu1 }
 0x7ff   :  { %v16797_v20 = vadd.f32 %v4392_v26, %v16622_v21  ;;  %v13020_v56 = vpop.f32.mrb[129].mxu1 }
 0x802   :  { %v4397_v50 = vpop.f32.mrb[130].mxu1 }
 0x803   :  { %v16800_v14 = vadd.f32 %v4397_v50, %v16625_v58  ;;  %v13023_v27 = vpop.f32.mrb[131].mxu1 }
 0x806   :  { %v4402_v62 = vpop.f32.mrb[132].mxu1 }
 0x807   :  { %v16803_v39 = vadd.f32 %v4402_v62, %v16628_v54  ;;  %v13026_v29 = vpop.f32.mrb[133].mxu1  ;;  %v16846_v62 = vld [vmem:[%s18590_s1 + $0x28] sm:$0xff]  }
 0x80a   :  { %v4407_v24 = vpop.f32.mrb[134].mxu1 }
 0x80b   :  { %v16806_v18 = vadd.f32 %v4407_v24, %v16631_v45  ;;  %v13029_v59 = vpop.f32.mrb[135].mxu1 }
 0x80c   :  { %v16853_v59 = vld [vmem:[%s18590_s1 + $0x70] sm:$0xff]  }
 0x80e   :  { %v12074_v31 = vpop.f32.mrb[136].mxu1 }
 0x80f   :  { %v12075_v37 = vpop.f32.mrb[137].mxu1 }
 0x810   :  { %v12076_v21 = vadd.f32 %v12075_v37, %v12074_v31  ;;  %v12077_v43 = vpop.f32.mrb[138].mxu1 }
 0x811   :  { %v12078_v5 = vpop.f32.mrb[139].mxu1 }
 0x812   :  { %v4511_v32 = vadd.f32 %v16391_v57, %v12076_v21  ;;  %v12079_v58 = vadd.f32 %v12078_v5, %v12077_v43  ;;  %v16862_v21 = vld [vmem:[%s18590_s1 + $0x30] sm:$0xff]  }
 0x814   :  { %v4548_v1 = vmax.f32 %v4511_v32, 0.0  ;;  %v4514_v36 = vadd.f32 %v16391_v57, %v12079_v58  ;;  %v16868_v58 = vld [vmem:[%s18590_s1 + $0x78] sm:$0xff]  }
 0x816   :  { %v12080_v38 = vpop.f32.mrb[140].mxu1  ;;  %13039 = vmatmul.mubr.msk.f32.vlgmr.msra.gmra.mrb[110].mxu0 %vm2705_vm1, %v4548_v1  ;;  %v4549_v45 = vmax.f32 %v4514_v36, 0.0 }
 0x817   :  { %12118 = vmatpush3.bf16.msra.mxu0 %v16639_v33  ;;  %v12081_v54 = vpop.f32.mrb[141].mxu1  ;;  %13041 = vmatprep.mubr.msk.f32.mxu0 %vm14277_vm0, %v14278_v55 }
 0x818   :  { %v12082_v9 = vadd.f32 %v12081_v54, %v12080_v38  ;;  %v12083_v10 = vpop.f32.mrb[142].mxu1  ;;  %12119 = vmatprep.subr.bf16.mxu0 %v16647_v41  ;;  %v16878_v38 = vld [vmem:[%s18590_s1 + $0x38] sm:$0xff]   ;;  %v14073_v54 = vld [vmem:[%s18589_s0 + $0x244] ss:$8 sps:$4 sm:$0xff]  }
 0x819   :  { %v12084_v40 = vpop.f32.mrb[143].mxu1 }
 0x81a   :  { %v4519_v44 = vadd.f32 %v16391_v57, %v12082_v9  ;;  %v12085_v11 = vadd.f32 %v12084_v40, %v12083_v10  ;;  %13042 = vmatmul.mubr.msk.f32.gmra.mrb[132].mxu0 %vm2705_vm1, %v4549_v45  ;;  %v14074_v9 = vld [vmem:[%s18589_s0 + $0x254] ss:$8 sps:$4 sm:$0xff]   ;;  %v14076_v10 = vld [vmem:[%s18589_s0 + $0x250] ss:$8 sps:$4 sm:$0xff]   ;;  %v14077_v40 = vld [vmem:[%s18589_s0 + $0x264] ss:$8 sps:$4 sm:$0xff]  }
 0x81b   :  { %12120 = vmatpush3.bf16.msra.mxu0 %v16655_v49  ;;  %13044 = vmatprep.mubr.msk.f32.mxu0 %vm14277_vm0, %v14278_v55 }
 0x81c   :  { %v4550_v47 = vmax.f32 %v4519_v44, 0.0  ;;  %v4522_v52 = vadd.f32 %v16391_v57, %v12085_v11  ;;  %12121 = vmatprep.subr.bf16.mxu0 %v16664_v3  ;;  %v14079_v44 = vld [vmem:[%s18589_s0 + $0x260] ss:$8 sps:$4 sm:$0xff]   ;;  %v14080_v11 = vld [vmem:[%s18589_s0 + $0x274] ss:$8 sps:$4 sm:$0xff]  }
 0x81e   :  { %v12086_v12 = vpop.f32.mrb[144].mxu1  ;;  %13045 = vmatmul.mubr.msk.f32.gmra.mrb[134].mxu0 %vm2705_vm1, %v4550_v47  ;;  %v4551_v6 = vmax.f32 %v4522_v52, 0.0  ;;  %v4716_v47 = vld [vmem:[%s18589_s0 + $0x280] sm:$0xff]  ;;  %v14082_v52 = vld [vmem:[%s18589_s0 + $0x270] ss:$8 sps:$4 sm:$0xff]  }
 0x81f   :  { %v12087_v53 = vpop.f32.mrb[145].mxu1  ;;  %12122 = vmatpush3.bf16.msra.mxu0 %v16671_v28  ;;  %13047 = vmatprep.mubr.msk.f32.mxu0 %vm14277_vm0, %v14278_v55 }
 0x820   :  { %v12088_v61 = vadd.f32 %v12087_v53, %v12086_v12  ;;  %v12089_v16 = vpop.f32.mrb[146].mxu1  ;;  %12123 = vmatprep.subr.bf16.mxu0 %v16679_v0  ;;  %v11313_v12 = vcombine.high %v4716_v47, %v4716_v47  ;;  %v11312_v53 = vcombine.low %v4716_v47, %v4716_v47 }
 0x821   :  { %v12090_v19 = vpop.f32.mrb[147].mxu1 }
 0x822   :  { %v4527_v4 = vadd.f32 %v16391_v57, %v12088_v61  ;;  %v12091_v35 = vadd.f32 %v12090_v19, %v12089_v16  ;;  %13048 = vmatmul.mubr.msk.f32.gmra.mrb[136].mxu0 %vm2705_vm1, %v4551_v6  ;;  %v11314_v6 = vld [vmem:[%s18592_s3 + $0x100] sm:$0xff]  ;;  %v11315_v61 = vld [vmem:[%s18592_s3 + $0x108] sm:$0xff]  ;;  %v11316_v19 = vld [vmem:[%s18592_s3 + $0x110] sm:$0xff] }
 0x823   :  { %12124 = vmatpush3.bf16.msra.mxu0 %v16687_v13  ;;  %13050 = vmatprep.mubr.msk.f32.mxu0 %vm14277_vm0, %v14278_v55  ;;  %v13619_v16 = vpack.c.bf16 %v11315_v61, %v11314_v6 }
 0x824   :  { %v4552_v7 = vmax.f32 %v4527_v4, 0.0  ;;  %v4530_v22 = vadd.f32 %v16391_v57, %v12091_v35  ;;  %12125 = vmatprep.subr.bf16.mxu0 %v16696_v34  ;;  %v11317_v4 = vld [vmem:[%s18592_s3 + $0x118] sm:$0xff] }
 0x825   :  { %13620 = vmatpush3.bf16.msra.mxu1 %v13619_v16  ;;  %v13622_v35 = vpack.c.bf16 %v11317_v4, %v11316_v19 }
 0x826   :  { %v12092_v46 = vpop.f32.mrb[148].mxu1  ;;  %13051 = vmatmul.mubr.msk.f32.gmra.mrb[138].mxu0 %vm2705_vm1, %v4552_v7  ;;  %v4553_v48 = vmax.f32 %v4530_v22, 0.0  ;;  %13621 = vmatprep.subr.bf16.mxu1 %v14276_v30 }
 0x827   :  { %v12093_v25 = vpop.f32.mrb[149].mxu1  ;;  %12126 = vmatpush3.bf16.msra.mxu0 %v16703_v15  ;;  %13053 = vmatprep.mubr.msk.f32.mxu0 %vm14277_vm0, %v14278_v55 }
 0x828   :  { %v12094_v51 = vadd.f32 %v12093_v25, %v12092_v46  ;;  %v12095_v26 = vpop.f32.mrb[150].mxu1  ;;  %12127 = vmatprep.subr.bf16.mxu0 %v16711_v60 }
 0x829   :  { %v12096_v56 = vpop.f32.mrb[151].mxu1  ;;  %13623 = vmatpush3.bf16.msra.mxu1 %v13622_v35 }
 0x82a   :  { %v4535_v50 = vadd.f32 %v16391_v57, %v12094_v51  ;;  %v12097_v27 = vadd.f32 %v12096_v56, %v12095_v26  ;;  %13054 = vmatmul.mubr.msk.f32.gmra.mrb[140].mxu0 %vm2705_vm1, %v4553_v48  ;;  %12176 = vmatprep.subr.bf16.mxu1 %v16778_v63 }
 0x82b   :  { %13056 = vmatprep.mubr.msk.f32.mxu0 %vm14277_vm0, %v14278_v55  ;;  %12128 = vmatpush3.bf16.msra.mxu0 %v16846_v62 }
 0x82c   :  { %v4554_v29 = vmax.f32 %v4535_v50, 0.0  ;;  %v4538_v24 = vadd.f32 %v16391_v57, %v12097_v27  ;;  %12129 = vmatprep.subr.bf16.mxu0 %v16853_v59 }
 0x82e   :  { %v12098_v31 = vpop.f32.mrb[152].mxu1  ;;  %13057 = vmatmul.mubr.msk.f32.gmra.mrb[142].mxu0 %vm2705_vm1, %v4554_v29  ;;  %v4555_v43 = vmax.f32 %v4538_v24, 0.0 }
 0x82f   :  { %v12099_v37 = vpop.f32.mrb[153].mxu1  ;;  %13059 = vmatprep.mubr.msk.f32.mxu0 %vm14277_vm0, %v14278_v55  ;;  %12130 = vmatpush3.bf16.msra.mxu0 %v16862_v21 }
 0x830   :  { %v12100_v5 = vadd.f32 %v12099_v37, %v12098_v31  ;;  %v12101_v32 = vpop.f32.mrb[154].mxu1  ;;  %12131 = vmatprep.subr.bf16.mxu0 %v16868_v58 }
 0x831   :  { %v12102_v1 = vpop.f32.mrb[155].mxu1 }
 0x832   :  { %v4543_v36 = vadd.f32 %v16391_v57, %v12100_v5  ;;  %13060 = vmatmul.mubr.msk.f32.gmra.mrb[144].mxu0 %vm2705_vm1, %v4555_v43  ;;  %v14071_v57 = vld [vmem:[%s18589_s0 + $0x240] ss:$8 sps:$4 sm:$0xff]  }
 0x833   :  { %13062 = vmatprep.mubr.msk.f32.mxu0 %vm14277_vm0, %v14278_v55  ;;  %12132 = vmatpush3.bf16.msra.mxu0 %v16878_v38 }
 0x834   :  { %v4556_v45 = vmax.f32 %v4543_v36, 0.0  ;;  %13624 = vmatprep.subr.bf16.mxu0 %v14276_v30 }
 0x836   :  { %13063 = vmatmul.mubr.msk.f32.gmra.mrb[146].mxu0 %vm2705_vm1, %v4556_v45 }
 0x837   :  { %4796 = vmatprep.mubr.bf16.mxu0 %v14073_v54 }
 0x83a   :  { %4797 = vmatmul.mubr.bf16.vlgmr.msra.gmra.mrb[148].mxu0 %v14071_v57 }
 0x83b   :  { %4804 = vmatprep.mubr.bf16.mxu0 %v14074_v9 }
 0x842   :  { %4805 = vmatmul.mubr.bf16.gmra.mrb[152].mxu0 %v14076_v10 }
 0x843   :  { %4812 = vmatprep.mubr.bf16.mxu0 %v14077_v40 }
 0x84a   :  { %4813 = vmatmul.mubr.bf16.gmra.mrb[156].mxu0 %v14079_v44 }
 0x84b   :  { %4820 = vmatprep.mubr.bf16.mxu0 %v14080_v11 }
 0x852   :  { %4821 = vmatmul.mubr.bf16.gmra.mrb[160].mxu0 %v14082_v52 }
 0x853   :  { %4828 = vmatprep.mubr.bf16.mxu0 %v11313_v12 }
 0x85a   :  { %4829 = vmatmul.mubr.bf16.gmra.mrb[164].mxu0 %v11312_v53 }
 0x85b   :  { %13108 = vmatprep.mubr.msk.f32.mxu0 %vm14277_vm0, %v14278_v55 }
 0x8e9   :  { %v4655_v7 = vpop.f32.mrb[110].mxu0 }
 0x8ea   :  { %v16927_v22 = vadd.f32 %v4655_v7, %v16782_v8  ;;  %v13040_v46 = vpop.f32.mrb[111].mxu0 }
 0x8ed   :  { %v4660_v25 = vpop.f32.mrb[132].mxu0 }
 0x8ee   :  { %v16930_v48 = vadd.f32 %v4660_v25, %v16785_v2  ;;  %v13043_v51 = vpop.f32.mrb[133].mxu0 }
 0x8f1   :  { %v4665_v26 = vpop.f32.mrb[134].mxu0 }
 0x8f2   :  { %v16933_v56 = vadd.f32 %v4665_v26, %v16788_v42  ;;  %v13046_v50 = vpop.f32.mrb[135].mxu0 }
 0x8f5   :  { %v4670_v27 = vpop.f32.mrb[136].mxu0 }
 0x8f6   :  { %v16936_v29 = vadd.f32 %v4670_v27, %v16791_v23  ;;  %v13049_v24 = vpop.f32.mrb[137].mxu0 }
 0x8f9   :  { %v4675_v31 = vpop.f32.mrb[138].mxu0 }
 0x8fa   :  { %v16939_v8 = vadd.f32 %v4675_v31, %v16794_v17  ;;  %v13052_v37 = vpop.f32.mrb[139].mxu0 }
 0x8fd   :  { %v4680_v43 = vpop.f32.mrb[140].mxu0 }
 0x8fe   :  { %v16942_v2 = vadd.f32 %v4680_v43, %v16797_v20  ;;  %v13055_v5 = vpop.f32.mrb[141].mxu0 }
 0x901   :  { %v4685_v32 = vpop.f32.mrb[142].mxu0 }
 0x902   :  { %v16945_v42 = vadd.f32 %v4685_v32, %v16800_v14  ;;  %v13058_v1 = vpop.f32.mrb[143].mxu0  ;;  %v16956_v14 = vld [vmem:[%s18591_s2] ss:$0 sm:$0xff] }
 0x905   :  { %v4690_v36 = vpop.f32.mrb[144].mxu0 }
 0x906   :  { %v16948_v23 = vadd.f32 %v4690_v36, %v16803_v39  ;;  %v13061_v54 = vpop.f32.mrb[145].mxu0 }
 0x909   :  { %v4695_v45 = vpop.f32.mrb[146].mxu0 }
 0x90a   :  { %v16951_v17 = vadd.f32 %v4695_v45, %v16806_v18  ;;  %v13064_v57 = vpop.f32.mrb[147].mxu0 }
 0x90d   :  { %v12133_v9 = vpop.f32.mrb[148].mxu0 }
 0x90e   :  { %v12134_v10 = vpop.f32.mrb[149].mxu0 }
 0x90f   :  { %v12135_v20 = vadd.f32 %v12134_v10, %v12133_v9  ;;  %v12136_v40 = vpop.f32.mrb[150].mxu0 }
 0x910   :  { %v12137_v44 = vpop.f32.mrb[151].mxu0 }
 0x911   :  { %v4799_v11 = vadd.f32 %v16956_v14, %v12135_v20  ;;  %v12138_v39 = vadd.f32 %v12137_v44, %v12136_v40 }
 0x913   :  { %v4836_v47 = vmax.f32 %v4799_v11, 0.0  ;;  %v4802_v52 = vadd.f32 %v16956_v14, %v12138_v39 }
 0x915   :  { %v12139_v12 = vpop.f32.mrb[152].mxu0  ;;  %13074 = vmatmul.mubr.msk.f32.vlgmr.msra.gmra.mrb[156].mxu1 %vm2705_vm1, %v4836_v47  ;;  %v4837_v53 = vmax.f32 %v4802_v52, 0.0 }
 0x916   :  { %12177 = vmatpush3.bf16.msra.mxu1 %v16639_v33  ;;  %v12140_v18 = vpop.f32.mrb[153].mxu0  ;;  %13076 = vmatprep.mubr.msk.f32.mxu1 %vm14277_vm0, %v14278_v55 }
 0x917   :  { %v12141_v6 = vadd.f32 %v12140_v18, %v12139_v12  ;;  %v12142_v61 = vpop.f32.mrb[154].mxu0  ;;  %12178 = vmatprep.subr.bf16.mxu1 %v16647_v41  ;;  %v14087_v18 = vld [vmem:[%s18589_s0 + $0x28c] ss:$8 sps:$4 sm:$0xff]  }
 0x918   :  { %v12143_v16 = vpop.f32.mrb[155].mxu0 }
 0x919   :  { %v4807_v19 = vadd.f32 %v16956_v14, %v12141_v6  ;;  %v12144_v4 = vadd.f32 %v12143_v16, %v12142_v61  ;;  %13077 = vmatmul.mubr.msk.f32.gmra.mrb[158].mxu1 %vm2705_vm1, %v4837_v53  ;;  %v14085_v6 = vld [vmem:[%s18589_s0 + $0x288] ss:$8 sps:$4 sm:$0xff]   ;;  %v14088_v61 = vld [vmem:[%s18589_s0 + $0x29c] ss:$8 sps:$4 sm:$0xff]   ;;  %v14090_v16 = vld [vmem:[%s18589_s0 + $0x298] ss:$8 sps:$4 sm:$0xff]  }
 0x91a   :  { %12179 = vmatpush3.bf16.msra.mxu1 %v16655_v49  ;;  %13079 = vmatprep.mubr.msk.f32.mxu1 %vm14277_vm0, %v14278_v55 }
 0x91b   :  { %v4838_v35 = vmax.f32 %v4807_v19, 0.0  ;;  %v4810_v7 = vadd.f32 %v16956_v14, %v12144_v4  ;;  %12180 = vmatprep.subr.bf16.mxu1 %v16664_v3  ;;  %v14091_v19 = vld [vmem:[%s18589_s0 + $0x2ac] ss:$8 sps:$4 sm:$0xff]   ;;  %v14093_v4 = vld [vmem:[%s18589_s0 + $0x2a8] ss:$8 sps:$4 sm:$0xff]  }
 0x91d   :  { %v12145_v46 = vpop.f32.mrb[156].mxu0  ;;  %13080 = vmatmul.mubr.msk.f32.gmra.mrb[160].mxu1 %vm2705_vm1, %v4838_v35  ;;  %v4839_v51 = vmax.f32 %v4810_v7, 0.0  ;;  %v14094_v35 = vld [vmem:[%s18589_s0 + $0x2bc] ss:$8 sps:$4 sm:$0xff]   ;;  %v5004_v7 = vld [vmem:[%s18589_s0 + $0x2c8] sm:$0xff] }
 0x91e   :  { %v12146_v25 = vpop.f32.mrb[157].mxu0  ;;  %12181 = vmatpush3.bf16.msra.mxu1 %v16671_v28  ;;  %13082 = vmatprep.mubr.msk.f32.mxu1 %vm14277_vm0, %v14278_v55 }
 0x91f   :  { %v12147_v26 = vadd.f32 %v12146_v25, %v12145_v46  ;;  %v12148_v50 = vpop.f32.mrb[158].mxu0  ;;  %12182 = vmatprep.subr.bf16.mxu1 %v16679_v0  ;;  %v14096_v46 = vld [vmem:[%s18589_s0 + $0x2b8] ss:$8 sps:$4 sm:$0xff]   ;;  %v11336_v25 = vcombine.high %v5004_v7, %v5004_v7 }
 0x920   :  { %v12149_v27 = vpop.f32.mrb[159].mxu0 }
 0x921   :  { %v4815_v24 = vadd.f32 %v16956_v14, %v12147_v26  ;;  %v12150_v31 = vadd.f32 %v12149_v27, %v12148_v50  ;;  %13083 = vmatmul.mubr.msk.f32.gmra.mrb[162].mxu1 %vm2705_vm1, %v4839_v51  ;;  %v11335_v51 = vcombine.low %v5004_v7, %v5004_v7  ;;  %v11337_v26 = vld [vmem:[%s18592_s3 + $0x120] sm:$0xff]  ;;  %v11338_v50 = vld [vmem:[%s18592_s3 + $0x128] sm:$0xff] }
 0x922   :  { %12183 = vmatpush3.bf16.msra.mxu1 %v16687_v13  ;;  %13085 = vmatprep.mubr.msk.f32.mxu1 %vm14277_vm0, %v14278_v55  ;;  %v13625_v27 = vpack.c.bf16 %v11338_v50, %v11337_v26 }
 0x923   :  { %v4840_v37 = vmax.f32 %v4815_v24, 0.0  ;;  %v4818_v43 = vadd.f32 %v16956_v14, %v12150_v31  ;;  %12184 = vmatprep.subr.bf16.mxu1 %v16696_v34  ;;  %v11339_v24 = vld [vmem:[%s18592_s3 + $0x130] sm:$0xff]  ;;  %v11340_v31 = vld [vmem:[%s18592_s3 + $0x138] sm:$0xff] }
 0x924   :  { %13626 = vmatpush3.bf16.msra.mxu0 %v13625_v27 }
 0x925   :  { %v12151_v5 = vpop.f32.mrb[160].mxu0  ;;  %13086 = vmatmul.mubr.msk.f32.gmra.mrb[164].mxu1 %vm2705_vm1, %v4840_v37  ;;  %v4841_v1 = vmax.f32 %v4818_v43, 0.0  ;;  %13627 = vmatprep.subr.bf16.mxu0 %v14276_v30  ;;  %v13628_v37 = vpack.c.bf16 %v11340_v31, %v11339_v24 }
 0x926   :  { %v12152_v32 = vpop.f32.mrb[161].mxu0  ;;  %12185 = vmatpush3.bf16.msra.mxu1 %v16703_v15  ;;  %13088 = vmatprep.mubr.msk.f32.mxu1 %vm14277_vm0, %v14278_v55 }
 0x927   :  { %v12153_v36 = vadd.f32 %v12152_v32, %v12151_v5  ;;  %v12154_v54 = vpop.f32.mrb[162].mxu0  ;;  %12186 = vmatprep.subr.bf16.mxu1 %v16711_v60 }
 0x928   :  { %v12155_v45 = vpop.f32.mrb[163].mxu0  ;;  %13629 = vmatpush3.bf16.msra.mxu0 %v13628_v37 }
 0x929   :  { %v4823_v57 = vadd.f32 %v16956_v14, %v12153_v36  ;;  %v12156_v9 = vadd.f32 %v12155_v45, %v12154_v54  ;;  %13089 = vmatmul.mubr.msk.f32.gmra.mrb[166].mxu1 %vm2705_vm1, %v4841_v1  ;;  %12235 = vmatprep.subr.bf16.mxu0 %v16778_v63 }
 0x92a   :  { %13091 = vmatprep.mubr.msk.f32.mxu1 %vm14277_vm0, %v14278_v55  ;;  %12187 = vmatpush3.bf16.msra.mxu1 %v16846_v62 }
 0x92b   :  { %v4842_v10 = vmax.f32 %v4823_v57, 0.0  ;;  %v4826_v20 = vadd.f32 %v16956_v14, %v12156_v9  ;;  %12188 = vmatprep.subr.bf16.mxu1 %v16853_v59 }
 0x92d   :  { %v12157_v40 = vpop.f32.mrb[164].mxu0  ;;  %13092 = vmatmul.mubr.msk.f32.gmra.mrb[168].mxu1 %vm2705_vm1, %v4842_v10  ;;  %v4843_v11 = vmax.f32 %v4826_v20, 0.0 }
 0x92e   :  { %v12158_v44 = vpop.f32.mrb[165].mxu0  ;;  %13094 = vmatprep.mubr.msk.f32.mxu1 %vm14277_vm0, %v14278_v55  ;;  %12189 = vmatpush3.bf16.msra.mxu1 %v16862_v21 }
 0x92f   :  { %v12159_v39 = vadd.f32 %v12158_v44, %v12157_v40  ;;  %v12160_v47 = vpop.f32.mrb[166].mxu0  ;;  %12190 = vmatprep.subr.bf16.mxu1 %v16868_v58 }
 0x930   :  { %v12161_v52 = vpop.f32.mrb[167].mxu0 }
 0x931   :  { %v4831_v12 = vadd.f32 %v16956_v14, %v12159_v39  ;;  %13095 = vmatmul.mubr.msk.f32.gmra.mrb[170].mxu1 %vm2705_vm1, %v4843_v11 }
 0x932   :  { %13097 = vmatprep.mubr.msk.f32.mxu1 %vm14277_vm0, %v14278_v55  ;;  %12191 = vmatpush3.bf16.msra.mxu1 %v16878_v38 }
 0x933   :  { %v4844_v53 = vmax.f32 %v4831_v12, 0.0  ;;  %13630 = vmatprep.subr.bf16.mxu1 %v14276_v30 }
 0x935   :  { %13098 = vmatmul.mubr.msk.f32.gmra.mrb[172].mxu1 %vm2705_vm1, %v4844_v53 }
 0x936   :  { %5084 = vmatprep.mubr.bf16.mxu1 %v14087_v18 }
 0x939   :  { %5085 = vmatmul.mubr.bf16.vlgmr.msra.gmra.mrb[176].mxu1 %v14085_v6 }
 0x93a   :  { %5092 = vmatprep.mubr.bf16.mxu1 %v14088_v61 }
 0x941   :  { %5093 = vmatmul.mubr.bf16.gmra.mrb[180].mxu1 %v14090_v16 }
 0x942   :  { %5100 = vmatprep.mubr.bf16.mxu1 %v14091_v19 }
 0x949   :  { %5101 = vmatmul.mubr.bf16.gmra.mrb[184].mxu1 %v14093_v4 }
 0x94a   :  { %5108 = vmatprep.mubr.bf16.mxu1 %v14094_v35 }
 0x951   :  { %5109 = vmatmul.mubr.bf16.gmra.mrb[188].mxu1 %v14096_v46 }
 0x952   :  { %5116 = vmatprep.mubr.bf16.mxu1 %v11336_v25 }
 0x959   :  { %5117 = vmatmul.mubr.bf16.gmra.mrb[192].mxu1 %v11335_v51 }
 0x95a   :  { %13143 = vmatprep.mubr.msk.f32.mxu1 %vm14277_vm0, %v14278_v55 }
 0x9e8   :  { %v4943_v43 = vpop.f32.mrb[156].mxu1 }
 0x9e9   :  { %v17052_v5 = vadd.f32 %v4943_v43, %v16927_v22  ;;  %v13075_v32 = vpop.f32.mrb[157].mxu1 }
 0x9ec   :  { %v4948_v1 = vpop.f32.mrb[158].mxu1 }
 0x9ed   :  { %v17055_v36 = vadd.f32 %v4948_v1, %v16930_v48  ;;  %v13078_v54 = vpop.f32.mrb[159].mxu1 }
 0x9f0   :  { %v4953_v45 = vpop.f32.mrb[160].mxu1 }
 0x9f1   :  { %v17058_v57 = vadd.f32 %v4953_v45, %v16933_v56  ;;  %v13081_v9 = vpop.f32.mrb[161].mxu1 }
 0x9f4   :  { %v4958_v10 = vpop.f32.mrb[162].mxu1 }
 0x9f5   :  { %v17061_v20 = vadd.f32 %v4958_v10, %v16936_v29  ;;  %v13084_v40 = vpop.f32.mrb[163].mxu1 }
 0x9f8   :  { %v4963_v44 = vpop.f32.mrb[164].mxu1 }
 0x9f9   :  { %v17064_v22 = vadd.f32 %v4963_v44, %v16939_v8  ;;  %v13087_v11 = vpop.f32.mrb[165].mxu1 }
 0x9fc   :  { %v4968_v39 = vpop.f32.mrb[166].mxu1 }
 0x9fd   :  { %v17067_v48 = vadd.f32 %v4968_v39, %v16942_v2  ;;  %v13090_v47 = vpop.f32.mrb[167].mxu1 }
 0xa00   :  { %v4973_v52 = vpop.f32.mrb[168].mxu1 }
 0xa01   :  { %v17070_v56 = vadd.f32 %v4973_v52, %v16945_v42  ;;  %v13093_v12 = vpop.f32.mrb[169].mxu1 }
 0xa04   :  { %v4978_v18 = vpop.f32.mrb[170].mxu1 }
 0xa05   :  { %v17073_v29 = vadd.f32 %v4978_v18, %v16948_v23  ;;  %v13096_v53 = vpop.f32.mrb[171].mxu1 }
 0xa08   :  { %v4983_v6 = vpop.f32.mrb[172].mxu1 }
 0xa09   :  { %v17076_v8 = vadd.f32 %v4983_v6, %v16951_v17  ;;  %v13099_v61 = vpop.f32.mrb[173].mxu1 }
 0xa0c   :  { %v12192_v16 = vpop.f32.mrb[176].mxu1 }
 0xa0d   :  { %v12193_v19 = vpop.f32.mrb[177].mxu1 }
 0xa0e   :  { %v12194_v2 = vadd.f32 %v12193_v19, %v12192_v16  ;;  %v12195_v4 = vpop.f32.mrb[178].mxu1  ;;  %v14101_v16 = vld [vmem:[%s18589_s0 + $0x2d4] ss:$8 sps:$4 sm:$0xff]  }
 0xa0f   :  { %v12196_v35 = vpop.f32.mrb[179].mxu1 }
 0xa10   :  { %v5087_v7 = vadd.f32 %v16956_v14, %v12194_v2  ;;  %v12197_v42 = vadd.f32 %v12196_v35, %v12195_v4  ;;  %v14099_v2 = vld [vmem:[%s18589_s0 + $0x2d0] ss:$8 sps:$4 sm:$0xff]   ;;  %v14102_v4 = vld [vmem:[%s18589_s0 + $0x2e4] ss:$8 sps:$4 sm:$0xff]   ;;  %v14104_v35 = vld [vmem:[%s18589_s0 + $0x2e0] ss:$8 sps:$4 sm:$0xff]  }
 0xa12   :  { %v5124_v46 = vmax.f32 %v5087_v7, 0.0  ;;  %v5090_v25 = vadd.f32 %v16956_v14, %v12197_v42  ;;  %v14105_v7 = vld [vmem:[%s18589_s0 + $0x2f4] ss:$8 sps:$4 sm:$0xff]   ;;  %v14107_v42 = vld [vmem:[%s18589_s0 + $0x2f0] ss:$8 sps:$4 sm:$0xff]  }
 0xa14   :  { %v12198_v51 = vpop.f32.mrb[180].mxu1  ;;  %13109 = vmatmul.mubr.msk.f32.vlgmr.msra.gmra.mrb[168].mxu0 %vm2705_vm1, %v5124_v46  ;;  %v5125_v17 = vmax.f32 %v5090_v25, 0.0  ;;  %v14108_v46 = vld [vmem:[%s18589_s0 + $0x304] ss:$8 sps:$4 sm:$0xff]   ;;  %v5292_v25 = vld [vmem:[%s18589_s0 + $0x310] sm:$0xff] }
 0xa15   :  { %12236 = vmatpush3.bf16.msra.mxu0 %v16639_v33  ;;  %v12199_v23 = vpop.f32.mrb[181].mxu1  ;;  %13111 = vmatprep.mubr.msk.f32.mxu0 %vm14277_vm0, %v14278_v55 }
 0xa16   :  { %v12200_v26 = vadd.f32 %v12199_v23, %v12198_v51  ;;  %v12201_v50 = vpop.f32.mrb[182].mxu1  ;;  %12237 = vmatprep.subr.bf16.mxu0 %v16647_v41  ;;  %v14110_v51 = vld [vmem:[%s18589_s0 + $0x300] ss:$8 sps:$4 sm:$0xff]   ;;  %v11359_v23 = vcombine.high %v5292_v25, %v5292_v25 }
 0xa17   :  { %v12202_v27 = vpop.f32.mrb[183].mxu1 }
 0xa18   :  { %v5095_v24 = vadd.f32 %v16956_v14, %v12200_v26  ;;  %v12203_v31 = vadd.f32 %v12202_v27, %v12201_v50  ;;  %13112 = vmatmul.mubr.msk.f32.gmra.mrb[170].mxu0 %vm2705_vm1, %v5125_v17  ;;  %v11358_v17 = vcombine.low %v5292_v25, %v5292_v25  ;;  %v11360_v26 = vld [vmem:[%s18592_s3 + $0x140] sm:$0xff]  ;;  %v11361_v50 = vld [vmem:[%s18592_s3 + $0x148] sm:$0xff] }
 0xa19   :  { %12238 = vmatpush3.bf16.msra.mxu0 %v16655_v49  ;;  %13114 = vmatprep.mubr.msk.f32.mxu0 %vm14277_vm0, %v14278_v55  ;;  %v13631_v27 = vpack.c.bf16 %v11361_v50, %v11360_v26  ;;  %v17220_v25 = vld [vmem:[%s18590_s1 + $0x8] sm:$0xff]  }
 0xa1a   :  { %v5126_v33 = vmax.f32 %v5095_v24, 0.0  ;;  %v5098_v37 = vadd.f32 %v16956_v14, %v12203_v31  ;;  %12239 = vmatprep.subr.bf16.mxu0 %v16664_v3  ;;  %v11362_v24 = vld [vmem:[%s18592_s3 + $0x150] sm:$0xff]  ;;  %v11363_v31 = vld [vmem:[%s18592_s3 + $0x158] sm:$0xff] }
 0xa1b   :  { %13632 = vmatpush3.bf16.msra.mxu1 %v13631_v27  ;;  %v17236_v27 = vld [vmem:[%s18590_s1 + $0x10] sm:$0xff]  }
 0xa1c   :  { %v12204_v43 = vpop.f32.mrb[184].mxu1  ;;  %13115 = vmatmul.mubr.msk.f32.gmra.mrb[172].mxu0 %vm2705_vm1, %v5126_v33  ;;  %v5127_v32 = vmax.f32 %v5098_v37, 0.0  ;;  %13633 = vmatprep.subr.bf16.mxu1 %v14276_v30  ;;  %v13634_v33 = vpack.c.bf16 %v11363_v31, %v11362_v24 }
 0xa1d   :  { %v12205_v41 = vpop.f32.mrb[185].mxu1  ;;  %12240 = vmatpush3.bf16.msra.mxu0 %v16671_v28  ;;  %13117 = vmatprep.mubr.msk.f32.mxu0 %vm14277_vm0, %v14278_v55 }
 0xa1e   :  { %v12206_v1 = vadd.f32 %v12205_v41, %v12204_v43  ;;  %v12207_v49 = vpop.f32.mrb[186].mxu1  ;;  %12241 = vmatprep.subr.bf16.mxu0 %v16679_v0 }
 0xa1f   :  { %v12208_v54 = vpop.f32.mrb[187].mxu1  ;;  %13635 = vmatpush3.bf16.msra.mxu1 %v13634_v33 }
 0xa20   :  { %v5103_v45 = vadd.f32 %v16956_v14, %v12206_v1  ;;  %v12209_v9 = vadd.f32 %v12208_v54, %v12207_v49  ;;  %13118 = vmatmul.mubr.msk.f32.gmra.mrb[174].mxu0 %vm2705_vm1, %v5127_v32  ;;  %12294 = vmatprep.subr.bf16.mxu1 %v16778_v63 }
 0xa21   :  { %12242 = vmatpush3.bf16.msra.mxu0 %v16687_v13  ;;  %13120 = vmatprep.mubr.msk.f32.mxu0 %vm14277_vm0, %v14278_v55 }
 0xa22   :  { %v5128_v3 = vmax.f32 %v5103_v45, 0.0  ;;  %v5106_v28 = vadd.f32 %v16956_v14, %v12209_v9  ;;  %12243 = vmatprep.subr.bf16.mxu0 %v16696_v34 }
 0xa24   :  { %v12210_v10 = vpop.f32.mrb[188].mxu1  ;;  %13121 = vmatmul.mubr.msk.f32.gmra.mrb[176].mxu0 %vm2705_vm1, %v5128_v3  ;;  %v5129_v40 = vmax.f32 %v5106_v28, 0.0 }
 0xa25   :  { %v12211_v0 = vpop.f32.mrb[189].mxu1  ;;  %12244 = vmatpush3.bf16.msra.mxu0 %v16703_v15  ;;  %13123 = vmatprep.mubr.msk.f32.mxu0 %vm14277_vm0, %v14278_v55 }
 0xa26   :  { %v12212_v44 = vadd.f32 %v12211_v0, %v12210_v10  ;;  %v12213_v13 = vpop.f32.mrb[190].mxu1  ;;  %12245 = vmatprep.subr.bf16.mxu0 %v16711_v60 }
 0xa27   :  { %v12214_v11 = vpop.f32.mrb[191].mxu1 }
 0xa28   :  { %v5111_v39 = vadd.f32 %v16956_v14, %v12212_v44  ;;  %v12215_v47 = vadd.f32 %v12214_v11, %v12213_v13  ;;  %13124 = vmatmul.mubr.msk.f32.gmra.mrb[178].mxu0 %vm2705_vm1, %v5129_v40 }
 0xa29   :  { %13126 = vmatprep.mubr.msk.f32.mxu0 %vm14277_vm0, %v14278_v55  ;;  %12246 = vmatpush3.bf16.msra.mxu0 %v16846_v62 }
 0xa2a   :  { %v5130_v34 = vmax.f32 %v5111_v39, 0.0  ;;  %v5114_v15 = vadd.f32 %v16956_v14, %v12215_v47  ;;  %12247 = vmatprep.subr.bf16.mxu0 %v16853_v59 }
 0xa2c   :  { %v12216_v52 = vpop.f32.mrb[192].mxu1  ;;  %13127 = vmatmul.mubr.msk.f32.gmra.mrb[180].mxu0 %vm2705_vm1, %v5130_v34  ;;  %v5131_v12 = vmax.f32 %v5114_v15, 0.0 }
 0xa2d   :  { %v12217_v60 = vpop.f32.mrb[193].mxu1  ;;  %13129 = vmatprep.mubr.msk.f32.mxu0 %vm14277_vm0, %v14278_v55  ;;  %12248 = vmatpush3.bf16.msra.mxu0 %v16862_v21 }
 0xa2e   :  { %v12218_v18 = vadd.f32 %v12217_v60, %v12216_v52  ;;  %v12219_v53 = vpop.f32.mrb[194].mxu1  ;;  %12249 = vmatprep.subr.bf16.mxu0 %v16868_v58 }
 0xa2f   :  { %v12220_v6 = vpop.f32.mrb[195].mxu1 }
 0xa30   :  { %v5119_v61 = vadd.f32 %v16956_v14, %v12218_v18  ;;  %13130 = vmatmul.mubr.msk.f32.gmra.mrb[182].mxu0 %vm2705_vm1, %v5131_v12 }
 0xa31   :  { %13132 = vmatprep.mubr.msk.f32.mxu0 %vm14277_vm0, %v14278_v55  ;;  %12250 = vmatpush3.bf16.msra.mxu0 %v16878_v38 }
 0xa32   :  { %v5132_v19 = vmax.f32 %v5119_v61, 0.0  ;;  %13636 = vmatprep.subr.bf16.mxu0 %v14276_v30 }
 0xa34   :  { %13133 = vmatmul.mubr.msk.f32.gmra.mrb[184].mxu0 %vm2705_vm1, %v5132_v19 }
 0xa35   :  { %5372 = vmatprep.mubr.bf16.mxu0 %v14101_v16 }
 0xa38   :  { %5373 = vmatmul.mubr.bf16.vlgmr.msra.gmra.mrb[188].mxu0 %v14099_v2 }
 0xa39   :  { %5380 = vmatprep.mubr.bf16.mxu0 %v14102_v4 }
 0xa40   :  { %5381 = vmatmul.mubr.bf16.gmra.mrb[192].mxu0 %v14104_v35  ;;  %v17212_v35 = vld [vmem:[%s18590_s1 + $0x48] sm:$0xff]  }
 0xa41   :  { %5388 = vmatprep.mubr.bf16.mxu0 %v14105_v7 }
 0xa48   :  { %5389 = vmatmul.mubr.bf16.gmra.mrb[196].mxu0 %v14107_v42 }
 0xa49   :  { %5396 = vmatprep.mubr.bf16.mxu0 %v14108_v46 }
 0xa50   :  { %5397 = vmatmul.mubr.bf16.gmra.mrb[200].mxu0 %v14110_v51 }
 0xa51   :  { %5404 = vmatprep.mubr.bf16.mxu0 %v11359_v23 }
 0xa58   :  { %5405 = vmatmul.mubr.bf16.gmra.mrb[204].mxu0 %v11358_v17  ;;  %v17229_v17 = vld [vmem:[%s18590_s1 + $0x50] sm:$0xff]  }
 0xa59   :  { %13178 = vmatprep.mubr.msk.f32.mxu0 %vm14277_vm0, %v14278_v55 }
 0xae7   :  { %v5231_v37 = vpop.f32.mrb[168].mxu0 }
 0xae8   :  { %v17172_v43 = vadd.f32 %v5231_v37, %v17052_v5  ;;  %v13110_v41 = vpop.f32.mrb[169].mxu0  ;;  %v17244_v37 = vld [vmem:[%s18590_s1 + $0x58] sm:$0xff]  }
 0xaeb   :  { %v5236_v32 = vpop.f32.mrb[170].mxu0 }
 0xaec   :  { %v17175_v1 = vadd.f32 %v5236_v32, %v17055_v36  ;;  %v13113_v49 = vpop.f32.mrb[171].mxu0 }
 0xaef   :  { %v5241_v54 = vpop.f32.mrb[172].mxu0 }
 0xaf0   :  { %v17178_v45 = vadd.f32 %v5241_v54, %v17058_v57  ;;  %v13116_v9 = vpop.f32.mrb[173].mxu0  ;;  %v17252_v54 = vld [vmem:[%s18590_s1 + $0x18] sm:$0xff]  }
 0xaf3   :  { %v5246_v3 = vpop.f32.mrb[174].mxu0 }
 0xaf4   :  { %v17181_v28 = vadd.f32 %v5246_v3, %v17061_v20  ;;  %v13119_v63 = vpop.f32.mrb[175].mxu0 }
 0xaf5   :  { %v17261_v63 = vld [vmem:[%s18590_s1 + $0x60] sm:$0xff]  }
 0xaf7   :  { %v5251_v10 = vpop.f32.mrb[176].mxu0 }
 0xaf8   :  { %v17184_v5 = vadd.f32 %v5251_v10, %v17064_v22  ;;  %v13122_v0 = vpop.f32.mrb[177].mxu0 }
 0xafb   :  { %v5256_v40 = vpop.f32.mrb[178].mxu0 }
 0xafc   :  { %v17187_v36 = vadd.f32 %v5256_v40, %v17067_v48  ;;  %v13125_v44 = vpop.f32.mrb[179].mxu0  ;;  %v17268_v40 = vld [vmem:[%s18590_s1 + $0x20] sm:$0xff]  }
 0xaff   :  { %v5261_v13 = vpop.f32.mrb[180].mxu0 }
 0xb00   :  { %v17190_v57 = vadd.f32 %v5261_v13, %v17070_v56  ;;  %v13128_v11 = vpop.f32.mrb[181].mxu0 }
 0xb03   :  { %v5266_v39 = vpop.f32.mrb[182].mxu0 }
 0xb04   :  { %v17193_v20 = vadd.f32 %v5266_v39, %v17073_v29  ;;  %v13131_v47 = vpop.f32.mrb[183].mxu0  ;;  %v17204_v29 = vld [vmem:[%s18590_s1] sm:$0xff]   ;;  %v17276_v39 = vld [vmem:[%s18590_s1 + $0x68] sm:$0xff]  }
 0xb07   :  { %v5271_v34 = vpop.f32.mrb[184].mxu0 }
 0xb08   :  { %v17196_v22 = vadd.f32 %v5271_v34, %v17076_v8  ;;  %v13134_v15 = vpop.f32.mrb[185].mxu0 }
 0xb0b   :  { %v12251_v52 = vpop.f32.mrb[188].mxu0 }
 0xb0c   :  { %v12252_v60 = vpop.f32.mrb[189].mxu0 }
 0xb0d   :  { %v12253_v48 = vadd.f32 %v12252_v60, %v12251_v52  ;;  %v12254_v12 = vpop.f32.mrb[190].mxu0 }
 0xb0e   :  { %v12255_v18 = vpop.f32.mrb[191].mxu0 }
 0xb0f   :  { %v5375_v53 = vadd.f32 %v16956_v14, %v12253_v48  ;;  %v12256_v56 = vadd.f32 %v12255_v18, %v12254_v12 }
 0xb11   :  { %v5412_v6 = vmax.f32 %v5375_v53, 0.0  ;;  %v5378_v61 = vadd.f32 %v16956_v14, %v12256_v56 }
 0xb13   :  { %v12257_v16 = vpop.f32.mrb[192].mxu0  ;;  %13144 = vmatmul.mubr.msk.f32.vlgmr.msra.gmra.mrb[174].mxu1 %vm2705_vm1, %v5412_v6  ;;  %v5413_v19 = vmax.f32 %v5378_v61, 0.0  ;;  %v14116_v61 = vld [vmem:[%s18589_s0 + $0x32c] ss:$8 sps:$4 sm:$0xff]  }
 0xb14   :  { %12295 = vmatpush3.bf16.msra.mxu1 %v17204_v29  ;;  %v12258_v8 = vpop.f32.mrb[193].mxu0  ;;  %13146 = vmatprep.mubr.msk.f32.mxu1 %vm14277_vm0, %v14278_v55 }
 0xb15   :  { %v12259_v2 = vadd.f32 %v12258_v8, %v12257_v16  ;;  %v12260_v4 = vpop.f32.mrb[194].mxu0  ;;  %12296 = vmatprep.subr.bf16.mxu1 %v17212_v35  ;;  %v14119_v16 = vld [vmem:[%s18589_s0 + $0x33c] ss:$8 sps:$4 sm:$0xff]   ;;  %v14121_v8 = vld [vmem:[%s18589_s0 + $0x338] ss:$8 sps:$4 sm:$0xff]  }
 0xb16   :  { %v12261_v7 = vpop.f32.mrb[195].mxu0 }
 0xb17   :  { %v5383_v42 = vadd.f32 %v16956_v14, %v12259_v2  ;;  %v12262_v46 = vadd.f32 %v12261_v7, %v12260_v4  ;;  %13147 = vmatmul.mubr.msk.f32.gmra.mrb[196].mxu1 %vm2705_vm1, %v5413_v19  ;;  %v14122_v19 = vld [vmem:[%s18589_s0 + $0x34c] ss:$8 sps:$4 sm:$0xff]   ;;  %v5580_v2 = vld [vmem:[%s18589_s0 + $0x358] sm:$0xff]  ;;  %v14124_v4 = vld [vmem:[%s18589_s0 + $0x348] ss:$8 sps:$4 sm:$0xff]  }
 0xb18   :  { %12297 = vmatpush3.bf16.msra.mxu1 %v17220_v25  ;;  %13149 = vmatprep.mubr.msk.f32.mxu1 %vm14277_vm0, %v14278_v55  ;;  %v11382_v7 = vcombine.high %v5580_v2, %v5580_v2 }
 0xb19   :  { %v5414_v51 = vmax.f32 %v5383_v42, 0.0  ;;  %v5386_v23 = vadd.f32 %v16956_v14, %v12262_v46  ;;  %12298 = vmatprep.subr.bf16.mxu1 %v17229_v17  ;;  %v11381_v42 = vcombine.low %v5580_v2, %v5580_v2  ;;  %v11383_v46 = vld [vmem:[%s18592_s3 + $0x160] sm:$0xff] }
 0xb1b   :  { %v12263_v26 = vpop.f32.mrb[196].mxu0  ;;  %13150 = vmatmul.mubr.msk.f32.gmra.mrb[198].mxu1 %vm2705_vm1, %v5414_v51  ;;  %v5415_v24 = vmax.f32 %v5386_v23, 0.0  ;;  %v11384_v51 = vld [vmem:[%s18592_s3 + $0x168] sm:$0xff] }
 0xb1c   :  { %v12264_v50 = vpop.f32.mrb[197].mxu0  ;;  %12299 = vmatpush3.bf16.msra.mxu1 %v17236_v27  ;;  %13152 = vmatprep.mubr.msk.f32.mxu1 %vm14277_vm0, %v14278_v55  ;;  %v13637_v23 = vpack.c.bf16 %v11384_v51, %v11383_v46 }
 0xb1d   :  { %v12265_v31 = vadd.f32 %v12264_v50, %v12263_v26  ;;  %v12266_v33 = vpop.f32.mrb[198].mxu0  ;;  %12300 = vmatprep.subr.bf16.mxu1 %v17244_v37  ;;  %v11385_v26 = vld [vmem:[%s18592_s3 + $0x170] sm:$0xff]  ;;  %v11386_v50 = vld [vmem:[%s18592_s3 + $0x178] sm:$0xff] }
 0xb1e   :  { %v12267_v41 = vpop.f32.mrb[199].mxu0  ;;  %13638 = vmatpush3.bf16.msra.mxu0 %v13637_v23 }
 0xb1f   :  { %v5391_v32 = vadd.f32 %v16956_v14, %v12265_v31  ;;  %v12268_v49 = vadd.f32 %v12267_v41, %v12266_v33  ;;  %13153 = vmatmul.mubr.msk.f32.gmra.mrb[200].mxu1 %vm2705_vm1, %v5415_v24  ;;  %13639 = vmatprep.subr.bf16.mxu0 %v14276_v30  ;;  %v13640_v24 = vpack.c.bf16 %v11386_v50, %v11385_v26  ;;  %v17343_v31 = vld [vmem:[%s18590_s1 + $0x40] sm:$0xff]  }
 0xb20   :  { %12301 = vmatpush3.bf16.msra.mxu1 %v17252_v54  ;;  %13155 = vmatprep.mubr.msk.f32.mxu1 %vm14277_vm0, %v14278_v55 }
 0xb21   :  { %v5416_v9 = vmax.f32 %v5391_v32, 0.0  ;;  %v5394_v3 = vadd.f32 %v16956_v14, %v12268_v49  ;;  %12302 = vmatprep.subr.bf16.mxu1 %v17261_v63 }
 0xb22   :  { %13641 = vmatpush3.bf16.msra.mxu0 %v13640_v24 }
 0xb23   :  { %v12269_v10 = vpop.f32.mrb[200].mxu0  ;;  %13156 = vmatmul.mubr.msk.f32.gmra.mrb[202].mxu1 %vm2705_vm1, %v5416_v9  ;;  %v5417_v44 = vmax.f32 %v5394_v3, 0.0  ;;  %12353 = vmatprep.subr.bf16.mxu0 %v17343_v31 }
 0xb24   :  { %v12270_v0 = vpop.f32.mrb[201].mxu0  ;;  %12303 = vmatpush3.bf16.msra.mxu1 %v17268_v40  ;;  %13158 = vmatprep.mubr.msk.f32.mxu1 %vm14277_vm0, %v14278_v55 }
 0xb25   :  { %v12271_v13 = vadd.f32 %v12270_v0, %v12269_v10  ;;  %v12272_v11 = vpop.f32.mrb[202].mxu0  ;;  %12304 = vmatprep.subr.bf16.mxu1 %v17276_v39 }
 0xb26   :  { %v12273_v47 = vpop.f32.mrb[203].mxu0 }
 0xb27   :  { %v5399_v34 = vadd.f32 %v16956_v14, %v12271_v13  ;;  %v12274_v15 = vadd.f32 %v12273_v47, %v12272_v11  ;;  %13159 = vmatmul.mubr.msk.f32.gmra.mrb[204].mxu1 %vm2705_vm1, %v5417_v44 }
 0xb28   :  { %13161 = vmatprep.mubr.msk.f32.mxu1 %vm14277_vm0, %v14278_v55  ;;  %12305 = vmatpush3.bf16.msra.mxu1 %v16846_v62 }
 0xb29   :  { %v5418_v52 = vmax.f32 %v5399_v34, 0.0  ;;  %v5402_v60 = vadd.f32 %v16956_v14, %v12274_v15  ;;  %12306 = vmatprep.subr.bf16.mxu1 %v16853_v59  ;;  %v14115_v59 = vld [vmem:[%s18589_s0 + $0x31c] ss:$8 sps:$4 sm:$0xff]  }
 0xb2b   :  { %v12275_v48 = vpop.f32.mrb[204].mxu0  ;;  %13162 = vmatmul.mubr.msk.f32.gmra.mrb[206].mxu1 %vm2705_vm1, %v5418_v52  ;;  %v5419_v18 = vmax.f32 %v5402_v60, 0.0 }
 0xb2c   :  { %v12276_v12 = vpop.f32.mrb[205].mxu0  ;;  %13164 = vmatprep.mubr.msk.f32.mxu1 %vm14277_vm0, %v14278_v55  ;;  %12307 = vmatpush3.bf16.msra.mxu1 %v16862_v21 }
 0xb2d   :  { %v12277_v53 = vadd.f32 %v12276_v12, %v12275_v48  ;;  %v12278_v56 = vpop.f32.mrb[206].mxu0  ;;  %12308 = vmatprep.subr.bf16.mxu1 %v16868_v58  ;;  %v14113_v58 = vld [vmem:[%s18589_s0 + $0x318] ss:$8 sps:$4 sm:$0xff]  }
 0xb2e   :  { %v12279_v62 = vpop.f32.mrb[207].mxu0 }
 0xb2f   :  { %v5407_v6 = vadd.f32 %v16956_v14, %v12277_v53  ;;  %13165 = vmatmul.mubr.msk.f32.gmra.mrb[208].mxu1 %vm2705_vm1, %v5419_v18 }
 0xb30   :  { %13167 = vmatprep.mubr.msk.f32.mxu1 %vm14277_vm0, %v14278_v55  ;;  %12309 = vmatpush3.bf16.msra.mxu1 %v16878_v38  ;;  %v14118_v38 = vld [vmem:[%s18589_s0 + $0x328] ss:$8 sps:$4 sm:$0xff]  }
 0xb31   :  { %v5420_v21 = vmax.f32 %v5407_v6, 0.0  ;;  %13642 = vmatprep.subr.bf16.mxu1 %v14276_v30 }
 0xb33   :  { %13168 = vmatmul.mubr.msk.f32.gmra.mrb[210].mxu1 %vm2705_vm1, %v5420_v21 }
 0xb34   :  { %5660 = vmatprep.mubr.bf16.mxu1 %v14115_v59 }
 0xb37   :  { %5661 = vmatmul.mubr.bf16.vlgmr.msra.gmra.mrb[212].mxu1 %v14113_v58 }
 0xb38   :  { %5668 = vmatprep.mubr.bf16.mxu1 %v14116_v61 }
 0xb3f   :  { %5669 = vmatmul.mubr.bf16.gmra.mrb[216].mxu1 %v14118_v38 }
 0xb40   :  { %5676 = vmatprep.mubr.bf16.mxu1 %v14119_v16 }
 0xb47   :  { %5677 = vmatmul.mubr.bf16.gmra.mrb[220].mxu1 %v14121_v8 }
 0xb48   :  { %5684 = vmatprep.mubr.bf16.mxu1 %v14122_v19 }
 0xb4f   :  { %5685 = vmatmul.mubr.bf16.gmra.mrb[224].mxu1 %v14124_v4 }
 0xb50   :  { %5692 = vmatprep.mubr.bf16.mxu1 %v11382_v7 }
 0xb57   :  { %5693 = vmatmul.mubr.bf16.gmra.mrb[228].mxu1 %v11381_v42 }
 0xb58   :  { %13213 = vmatprep.mubr.msk.f32.mxu1 %vm14277_vm0, %v14278_v55 }
 0xbe6   :  { %v5519_v33 = vpop.f32.mrb[174].mxu1 }
 0xbe7   :  { %v17347_v41 = vadd.f32 %v5519_v33, %v17172_v43  ;;  %v13145_v32 = vpop.f32.mrb[175].mxu1 }
 0xbea   :  { %v5524_v49 = vpop.f32.mrb[196].mxu1 }
 0xbeb   :  { %v17350_v9 = vadd.f32 %v5524_v49, %v17175_v1  ;;  %v13148_v3 = vpop.f32.mrb[197].mxu1 }
 0xbee   :  { %v5529_v10 = vpop.f32.mrb[198].mxu1 }
 0xbef   :  { %v17353_v0 = vadd.f32 %v5529_v10, %v17178_v45  ;;  %v13151_v44 = vpop.f32.mrb[199].mxu1 }
 0xbf2   :  { %v5534_v13 = vpop.f32.mrb[200].mxu1 }
 0xbf3   :  { %v17356_v11 = vadd.f32 %v5534_v13, %v17181_v28  ;;  %v13154_v47 = vpop.f32.mrb[201].mxu1 }
 0xbf6   :  { %v5539_v34 = vpop.f32.mrb[202].mxu1 }
 0xbf7   :  { %v17359_v43 = vadd.f32 %v5539_v34, %v17184_v5  ;;  %v13157_v15 = vpop.f32.mrb[203].mxu1 }
 0xbfa   :  { %v5544_v52 = vpop.f32.mrb[204].mxu1 }
 0xbfb   :  { %v17362_v1 = vadd.f32 %v5544_v52, %v17187_v36  ;;  %v13160_v60 = vpop.f32.mrb[205].mxu1 }
 0xbfe   :  { %v5549_v48 = vpop.f32.mrb[206].mxu1 }
 0xbff   :  { %v17365_v45 = vadd.f32 %v5549_v48, %v17190_v57  ;;  %v13163_v12 = vpop.f32.mrb[207].mxu1 }
 0xc02   :  { %v5554_v18 = vpop.f32.mrb[208].mxu1 }
 0xc03   :  { %v17368_v28 = vadd.f32 %v5554_v18, %v17193_v20  ;;  %v13166_v53 = vpop.f32.mrb[209].mxu1  ;;  %v17411_v18 = vld [vmem:[%s18590_s1 + $0x28] sm:$0xff]  }
 0xc06   :  { %v5559_v56 = vpop.f32.mrb[210].mxu1 }
 0xc07   :  { %v17371_v5 = vadd.f32 %v5559_v56, %v17196_v22  ;;  %v13169_v62 = vpop.f32.mrb[211].mxu1 }
 0xc08   :  { %v17418_v62 = vld [vmem:[%s18590_s1 + $0x70] sm:$0xff]  }
 0xc0a   :  { %v12310_v6 = vpop.f32.mrb[212].mxu1 }
 0xc0b   :  { %v12311_v59 = vpop.f32.mrb[213].mxu1 }
 0xc0c   :  { %v12312_v36 = vadd.f32 %v12311_v59, %v12310_v6  ;;  %v12313_v21 = vpop.f32.mrb[214].mxu1 }
 0xc0d   :  { %v12314_v58 = vpop.f32.mrb[215].mxu1 }
 0xc0e   :  { %v5663_v61 = vadd.f32 %v16956_v14, %v12312_v36  ;;  %v12315_v57 = vadd.f32 %v12314_v58, %v12313_v21  ;;  %v17427_v36 = vld [vmem:[%s18590_s1 + $0x30] sm:$0xff]  }
 0xc10   :  { %v5700_v38 = vmax.f32 %v5663_v61, 0.0  ;;  %v5666_v16 = vadd.f32 %v16956_v14, %v12315_v57  ;;  %v17433_v57 = vld [vmem:[%s18590_s1 + $0x78] sm:$0xff]  }
 0xc12   :  { %v12316_v8 = vpop.f32.mrb[216].mxu1  ;;  %13179 = vmatmul.mubr.msk.f32.vlgmr.msra.gmra.mrb[186].mxu0 %vm2705_vm1, %v5700_v38  ;;  %v5701_v22 = vmax.f32 %v5666_v16, 0.0 }
 0xc13   :  { %12354 = vmatpush3.bf16.msra.mxu0 %v17204_v29  ;;  %v12317_v20 = vpop.f32.mrb[217].mxu1  ;;  %13181 = vmatprep.mubr.msk.f32.mxu0 %vm14277_vm0, %v14278_v55 }
 0xc14   :  { %v12318_v19 = vadd.f32 %v12317_v20, %v12316_v8  ;;  %v12319_v2 = vpop.f32.mrb[218].mxu1  ;;  %12355 = vmatprep.subr.bf16.mxu0 %v17212_v35  ;;  %v17443_v8 = vld [vmem:[%s18590_s1 + $0x38] sm:$0xff]   ;;  %v14129_v20 = vld [vmem:[%s18589_s0 + $0x364] ss:$8 sps:$4 sm:$0xff]  }
 0xc15   :  { %v12320_v4 = vpop.f32.mrb[219].mxu1 }
 0xc16   :  { %v5671_v7 = vadd.f32 %v16956_v14, %v12318_v19  ;;  %v12321_v42 = vadd.f32 %v12320_v4, %v12319_v2  ;;  %13182 = vmatmul.mubr.msk.f32.gmra.mrb[208].mxu0 %vm2705_vm1, %v5701_v22  ;;  %v14130_v19 = vld [vmem:[%s18589_s0 + $0x374] ss:$8 sps:$4 sm:$0xff]   ;;  %v14132_v2 = vld [vmem:[%s18589_s0 + $0x370] ss:$8 sps:$4 sm:$0xff]   ;;  %v14133_v4 = vld [vmem:[%s18589_s0 + $0x384] ss:$8 sps:$4 sm:$0xff]  }
 0xc17   :  { %12356 = vmatpush3.bf16.msra.mxu0 %v17220_v25  ;;  %13184 = vmatprep.mubr.msk.f32.mxu0 %vm14277_vm0, %v14278_v55 }
 0xc18   :  { %v5702_v46 = vmax.f32 %v5671_v7, 0.0  ;;  %v5674_v51 = vadd.f32 %v16956_v14, %v12321_v42  ;;  %12357 = vmatprep.subr.bf16.mxu0 %v17229_v17  ;;  %v14135_v7 = vld [vmem:[%s18589_s0 + $0x380] ss:$8 sps:$4 sm:$0xff]   ;;  %v14136_v42 = vld [vmem:[%s18589_s0 + $0x394] ss:$8 sps:$4 sm:$0xff]  }
 0xc1a   :  { %v12322_v23 = vpop.f32.mrb[220].mxu1  ;;  %13185 = vmatmul.mubr.msk.f32.gmra.mrb[210].mxu0 %vm2705_vm1, %v5702_v46  ;;  %v5703_v50 = vmax.f32 %v5674_v51, 0.0  ;;  %v5868_v46 = vld [vmem:[%s18589_s0 + $0x3a0] sm:$0xff]  ;;  %v14138_v51 = vld [vmem:[%s18589_s0 + $0x390] ss:$8 sps:$4 sm:$0xff]  }
 0xc1b   :  { %v12323_v26 = vpop.f32.mrb[221].mxu1  ;;  %12358 = vmatpush3.bf16.msra.mxu0 %v17236_v27  ;;  %13187 = vmatprep.mubr.msk.f32.mxu0 %vm14277_vm0, %v14278_v55 }
 0xc1c   :  { %v12324_v24 = vadd.f32 %v12323_v26, %v12322_v23  ;;  %v12325_v33 = vpop.f32.mrb[222].mxu1  ;;  %12359 = vmatprep.subr.bf16.mxu0 %v17244_v37  ;;  %v11405_v23 = vcombine.high %v5868_v46, %v5868_v46  ;;  %v11404_v26 = vcombine.low %v5868_v46, %v5868_v46 }
 0xc1d   :  { %v12326_v32 = vpop.f32.mrb[223].mxu1 }
 0xc1e   :  { %v5679_v49 = vadd.f32 %v16956_v14, %v12324_v24  ;;  %v12327_v3 = vadd.f32 %v12326_v32, %v12325_v33  ;;  %13188 = vmatmul.mubr.msk.f32.gmra.mrb[212].mxu0 %vm2705_vm1, %v5703_v50  ;;  %v11406_v50 = vld [vmem:[%s18592_s3 + $0x180] sm:$0xff]  ;;  %v11407_v24 = vld [vmem:[%s18592_s3 + $0x188] sm:$0xff]  ;;  %v11408_v32 = vld [vmem:[%s18592_s3 + $0x190] sm:$0xff] }
 0xc1f   :  { %12360 = vmatpush3.bf16.msra.mxu0 %v17252_v54  ;;  %13190 = vmatprep.mubr.msk.f32.mxu0 %vm14277_vm0, %v14278_v55  ;;  %v13643_v33 = vpack.c.bf16 %v11407_v24, %v11406_v50 }
 0xc20   :  { %v5704_v10 = vmax.f32 %v5679_v49, 0.0  ;;  %v5682_v44 = vadd.f32 %v16956_v14, %v12327_v3  ;;  %12361 = vmatprep.subr.bf16.mxu0 %v17261_v63  ;;  %v11409_v49 = vld [vmem:[%s18592_s3 + $0x198] sm:$0xff] }
 0xc21   :  { %13644 = vmatpush3.bf16.msra.mxu1 %v13643_v33  ;;  %v13646_v3 = vpack.c.bf16 %v11409_v49, %v11408_v32 }
 0xc22   :  { %v12328_v13 = vpop.f32.mrb[224].mxu1  ;;  %13191 = vmatmul.mubr.msk.f32.gmra.mrb[214].mxu0 %vm2705_vm1, %v5704_v10  ;;  %v5705_v34 = vmax.f32 %v5682_v44, 0.0  ;;  %13645 = vmatprep.subr.bf16.mxu1 %v14276_v30 }
 0xc23   :  { %v12329_v47 = vpop.f32.mrb[225].mxu1  ;;  %12362 = vmatpush3.bf16.msra.mxu0 %v17268_v40  ;;  %13193 = vmatprep.mubr.msk.f32.mxu0 %vm14277_vm0, %v14278_v55 }
 0xc24   :  { %v12330_v15 = vadd.f32 %v12329_v47, %v12328_v13  ;;  %v12331_v52 = vpop.f32.mrb[226].mxu1  ;;  %12363 = vmatprep.subr.bf16.mxu0 %v17276_v39 }
 0xc25   :  { %v12332_v60 = vpop.f32.mrb[227].mxu1  ;;  %13647 = vmatpush3.bf16.msra.mxu1 %v13646_v3 }
 0xc26   :  { %v5687_v48 = vadd.f32 %v16956_v14, %v12330_v15  ;;  %v12333_v12 = vadd.f32 %v12332_v60, %v12331_v52  ;;  %13194 = vmatmul.mubr.msk.f32.gmra.mrb[216].mxu0 %vm2705_vm1, %v5705_v34  ;;  %12412 = vmatprep.subr.bf16.mxu1 %v17343_v31 }
 0xc27   :  { %13196 = vmatprep.mubr.msk.f32.mxu0 %vm14277_vm0, %v14278_v55  ;;  %12364 = vmatpush3.bf16.msra.mxu0 %v17411_v18 }
 0xc28   :  { %v5706_v53 = vmax.f32 %v5687_v48, 0.0  ;;  %v5690_v56 = vadd.f32 %v16956_v14, %v12333_v12  ;;  %12365 = vmatprep.subr.bf16.mxu0 %v17418_v62 }
 0xc2a   :  { %v12334_v6 = vpop.f32.mrb[228].mxu1  ;;  %13197 = vmatmul.mubr.msk.f32.gmra.mrb[218].mxu0 %vm2705_vm1, %v5706_v53  ;;  %v5707_v21 = vmax.f32 %v5690_v56, 0.0 }
 0xc2b   :  { %v12335_v59 = vpop.f32.mrb[229].mxu1  ;;  %13199 = vmatprep.mubr.msk.f32.mxu0 %vm14277_vm0, %v14278_v55  ;;  %12366 = vmatpush3.bf16.msra.mxu0 %v17427_v36 }
 0xc2c   :  { %v12336_v58 = vadd.f32 %v12335_v59, %v12334_v6  ;;  %v12337_v61 = vpop.f32.mrb[230].mxu1  ;;  %12367 = vmatprep.subr.bf16.mxu0 %v17433_v57 }
 0xc2d   :  { %v12338_v38 = vpop.f32.mrb[231].mxu1 }
 0xc2e   :  { %v5695_v16 = vadd.f32 %v16956_v14, %v12336_v58  ;;  %13200 = vmatmul.mubr.msk.f32.gmra.mrb[220].mxu0 %vm2705_vm1, %v5707_v21  ;;  %v14127_v14 = vld [vmem:[%s18589_s0 + $0x360] ss:$8 sps:$4 sm:$0xff]  }
 0xc2f   :  { %13202 = vmatprep.mubr.msk.f32.mxu0 %vm14277_vm0, %v14278_v55  ;;  %12368 = vmatpush3.bf16.msra.mxu0 %v17443_v8 }
 0xc30   :  { %v5708_v22 = vmax.f32 %v5695_v16, 0.0  ;;  %13648 = vmatprep.subr.bf16.mxu0 %v14276_v30 }
 0xc32   :  { %13203 = vmatmul.mubr.msk.f32.gmra.mrb[222].mxu0 %vm2705_vm1, %v5708_v22 }
 0xc33   :  { %5948 = vmatprep.mubr.bf16.mxu0 %v14129_v20 }
 0xc36   :  { %5949 = vmatmul.mubr.bf16.vlgmr.msra.gmra.mrb[224].mxu0 %v14127_v14 }
 0xc37   :  { %5956 = vmatprep.mubr.bf16.mxu0 %v14130_v19 }
 0xc3e   :  { %5957 = vmatmul.mubr.bf16.gmra.mrb[228].mxu0 %v14132_v2 }
 0xc3f   :  { %5964 = vmatprep.mubr.bf16.mxu0 %v14133_v4 }
 0xc46   :  { %5965 = vmatmul.mubr.bf16.gmra.mrb[232].mxu0 %v14135_v7 }
 0xc47   :  { %5972 = vmatprep.mubr.bf16.mxu0 %v14136_v42 }
 0xc4e   :  { %5973 = vmatmul.mubr.bf16.gmra.mrb[236].mxu0 %v14138_v51 }
 0xc4f   :  { %5980 = vmatprep.mubr.bf16.mxu0 %v11405_v23 }
 0xc56   :  { %5981 = vmatmul.mubr.bf16.gmra.mrb[240].mxu0 %v11404_v26 }
 0xc57   :  { %13248 = vmatprep.mubr.msk.f32.mxu0 %vm14277_vm0, %v14278_v55 }
 0xce5   :  { %v5807_v10 = vpop.f32.mrb[186].mxu0 }
 0xce6   :  { %v17492_v44 = vadd.f32 %v5807_v10, %v17347_v41  ;;  %v13180_v13 = vpop.f32.mrb[187].mxu0 }
 0xce9   :  { %v5812_v47 = vpop.f32.mrb[208].mxu0 }
 0xcea   :  { %v17495_v34 = vadd.f32 %v5812_v47, %v17350_v9  ;;  %v13183_v15 = vpop.f32.mrb[209].mxu0 }
 0xced   :  { %v5817_v52 = vpop.f32.mrb[210].mxu0 }
 0xcee   :  { %v17498_v60 = vadd.f32 %v5817_v52, %v17353_v0  ;;  %v13186_v48 = vpop.f32.mrb[211].mxu0 }
 0xcf1   :  { %v5822_v12 = vpop.f32.mrb[212].mxu0 }
 0xcf2   :  { %v17501_v53 = vadd.f32 %v5822_v12, %v17356_v11  ;;  %v13189_v56 = vpop.f32.mrb[213].mxu0 }
 0xcf5   :  { %v5827_v6 = vpop.f32.mrb[214].mxu0 }
 0xcf6   :  { %v17504_v41 = vadd.f32 %v5827_v6, %v17359_v43  ;;  %v13192_v59 = vpop.f32.mrb[215].mxu0 }
 0xcf9   :  { %v5832_v21 = vpop.f32.mrb[216].mxu0 }
 0xcfa   :  { %v17507_v9 = vadd.f32 %v5832_v21, %v17362_v1  ;;  %v13195_v58 = vpop.f32.mrb[217].mxu0 }
 0xcfd   :  { %v5837_v61 = vpop.f32.mrb[218].mxu0 }
 0xcfe   :  { %v17510_v0 = vadd.f32 %v5837_v61, %v17365_v45  ;;  %v13198_v38 = vpop.f32.mrb[219].mxu0  ;;  %v17521_v45 = vld [vmem:[%s18591_s2] ss:$0 sm:$0xff] }
 0xd01   :  { %v5842_v16 = vpop.f32.mrb[220].mxu0 }
 0xd02   :  { %v17513_v11 = vadd.f32 %v5842_v16, %v17368_v28  ;;  %v13201_v20 = vpop.f32.mrb[221].mxu0 }
 0xd05   :  { %v5847_v22 = vpop.f32.mrb[222].mxu0 }
 0xd06   :  { %v17516_v43 = vadd.f32 %v5847_v22, %v17371_v5  ;;  %v13204_v14 = vpop.f32.mrb[223].mxu0 }
 0xd09   :  { %v12369_v19 = vpop.f32.mrb[224].mxu0 }
 0xd0a   :  { %v12370_v2 = vpop.f32.mrb[225].mxu0 }
 0xd0b   :  { %v12371_v1 = vadd.f32 %v12370_v2, %v12369_v19  ;;  %v12372_v4 = vpop.f32.mrb[226].mxu0 }
 0xd0c   :  { %v12373_v7 = vpop.f32.mrb[227].mxu0 }
 0xd0d   :  { %v5951_v42 = vadd.f32 %v17521_v45, %v12371_v1  ;;  %v12374_v28 = vadd.f32 %v12373_v7, %v12372_v4 }
 0xd0f   :  { %v5988_v46 = vmax.f32 %v5951_v42, 0.0  ;;  %v5954_v51 = vadd.f32 %v17521_v45, %v12374_v28 }
 0xd11   :  { %v12375_v23 = vpop.f32.mrb[228].mxu0  ;;  %13214 = vmatmul.mubr.msk.f32.vlgmr.msra.gmra.mrb[232].mxu1 %vm2705_vm1, %v5988_v46  ;;  %v5989_v26 = vmax.f32 %v5954_v51, 0.0 }
 0xd12   :  { %12413 = vmatpush3.bf16.msra.mxu1 %v17204_v29  ;;  %v12376_v5 = vpop.f32.mrb[229].mxu0  ;;  %13216 = vmatprep.mubr.msk.f32.mxu1 %vm14277_vm0, %v14278_v55 }
 0xd13   :  { %v12377_v50 = vadd.f32 %v12376_v5, %v12375_v23  ;;  %v12378_v24 = vpop.f32.mrb[230].mxu0  ;;  %12414 = vmatprep.subr.bf16.mxu1 %v17212_v35  ;;  %v14143_v5 = vld [vmem:[%s18589_s0 + $0x3ac] ss:$8 sps:$4 sm:$0xff]  }
 0xd14   :  { %v12379_v33 = vpop.f32.mrb[231].mxu0 }
 0xd15   :  { %v5959_v32 = vadd.f32 %v17521_v45, %v12377_v50  ;;  %v12380_v49 = vadd.f32 %v12379_v33, %v12378_v24  ;;  %13217 = vmatmul.mubr.msk.f32.gmra.mrb[234].mxu1 %vm2705_vm1, %v5989_v26  ;;  %v14141_v50 = vld [vmem:[%s18589_s0 + $0x3a8] ss:$8 sps:$4 sm:$0xff]   ;;  %v14146_v24 = vld [vmem:[%s18589_s0 + $0x3bc] ss:$8 sps:$4 sm:$0xff]   ;;  %v14144_v33 = vld [vmem:[%s18589_s0 + $0x3b8] ss:$8 sps:$4 sm:$0xff]  }
 0xd16   :  { %12415 = vmatpush3.bf16.msra.mxu1 %v17220_v25  ;;  %13219 = vmatprep.mubr.msk.f32.mxu1 %vm14277_vm0, %v14278_v55 }
 0xd17   :  { %v5990_v3 = vmax.f32 %v5959_v32, 0.0  ;;  %v5962_v10 = vadd.f32 %v17521_v45, %v12380_v49  ;;  %12416 = vmatprep.subr.bf16.mxu1 %v17229_v17  ;;  %v14149_v32 = vld [vmem:[%s18589_s0 + $0x3cc] ss:$8 sps:$4 sm:$0xff]   ;;  %v14147_v49 = vld [vmem:[%s18589_s0 + $0x3c8] ss:$8 sps:$4 sm:$0xff]  }
 0xd19   :  { %v12381_v13 = vpop.f32.mrb[232].mxu0  ;;  %13220 = vmatmul.mubr.msk.f32.gmra.mrb[236].mxu1 %vm2705_vm1, %v5990_v3  ;;  %v5991_v15 = vmax.f32 %v5962_v10, 0.0  ;;  %v14152_v3 = vld [vmem:[%s18589_s0 + $0x3dc] ss:$8 sps:$4 sm:$0xff]   ;;  %v6156_v10 = vld [vmem:[%s18589_s0 + $0x3e8] sm:$0xff] }
 0xd1a   :  { %v12382_v47 = vpop.f32.mrb[233].mxu0  ;;  %12417 = vmatpush3.bf16.msra.mxu1 %v17236_v27  ;;  %13222 = vmatprep.mubr.msk.f32.mxu1 %vm14277_vm0, %v14278_v55 }
 0xd1b   :  { %v12383_v52 = vadd.f32 %v12382_v47, %v12381_v13  ;;  %v12384_v48 = vpop.f32.mrb[234].mxu0  ;;  %12418 = vmatprep.subr.bf16.mxu1 %v17244_v37  ;;  %v14150_v13 = vld [vmem:[%s18589_s0 + $0x3d8] ss:$8 sps:$4 sm:$0xff]   ;;  %v11428_v47 = vcombine.high %v6156_v10, %v6156_v10 }
 0xd1c   :  { %v12385_v12 = vpop.f32.mrb[235].mxu0 }
 0xd1d   :  { %v5967_v56 = vadd.f32 %v17521_v45, %v12383_v52  ;;  %v12386_v6 = vadd.f32 %v12385_v12, %v12384_v48  ;;  %13223 = vmatmul.mubr.msk.f32.gmra.mrb[238].mxu1 %vm2705_vm1, %v5991_v15  ;;  %v11427_v15 = vcombine.low %v6156_v10, %v6156_v10  ;;  %v11429_v52 = vld [vmem:[%s18592_s3 + $0x1a0] sm:$0xff]  ;;  %v11430_v48 = vld [vmem:[%s18592_s3 + $0x1a8] sm:$0xff] }
 0xd1e   :  { %12419 = vmatpush3.bf16.msra.mxu1 %v17252_v54  ;;  %13225 = vmatprep.mubr.msk.f32.mxu1 %vm14277_vm0, %v14278_v55  ;;  %v13649_v12 = vpack.c.bf16 %v11430_v48, %v11429_v52 }
 0xd1f   :  { %v5992_v59 = vmax.f32 %v5967_v56, 0.0  ;;  %v5970_v21 = vadd.f32 %v17521_v45, %v12386_v6  ;;  %12420 = vmatprep.subr.bf16.mxu1 %v17261_v63  ;;  %v11431_v56 = vld [vmem:[%s18592_s3 + $0x1b0] sm:$0xff]  ;;  %v11432_v6 = vld [vmem:[%s18592_s3 + $0x1b8] sm:$0xff] }
 0xd20   :  { %13650 = vmatpush3.bf16.msra.mxu0 %v13649_v12 }
 0xd21   :  { %v12387_v58 = vpop.f32.mrb[236].mxu0  ;;  %13226 = vmatmul.mubr.msk.f32.gmra.mrb[240].mxu1 %vm2705_vm1, %v5992_v59  ;;  %v5993_v38 = vmax.f32 %v5970_v21, 0.0  ;;  %13651 = vmatprep.subr.bf16.mxu0 %v14276_v30  ;;  %v13652_v59 = vpack.c.bf16 %v11432_v6, %v11431_v56 }
 0xd22   :  { %v12388_v61 = vpop.f32.mrb[237].mxu0  ;;  %12421 = vmatpush3.bf16.msra.mxu1 %v17268_v40  ;;  %13228 = vmatprep.mubr.msk.f32.mxu1 %vm14277_vm0, %v14278_v55 }
 0xd23   :  { %v12389_v16 = vadd.f32 %v12388_v61, %v12387_v58  ;;  %v12390_v20 = vpop.f32.mrb[238].mxu0  ;;  %12422 = vmatprep.subr.bf16.mxu1 %v17276_v39 }
 0xd24   :  { %v12391_v22 = vpop.f32.mrb[239].mxu0  ;;  %13653 = vmatpush3.bf16.msra.mxu0 %v13652_v59 }
 0xd25   :  { %v5975_v14 = vadd.f32 %v17521_v45, %v12389_v16  ;;  %v12392_v19 = vadd.f32 %v12391_v22, %v12390_v20  ;;  %13229 = vmatmul.mubr.msk.f32.gmra.mrb[242].mxu1 %vm2705_vm1, %v5993_v38  ;;  %12471 = vmatprep.subr.bf16.mxu0 %v17343_v31 }
 0xd26   :  { %13231 = vmatprep.mubr.msk.f32.mxu1 %vm14277_vm0, %v14278_v55  ;;  %12423 = vmatpush3.bf16.msra.mxu1 %v17411_v18 }
 0xd27   :  { %v5994_v2 = vmax.f32 %v5975_v14, 0.0  ;;  %v5978_v1 = vadd.f32 %v17521_v45, %v12392_v19  ;;  %12424 = vmatprep.subr.bf16.mxu1 %v17418_v62 }
 0xd29   :  { %v12393_v4 = vpop.f32.mrb[240].mxu0  ;;  %13232 = vmatmul.mubr.msk.f32.gmra.mrb[244].mxu1 %vm2705_vm1, %v5994_v2  ;;  %v5995_v42 = vmax.f32 %v5978_v1, 0.0 }
 0xd2a   :  { %v12394_v7 = vpop.f32.mrb[241].mxu0  ;;  %13234 = vmatprep.mubr.msk.f32.mxu1 %vm14277_vm0, %v14278_v55  ;;  %12425 = vmatpush3.bf16.msra.mxu1 %v17427_v36 }
 0xd2b   :  { %v12395_v28 = vadd.f32 %v12394_v7, %v12393_v4  ;;  %v12396_v46 = vpop.f32.mrb[242].mxu0  ;;  %12426 = vmatprep.subr.bf16.mxu1 %v17433_v57 }
 0xd2c   :  { %v12397_v51 = vpop.f32.mrb[243].mxu0 }
 0xd2d   :  { %v5983_v23 = vadd.f32 %v17521_v45, %v12395_v28  ;;  %13235 = vmatmul.mubr.msk.f32.gmra.mrb[246].mxu1 %vm2705_vm1, %v5995_v42 }
 0xd2e   :  { %13237 = vmatprep.mubr.msk.f32.mxu1 %vm14277_vm0, %v14278_v55  ;;  %12427 = vmatpush3.bf16.msra.mxu1 %v17443_v8 }
 0xd2f   :  { %v5996_v26 = vmax.f32 %v5983_v23, 0.0  ;;  %13654 = vmatprep.subr.bf16.mxu1 %v14276_v30 }
 0xd31   :  { %13238 = vmatmul.mubr.msk.f32.gmra.mrb[248].mxu1 %vm2705_vm1, %v5996_v26 }
 0xd32   :  { %6236 = vmatprep.mubr.bf16.mxu1 %v14143_v5 }
 0xd35   :  { %6237 = vmatmul.mubr.bf16.vlgmr.msra.gmra.mrb[252].mxu1 %v14141_v50 }
 0xd36   :  { %6244 = vmatprep.mubr.bf16.mxu1 %v14146_v24 }
 0xd3d   :  { %6245 = vmatmul.mubr.bf16.gmra.mrb[0].mxu1 %v14144_v33 }
 0xd3e   :  { %6252 = vmatprep.mubr.bf16.mxu1 %v14149_v32 }
 0xd45   :  { %6253 = vmatmul.mubr.bf16.gmra.mrb[4].mxu1 %v14147_v49 }
 0xd46   :  { %6260 = vmatprep.mubr.bf16.mxu1 %v14152_v3 }
 0xd4d   :  { %6261 = vmatmul.mubr.bf16.gmra.mrb[8].mxu1 %v14150_v13 }
 0xd4e   :  { %6268 = vmatprep.mubr.bf16.mxu1 %v11428_v47 }
 0xd55   :  { %6269 = vmatmul.mubr.bf16.gmra.mrb[12].mxu1 %v11427_v15 }
 0xd56   :  { %13283 = vmatprep.mubr.msk.f32.mxu1 %vm14277_vm0, %v14278_v55 }
 0xde4   :  { %v6095_v21 = vpop.f32.mrb[232].mxu1 }
 0xde5   :  { %v17617_v58 = vadd.f32 %v6095_v21, %v17492_v44  ;;  %v13215_v61 = vpop.f32.mrb[233].mxu1 }
 0xde8   :  { %v6100_v38 = vpop.f32.mrb[234].mxu1 }
 0xde9   :  { %v17620_v16 = vadd.f32 %v6100_v38, %v17495_v34  ;;  %v13218_v20 = vpop.f32.mrb[235].mxu1 }
 0xdec   :  { %v6105_v22 = vpop.f32.mrb[236].mxu1 }
 0xded   :  { %v17623_v14 = vadd.f32 %v6105_v22, %v17498_v60  ;;  %v13221_v19 = vpop.f32.mrb[237].mxu1 }
 0xdf0   :  { %v6110_v2 = vpop.f32.mrb[238].mxu1 }
 0xdf1   :  { %v17626_v1 = vadd.f32 %v6110_v2, %v17501_v53  ;;  %v13224_v4 = vpop.f32.mrb[239].mxu1 }
 0xdf4   :  { %v6115_v7 = vpop.f32.mrb[240].mxu1 }
 0xdf5   :  { %v17629_v44 = vadd.f32 %v6115_v7, %v17504_v41  ;;  %v13227_v42 = vpop.f32.mrb[241].mxu1 }
 0xdf8   :  { %v6120_v28 = vpop.f32.mrb[242].mxu1 }
 0xdf9   :  { %v17632_v34 = vadd.f32 %v6120_v28, %v17507_v9  ;;  %v13230_v46 = vpop.f32.mrb[243].mxu1 }
 0xdfc   :  { %v6125_v51 = vpop.f32.mrb[244].mxu1 }
 0xdfd   :  { %v17635_v60 = vadd.f32 %v6125_v51, %v17510_v0  ;;  %v13233_v23 = vpop.f32.mrb[245].mxu1 }
 0xe00   :  { %v6130_v5 = vpop.f32.mrb[246].mxu1 }
 0xe01   :  { %v17638_v53 = vadd.f32 %v6130_v5, %v17513_v11  ;;  %v13236_v26 = vpop.f32.mrb[247].mxu1 }
 0xe04   :  { %v6135_v50 = vpop.f32.mrb[248].mxu1 }
 0xe05   :  { %v17641_v41 = vadd.f32 %v6135_v50, %v17516_v43  ;;  %v13239_v24 = vpop.f32.mrb[249].mxu1 }
 0xe08   :  { %v12428_v33 = vpop.f32.mrb[252].mxu1 }
 0xe09   :  { %v12429_v32 = vpop.f32.mrb[253].mxu1 }
 0xe0a   :  { %v12430_v9 = vadd.f32 %v12429_v32, %v12428_v33  ;;  %v12431_v49 = vpop.f32.mrb[254].mxu1  ;;  %v14157_v33 = vld [vmem:[%s18589_s0 + $0x3f4] ss:$8 sps:$4 sm:$0xff]  }
 0xe0b   :  { %v12432_v3 = vpop.f32.mrb[255].mxu1 }
 0xe0c   :  { %v6239_v10 = vadd.f32 %v17521_v45, %v12430_v9  ;;  %v12433_v0 = vadd.f32 %v12432_v3, %v12431_v49  ;;  %v14155_v9 = vld [vmem:[%s18589_s0 + $0x3f0] ss:$8 sps:$4 sm:$0xff]   ;;  %v14160_v49 = vld [vmem:[%s18589_s0 + $0x404] ss:$8 sps:$4 sm:$0xff]   ;;  %v14158_v3 = vld [vmem:[%s18589_s0 + $0x400] ss:$8 sps:$4 sm:$0xff]  }
 0xe0e   :  { %v6276_v13 = vmax.f32 %v6239_v10, 0.0  ;;  %v6242_v47 = vadd.f32 %v17521_v45, %v12433_v0  ;;  %v14163_v10 = vld [vmem:[%s18589_s0 + $0x414] ss:$8 sps:$4 sm:$0xff]   ;;  %v14161_v0 = vld [vmem:[%s18589_s0 + $0x410] ss:$8 sps:$4 sm:$0xff]  }
 0xe10   :  { %v12434_v15 = vpop.f32.mrb[0].mxu1  ;;  %13249 = vmatmul.mubr.msk.f32.vlgmr.msra.gmra.mrb[244].mxu0 %vm2705_vm1, %v6276_v13  ;;  %v6277_v43 = vmax.f32 %v6242_v47, 0.0  ;;  %v14166_v13 = vld [vmem:[%s18589_s0 + $0x424] ss:$8 sps:$4 sm:$0xff]   ;;  %v6444_v47 = vld [vmem:[%s18589_s0 + $0x430] sm:$0xff] }
 0xe11   :  { %12472 = vmatpush3.bf16.msra.mxu0 %v17204_v29  ;;  %v12435_v11 = vpop.f32.mrb[1].mxu1  ;;  %13251 = vmatprep.mubr.msk.f32.mxu0 %vm14277_vm0, %v14278_v55 }
 0xe12   :  { %v12436_v52 = vadd.f32 %v12435_v11, %v12434_v15  ;;  %v12437_v48 = vpop.f32.mrb[2].mxu1  ;;  %12473 = vmatprep.subr.bf16.mxu0 %v17212_v35  ;;  %v14164_v15 = vld [vmem:[%s18589_s0 + $0x420] ss:$8 sps:$4 sm:$0xff]   ;;  %v11451_v11 = vcombine.high %v6444_v47, %v6444_v47 }
 0xe13   :  { %v12438_v12 = vpop.f32.mrb[3].mxu1 }
 0xe14   :  { %v6247_v56 = vadd.f32 %v17521_v45, %v12436_v52  ;;  %v12439_v6 = vadd.f32 %v12438_v12, %v12437_v48  ;;  %13252 = vmatmul.mubr.msk.f32.gmra.mrb[246].mxu0 %vm2705_vm1, %v6277_v43  ;;  %v11450_v43 = vcombine.low %v6444_v47, %v6444_v47  ;;  %v11452_v52 = vld [vmem:[%s18592_s3 + $0x1c0] sm:$0xff]  ;;  %v11453_v48 = vld [vmem:[%s18592_s3 + $0x1c8] sm:$0xff] }
 0xe15   :  { %12474 = vmatpush3.bf16.msra.mxu0 %v17220_v25  ;;  %13254 = vmatprep.mubr.msk.f32.mxu0 %vm14277_vm0, %v14278_v55  ;;  %v13655_v12 = vpack.c.bf16 %v11453_v48, %v11452_v52  ;;  %v14236_v47 = vld [vmem:[%s18590_s1 + $0x8] sm:$0xff]  }
 0xe16   :  { %v6278_v29 = vmax.f32 %v6247_v56, 0.0  ;;  %v6250_v59 = vadd.f32 %v17521_v45, %v12439_v6  ;;  %12475 = vmatprep.subr.bf16.mxu0 %v17229_v17  ;;  %v11454_v56 = vld [vmem:[%s18592_s3 + $0x1d0] sm:$0xff]  ;;  %v11455_v6 = vld [vmem:[%s18592_s3 + $0x1d8] sm:$0xff] }
 0xe17   :  { %13656 = vmatpush3.bf16.msra.mxu1 %v13655_v12  ;;  %v14238_v12 = vld [vmem:[%s18590_s1 + $0x10] sm:$0xff]  }
 0xe18   :  { %v12440_v21 = vpop.f32.mrb[4].mxu1  ;;  %13255 = vmatmul.mubr.msk.f32.gmra.mrb[248].mxu0 %vm2705_vm1, %v6278_v29  ;;  %v6279_v61 = vmax.f32 %v6250_v59, 0.0  ;;  %13657 = vmatprep.subr.bf16.mxu1 %v14276_v30  ;;  %v13658_v29 = vpack.c.bf16 %v11455_v6, %v11454_v56 }
 0xe19   :  { %v12441_v35 = vpop.f32.mrb[5].mxu1  ;;  %12476 = vmatpush3.bf16.msra.mxu0 %v17236_v27  ;;  %13257 = vmatprep.mubr.msk.f32.mxu0 %vm14277_vm0, %v14278_v55 }
 0xe1a   :  { %v12442_v38 = vadd.f32 %v12441_v35, %v12440_v21  ;;  %v12443_v25 = vpop.f32.mrb[6].mxu1  ;;  %12477 = vmatprep.subr.bf16.mxu0 %v17244_v37 }
 0xe1b   :  { %v12444_v20 = vpop.f32.mrb[7].mxu1  ;;  %13659 = vmatpush3.bf16.msra.mxu1 %v13658_v29 }
 0xe1c   :  { %v6255_v22 = vadd.f32 %v17521_v45, %v12442_v38  ;;  %v12445_v19 = vadd.f32 %v12444_v20, %v12443_v25  ;;  %13258 = vmatmul.mubr.msk.f32.gmra.mrb[250].mxu0 %vm2705_vm1, %v6279_v61  ;;  %12530 = vmatprep.subr.bf16.mxu1 %v17343_v31 }
 0xe1d   :  { %12478 = vmatpush3.bf16.msra.mxu0 %v17252_v54  ;;  %13260 = vmatprep.mubr.msk.f32.mxu0 %vm14277_vm0, %v14278_v55 }
 0xe1e   :  { %v6280_v17 = vmax.f32 %v6255_v22, 0.0  ;;  %v6258_v27 = vadd.f32 %v17521_v45, %v12445_v19  ;;  %12479 = vmatprep.subr.bf16.mxu0 %v17261_v63 }
 0xe20   :  { %v12446_v2 = vpop.f32.mrb[8].mxu1  ;;  %13261 = vmatmul.mubr.msk.f32.gmra.mrb[252].mxu0 %vm2705_vm1, %v6280_v17  ;;  %v6281_v4 = vmax.f32 %v6258_v27, 0.0 }
 0xe21   :  { %v12447_v37 = vpop.f32.mrb[9].mxu1  ;;  %12480 = vmatpush3.bf16.msra.mxu0 %v17268_v40  ;;  %13263 = vmatprep.mubr.msk.f32.mxu0 %vm14277_vm0, %v14278_v55 }
 0xe22   :  { %v12448_v7 = vadd.f32 %v12447_v37, %v12446_v2  ;;  %v12449_v54 = vpop.f32.mrb[10].mxu1  ;;  %12481 = vmatprep.subr.bf16.mxu0 %v17276_v39 }
 0xe23   :  { %v12450_v42 = vpop.f32.mrb[11].mxu1 }
 0xe24   :  { %v6263_v28 = vadd.f32 %v17521_v45, %v12448_v7  ;;  %v12451_v46 = vadd.f32 %v12450_v42, %v12449_v54  ;;  %13264 = vmatmul.mubr.msk.f32.gmra.mrb[254].mxu0 %vm2705_vm1, %v6281_v4 }
 0xe25   :  { %13266 = vmatprep.mubr.msk.f32.mxu0 %vm14277_vm0, %v14278_v55  ;;  %12482 = vmatpush3.bf16.msra.mxu0 %v17411_v18 }
 0xe26   :  { %v6282_v63 = vmax.f32 %v6263_v28, 0.0  ;;  %v6266_v40 = vadd.f32 %v17521_v45, %v12451_v46  ;;  %12483 = vmatprep.subr.bf16.mxu0 %v17418_v62 }
 0xe28   :  { %v12452_v51 = vpop.f32.mrb[12].mxu1  ;;  %13267 = vmatmul.mubr.msk.f32.gmra.mrb[0].mxu0 %vm2705_vm1, %v6282_v63  ;;  %v6283_v23 = vmax.f32 %v6266_v40, 0.0 }
 0xe29   :  { %v12453_v39 = vpop.f32.mrb[13].mxu1  ;;  %13269 = vmatprep.mubr.msk.f32.mxu0 %vm14277_vm0, %v14278_v55  ;;  %12484 = vmatpush3.bf16.msra.mxu0 %v17427_v36 }
 0xe2a   :  { %v12454_v5 = vadd.f32 %v12453_v39, %v12452_v51  ;;  %v12455_v26 = vpop.f32.mrb[14].mxu1  ;;  %12485 = vmatprep.subr.bf16.mxu0 %v17433_v57 }
 0xe2b   :  { %v12456_v50 = vpop.f32.mrb[15].mxu1 }
 0xe2c   :  { %v6271_v24 = vadd.f32 %v17521_v45, %v12454_v5  ;;  %13270 = vmatmul.mubr.msk.f32.gmra.mrb[2].mxu0 %vm2705_vm1, %v6283_v23 }
 0xe2d   :  { %13272 = vmatprep.mubr.msk.f32.mxu0 %vm14277_vm0, %v14278_v55  ;;  %12486 = vmatpush3.bf16.msra.mxu0 %v17443_v8 }
 0xe2e   :  { %v6284_v32 = vmax.f32 %v6271_v24, 0.0  ;;  %13660 = vmatprep.subr.bf16.mxu0 %v14276_v30 }
 0xe30   :  { %13273 = vmatmul.mubr.msk.f32.gmra.mrb[4].mxu0 %vm2705_vm1, %v6284_v32 }
 0xe31   :  { %6524 = vmatprep.mubr.bf16.mxu0 %v14157_v33 }
 0xe34   :  { %6525 = vmatmul.mubr.bf16.vlgmr.msra.gmra.mrb[8].mxu0 %v14155_v9 }
 0xe35   :  { %6532 = vmatprep.mubr.bf16.mxu0 %v14160_v49 }
 0xe3c   :  { %6533 = vmatmul.mubr.bf16.gmra.mrb[12].mxu0 %v14158_v3  ;;  %v14235_v3 = vld [vmem:[%s18590_s1 + $0x48] sm:$0xff]  }
 0xe3d   :  { %6540 = vmatprep.mubr.bf16.mxu0 %v14163_v10 }
 0xe44   :  { %6541 = vmatmul.mubr.bf16.gmra.mrb[16].mxu0 %v14161_v0 }
 0xe45   :  { %6548 = vmatprep.mubr.bf16.mxu0 %v14166_v13 }
 0xe4c   :  { %6549 = vmatmul.mubr.bf16.gmra.mrb[20].mxu0 %v14164_v15 }
 0xe4d   :  { %6556 = vmatprep.mubr.bf16.mxu0 %v11451_v11 }
 0xe54   :  { %6557 = vmatmul.mubr.bf16.gmra.mrb[24].mxu0 %v11450_v43  ;;  %v14237_v43 = vld [vmem:[%s18590_s1 + $0x50] sm:$0xff]  }
 0xe55   :  { %13318 = vmatprep.mubr.msk.f32.mxu0 %vm14277_vm0, %v14278_v55 }
 0xee3   :  { %v6383_v59 = vpop.f32.mrb[244].mxu0 }
 0xee4   :  { %v17737_v21 = vadd.f32 %v6383_v59, %v17617_v58  ;;  %v13250_v35 = vpop.f32.mrb[245].mxu0  ;;  %v14239_v59 = vld [vmem:[%s18590_s1 + $0x58] sm:$0xff]  }
 0xee7   :  { %v6388_v61 = vpop.f32.mrb[246].mxu0 }
 0xee8   :  { %v17740_v38 = vadd.f32 %v6388_v61, %v17620_v16  ;;  %v13253_v25 = vpop.f32.mrb[247].mxu0 }
 0xeeb   :  { %v6393_v20 = vpop.f32.mrb[248].mxu0 }
 0xeec   :  { %v17743_v22 = vadd.f32 %v6393_v20, %v17623_v14  ;;  %v13256_v19 = vpop.f32.mrb[249].mxu0  ;;  %v14240_v20 = vld [vmem:[%s18590_s1 + $0x18] sm:$0xff]  }
 0xeef   :  { %v6398_v17 = vpop.f32.mrb[250].mxu0 }
 0xef0   :  { %v17746_v27 = vadd.f32 %v6398_v17, %v17626_v1  ;;  %v13259_v31 = vpop.f32.mrb[251].mxu0 }
 0xef1   :  { %v14241_v31 = vld [vmem:[%s18590_s1 + $0x60] sm:$0xff]  }
 0xef3   :  { %v6403_v2 = vpop.f32.mrb[252].mxu0 }
 0xef4   :  { %v17749_v58 = vadd.f32 %v6403_v2, %v17629_v44  ;;  %v13262_v37 = vpop.f32.mrb[253].mxu0 }
 0xef7   :  { %v6408_v4 = vpop.f32.mrb[254].mxu0 }
 0xef8   :  { %v17752_v16 = vadd.f32 %v6408_v4, %v17632_v34  ;;  %v13265_v7 = vpop.f32.mrb[255].mxu0  ;;  %v14242_v4 = vld [vmem:[%s18590_s1 + $0x20] sm:$0xff]  }
 0xefb   :  { %v6413_v54 = vpop.f32.mrb[0].mxu0 }
 0xefc   :  { %v17755_v14 = vadd.f32 %v6413_v54, %v17635_v60  ;;  %v13268_v42 = vpop.f32.mrb[1].mxu0 }
 0xeff   :  { %v6418_v28 = vpop.f32.mrb[2].mxu0 }
 0xf00   :  { %v17758_v1 = vadd.f32 %v6418_v28, %v17638_v53  ;;  %v13271_v46 = vpop.f32.mrb[3].mxu0  ;;  %v14234_v53 = vld [vmem:[%s18590_s1] sm:$0xff]   ;;  %v14243_v28 = vld [vmem:[%s18590_s1 + $0x68] sm:$0xff]  }
 0xf03   :  { %v6423_v63 = vpop.f32.mrb[4].mxu0 }
 0xf04   :  { %v17761_v44 = vadd.f32 %v6423_v63, %v17641_v41  ;;  %v13274_v40 = vpop.f32.mrb[5].mxu0 }
 0xf07   :  { %v12487_v51 = vpop.f32.mrb[8].mxu0 }
 0xf08   :  { %v12488_v39 = vpop.f32.mrb[9].mxu0 }
 0xf09   :  { %v12489_v34 = vadd.f32 %v12488_v39, %v12487_v51  ;;  %v12490_v23 = vpop.f32.mrb[10].mxu0 }
 0xf0a   :  { %v12491_v5 = vpop.f32.mrb[11].mxu0 }
 0xf0b   :  { %v6527_v26 = vadd.f32 %v17521_v45, %v12489_v34  ;;  %v12492_v60 = vadd.f32 %v12491_v5, %v12490_v23 }
 0xf0d   :  { %v6564_v50 = vmax.f32 %v6527_v26, 0.0  ;;  %v6530_v24 = vadd.f32 %v17521_v45, %v12492_v60 }
 0xf0f   :  { %v12493_v33 = vpop.f32.mrb[12].mxu0  ;;  %13284 = vmatmul.mubr.msk.f32.vlgmr.msra.gmra.mrb[250].mxu1 %vm2705_vm1, %v6564_v50  ;;  %v6565_v32 = vmax.f32 %v6530_v24, 0.0  ;;  %v14174_v24 = vld [vmem:[%s18589_s0 + $0x44c] ss:$8 sps:$4 sm:$0xff]  }
 0xf10   :  { %12531 = vmatpush3.bf16.msra.mxu1 %v14234_v53  ;;  %v12494_v41 = vpop.f32.mrb[13].mxu0  ;;  %13286 = vmatprep.mubr.msk.f32.mxu1 %vm14277_vm0, %v14278_v55  ;;  %v14175_v53 = vld [vmem:[%s18589_s0 + $0x458] ss:$8 sps:$4 sm:$0xff]  }
 0xf11   :  { %v12495_v9 = vadd.f32 %v12494_v41, %v12493_v33  ;;  %v12496_v49 = vpop.f32.mrb[14].mxu0  ;;  %12532 = vmatprep.subr.bf16.mxu1 %v14235_v3  ;;  %v14177_v33 = vld [vmem:[%s18589_s0 + $0x45c] ss:$8 sps:$4 sm:$0xff]   ;;  %v14180_v41 = vld [vmem:[%s18589_s0 + $0x46c] ss:$8 sps:$4 sm:$0xff]  }
 0xf12   :  { %v12497_v10 = vpop.f32.mrb[15].mxu0 }
 0xf13   :  { %v6535_v0 = vadd.f32 %v17521_v45, %v12495_v9  ;;  %v12498_v13 = vadd.f32 %v12497_v10, %v12496_v49  ;;  %13287 = vmatmul.mubr.msk.f32.gmra.mrb[16].mxu1 %vm2705_vm1, %v6565_v32  ;;  %v6732_v32 = vld [vmem:[%s18589_s0 + $0x478] sm:$0xff]  ;;  %v14178_v9 = vld [vmem:[%s18589_s0 + $0x468] ss:$8 sps:$4 sm:$0xff]   ;;  %v11475_v10 = vld [vmem:[%s18592_s3 + $0x1e0] sm:$0xff] }
 0xf14   :  { %12533 = vmatpush3.bf16.msra.mxu1 %v14236_v47  ;;  %13289 = vmatprep.mubr.msk.f32.mxu1 %vm14277_vm0, %v14278_v55  ;;  %v11474_v49 = vcombine.high %v6732_v32, %v6732_v32  ;;  %v11473_v3 = vcombine.low %v6732_v32, %v6732_v32  ;;  %v11477_v47 = vld [vmem:[%s18592_s3 + $0x1f0] sm:$0xff] }
 0xf15   :  { %v6566_v15 = vmax.f32 %v6535_v0, 0.0  ;;  %v6538_v11 = vadd.f32 %v17521_v45, %v12498_v13  ;;  %12534 = vmatprep.subr.bf16.mxu1 %v14237_v43  ;;  %v11476_v0 = vld [vmem:[%s18592_s3 + $0x1e8] sm:$0xff]  ;;  %v11489_v43 = vld [vmem:[%s18594_s5 + $0x40] sm:$0xff] }
 0xf16   :  { %v13661_v13 = vpack.c.bf16 %v11476_v0, %v11475_v10 }
 0xf17   :  { %v12499_v52 = vpop.f32.mrb[16].mxu0  ;;  %13290 = vmatmul.mubr.msk.f32.gmra.mrb[18].mxu1 %vm2705_vm1, %v6566_v15  ;;  %v6567_v56 = vmax.f32 %v6538_v11, 0.0  ;;  %v11478_v15 = vld [vmem:[%s18592_s3 + $0x1f8] sm:$0xff] }
 0xf18   :  { %v12500_v48 = vpop.f32.mrb[17].mxu0  ;;  %12535 = vmatpush3.bf16.msra.mxu1 %v14238_v12  ;;  %13292 = vmatprep.mubr.msk.f32.mxu1 %vm14277_vm0, %v14278_v55  ;;  %v13664_v11 = vpack.c.bf16 %v11478_v15, %v11477_v47 }
 0xf19   :  { %v12501_v6 = vadd.f32 %v12500_v48, %v12499_v52  ;;  %v12502_v29 = vpop.f32.mrb[18].mxu0  ;;  %12536 = vmatprep.subr.bf16.mxu1 %v14239_v59  ;;  %13662 = vmatpush3.bf16.msra.mxu0 %v13661_v13  ;;  %v11490_v52 = vld [vmem:[%s18594_s5 + $0x48] sm:$0xff] }
 0xf1a   :  { %v12503_v35 = vpop.f32.mrb[19].mxu0  ;;  %13663 = vmatprep.subr.bf16.mxu0 %v14276_v30  ;;  %v13666_v48 = vpack.c.bf16 %v11490_v52, %v11489_v43 }
 0xf1b   :  { %v6543_v61 = vadd.f32 %v17521_v45, %v12501_v6  ;;  %v12504_v25 = vadd.f32 %v12503_v35, %v12502_v29  ;;  %13293 = vmatmul.mubr.msk.f32.gmra.mrb[20].mxu1 %vm2705_vm1, %v6567_v56 }
 0xf1c   :  { %12537 = vmatpush3.bf16.msra.mxu1 %v14240_v20  ;;  %13295 = vmatprep.mubr.msk.f32.mxu1 %vm14277_vm0, %v14278_v55 }
 0xf1d   :  { %v6568_v19 = vmax.f32 %v6543_v61, 0.0  ;;  %v6546_v17 = vadd.f32 %v17521_v45, %v12504_v25  ;;  %12538 = vmatprep.subr.bf16.mxu1 %v14241_v31  ;;  %13665 = vmatpush3.bf16.msra.mxu0 %v13664_v11 }
 0xf1e   :  { %13667 = vmatprep.subr.bf16.mxu0 %v13666_v48 }
 0xf1f   :  { %v12505_v2 = vpop.f32.mrb[20].mxu0  ;;  %13296 = vmatmul.mubr.msk.f32.gmra.mrb[22].mxu1 %vm2705_vm1, %v6568_v19  ;;  %v6569_v7 = vmax.f32 %v6546_v17, 0.0 }
 0xf20   :  { %v12506_v37 = vpop.f32.mrb[21].mxu0  ;;  %12539 = vmatpush3.bf16.msra.mxu1 %v14242_v4  ;;  %13298 = vmatprep.mubr.msk.f32.mxu1 %vm14277_vm0, %v14278_v55 }
 0xf21   :  { %v12507_v54 = vadd.f32 %v12506_v37, %v12505_v2  ;;  %v12508_v42 = vpop.f32.mrb[22].mxu0  ;;  %12540 = vmatprep.subr.bf16.mxu1 %v14243_v28 }
 0xf22   :  { %v12509_v46 = vpop.f32.mrb[23].mxu0 }
 0xf23   :  { %v6551_v63 = vadd.f32 %v17521_v45, %v12507_v54  ;;  %v12510_v40 = vadd.f32 %v12509_v46, %v12508_v42  ;;  %13299 = vmatmul.mubr.msk.f32.gmra.mrb[24].mxu1 %vm2705_vm1, %v6569_v7 }
 0xf24   :  { %13301 = vmatprep.mubr.msk.f32.mxu1 %vm14277_vm0, %v14278_v55  ;;  %12541 = vmatpush3.bf16.msra.mxu1 %v17411_v18 }
 0xf25   :  { %v6570_v51 = vmax.f32 %v6551_v63, 0.0  ;;  %v6554_v39 = vadd.f32 %v17521_v45, %v12510_v40  ;;  %12542 = vmatprep.subr.bf16.mxu1 %v17418_v62  ;;  %v14171_v62 = vld [vmem:[%s18589_s0 + $0x43c] ss:$8 sps:$4 sm:$0xff]  }
 0xf27   :  { %v12511_v34 = vpop.f32.mrb[24].mxu0  ;;  %13302 = vmatmul.mubr.msk.f32.gmra.mrb[26].mxu1 %vm2705_vm1, %v6570_v51  ;;  %v6571_v5 = vmax.f32 %v6554_v39, 0.0 }
 0xf28   :  { %v12512_v23 = vpop.f32.mrb[25].mxu0  ;;  %13304 = vmatprep.mubr.msk.f32.mxu1 %vm14277_vm0, %v14278_v55  ;;  %12543 = vmatpush3.bf16.msra.mxu1 %v17427_v36 }
 0xf29   :  { %v12513_v26 = vadd.f32 %v12512_v23, %v12511_v34  ;;  %v12514_v60 = vpop.f32.mrb[26].mxu0  ;;  %12544 = vmatprep.subr.bf16.mxu1 %v17433_v57  ;;  %v14169_v57 = vld [vmem:[%s18589_s0 + $0x438] ss:$8 sps:$4 sm:$0xff]  }
 0xf2a   :  { %v12515_v18 = vpop.f32.mrb[27].mxu0 }
 0xf2b   :  { %v6559_v50 = vadd.f32 %v17521_v45, %v12513_v26  ;;  %13305 = vmatmul.mubr.msk.f32.gmra.mrb[28].mxu1 %vm2705_vm1, %v6571_v5 }
 0xf2c   :  { %13307 = vmatprep.mubr.msk.f32.mxu1 %vm14277_vm0, %v14278_v55  ;;  %12545 = vmatpush3.bf16.msra.mxu1 %v17443_v8  ;;  %v14172_v8 = vld [vmem:[%s18589_s0 + $0x448] ss:$8 sps:$4 sm:$0xff]  }
 0xf2d   :  { %v6572_v36 = vmax.f32 %v6559_v50, 0.0 }
 0xf2f   :  { %13308 = vmatmul.mubr.msk.f32.gmra.mrb[30].mxu1 %vm2705_vm1, %v6572_v36 }
 0xf30   :  { %6812 = vmatprep.mubr.bf16.mxu1 %v14171_v62 }
 0xf33   :  { %6813 = vmatmul.mubr.bf16.vlgmr.msra.gmra.mrb[32].mxu1 %v14169_v57 }
 0xf34   :  { %6820 = vmatprep.mubr.bf16.mxu1 %v14174_v24 }
 0xf3b   :  { %6821 = vmatmul.mubr.bf16.gmra.mrb[40].mxu1 %v14172_v8 }
 0xf3c   :  { %6828 = vmatprep.mubr.bf16.mxu1 %v14177_v33 }
 0xf43   :  { %6829 = vmatmul.mubr.bf16.gmra.mrb[36].mxu1 %v14175_v53 }
 0xf44   :  { %6836 = vmatprep.mubr.bf16.mxu1 %v14180_v41 }
 0xf4b   :  { %6837 = vmatmul.mubr.bf16.gmra.mrb[44].mxu1 %v14178_v9 }
 0xf4c   :  { %6844 = vmatprep.mubr.bf16.mxu1 %v11474_v49 }
 0xf53   :  { %6845 = vmatmul.mubr.bf16.gmra.mrb[48].mxu1 %v11473_v3 }
 0xfe2   :  { %v6671_v30 = vpop.f32.mrb[250].mxu1 }
 0xfe3   :  { %v17879_v12 = vadd.f32 %v6671_v30, %v17737_v21  ;;  %v13285_v56 = vpop.f32.mrb[251].mxu1 }
 0xfe6   :  { %v6676_v6 = vpop.f32.mrb[16].mxu1 }
 0xfe7   :  { %v17882_v29 = vadd.f32 %v6676_v6, %v17740_v38  ;;  %v13288_v59 = vpop.f32.mrb[17].mxu1 }
 0xfea   :  { %v6681_v35 = vpop.f32.mrb[18].mxu1 }
 0xfeb   :  { %v17885_v61 = vadd.f32 %v6681_v35, %v17743_v22  ;;  %v13291_v25 = vpop.f32.mrb[19].mxu1 }
 0xfee   :  { %v6686_v20 = vpop.f32.mrb[20].mxu1 }
 0xfef   :  { %v17888_v19 = vadd.f32 %v6686_v20, %v17746_v27  ;;  %v13294_v17 = vpop.f32.mrb[21].mxu1 }
 0xff2   :  { %v6691_v31 = vpop.f32.mrb[22].mxu1 }
 0xff3   :  { %v17891_v21 = vadd.f32 %v6691_v31, %v17749_v58  ;;  %v13297_v2 = vpop.f32.mrb[23].mxu1 }
 0xff6   :  { %v6696_v37 = vpop.f32.mrb[24].mxu1 }
 0xff7   :  { %v17894_v38 = vadd.f32 %v6696_v37, %v17752_v16  ;;  %v13300_v4 = vpop.f32.mrb[25].mxu1 }
 0xffa   :  { %v6701_v7 = vpop.f32.mrb[26].mxu1 }
 0xffb   :  { %v17897_v22 = vadd.f32 %v6701_v7, %v17755_v14  ;;  %v13303_v54 = vpop.f32.mrb[27].mxu1  ;;  %v11491_v14 = vld [vmem:[%s18594_s5 + $0x50] sm:$0xff] }
 0xffe   :  { %v6706_v42 = vpop.f32.mrb[28].mxu1 }
 0xfff   :  { %v17900_v27 = vadd.f32 %v6706_v42, %v17758_v1  ;;  %v13306_v28 = vpop.f32.mrb[29].mxu1  ;;  %v11492_v1 = vld [vmem:[%s18594_s5 + $0x58] sm:$0xff] }
0x1000   :  { %v13670_v60 = vpack.c.bf16 %v11492_v1, %v11491_v14  ;;  %v11493_v28 = vld [vmem:[%s18594_s5 + $0x60] sm:$0xff] }
0x1001   :  { %v17966_v14 = vld [vmem:[%s18593_s4] ss:$0 sm:$0xff] }
0x1002   :  { %v6711_v46 = vpop.f32.mrb[30].mxu1 }
0x1003   :  { %v17903_v58 = vadd.f32 %v6711_v46, %v17761_v44  ;;  %v13309_v63 = vpop.f32.mrb[31].mxu1  ;;  %v11494_v46 = vld [vmem:[%s18594_s5 + $0x68] sm:$0xff] }
0x1004   :  { %v13674_v63 = vpack.c.bf16 %v11494_v46, %v11493_v28  ;;  %v11509_v28 = vld [vmem:[%s18594_s5 + $0x80] sm:$0xff] }
0x1006   :  { %v12546_v40 = vpop.f32.mrb[32].mxu1 }
0x1007   :  { %v12547_v51 = vpop.f32.mrb[33].mxu1 }
0x1008   :  { %v12548_v16 = vadd.f32 %v12547_v51, %v12546_v40  ;;  %v12549_v39 = vpop.f32.mrb[34].mxu1  ;;  %v7053_v51 = vld [vmem:[%s18594_s5] sm:$0xff] }
0x1009   :  { %v12550_v34 = vpop.f32.mrb[35].mxu1 }
0x100a   :  { %v6815_v23 = vadd.f32 %v17521_v45, %v12548_v16  ;;  %v12551_v5 = vadd.f32 %v12550_v34, %v12549_v39  ;;  %v7054_v16 = vld [vmem:[%s18594_s5 + $0x8] sm:$0xff] }
0x100b   :  { %v13682_v39 = vpack.c.bf16 %v7054_v16, %v7053_v51 }
0x100c   :  { %v6852_v26 = vmax.f32 %v6815_v23, 0.0  ;;  %v6818_v44 = vadd.f32 %v17521_v45, %v12551_v5 }
0x100e   :  { %v12552_v18 = vpop.f32.mrb[40].mxu1  ;;  %13319 = vmatmul.mubr.msk.f32.vlgmr.msra.gmra.mrb[6].mxu0 %vm2705_vm1, %v6852_v26  ;;  %v6853_v62 = vmax.f32 %v6818_v44, 0.0 }
0x100f   :  { %v12553_v50 = vpop.f32.mrb[41].mxu1  ;;  %13321 = vmatprep.mubr.msk.f32.mxu0 %vm14277_vm0, %v14278_v55  ;;  %13669 = vmatpush3.bf16.msra.mxu0 %v13666_v48 }
0x1010   :  { %v12554_v36 = vadd.f32 %v12553_v50, %v12552_v18  ;;  %v12555_v57 = vpop.f32.mrb[42].mxu1  ;;  %13671 = vmatprep.subr.bf16.mxu0 %v13670_v60 }
0x1011   :  { %v12556_v24 = vpop.f32.mrb[43].mxu1 }
0x1012   :  { %v6823_v8 = vadd.f32 %v17521_v45, %v12554_v36  ;;  %v12557_v33 = vadd.f32 %v12556_v24, %v12555_v57  ;;  %13322 = vmatmul.mubr.msk.f32.gmra.mrb[28].mxu0 %vm2705_vm1, %v6853_v62 }
0x1013   :  { %13324 = vmatprep.mubr.msk.f32.mxu0 %vm14277_vm0, %v14278_v55  ;;  %13673 = vmatpush3.bf16.msra.mxu0 %v13670_v60 }
0x1014   :  { %v6854_v53 = vmax.f32 %v6823_v8, 0.0  ;;  %v6826_v41 = vadd.f32 %v17521_v45, %v12557_v33  ;;  %13675 = vmatprep.subr.bf16.mxu0 %v13674_v63 }
0x1016   :  { %v12558_v32 = vpop.f32.mrb[36].mxu1  ;;  %13325 = vmatmul.mubr.msk.f32.gmra.mrb[30].mxu0 %vm2705_vm1, %v6854_v53  ;;  %v6855_v49 = vmax.f32 %v6826_v41, 0.0 }
0x1017   :  { %v12559_v9 = vpop.f32.mrb[37].mxu1  ;;  %13327 = vmatprep.mubr.msk.f32.mxu0 %vm14277_vm0, %v14278_v55  ;;  %13677 = vmatpush3.bf16.msra.mxu0 %v13674_v63 }
0x1018   :  { %v12560_v3 = vadd.f32 %v12559_v9, %v12558_v32  ;;  %v12561_v10 = vpop.f32.mrb[38].mxu1 }
0x1019   :  { %v12562_v0 = vpop.f32.mrb[39].mxu1 }
0x101a   :  { %v6831_v13 = vadd.f32 %v17521_v45, %v12560_v3  ;;  %v12563_v47 = vadd.f32 %v12562_v0, %v12561_v10  ;;  %13328 = vmatmul.mubr.msk.f32.gmra.mrb[32].mxu0 %vm2705_vm1, %v6855_v49  ;;  %v7055_v10 = vld [vmem:[%s18594_s5 + $0x10] sm:$0xff]  ;;  %v7056_v0 = vld [vmem:[%s18594_s5 + $0x18] sm:$0xff] }
0x101b   :  { %13330 = vmatprep.mubr.msk.f32.mxu0 %vm14277_vm0, %v14278_v55 }
0x101c   :  { %v6856_v15 = vmax.f32 %v6831_v13, 0.0  ;;  %v6834_v11 = vadd.f32 %v17521_v45, %v12563_v47 }
0x101e   :  { %v12564_v43 = vpop.f32.mrb[44].mxu1  ;;  %13331 = vmatmul.mubr.msk.f32.gmra.mrb[34].mxu0 %vm2705_vm1, %v6856_v15  ;;  %v6857_v48 = vmax.f32 %v6834_v11, 0.0  ;;  %v13686_v11 = vpack.c.bf16 %v7056_v0, %v7055_v10 }
0x101f   :  { %v12565_v52 = vpop.f32.mrb[45].mxu1  ;;  %13333 = vmatprep.mubr.msk.f32.mxu0 %vm14277_vm0, %v14278_v55 }
0x1020   :  { %v12566_v30 = vadd.f32 %v12565_v52, %v12564_v43  ;;  %v12567_v56 = vpop.f32.mrb[46].mxu1  ;;  %v7057_v52 = vld [vmem:[%s18594_s5 + $0x20] sm:$0xff] }
0x1021   :  { %v12568_v6 = vpop.f32.mrb[47].mxu1 }
0x1022   :  { %v6839_v59 = vadd.f32 %v17521_v45, %v12566_v30  ;;  %13334 = vmatmul.mubr.msk.f32.gmra.mrb[36].mxu0 %vm2705_vm1, %v6857_v48  ;;  %v12569_v35 = vadd.f32 %v12568_v6, %v12567_v56  ;;  %v7058_v48 = vld [vmem:[%s18594_s5 + $0x28] sm:$0xff] }
0x1023   :  { %13336 = vmatprep.mubr.msk.f32.mxu0 %vm14277_vm0, %v14278_v55 }
0x1024   :  { %v6858_v25 = vmax.f32 %v6839_v59, 0.0  ;;  %v6842_v20 = vadd.f32 %v17521_v45, %v12569_v35  ;;  %v13690_v35 = vpack.c.bf16 %v7058_v48, %v7057_v52  ;;  %v11538_v52 = vld [vmem:[%s18594_s5 + $0x108] sm:$0xff] }
0x1026   :  { %v6859_v17 = vmax.f32 %v6842_v20, 0.0  ;;  %v12570_v31 = vpop.f32.mrb[48].mxu1  ;;  %13337 = vmatmul.mubr.msk.f32.gmra.mrb[40].mxu0 %vm2705_vm1, %v6858_v25  ;;  %v7059_v20 = vld [vmem:[%s18594_s5 + $0x30] sm:$0xff] }
0x1027   :  { %v12571_v2 = vpop.f32.mrb[49].mxu1  ;;  %13339 = vmatprep.mubr.msk.f32.mxu0 %vm14277_vm0, %v14278_v55 }
0x1028   :  { %v12572_v37 = vadd.f32 %v12571_v2, %v12570_v31  ;;  %v12573_v4 = vpop.f32.mrb[50].mxu1 }
0x1029   :  { %v12574_v7 = vpop.f32.mrb[51].mxu1 }
0x102a   :  { %v6847_v54 = vadd.f32 %v17521_v45, %v12572_v37  ;;  %13340 = vmatmul.mubr.msk.f32.gmra.mrb[42].mxu0 %vm2705_vm1, %v6859_v17  ;;  %v11495_v45 = vld [vmem:[%s18594_s5 + $0x70] sm:$0xff]  ;;  %v7060_v17 = vld [vmem:[%s18594_s5 + $0x38] sm:$0xff] }
0x102b   :  { %13342 = vmatprep.mubr.msk.f32.mxu0 %vm14277_vm0, %v14278_v55  ;;  %v11496_v55 = vld [vmem:[%s18594_s5 + $0x78] sm:$0xff]  ;;  %v13694_v7 = vpack.c.bf16 %v7060_v17, %v7059_v20 }
0x102c   :  { %v6860_v42 = vmax.f32 %v6847_v54, 0.0  ;;  %v13678_v40 = vpack.c.bf16 %v11496_v55, %v11495_v45  ;;  %v11544_v20 = vld [vmem:[%s18594_s5 + $0x138] sm:$0xff] }
0x102e   :  { %13343 = vmatmul.mubr.msk.f32.gmra.mrb[44].mxu0 %vm2705_vm1, %v6860_v42  ;;  %13679 = vmatprep.subr.bf16.mxu0 %v13678_v40 }
0x102f   :  { %13681 = vmatpush3.bf16.msra.mxu0 %v13678_v40 }
0x1030   :  { %13683 = vmatprep.subr.bf16.mxu0 %v13682_v39 }
0x10e1   :  { %v6959_v34 = vpop.f32.mrb[6].mxu0 }
0x10e2   :  { %v7003_v1 = vadd.f32 %v6959_v34, %v17879_v12  ;;  %v13320_v23 = vpop.f32.mrb[7].mxu0  ;;  %v11511_v34 = vld [vmem:[%s18594_s5 + $0x90] sm:$0xff] }
0x10e4   :  { %v7019_v5 = vadd.f32 %v17966_v14, %v7003_v1 }
0x10e5   :  { %v6964_v26 = vpop.f32.mrb[28].mxu0 }
0x10e6   :  { %v7028_v44 = vmax.f32 %v7019_v5, 0.0  ;;  %v7004_v60 = vadd.f32 %v6964_v26, %v17882_v29  ;;  %v13323_v18 = vpop.f32.mrb[29].mxu0  ;;  %v11513_v26 = vld [vmem:[%s18594_s5 + $0xa0] sm:$0xff] }
0x10e8   :  { %7038 = vst.msk [vmem:[#allocation2] sm:$0xff] %vm7037_vm2, %v7028_v44  ;;  %v7020_v50 = vadd.f32 %v17966_v14, %v7004_v60  ;;  %v11514_v44 = vld [vmem:[%s18594_s5 + $0xa8] sm:$0xff] }
0x10e9   :  { %v6969_v62 = vpop.f32.mrb[30].mxu0  ;;  %v13706_v18 = vpack.c.bf16 %v11514_v44, %v11513_v26  ;;  %v11567_v44 = vld [vmem:[%s18594_s5 + $0x190] sm:$0xff] }
0x10ea   :  { %v7029_v36 = vmax.f32 %v7020_v50, 0.0  ;;  %v7005_v57 = vadd.f32 %v6969_v62, %v17885_v61  ;;  %v13326_v24 = vpop.f32.mrb[31].mxu0  ;;  %v11515_v62 = vld [vmem:[%s18594_s5 + $0xb0] sm:$0xff] }
0x10ec   :  { %7039 = vst.msk [vmem:[#allocation2 + $0x8] sm:$0xff] %vm7037_vm2, %v7029_v36  ;;  %v7021_v12 = vadd.f32 %v17966_v14, %v7005_v57  ;;  %v11516_v36 = vld [vmem:[%s18594_s5 + $0xb8] sm:$0xff] }
0x10ed   :  { %v6974_v8 = vpop.f32.mrb[32].mxu0  ;;  %v13710_v24 = vpack.c.bf16 %v11516_v36, %v11515_v62  ;;  %v11569_v36 = vld [vmem:[%s18594_s5 + $0x1a0] sm:$0xff] }
0x10ee   :  { %v7030_v33 = vmax.f32 %v7021_v12, 0.0  ;;  %v7006_v53 = vadd.f32 %v6974_v8, %v17888_v19  ;;  %v13329_v41 = vpop.f32.mrb[33].mxu0  ;;  %v11523_v8 = vld [vmem:[%s18594_s5 + $0xc0] sm:$0xff] }
0x10ef   :  { %v7047_v1 = vld [vmem:[#allocation2] sm:$0xff] }
0x10f0   :  { %7040 = vst.msk [vmem:[#allocation2 + $0x10] sm:$0xff] %vm7037_vm2, %v7030_v33  ;;  %v7022_v29 = vadd.f32 %v17966_v14, %v7006_v53  ;;  %v11524_v33 = vld [vmem:[%s18594_s5 + $0xc8] sm:$0xff] }
0x10f1   :  { %v6979_v32 = vpop.f32.mrb[34].mxu0  ;;  %v13714_v41 = vpack.c.bf16 %v11524_v33, %v11523_v8  ;;  %v11571_v8 = vld [vmem:[%s18594_s5 + $0x1b0] sm:$0xff]  ;;  %v11572_v33 = vld [vmem:[%s18594_s5 + $0x1b8] sm:$0xff] }
0x10f2   :  { %v7031_v9 = vmax.f32 %v7022_v29, 0.0  ;;  %v7007_v49 = vadd.f32 %v6979_v32, %v17891_v21  ;;  %v13332_v3 = vpop.f32.mrb[35].mxu0  ;;  %v11525_v29 = vld [vmem:[%s18594_s5 + $0xd0] sm:$0xff]  ;;  %v11526_v32 = vld [vmem:[%s18594_s5 + $0xd8] sm:$0xff] }
0x10f3   :  { %v7061_v61 = vld [vmem:[#allocation2 + $0x2] sm:$0xff] }
0x10f4   :  { %7041 = vst.msk [vmem:[#allocation2 + $0x18] sm:$0xff] %vm7037_vm2, %v7031_v9  ;;  %v7023_v19 = vadd.f32 %v17966_v14, %v7007_v49  ;;  %13361 = vmatprep.mubr.msk.f32.mxu0 %vm7037_vm2, %v7061_v61  ;;  %v7048_v5 = vld [vmem:[#allocation2 + $0x8] sm:$0xff]  ;;  %v13718_v9 = vpack.c.bf16 %v11526_v32, %v11525_v29  ;;  %v11527_v3 = vld [vmem:[%s18594_s5 + $0xe0] sm:$0xff] }
0x10f5   :  { %v6984_v13 = vpop.f32.mrb[36].mxu0  ;;  %v7302_v53 = vld [vmem:[#allocation2 + $0x4] sm:$0xff] }
0x10f6   :  { %v7032_v47 = vmax.f32 %v7023_v19, 0.0  ;;  %v7008_v21 = vadd.f32 %v6984_v13, %v17894_v38  ;;  %v13335_v15 = vpop.f32.mrb[37].mxu0  ;;  %v11528_v61 = vld [vmem:[%s18594_s5 + $0xe8] sm:$0xff]  ;;  %v11529_v13 = vld [vmem:[%s18594_s5 + $0xf0] sm:$0xff]  ;;  %v11579_v32 = vld [vmem:[%s18594_s5 + $0x1c0] sm:$0xff] }
0x10f7   :  { %v7062_v43 = vld [vmem:[#allocation2 + $0xa] sm:$0xff]  ;;  %v13722_v0 = vpack.c.bf16 %v11528_v61, %v11527_v3  ;;  %v11582_v61 = vld [vmem:[%s18594_s5 + $0x1d8] sm:$0xff] }
0x10f8   :  { %7042 = vst.msk [vmem:[#allocation2 + $0x20] sm:$0xff] %vm7037_vm2, %v7032_v47  ;;  %v7024_v30 = vadd.f32 %v17966_v14, %v7008_v21  ;;  %13362 = vmatmul.mubr.msk.f32.vlgmr.msra.gmra.mrb[46].mxu0 %vm7037_vm2, %v7062_v43  ;;  %v18045_v60 = vld [vmem:[#allocation2 + $0x10] sm:$0xff]  ;;  %v11530_v47 = vld [vmem:[%s18594_s5 + $0xf8] sm:$0xff]  ;;  %v11537_v43 = vld [vmem:[%s18594_s5 + $0x100] sm:$0xff] }
0x10f9   :  { %v6989_v56 = vpop.f32.mrb[40].mxu0  ;;  %13685 = vmatpush3.bf16.msra.mxu0 %v13682_v39  ;;  %v7303_v49 = vld [vmem:[#allocation2 + $0xc] sm:$0xff]  ;;  %v13726_v15 = vpack.c.bf16 %v11530_v47, %v11529_v13  ;;  %v13730_v48 = vpack.c.bf16 %v11538_v52, %v11537_v43  ;;  %v11593_v52 = vld [vmem:[%s18594_s5 + $0x200] sm:$0xff] }
0x10fa   :  { %v7033_v38 = vmax.f32 %v7024_v30, 0.0  ;;  %v7009_v6 = vadd.f32 %v6989_v56, %v17897_v22  ;;  %v13338_v59 = vpop.f32.mrb[41].mxu0  ;;  %13687 = vmatprep.subr.bf16.mxu0 %v13686_v11  ;;  %v11539_v30 = vld [vmem:[%s18594_s5 + $0x110] sm:$0xff]  ;;  %v11540_v56 = vld [vmem:[%s18594_s5 + $0x118] sm:$0xff] }
0x10fb   :  { %v7063_v25 = vld [vmem:[#allocation2 + $0x12] sm:$0xff]  ;;  %v11542_v59 = vld [vmem:[%s18594_s5 + $0x128] sm:$0xff] }
0x10fc   :  { %7043 = vst.msk [vmem:[#allocation2 + $0x28] sm:$0xff] %vm7037_vm2, %v7033_v38  ;;  %v7025_v31 = vadd.f32 %v17966_v14, %v7009_v6  ;;  %13364 = vmatprep.mubr.msk.f32.mxu0 %vm7037_vm2, %v7063_v25  ;;  %v18049_v50 = vld [vmem:[#allocation2 + $0x18] sm:$0xff]  ;;  %v13734_v38 = vpack.c.bf16 %v11540_v56, %v11539_v30  ;;  %v11541_v6 = vld [vmem:[%s18594_s5 + $0x120] sm:$0xff]  ;;  %v11543_v25 = vld [vmem:[%s18594_s5 + $0x130] sm:$0xff] }
0x10fd   :  { %v6994_v2 = vpop.f32.mrb[42].mxu0  ;;  %13689 = vmatpush3.bf16.msra.mxu0 %v13686_v11  ;;  %v7304_v10 = vld [vmem:[#allocation2 + $0x14] sm:$0xff] }
0x10fe   :  { %v7034_v22 = vmax.f32 %v7025_v31, 0.0  ;;  %v7010_v37 = vadd.f32 %v6994_v2, %v17900_v27  ;;  %v13341_v4 = vpop.f32.mrb[43].mxu0  ;;  %13691 = vmatprep.subr.bf16.mxu0 %v13690_v35  ;;  %v11510_v27 = vld [vmem:[%s18594_s5 + $0x88] sm:$0xff]  ;;  %v13742_v31 = vpack.c.bf16 %v11544_v20, %v11543_v25  ;;  %v11581_v3 = vld [vmem:[%s18594_s5 + $0x1d0] sm:$0xff] }
0x10ff   :  { %v18010_v54 = vld [vmem:[#allocation2 + $0x1a] sm:$0xff]  ;;  %v13698_v16 = vpack.c.bf16 %v11510_v27, %v11509_v28  ;;  %v7570_v4 = vld [vmem:[#allocation2 + $0xe] sm:$0xff] }
0x1100   :  { %7044 = vst.msk [vmem:[#allocation2 + $0x30] sm:$0xff] %vm7037_vm2, %v7034_v22  ;;  %v7026_v42 = vadd.f32 %v17966_v14, %v7010_v37  ;;  %13365 = vmatmul.mubr.msk.f32.gmra.mrb[48].mxu0 %vm7037_vm2, %v18010_v54  ;;  %v18059_v57 = vld [vmem:[#allocation2 + $0x20] sm:$0xff]  ;;  %v11552_v37 = vld [vmem:[%s18594_s5 + $0x148] sm:$0xff]  ;;  %v11554_v28 = vld [vmem:[%s18594_s5 + $0x158] sm:$0xff] }
0x1101   :  { %v6999_v46 = vpop.f32.mrb[44].mxu0  ;;  %13693 = vmatpush3.bf16.msra.mxu0 %v13690_v35  ;;  %v18085_v19 = vld [vmem:[#allocation2 + $0x1c] sm:$0xff]  ;;  %v13738_v35 = vpack.c.bf16 %v11542_v59, %v11541_v6  ;;  %v11585_v47 = vld [vmem:[%s18594_s5 + $0x1f0] sm:$0xff] }
0x1102   :  { %v7035_v63 = vmax.f32 %v7026_v42, 0.0  ;;  %v7011_v45 = vadd.f32 %v6999_v46, %v17903_v58  ;;  %13695 = vmatprep.subr.bf16.mxu0 %v13694_v7  ;;  %v13344_v55 = vpop.f32.mrb[45].mxu0  ;;  %v11512_v58 = vld [vmem:[%s18594_s5 + $0x98] sm:$0xff]  ;;  %v11551_v22 = vld [vmem:[%s18594_s5 + $0x140] sm:$0xff]  ;;  %v11553_v42 = vld [vmem:[%s18594_s5 + $0x150] sm:$0xff] }
0x1103   :  { %v18023_v40 = vld [vmem:[#allocation2 + $0x22] sm:$0xff]  ;;  %v7066_v51 = vld [vmem:[#allocation2 + $0x2a] sm:$0xf]  ;;  %v13750_v27 = vpack.c.bf16 %v11554_v28, %v11553_v42  ;;  %v7571_v46 = vld [vmem:[#allocation2 + $0x16] sm:$0xff] }
0x1104   :  { %7045 = vst.msk [vmem:[#allocation2 + $0x38] sm:$0xff] %vm7037_vm2, %v7035_v63  ;;  %v7027_v39 = vadd.f32 %v17966_v14, %v7011_v45  ;;  %13367 = vmatprep.mubr.msk.f32.mxu0 %vm7037_vm2, %v18023_v40  ;;  %v13702_v14 = vpack.c.bf16 %v11512_v58, %v11511_v34  ;;  %v7052_v12 = vld [vmem:[#allocation2 + $0x28] sm:$0xf]  ;;  %v7307_v11 = vld [vmem:[#allocation2 + $0x2c] sm:$0xf]  ;;  %v11555_v63 = vld [vmem:[%s18594_s5 + $0x160] sm:$0xff] }
0x1105   :  { %13368 = vmatmul.mubr.msk.f32.gmra.mrb[50].mxu0 %vm7037_vm2, %v7066_v51  ;;  %v18095_v21 = vld [vmem:[#allocation2 + $0x24] sm:$0xff]  ;;  %v11558_v34 = vld [vmem:[%s18594_s5 + $0x178] sm:$0xff]  ;;  %v11595_v56 = vld [vmem:[%s18594_s5 + $0x210] sm:$0xff] }
0x1106   :  { %v7036_v23 = vmax.f32 %v7027_v39, 0.0  ;;  %13697 = vmatpush3.bf16.msra.mxu0 %v13694_v7  ;;  %13386 = vmatprep.mubr.msk.f32.mxu0 %vm7037_vm2, %v7047_v1  ;;  %v13746_v7 = vpack.c.bf16 %v11552_v37, %v11551_v22  ;;  %v11556_v45 = vld [vmem:[%s18594_s5 + $0x168] sm:$0xff]  ;;  %v7572_v55 = vld [vmem:[#allocation2 + $0x1e] sm:$0xff]  ;;  %v11557_v39 = vld [vmem:[%s18594_s5 + $0x170] sm:$0xff] }
0x1107   :  { %13699 = vmatprep.subr.bf16.mxu0 %v13698_v16  ;;  %v18130_v17 = vld [vmem:[#allocation2 + $0x2c] sm:$0xff]  ;;  %v7441_v2 = vld [vmem:[#allocation2 + $0x34] sm:$0xf]  ;;  %v13754_v51 = vpack.c.bf16 %v11556_v45, %v11555_v63  ;;  %v13758_v1 = vpack.c.bf16 %v11558_v34, %v11557_v39  ;;  %v11597_v59 = vld [vmem:[%s18594_s5 + $0x220] sm:$0xff] }
0x1108   :  { %7046 = vst.msk [vmem:[#allocation2 + $0x40] sm:$0xff] %vm7037_vm2, %v7036_v23  ;;  %v7574_v58 = vld [vmem:[#allocation2 + $0x2e] sm:$0xff] }
0x1109   :  { %13387 = vmatmul.mubr.msk.f32.vlgmr.msra.gmra.mrb[46].mxu0 %vm7037_vm2, %v7048_v5  ;;  %v11566_v5 = vld [vmem:[%s18594_s5 + $0x188] sm:$0xff] }
0x110a   :  { %13701 = vmatpush3.bf16.msra.mxu0 %v13698_v16  ;;  %13389 = vmatprep.mubr.msk.f32.mxu0 %vm7037_vm2, %v18045_v60  ;;  %v7573_v16 = vld [vmem:[#allocation2 + $0x26] sm:$0xff] }
0x110b   :  { %13703 = vmatprep.subr.bf16.mxu0 %v13702_v14  ;;  %v7575_v23 = vld [vmem:[#allocation2 + $0x36] sm:$0xf] }
0x110c   :  { %v7709_v29 = vld [vmem:[#allocation2 + $0x38] sm:$0xf] }
0x110d   :  { %13390 = vmatmul.mubr.msk.f32.gmra.mrb[48].mxu0 %vm7037_vm2, %v18049_v50  ;;  %v7975_v20 = vld [vmem:[#allocation2 + $0x32] sm:$0xff] }
0x110e   :  { %13705 = vmatpush3.bf16.msra.mxu0 %v13702_v14  ;;  %13392 = vmatprep.mubr.msk.f32.mxu0 %vm7037_vm2, %v18059_v57  ;;  %v11565_v14 = vld [vmem:[%s18594_s5 + $0x180] sm:$0xff] }
0x110f   :  { %13707 = vmatprep.subr.bf16.mxu0 %v13706_v18  ;;  %v13762_v26 = vpack.c.bf16 %v11566_v5, %v11565_v14  ;;  %v7843_v43 = vld [vmem:[#allocation2 + $0x40] sm:$0xf]  ;;  %v8111_v42 = vld [vmem:[#allocation2 + $0x44] sm:$0xf] }
0x1110   :  { %v7976_v22 = vld [vmem:[#allocation2 + $0x3a] sm:$0xff]  ;;  %v7977_v37 = vld [vmem:[#allocation2 + $0x42] sm:$0xf] }
0x1111   :  { %13393 = vmatmul.mubr.msk.f32.gmra.mrb[50].mxu0 %vm7037_vm2, %v7052_v12  ;;  %v7707_v12 = vld [vmem:[#allocation2 + $0x28] sm:$0xff] }
0x1112   :  { %13709 = vmatpush3.bf16.msra.mxu0 %v13706_v18  ;;  %13411 = vmatprep.mubr.msk.f32.mxu0 %vm7037_vm2, %v7302_v53  ;;  %v11568_v18 = vld [vmem:[%s18594_s5 + $0x198] sm:$0xff]  ;;  %v7708_v53 = vld [vmem:[#allocation2 + $0x30] sm:$0xff] }
0x1113   :  { %13711 = vmatprep.subr.bf16.mxu0 %v13710_v24  ;;  %v13766_v62 = vpack.c.bf16 %v11568_v18, %v11567_v44 }
0x1116   :  { %13713 = vmatpush3.bf16.msra.mxu0 %v13710_v24 }
0x1117   :  { %13715 = vmatprep.subr.bf16.mxu0 %v13714_v41 }
0x1119   :  { %13412 = vmatmul.mubr.msk.f32.vlgmr.msra.gmra.mrb[46].mxu0 %vm7037_vm2, %v7303_v49 }
0x111a   :  { %13414 = vmatprep.mubr.msk.f32.mxu0 %vm7037_vm2, %v7304_v10  ;;  %13717 = vmatpush3.bf16.msra.mxu0 %v13714_v41  ;;  %v13774_v41 = vpack.c.bf16 %v11572_v33, %v11571_v8 }
0x111b   :  { %13719 = vmatprep.subr.bf16.mxu0 %v13718_v9 }
0x111d   :  { %13415 = vmatmul.mubr.msk.f32.gmra.mrb[48].mxu0 %vm7037_vm2, %v18085_v19 }
0x111e   :  { %13417 = vmatprep.mubr.msk.f32.mxu0 %vm7037_vm2, %v18095_v21  ;;  %13721 = vmatpush3.bf16.msra.mxu0 %v13718_v9  ;;  %v11580_v9 = vld [vmem:[%s18594_s5 + $0x1c8] sm:$0xff] }
0x111f   :  { %13723 = vmatprep.subr.bf16.mxu0 %v13722_v0 }
0x1121   :  { %13418 = vmatmul.mubr.msk.f32.gmra.mrb[50].mxu0 %vm7037_vm2, %v7307_v11  ;;  %v7842_v11 = vld [vmem:[#allocation2 + $0x38] sm:$0xff] }
0x1122   :  { %13725 = vmatpush3.bf16.msra.mxu0 %v13722_v0  ;;  %13436 = vmatprep.mubr.msk.f32.mxu0 %vm7037_vm2, %v7303_v49  ;;  %v13778_v49 = vpack.c.bf16 %v11580_v9, %v11579_v32  ;;  %v11583_v0 = vld [vmem:[%s18594_s5 + $0x1e0] sm:$0xff] }
0x1123   :  { %13727 = vmatprep.subr.bf16.mxu0 %v13726_v15 }
0x1126   :  { %13729 = vmatpush3.bf16.msra.mxu0 %v13726_v15  ;;  %v11586_v15 = vld [vmem:[%s18594_s5 + $0x1f8] sm:$0xff] }
0x1127   :  { %13731 = vmatprep.subr.bf16.mxu0 %v13730_v48 }
0x1129   :  { %13437 = vmatmul.mubr.msk.f32.vlgmr.msra.gmra.mrb[46].mxu0 %vm7037_vm2, %v7304_v10  ;;  %v13782_v10 = vpack.c.bf16 %v11582_v61, %v11581_v3 }
0x112a   :  { %13439 = vmatprep.mubr.msk.f32.mxu0 %vm7037_vm2, %v18085_v19  ;;  %13733 = vmatpush3.bf16.msra.mxu0 %v13730_v48  ;;  %v11594_v48 = vld [vmem:[%s18594_s5 + $0x208] sm:$0xff] }
0x112b   :  { %13735 = vmatprep.subr.bf16.mxu0 %v13734_v38  ;;  %v13794_v30 = vpack.c.bf16 %v11594_v48, %v11593_v52 }
0x112d   :  { %13440 = vmatmul.mubr.msk.f32.gmra.mrb[48].mxu0 %vm7037_vm2, %v18095_v21 }
0x112e   :  { %13442 = vmatprep.mubr.msk.f32.mxu0 %vm7037_vm2, %v18130_v17  ;;  %13737 = vmatpush3.bf16.msra.mxu0 %v13734_v38  ;;  %v11596_v38 = vld [vmem:[%s18594_s5 + $0x218] sm:$0xff] }
0x112f   :  { %13739 = vmatprep.subr.bf16.mxu0 %v13738_v35  ;;  %v13798_v6 = vpack.c.bf16 %v11596_v38, %v11595_v56 }
0x1131   :  { %13443 = vmatmul.mubr.msk.f32.gmra.mrb[50].mxu0 %vm7037_vm2, %v7441_v2  ;;  %v11600_v2 = vld [vmem:[%s18594_s5 + $0x238] sm:$0xff] }
0x1132   :  { %13741 = vmatpush3.bf16.msra.mxu0 %v13738_v35  ;;  %13461 = vmatprep.mubr.msk.f32.mxu0 %vm7037_vm2, %v7570_v4  ;;  %v7974_v35 = vld [vmem:[#allocation2 + $0x2a] sm:$0xff]  ;;  %v8109_v4 = vld [vmem:[#allocation2 + $0x34] sm:$0xff] }
0x1133   :  { %13743 = vmatprep.subr.bf16.mxu0 %v13742_v31 }
0x1136   :  { %13745 = vmatpush3.bf16.msra.mxu0 %v13742_v31  ;;  %v11599_v31 = vld [vmem:[%s18594_s5 + $0x230] sm:$0xff] }
0x1137   :  { %13747 = vmatprep.subr.bf16.mxu0 %v13746_v7 }
0x1139   :  { %13462 = vmatmul.mubr.msk.f32.vlgmr.msra.gmra.mrb[46].mxu0 %vm7037_vm2, %v7571_v46 }
0x113a   :  { %13464 = vmatprep.mubr.msk.f32.mxu0 %vm7037_vm2, %v7572_v55  ;;  %13749 = vmatpush3.bf16.msra.mxu0 %v13746_v7  ;;  %v8110_v7 = vld [vmem:[#allocation2 + $0x3c] sm:$0xff] }
0x113b   :  { %13751 = vmatprep.subr.bf16.mxu0 %v13750_v27 }
0x113d   :  { %13465 = vmatmul.mubr.msk.f32.gmra.mrb[48].mxu0 %vm7037_vm2, %v7573_v16 }
0x113e   :  { %13467 = vmatprep.mubr.msk.f32.mxu0 %vm7037_vm2, %v7574_v58  ;;  %13753 = vmatpush3.bf16.msra.mxu0 %v13750_v27 }
0x113f   :  { %13755 = vmatprep.subr.bf16.mxu0 %v13754_v51 }
0x1141   :  { %13468 = vmatmul.mubr.msk.f32.gmra.mrb[50].mxu0 %vm7037_vm2, %v7575_v23 }
0x1142   :  { %13757 = vmatpush3.bf16.msra.mxu0 %v13754_v51  ;;  %13486 = vmatprep.mubr.msk.f32.mxu0 %vm7037_vm2, %v18045_v60  ;;  %v11570_v60 = vld [vmem:[%s18594_s5 + $0x1a8] sm:$0xff] }
0x1143   :  { %13759 = vmatprep.subr.bf16.mxu0 %v13758_v1  ;;  %v13770_v24 = vpack.c.bf16 %v11570_v60, %v11569_v36 }
0x1146   :  { %13761 = vmatpush3.bf16.msra.mxu0 %v13758_v1 }
0x1147   :  { %13763 = vmatprep.subr.bf16.mxu0 %v13762_v26 }
0x1149   :  { %13487 = vmatmul.mubr.msk.f32.vlgmr.msra.gmra.mrb[46].mxu0 %vm7037_vm2, %v18049_v50 }
0x114a   :  { %13489 = vmatprep.mubr.msk.f32.mxu0 %vm7037_vm2, %v18059_v57  ;;  %13765 = vmatpush3.bf16.msra.mxu0 %v13762_v26 }
0x114b   :  { %13767 = vmatprep.subr.bf16.mxu0 %v13766_v62 }
0x114d   :  { %13490 = vmatmul.mubr.msk.f32.gmra.mrb[48].mxu0 %vm7037_vm2, %v7707_v12 }
0x114e   :  { %13492 = vmatprep.mubr.msk.f32.mxu0 %vm7037_vm2, %v7708_v53  ;;  %13769 = vmatpush3.bf16.msra.mxu0 %v13766_v62 }
0x114f   :  { %13771 = vmatprep.subr.bf16.mxu0 %v13770_v24 }
0x1151   :  { %13493 = vmatmul.mubr.msk.f32.gmra.mrb[50].mxu0 %vm7037_vm2, %v7709_v29 }
0x1152   :  { %13773 = vmatpush3.bf16.msra.mxu0 %v13770_v24  ;;  %13511 = vmatprep.mubr.msk.f32.mxu0 %vm7037_vm2, %v18049_v50  ;;  %v11584_v50 = vld [vmem:[%s18594_s5 + $0x1e8] sm:$0xff] }
0x1153   :  { %13775 = vmatprep.subr.bf16.mxu0 %v13774_v41  ;;  %v13786_v13 = vpack.c.bf16 %v11584_v50, %v11583_v0 }
0x1156   :  { %13777 = vmatpush3.bf16.msra.mxu0 %v13774_v41 }
0x1157   :  { %13779 = vmatprep.subr.bf16.mxu0 %v13778_v49 }
0x1159   :  { %13512 = vmatmul.mubr.msk.f32.vlgmr.msra.gmra.mrb[46].mxu0 %vm7037_vm2, %v18059_v57  ;;  %v13790_v57 = vpack.c.bf16 %v11586_v15, %v11585_v47 }
0x115a   :  { %13514 = vmatprep.mubr.msk.f32.mxu0 %vm7037_vm2, %v7707_v12  ;;  %13781 = vmatpush3.bf16.msra.mxu0 %v13778_v49 }
0x115b   :  { %13783 = vmatprep.subr.bf16.mxu0 %v13782_v10 }
0x115d   :  { %13515 = vmatmul.mubr.msk.f32.gmra.mrb[48].mxu0 %vm7037_vm2, %v7708_v53 }
0x115e   :  { %13517 = vmatprep.mubr.msk.f32.mxu0 %vm7037_vm2, %v7842_v11  ;;  %13785 = vmatpush3.bf16.msra.mxu0 %v13782_v10 }
0x115f   :  { %13787 = vmatprep.subr.bf16.mxu0 %v13786_v13 }
0x1161   :  { %13518 = vmatmul.mubr.msk.f32.gmra.mrb[50].mxu0 %vm7037_vm2, %v7843_v43 }
0x1162   :  { %13789 = vmatpush3.bf16.msra.mxu0 %v13786_v13  ;;  %13536 = vmatprep.mubr.msk.f32.mxu0 %vm7037_vm2, %v18010_v54  ;;  %v11598_v54 = vld [vmem:[%s18594_s5 + $0x228] sm:$0xff] }
0x1163   :  { %13791 = vmatprep.subr.bf16.mxu0 %v13790_v57  ;;  %v13802_v25 = vpack.c.bf16 %v11598_v54, %v11597_v59 }
0x1166   :  { %13793 = vmatpush3.bf16.msra.mxu0 %v13790_v57 }
0x1167   :  { %13795 = vmatprep.subr.bf16.mxu0 %v13794_v30 }
0x1169   :  { %13537 = vmatmul.mubr.msk.f32.vlgmr.msra.gmra.mrb[46].mxu0 %vm7037_vm2, %v18023_v40  ;;  %v13806_v40 = vpack.c.bf16 %v11600_v2, %v11599_v31 }
0x116a   :  { %13539 = vmatprep.mubr.msk.f32.mxu0 %vm7037_vm2, %v7974_v35  ;;  %13797 = vmatpush3.bf16.msra.mxu0 %v13794_v30 }
0x116b   :  { %13799 = vmatprep.subr.bf16.mxu0 %v13798_v6 }
0x116d   :  { %13540 = vmatmul.mubr.msk.f32.gmra.mrb[48].mxu0 %vm7037_vm2, %v7975_v20 }
0x116e   :  { %13542 = vmatprep.mubr.msk.f32.mxu0 %vm7037_vm2, %v7976_v22  ;;  %13801 = vmatpush3.bf16.msra.mxu0 %v13798_v6 }
0x116f   :  { %13803 = vmatprep.subr.bf16.mxu0 %v13802_v25 }
0x1171   :  { %13543 = vmatmul.mubr.msk.f32.gmra.mrb[50].mxu0 %vm7037_vm2, %v7977_v37 }
0x1172   :  { %13805 = vmatpush3.bf16.msra.mxu0 %v13802_v25  ;;  %13561 = vmatprep.mubr.msk.f32.mxu0 %vm7037_vm2, %v18085_v19  ;;  %v11607_v19 = vld [vmem:[%s18595_s6] ss:$0 sm:$0xff] }
0x1173   :  { %13807 = vmatprep.subr.bf16.mxu0 %v13806_v40 }
0x1176   :  { %13809 = vmatpush3.bf16.msra.mxu0 %v13806_v40 }
0x1179   :  { %13562 = vmatmul.mubr.msk.f32.vlgmr.msra.gmra.mrb[46].mxu0 %vm7037_vm2, %v18095_v21 }
0x117a   :  { %13564 = vmatprep.mubr.msk.f32.mxu0 %vm7037_vm2, %v18130_v17 }
0x117d   :  { %13565 = vmatmul.mubr.msk.f32.gmra.mrb[48].mxu0 %vm7037_vm2, %v8109_v4 }
0x117e   :  { %13567 = vmatprep.mubr.msk.f32.mxu0 %vm7037_vm2, %v8110_v7 }
0x1181   :  { %13568 = vmatmul.mubr.msk.f32.gmra.mrb[50].mxu0 %vm7037_vm2, %v8111_v42 }
0x124c   :  { %v13563_v28 = vpop.f32.mrb[46].mxu0 }
0x124d   :  { %v8248_v27 = vadd.f32 %v13563_v28, %v11607_v19  ;;  %v8205_v46 = vpop.f32.mrb[47].mxu0 }
0x124e   :  { %v8247_v21 = vadd.f32 %v11607_v19, %v8205_v46 }
0x124f   :  { %v8254_v63 = vmax.f32 %v8248_v27, 0.0 }
0x1250   :  { %v8253_v45 = vmax.f32 %v8247_v21, 0.0  ;;  %v13566_v17 = vpop.f32.mrb[48].mxu0 }
0x1251   :  { %8260 = vst.msk [vmem:[#allocation3 + $0x8] sm:$0xff] %vm7037_vm2, %v8254_v63  ;;  %v8250_v55 = vadd.f32 %v13566_v17, %v11607_v19  ;;  %v8215_v51 = vpop.f32.mrb[49].mxu0 }
0x1252   :  { %8259 = vst.msk [vmem:[#allocation3] sm:$0xff] %vm7037_vm2, %v8253_v45  ;;  %v8249_v16 = vadd.f32 %v11607_v19, %v8215_v51 }
0x1253   :  { %v8256_v39 = vmax.f32 %v8250_v55, 0.0 }
0x1254   :  { %v8255_v34 = vmax.f32 %v8249_v16, 0.0  ;;  %v13569_v58 = vpop.f32.mrb[50].mxu0 }
0x1255   :  { %8262 = vst.msk [vmem:[#allocation3 + $0x18] sm:$0xff] %vm7037_vm2, %v8256_v39  ;;  %v8252_v1 = vadd.f32 %v13569_v58, %v11607_v19  ;;  %v8225_v23 = vpop.f32.mrb[51].mxu0 }
0x1256   :  { %8261 = vst.msk [vmem:[#allocation3 + $0x10] sm:$0xff] %vm7037_vm2, %v8255_v34  ;;  %v8251_v14 = vadd.f32 %v11607_v19, %v8225_v23 }
0x1257   :  { %v8258_v5 = vmax.f32 %v8252_v1, 0.0 }
0x1258   :  { %v8257_v26 = vmax.f32 %v8251_v14, 0.0 }
0x1259   :  { %8265 = vst.msk [vmem:[#allocation3 + $0x28] sm:$0xf] %vm8264_vm3, %v8258_v5 }
0x125a   :  { %8263 = vst.msk [vmem:[#allocation3 + $0x20] sm:$0xff] %vm7037_vm2, %v8257_v26 }
0x125b   :  { %14266 = dma.done.wait [#allocation5], 8192 }
0x125c   :  { %14267 = vsyncadd [#allocation5], 4294959104  ;;  %v14279_v44 = vmov 0   ;;  %v8293_v18 = vld [vmem:[#allocation4 + $0x88] sm:$0xff]  ;;  %v8292_v62 = vld [vmem:[#allocation4 + $0x80] sm:$0xff] }
0x125d   :  { %8343 = vmatprep.mubr.bf16.mxu1 %v14279_v44  ;;  %v8297_v36 = vld [vmem:[#allocation4 + $0xa8] sm:$0xff]  ;;  %8311 = vmatprep.subr.bf16.mxu1 %v8293_v18  ;;  %v8296_v60 = vld [vmem:[#allocation4 + $0xa0] sm:$0xff]  ;;  %v8289_v33 = vld [vmem:[#allocation3 + $0x2] sm:$0x3] }
0x125e   :  { %8312 = vmatpush1.bf16.msra.mxu1 %v8292_v62  ;;  %v8301_v24 = vld [vmem:[#allocation4 + $0xc8] sm:$0xff]  ;;  %v8300_v12 = vld [vmem:[#allocation4 + $0xc0] sm:$0xff]  ;;  %v8295_v41 = vld [vmem:[#allocation4 + $0x98] sm:$0xff]  ;;  %v8290_v29 = vpack.c.bf16 %v8289_v33, %v8289_v33 }
0x125f   :  { %8313 = vmatprep.subr.bf16.mxu1 %v8297_v36  ;;  %v8305_v8 = vld [vmem:[#allocation4 + $0xe8] sm:$0xff]  ;;  %v8304_v53 = vld [vmem:[#allocation4 + $0xe0] sm:$0xff]  ;;  %v8294_v32 = vld [vmem:[#allocation4 + $0x90] sm:$0xff] }
0x1260   :  { %v8299_v9 = vld [vmem:[#allocation4 + $0xb8] sm:$0xff]  ;;  %v8298_v49 = vld [vmem:[#allocation4 + $0xb0] sm:$0xff]  ;;  %v8274_v50 = vld [vmem:[#allocation4 + $0x8] sm:$0xff] }
0x1261   :  { %v8303_v3 = vld [vmem:[#allocation4 + $0xd8] sm:$0xff]  ;;  %v8302_v61 = vld [vmem:[#allocation4 + $0xd0] sm:$0xff]  ;;  %v8273_v13 = vld [vmem:[#allocation4] sm:$0xff] }
0x1262   :  { %8314 = vmatpush1.bf16.msra.mxu1 %v8296_v60  ;;  %v8307_v10 = vld [vmem:[#allocation4 + $0xf8] sm:$0xff]  ;;  %v8306_v0 = vld [vmem:[#allocation4 + $0xf0] sm:$0xff]  ;;  %v8278_v47 = vld [vmem:[#allocation4 + $0x28] sm:$0xff] }
0x1263   :  { %8315 = vmatprep.subr.bf16.mxu1 %v8301_v24  ;;  %v8277_v15 = vld [vmem:[#allocation4 + $0x20] sm:$0xff]  ;;  %v8282_v11 = vld [vmem:[#allocation4 + $0x48] sm:$0xff]  ;;  %v8271_v52 = vld [vmem:[#allocation3] sm:$0x3] }
0x1264   :  { %v8281_v57 = vld [vmem:[#allocation4 + $0x40] sm:$0xff]  ;;  %v8286_v43 = vld [vmem:[#allocation4 + $0x68] sm:$0xff]  ;;  %v8276_v30 = vld [vmem:[#allocation4 + $0x18] sm:$0xff]  ;;  %v8272_v56 = vpack.c.bf16 %v8271_v52, %v8271_v52 }
0x1265   :  { %v8285_v48 = vld [vmem:[#allocation4 + $0x60] sm:$0xff]  ;;  %v8275_v38 = vld [vmem:[#allocation4 + $0x10] sm:$0xff]  ;;  %v8280_v6 = vld [vmem:[#allocation4 + $0x38] sm:$0xff] }
0x1266   :  { %8316 = vmatpush1.bf16.msra.mxu1 %v8300_v12  ;;  %v8279_v59 = vld [vmem:[#allocation4 + $0x30] sm:$0xff]  ;;  %v8284_v54 = vld [vmem:[#allocation4 + $0x58] sm:$0xff]  ;;  %v8482_v31 = vld [vmem:[#allocation4 + $0x108] sm:$0xff] }
0x1267   :  { %8317 = vmatprep.subr.bf16.mxu1 %v8305_v8  ;;  %v8283_v35 = vld [vmem:[#allocation4 + $0x50] sm:$0xff]  ;;  %v8288_v25 = vld [vmem:[#allocation4 + $0x78] sm:$0xff]  ;;  %v8481_v2 = vld [vmem:[#allocation4 + $0x100] sm:$0xff] }
0x1268   :  { %v8287_v20 = vld [vmem:[#allocation4 + $0x70] sm:$0xff]  ;;  %v8486_v22 = vld [vmem:[#allocation4 + $0x128] sm:$0xff]  ;;  %v8485_v40 = vld [vmem:[#allocation4 + $0x120] sm:$0xff] }
0x1269   :  { %v8490_v37 = vld [vmem:[#allocation4 + $0x148] sm:$0xff]  ;;  %v8489_v4 = vld [vmem:[#allocation4 + $0x140] sm:$0xff]  ;;  %v8478_v42 = vld [vmem:[#allocation3 + $0x4] sm:$0x3] }
0x126a   :  { %8318 = vmatpush1.bf16.msra.mxu1 %v8304_v53  ;;  %v8494_v7 = vld [vmem:[#allocation4 + $0x168] sm:$0xff]  ;;  %v8493_v19 = vld [vmem:[#allocation4 + $0x160] sm:$0xff]  ;;  %v8484_v28 = vld [vmem:[#allocation4 + $0x118] sm:$0xff]  ;;  %v8479_v27 = vpack.c.bf16 %v8478_v42, %v8478_v42 }
0x126b   :  { %8352 = vmatprep.subr.bf16.mxu1 %v8295_v41  ;;  %v8483_v46 = vld [vmem:[#allocation4 + $0x110] sm:$0xff]  ;;  %v8488_v21 = vld [vmem:[#allocation4 + $0x138] sm:$0xff]  ;;  %v8590_v16 = vld [vmem:[#allocation4 + $0x188] sm:$0xff] }
0x126c   :  { %v8487_v63 = vld [vmem:[#allocation4 + $0x130] sm:$0xff]  ;;  %v8492_v45 = vld [vmem:[#allocation4 + $0x158] sm:$0xff]  ;;  %v8589_v39 = vld [vmem:[#allocation4 + $0x180] sm:$0xff] }
0x126d   :  { %11608 = vmatmul.mubr.msk.bf16.vlgmr.msra.gmra.mrb[52].mxu1 %vm7037_vm2, %v8290_v29  ;;  %v8491_v17 = vld [vmem:[#allocation4 + $0x150] sm:$0xff]  ;;  %v8496_v55 = vld [vmem:[#allocation4 + $0x178] sm:$0xff]  ;;  %v8594_v34 = vld [vmem:[#allocation4 + $0x1a8] sm:$0xff] }
0x126e   :  { %8353 = vmatpush1.bf16.msra.mxu1 %v8294_v32  ;;  %8384 = vmatprep.mubr.bf16.mxu1 %v14279_v44  ;;  %v8495_v51 = vld [vmem:[#allocation4 + $0x170] sm:$0xff]  ;;  %v8593_v58 = vld [vmem:[#allocation4 + $0x1a0] sm:$0xff]  ;;  %v8598_v1 = vld [vmem:[#allocation4 + $0x1c8] sm:$0xff] }
0x126f   :  { %8354 = vmatprep.subr.bf16.mxu1 %v8299_v9  ;;  %v8597_v23 = vld [vmem:[#allocation4 + $0x1c0] sm:$0xff]  ;;  %v8602_v14 = vld [vmem:[#allocation4 + $0x1e8] sm:$0xff]  ;;  %v8586_v5 = vld [vmem:[#allocation3 + $0x6] sm:$0x3] }
0x1270   :  { %v8601_v26 = vld [vmem:[#allocation4 + $0x1e0] sm:$0xff]  ;;  %v8592_v18 = vld [vmem:[#allocation4 + $0x198] sm:$0xff]  ;;  %v8587_v62 = vpack.c.bf16 %v8586_v5, %v8586_v5  ;;  %v8591_v36 = vld [vmem:[#allocation4 + $0x190] sm:$0xff] }
0x1271   :  { %v8596_v60 = vld [vmem:[#allocation4 + $0x1b8] sm:$0xff]  ;;  %v8595_v24 = vld [vmem:[#allocation4 + $0x1b0] sm:$0xff] }
0x1272   :  { %8355 = vmatpush1.bf16.msra.mxu1 %v8298_v49  ;;  %v8600_v12 = vld [vmem:[#allocation4 + $0x1d8] sm:$0xff]  ;;  %v8599_v8 = vld [vmem:[#allocation4 + $0x1d0] sm:$0xff] }
0x1273   :  { %8356 = vmatprep.subr.bf16.mxu1 %v8303_v3  ;;  %v8604_v33 = vld [vmem:[#allocation4 + $0x1f8] sm:$0xff]  ;;  %v8603_v53 = vld [vmem:[#allocation4 + $0x1f0] sm:$0xff] }
0x1276   :  { %8357 = vmatpush1.bf16.msra.mxu1 %v8302_v61 }
0x1277   :  { %8358 = vmatprep.subr.bf16.mxu1 %v8307_v10 }
0x127a   :  { %8359 = vmatpush1.bf16.msra.mxu1 %v8306_v0 }
0x127b   :  { %8396 = vmatprep.subr.bf16.mxu1 %v8274_v50 }
0x127d   :  { %11609 = vmatmul.mubr.msk.bf16.vlgmr.msra.gmra.mrb[56].mxu1 %vm7037_vm2, %v8290_v29 }
0x127e   :  { %8397 = vmatpush1.bf16.msra.mxu1 %v8273_v13  ;;  %8428 = vmatprep.mubr.bf16.mxu1 %v14279_v44 }
0x127f   :  { %8398 = vmatprep.subr.bf16.mxu1 %v8278_v47 }
0x1282   :  { %8399 = vmatpush1.bf16.msra.mxu1 %v8277_v15 }
0x1283   :  { %8400 = vmatprep.subr.bf16.mxu1 %v8282_v11 }
0x1286   :  { %8401 = vmatpush1.bf16.msra.mxu1 %v8281_v57 }
0x1287   :  { %8402 = vmatprep.subr.bf16.mxu1 %v8286_v43 }
0x128a   :  { %8403 = vmatpush1.bf16.msra.mxu1 %v8285_v48 }
0x128b   :  { %8437 = vmatprep.subr.bf16.mxu1 %v8276_v30 }
0x128d   :  { %11610 = vmatmul.mubr.msk.bf16.vlgmr.msra.gmra.mrb[60].mxu1 %vm7037_vm2, %v8272_v56 }
0x128e   :  { %8438 = vmatpush1.bf16.msra.mxu1 %v8275_v38  ;;  %8469 = vmatprep.mubr.bf16.mxu1 %v14279_v44 }
0x128f   :  { %8439 = vmatprep.subr.bf16.mxu1 %v8280_v6 }
0x1292   :  { %8440 = vmatpush1.bf16.msra.mxu1 %v8279_v59 }
0x1293   :  { %8441 = vmatprep.subr.bf16.mxu1 %v8284_v54 }
0x1296   :  { %8442 = vmatpush1.bf16.msra.mxu1 %v8283_v35 }
0x1297   :  { %8443 = vmatprep.subr.bf16.mxu1 %v8288_v25 }
0x129a   :  { %8444 = vmatpush1.bf16.msra.mxu1 %v8287_v20 }
0x129b   :  { %8500 = vmatprep.subr.bf16.mxu1 %v8482_v31 }
0x129d   :  { %11611 = vmatmul.mubr.msk.bf16.vlgmr.msra.gmra.mrb[64].mxu1 %vm7037_vm2, %v8272_v56 }
0x129e   :  { %8501 = vmatpush1.bf16.msra.mxu1 %v8481_v2  ;;  %8532 = vmatprep.mubr.bf16.mxu1 %v14279_v44 }
0x129f   :  { %8502 = vmatprep.subr.bf16.mxu1 %v8486_v22 }
0x12a2   :  { %8503 = vmatpush1.bf16.msra.mxu1 %v8485_v40 }
0x12a3   :  { %8504 = vmatprep.subr.bf16.mxu1 %v8490_v37 }
0x12a6   :  { %8505 = vmatpush1.bf16.msra.mxu1 %v8489_v4 }
0x12a7   :  { %8506 = vmatprep.subr.bf16.mxu1 %v8494_v7 }
0x12aa   :  { %8507 = vmatpush1.bf16.msra.mxu1 %v8493_v19 }
0x12ab   :  { %8541 = vmatprep.subr.bf16.mxu1 %v8484_v28 }
0x12ad   :  { %11612 = vmatmul.mubr.msk.bf16.vlgmr.msra.gmra.mrb[68].mxu1 %vm7037_vm2, %v8479_v27 }
0x12ae   :  { %8542 = vmatpush1.bf16.msra.mxu1 %v8483_v46  ;;  %8573 = vmatprep.mubr.bf16.mxu1 %v14279_v44 }
0x12af   :  { %8543 = vmatprep.subr.bf16.mxu1 %v8488_v21 }
0x12b2   :  { %8544 = vmatpush1.bf16.msra.mxu1 %v8487_v63 }
0x12b3   :  { %8545 = vmatprep.subr.bf16.mxu1 %v8492_v45 }
0x12b6   :  { %8546 = vmatpush1.bf16.msra.mxu1 %v8491_v17 }
0x12b7   :  { %8547 = vmatprep.subr.bf16.mxu1 %v8496_v55 }
0x12ba   :  { %8548 = vmatpush1.bf16.msra.mxu1 %v8495_v51 }
0x12bb   :  { %8608 = vmatprep.subr.bf16.mxu1 %v8590_v16 }
0x12bd   :  { %11613 = vmatmul.mubr.msk.bf16.vlgmr.msra.gmra.mrb[72].mxu1 %vm7037_vm2, %v8479_v27 }
0x12be   :  { %8609 = vmatpush1.bf16.msra.mxu1 %v8589_v39  ;;  %8640 = vmatprep.mubr.bf16.mxu1 %v14279_v44 }
0x12bf   :  { %8610 = vmatprep.subr.bf16.mxu1 %v8594_v34 }
0x12c2   :  { %8611 = vmatpush1.bf16.msra.mxu1 %v8593_v58 }
0x12c3   :  { %8612 = vmatprep.subr.bf16.mxu1 %v8598_v1 }
0x12c6   :  { %8613 = vmatpush1.bf16.msra.mxu1 %v8597_v23 }
0x12c7   :  { %8614 = vmatprep.subr.bf16.mxu1 %v8602_v14 }
0x12ca   :  { %8615 = vmatpush1.bf16.msra.mxu1 %v8601_v26 }
0x12cb   :  { %8649 = vmatprep.subr.bf16.mxu1 %v8592_v18 }
0x12cd   :  { %11614 = vmatmul.mubr.msk.bf16.vlgmr.msra.gmra.mrb[76].mxu1 %vm7037_vm2, %v8587_v62 }
0x12ce   :  { %8650 = vmatpush1.bf16.msra.mxu1 %v8591_v36  ;;  %8681 = vmatprep.mubr.bf16.mxu1 %v14279_v44 }
0x12cf   :  { %8651 = vmatprep.subr.bf16.mxu1 %v8596_v60 }
0x12d2   :  { %8652 = vmatpush1.bf16.msra.mxu1 %v8595_v24 }
0x12d3   :  { %8653 = vmatprep.subr.bf16.mxu1 %v8600_v12 }
0x12d6   :  { %8654 = vmatpush1.bf16.msra.mxu1 %v8599_v8 }
0x12d7   :  { %8655 = vmatprep.subr.bf16.mxu1 %v8604_v33 }
0x12da   :  { %8656 = vmatpush1.bf16.msra.mxu1 %v8603_v53 }
0x12dd   :  { %11615 = vmatmul.mubr.msk.bf16.vlgmr.msra.gmra.mrb[80].mxu1 %vm7037_vm2, %v8587_v62 }
0x1340   :  { %v8345_v41 = vpop.f32.mrb[52].mxu1 }
0x1341   :  { %v8347_v29 = vpop.f32.mrb[53].mxu1 }
0x1342   :  { %v8349_v32 = vpop.f32.mrb[54].mxu1 }
0x1343   :  { %v8350_v9 = vpop.f32.mrb[55].mxu1 }
0x1350   :  { %v8386_v49 = vpop.f32.mrb[56].mxu1 }
0x1351   :  { %v8388_v3 = vpop.f32.mrb[57].mxu1 }
0x1352   :  { %v8390_v61 = vpop.f32.mrb[58].mxu1 }
0x1353   :  { %v8391_v10 = vpop.f32.mrb[59].mxu1 }
0x1360   :  { %v8430_v0 = vpop.f32.mrb[60].mxu1 }
0x1361   :  { %v8431_v50 = vadd.f32 %v8430_v0, %v8345_v41  ;;  %v8432_v13 = vpop.f32.mrb[61].mxu1 }
0x1362   :  { %v8433_v47 = vadd.f32 %v8432_v13, %v8347_v29  ;;  %v8434_v15 = vpop.f32.mrb[62].mxu1 }
0x1363   :  { %v8435_v11 = vpop.f32.mrb[63].mxu1 }
0x1370   :  { %v8471_v57 = vpop.f32.mrb[64].mxu1 }
0x1371   :  { %v8472_v43 = vadd.f32 %v8471_v57, %v8386_v49  ;;  %v8473_v52 = vpop.f32.mrb[65].mxu1 }
0x1372   :  { %v8474_v48 = vadd.f32 %v8473_v52, %v8388_v3  ;;  %v8475_v30 = vpop.f32.mrb[66].mxu1 }
0x1373   :  { %v8476_v56 = vpop.f32.mrb[67].mxu1 }
0x1380   :  { %v8534_v38 = vpop.f32.mrb[68].mxu1 }
0x1381   :  { %v8582_v6 = vadd.f32 %v8534_v38, %v8431_v50  ;;  %v8536_v59 = vpop.f32.mrb[69].mxu1 }
0x1382   :  { %v8583_v54 = vadd.f32 %v8536_v59, %v8433_v47  ;;  %v8538_v35 = vpop.f32.mrb[70].mxu1 }
0x1383   :  { %v8539_v25 = vpop.f32.mrb[71].mxu1 }
0x1390   :  { %v8575_v20 = vpop.f32.mrb[72].mxu1 }
0x1391   :  { %v8584_v31 = vadd.f32 %v8575_v20, %v8472_v43  ;;  %v8577_v2 = vpop.f32.mrb[73].mxu1 }
0x1392   :  { %v8585_v22 = vadd.f32 %v8577_v2, %v8474_v48  ;;  %v8579_v40 = vpop.f32.mrb[74].mxu1 }
0x1393   :  { %v8580_v37 = vpop.f32.mrb[75].mxu1 }
0x13a0   :  { %v8642_v4 = vpop.f32.mrb[76].mxu1 }
0x13a1   :  { %v18295_v7 = vadd.f32 %v8642_v4, %v8582_v6  ;;  %v8644_v42 = vpop.f32.mrb[77].mxu1 }
0x13a2   :  { %v18297_v19 = vadd.f32 %v8644_v42, %v8583_v54  ;;  %v8646_v28 = vpop.f32.mrb[78].mxu1 }
0x13a3   :  { %v8647_v27 = vpop.f32.mrb[79].mxu1 }
0x13b0   :  { %v8683_v46 = vpop.f32.mrb[80].mxu1 }
0x13b1   :  { %v18299_v21 = vadd.f32 %v8683_v46, %v8584_v31  ;;  %v8685_v63 = vpop.f32.mrb[81].mxu1 }
0x13b2   :  { %v18301_v45 = vadd.f32 %v8685_v63, %v8585_v22  ;;  %v8687_v17 = vpop.f32.mrb[82].mxu1 }
0x13b3   :  { %v8688_v55 = vpop.f32.mrb[83].mxu1 }
0x13b4   :  { %14268 = dma.done.wait [#allocation5 + $0x1], 8192 }
0x13b5   :  { %14269 = vsyncadd [#allocation5 + $0x1], 4294959104  ;;  %8749 = vmatprep.mubr.bf16.mxu1 %v14279_v44  ;;  %8790 = vmatprep.mubr.bf16.mxu0 %v14279_v44  ;;  %v8699_v51 = vld [vmem:[#allocation4 + $0x208] sm:$0xff]  ;;  %v8701_v16 = vld [vmem:[#allocation4 + $0x218] sm:$0xff] }
0x13b6   :  { %v8698_v39 = vld [vmem:[#allocation4 + $0x200] sm:$0xff]  ;;  %8717 = vmatprep.subr.bf16.mxu1 %v8699_v51  ;;  %8758 = vmatprep.subr.bf16.mxu0 %v8701_v16  ;;  %v8700_v34 = vld [vmem:[#allocation4 + $0x210] sm:$0xff]  ;;  %v8703_v58 = vld [vmem:[#allocation4 + $0x228] sm:$0xff] }
0x13b7   :  { %v8705_v1 = vld [vmem:[#allocation4 + $0x238] sm:$0xff]  ;;  %8718 = vmatpush1.bf16.msra.mxu1 %v8698_v39  ;;  %8759 = vmatpush1.bf16.msra.mxu0 %v8700_v34  ;;  %v8702_v23 = vld [vmem:[#allocation4 + $0x220] sm:$0xff]  ;;  %v8704_v14 = vld [vmem:[#allocation4 + $0x230] sm:$0xff] }
0x13b8   :  { %8719 = vmatprep.subr.bf16.mxu1 %v8703_v58  ;;  %8760 = vmatprep.subr.bf16.mxu0 %v8705_v1  ;;  %v8707_v5 = vld [vmem:[#allocation4 + $0x248] sm:$0xff]  ;;  %v8709_v26 = vld [vmem:[#allocation4 + $0x258] sm:$0xff]  ;;  %v8706_v18 = vld [vmem:[#allocation4 + $0x240] sm:$0xff] }
0x13b9   :  { %v8708_v62 = vld [vmem:[#allocation4 + $0x250] sm:$0xff]  ;;  %v8711_v36 = vld [vmem:[#allocation4 + $0x268] sm:$0xff]  ;;  %v8713_v60 = vld [vmem:[#allocation4 + $0x278] sm:$0xff] }
0x13ba   :  { %v8696_v24 = vld [vmem:[#allocation3 + $0xc] sm:$0x3]  ;;  %v8710_v12 = vld [vmem:[#allocation4 + $0x260] sm:$0xff]  ;;  %v8712_v8 = vld [vmem:[#allocation4 + $0x270] sm:$0xff] }
0x13bb   :  { %8720 = vmatpush1.bf16.msra.mxu1 %v8702_v23  ;;  %8761 = vmatpush1.bf16.msra.mxu0 %v8704_v14  ;;  %v8807_v33 = vld [vmem:[#allocation4 + $0x288] sm:$0xff]  ;;  %v8809_v53 = vld [vmem:[#allocation4 + $0x298] sm:$0xff]  ;;  %v8697_v41 = vpack.c.bf16 %v8696_v24, %v8696_v24  ;;  %v8806_v29 = vld [vmem:[#allocation4 + $0x280] sm:$0xff] }
0x13bc   :  { %8721 = vmatprep.subr.bf16.mxu1 %v8707_v5  ;;  %8762 = vmatprep.subr.bf16.mxu0 %v8709_v26  ;;  %v8808_v32 = vld [vmem:[#allocation4 + $0x290] sm:$0xff]  ;;  %v8811_v9 = vld [vmem:[#allocation4 + $0x2a8] sm:$0xff]  ;;  %v8813_v49 = vld [vmem:[#allocation4 + $0x2b8] sm:$0xff] }
0x13bd   :  { %v8810_v3 = vld [vmem:[#allocation4 + $0x2a0] sm:$0xff]  ;;  %v8812_v61 = vld [vmem:[#allocation4 + $0x2b0] sm:$0xff]  ;;  %v8815_v10 = vld [vmem:[#allocation4 + $0x2c8] sm:$0xff] }
0x13be   :  { %v8817_v0 = vld [vmem:[#allocation4 + $0x2d8] sm:$0xff]  ;;  %v8814_v50 = vld [vmem:[#allocation4 + $0x2c0] sm:$0xff]  ;;  %v8816_v13 = vld [vmem:[#allocation4 + $0x2d0] sm:$0xff] }
0x13bf   :  { %8722 = vmatpush1.bf16.msra.mxu1 %v8706_v18  ;;  %8763 = vmatpush1.bf16.msra.mxu0 %v8708_v62  ;;  %v8819_v47 = vld [vmem:[#allocation4 + $0x2e8] sm:$0xff]  ;;  %v8821_v15 = vld [vmem:[#allocation4 + $0x2f8] sm:$0xff]  ;;  %v8818_v57 = vld [vmem:[#allocation4 + $0x2e0] sm:$0xff] }
0x13c0   :  { %8723 = vmatprep.subr.bf16.mxu1 %v8711_v36  ;;  %8764 = vmatprep.subr.bf16.mxu0 %v8713_v60  ;;  %v8803_v11 = vld [vmem:[#allocation3 + $0xe] sm:$0x3]  ;;  %v8820_v43 = vld [vmem:[#allocation4 + $0x2f0] sm:$0xff]  ;;  %v8915_v52 = vld [vmem:[#allocation4 + $0x308] sm:$0xff] }
0x13c1   :  { %v8917_v48 = vld [vmem:[#allocation4 + $0x318] sm:$0xff]  ;;  %v8804_v30 = vpack.c.bf16 %v8803_v11, %v8803_v11  ;;  %v8914_v56 = vld [vmem:[#allocation4 + $0x300] sm:$0xff]  ;;  %v8916_v38 = vld [vmem:[#allocation4 + $0x310] sm:$0xff] }
0x13c2   :  { %v8919_v6 = vld [vmem:[#allocation4 + $0x328] sm:$0xff]  ;;  %v8921_v59 = vld [vmem:[#allocation4 + $0x338] sm:$0xff]  ;;  %v8918_v54 = vld [vmem:[#allocation4 + $0x320] sm:$0xff] }
0x13c3   :  { %8724 = vmatpush1.bf16.msra.mxu1 %v8710_v12  ;;  %8765 = vmatpush1.bf16.msra.mxu0 %v8712_v8  ;;  %v8920_v35 = vld [vmem:[#allocation4 + $0x330] sm:$0xff]  ;;  %v8923_v25 = vld [vmem:[#allocation4 + $0x348] sm:$0xff]  ;;  %v8925_v20 = vld [vmem:[#allocation4 + $0x358] sm:$0xff] }
0x13c4   :  { %8825 = vmatprep.subr.bf16.mxu1 %v8807_v33  ;;  %8866 = vmatprep.subr.bf16.mxu0 %v8809_v53  ;;  %v8922_v31 = vld [vmem:[#allocation4 + $0x340] sm:$0xff]  ;;  %v8924_v2 = vld [vmem:[#allocation4 + $0x350] sm:$0xff]  ;;  %v8927_v22 = vld [vmem:[#allocation4 + $0x368] sm:$0xff] }
0x13c5   :  { %v8929_v40 = vld [vmem:[#allocation4 + $0x378] sm:$0xff]  ;;  %v8911_v37 = vld [vmem:[#allocation3 + $0x10] sm:$0x3]  ;;  %v8928_v42 = vld [vmem:[#allocation4 + $0x370] sm:$0xff] }
0x13c6   :  { %11616 = vmatmul.mubr.msk.bf16.vlgmr.msra.gmra.mrb[84].mxu1 %vm7037_vm2, %v8697_v41  ;;  %11617 = vmatmul.mubr.msk.bf16.vlgmr.msra.gmra.mrb[52].mxu0 %vm7037_vm2, %v8697_v41  ;;  %v8926_v4 = vld [vmem:[#allocation4 + $0x360] sm:$0xff]  ;;  %v9023_v28 = vld [vmem:[#allocation4 + $0x388] sm:$0xff]  ;;  %v9025_v27 = vld [vmem:[#allocation4 + $0x398] sm:$0xff]  ;;  %v8912_v46 = vpack.c.bf16 %v8911_v37, %v8911_v37 }
0x13c7   :  { %8826 = vmatpush1.bf16.msra.mxu1 %v8806_v29  ;;  %8867 = vmatpush1.bf16.msra.mxu0 %v8808_v32  ;;  %v9022_v63 = vld [vmem:[#allocation4 + $0x380] sm:$0xff]  ;;  %v9024_v17 = vld [vmem:[#allocation4 + $0x390] sm:$0xff]  ;;  %v9027_v55 = vld [vmem:[#allocation4 + $0x3a8] sm:$0xff] }
0x13c8   :  { %8827 = vmatprep.subr.bf16.mxu1 %v8811_v9  ;;  %8868 = vmatprep.subr.bf16.mxu0 %v8813_v49  ;;  %v9029_v51 = vld [vmem:[#allocation4 + $0x3b8] sm:$0xff]  ;;  %v9026_v16 = vld [vmem:[#allocation4 + $0x3a0] sm:$0xff]  ;;  %v9028_v39 = vld [vmem:[#allocation4 + $0x3b0] sm:$0xff] }
0x13c9   :  { %8857 = vmatprep.mubr.bf16.mxu1 %v14279_v44  ;;  %8898 = vmatprep.mubr.bf16.mxu0 %v14279_v44  ;;  %v9031_v34 = vld [vmem:[#allocation4 + $0x3c8] sm:$0xff]  ;;  %v9033_v58 = vld [vmem:[#allocation4 + $0x3d8] sm:$0xff]  ;;  %v9030_v1 = vld [vmem:[#allocation4 + $0x3c0] sm:$0xff] }
0x13ca   :  { %v9032_v23 = vld [vmem:[#allocation4 + $0x3d0] sm:$0xff]  ;;  %v9035_v14 = vld [vmem:[#allocation4 + $0x3e8] sm:$0xff]  ;;  %v9037_v5 = vld [vmem:[#allocation4 + $0x3f8] sm:$0xff] }
0x13cb   :  { %8828 = vmatpush1.bf16.msra.mxu1 %v8810_v3  ;;  %8869 = vmatpush1.bf16.msra.mxu0 %v8812_v61  ;;  %v9019_v26 = vld [vmem:[#allocation3 + $0x12] sm:$0x3]  ;;  %v9036_v62 = vld [vmem:[#allocation4 + $0x3f0] sm:$0xff] }
0x13cc   :  { %8829 = vmatprep.subr.bf16.mxu1 %v8815_v10  ;;  %8870 = vmatprep.subr.bf16.mxu0 %v8817_v0  ;;  %v9034_v18 = vld [vmem:[#allocation4 + $0x3e0] sm:$0xff]  ;;  %v9020_v36 = vpack.c.bf16 %v9019_v26, %v9019_v26 }
0x13cf   :  { %8830 = vmatpush1.bf16.msra.mxu1 %v8814_v50  ;;  %8871 = vmatpush1.bf16.msra.mxu0 %v8816_v13 }
0x13d0   :  { %8831 = vmatprep.subr.bf16.mxu1 %v8819_v47  ;;  %8872 = vmatprep.subr.bf16.mxu0 %v8821_v15 }
0x13d3   :  { %8832 = vmatpush1.bf16.msra.mxu1 %v8818_v57  ;;  %8873 = vmatpush1.bf16.msra.mxu0 %v8820_v43 }
0x13d4   :  { %8933 = vmatprep.subr.bf16.mxu1 %v8915_v52  ;;  %8974 = vmatprep.subr.bf16.mxu0 %v8917_v48 }
0x13d6   :  { %11618 = vmatmul.mubr.msk.bf16.vlgmr.msra.gmra.mrb[88].mxu1 %vm7037_vm2, %v8804_v30  ;;  %11619 = vmatmul.mubr.msk.bf16.vlgmr.msra.gmra.mrb[56].mxu0 %vm7037_vm2, %v8804_v30 }
0x13d7   :  { %8934 = vmatpush1.bf16.msra.mxu1 %v8914_v56  ;;  %8975 = vmatpush1.bf16.msra.mxu0 %v8916_v38 }
0x13d8   :  { %8935 = vmatprep.subr.bf16.mxu1 %v8919_v6  ;;  %8976 = vmatprep.subr.bf16.mxu0 %v8921_v59 }
0x13d9   :  { %8965 = vmatprep.mubr.bf16.mxu1 %v14279_v44  ;;  %9006 = vmatprep.mubr.bf16.mxu0 %v14279_v44 }
0x13db   :  { %8936 = vmatpush1.bf16.msra.mxu1 %v8918_v54  ;;  %8977 = vmatpush1.bf16.msra.mxu0 %v8920_v35 }
0x13dc   :  { %8937 = vmatprep.subr.bf16.mxu1 %v8923_v25  ;;  %8978 = vmatprep.subr.bf16.mxu0 %v8925_v20 }
0x13df   :  { %8938 = vmatpush1.bf16.msra.mxu1 %v8922_v31  ;;  %8979 = vmatpush1.bf16.msra.mxu0 %v8924_v2 }
0x13e0   :  { %8939 = vmatprep.subr.bf16.mxu1 %v8927_v22  ;;  %8980 = vmatprep.subr.bf16.mxu0 %v8929_v40 }
0x13e3   :  { %8940 = vmatpush1.bf16.msra.mxu1 %v8926_v4  ;;  %8981 = vmatpush1.bf16.msra.mxu0 %v8928_v42 }
0x13e4   :  { %9041 = vmatprep.subr.bf16.mxu1 %v9023_v28  ;;  %9082 = vmatprep.subr.bf16.mxu0 %v9025_v27 }
0x13e6   :  { %11620 = vmatmul.mubr.msk.bf16.vlgmr.msra.gmra.mrb[92].mxu1 %vm7037_vm2, %v8912_v46  ;;  %11621 = vmatmul.mubr.msk.bf16.vlgmr.msra.gmra.mrb[60].mxu0 %vm7037_vm2, %v8912_v46 }
0x13e7   :  { %9042 = vmatpush1.bf16.msra.mxu1 %v9022_v63  ;;  %9083 = vmatpush1.bf16.msra.mxu0 %v9024_v17 }
0x13e8   :  { %9043 = vmatprep.subr.bf16.mxu1 %v9027_v55  ;;  %9084 = vmatprep.subr.bf16.mxu0 %v9029_v51 }
0x13e9   :  { %9073 = vmatprep.mubr.bf16.mxu1 %v14279_v44  ;;  %9114 = vmatprep.mubr.bf16.mxu0 %v14279_v44 }
0x13eb   :  { %9044 = vmatpush1.bf16.msra.mxu1 %v9026_v16  ;;  %9085 = vmatpush1.bf16.msra.mxu0 %v9028_v39 }
0x13ec   :  { %9045 = vmatprep.subr.bf16.mxu1 %v9031_v34  ;;  %9086 = vmatprep.subr.bf16.mxu0 %v9033_v58 }
0x13ef   :  { %9046 = vmatpush1.bf16.msra.mxu1 %v9030_v1  ;;  %9087 = vmatpush1.bf16.msra.mxu0 %v9032_v23 }
0x13f0   :  { %9047 = vmatprep.subr.bf16.mxu1 %v9035_v14  ;;  %9088 = vmatprep.subr.bf16.mxu0 %v9037_v5 }
0x13f3   :  { %9048 = vmatpush1.bf16.msra.mxu1 %v9034_v18  ;;  %9089 = vmatpush1.bf16.msra.mxu0 %v9036_v62 }
0x13f6   :  { %11622 = vmatmul.mubr.msk.bf16.vlgmr.msra.gmra.mrb[100].mxu1 %vm7037_vm2, %v9020_v36  ;;  %11623 = vmatmul.mubr.msk.bf16.vlgmr.msra.gmra.mrb[64].mxu0 %vm7037_vm2, %v9020_v36 }
0x1499   :  { %v8751_v60 = vpop.f32.mrb[84].mxu1  ;;  %v8792_v24 = vpop.f32.mrb[52].mxu0 }
0x149a   :  { %v8753_v12 = vpop.f32.mrb[85].mxu1  ;;  %v8794_v8 = vpop.f32.mrb[53].mxu0  ;;  %v8799_v32 = vadd.f32 %v8751_v60, %v18295_v7  ;;  %v8801_v9 = vadd.f32 %v8792_v24, %v18299_v21 }
0x149b   :  { %v8755_v33 = vpop.f32.mrb[86].mxu1  ;;  %v8796_v53 = vpop.f32.mrb[54].mxu0  ;;  %v8800_v49 = vadd.f32 %v8753_v12, %v18297_v19  ;;  %v8802_v3 = vadd.f32 %v8794_v8, %v18301_v45 }
0x149c   :  { %v8756_v41 = vpop.f32.mrb[87].mxu1  ;;  %v8797_v29 = vpop.f32.mrb[55].mxu0 }
0x14a9   :  { %v8859_v61 = vpop.f32.mrb[88].mxu1  ;;  %v8900_v10 = vpop.f32.mrb[56].mxu0 }
0x14aa   :  { %v8907_v0 = vadd.f32 %v8859_v61, %v8799_v32  ;;  %v8909_v50 = vadd.f32 %v8900_v10, %v8801_v9  ;;  %v8861_v13 = vpop.f32.mrb[89].mxu1  ;;  %v8902_v47 = vpop.f32.mrb[57].mxu0 }
0x14ab   :  { %v8908_v15 = vadd.f32 %v8861_v13, %v8800_v49  ;;  %v8910_v11 = vadd.f32 %v8902_v47, %v8802_v3  ;;  %v8863_v57 = vpop.f32.mrb[90].mxu1  ;;  %v8904_v43 = vpop.f32.mrb[58].mxu0 }
0x14ac   :  { %v8864_v52 = vpop.f32.mrb[91].mxu1  ;;  %v8905_v48 = vpop.f32.mrb[59].mxu0 }
0x14b9   :  { %v8967_v30 = vpop.f32.mrb[92].mxu1  ;;  %v9008_v7 = vpop.f32.mrb[60].mxu0 }
0x14ba   :  { %v9015_v56 = vadd.f32 %v8967_v30, %v8907_v0  ;;  %v9017_v21 = vadd.f32 %v9008_v7, %v8909_v50  ;;  %v8969_v38 = vpop.f32.mrb[93].mxu1  ;;  %v9010_v19 = vpop.f32.mrb[61].mxu0 }
0x14bb   :  { %v9016_v6 = vadd.f32 %v8969_v38, %v8908_v15  ;;  %v9018_v45 = vadd.f32 %v9010_v19, %v8910_v11  ;;  %v8971_v59 = vpop.f32.mrb[94].mxu1  ;;  %v9012_v54 = vpop.f32.mrb[62].mxu0 }
0x14bc   :  { %v8972_v35 = vpop.f32.mrb[95].mxu1  ;;  %v9013_v25 = vpop.f32.mrb[63].mxu0 }
0x14c9   :  { %v9075_v20 = vpop.f32.mrb[100].mxu1  ;;  %v9116_v31 = vpop.f32.mrb[64].mxu0 }
0x14ca   :  { %v18323_v2 = vadd.f32 %v9075_v20, %v9015_v56  ;;  %v18325_v22 = vadd.f32 %v9116_v31, %v9017_v21  ;;  %v9077_v40 = vpop.f32.mrb[101].mxu1  ;;  %v9118_v37 = vpop.f32.mrb[65].mxu0 }
0x14cb   :  { %v18327_v4 = vadd.f32 %v9077_v40, %v9016_v6  ;;  %v18329_v42 = vadd.f32 %v9118_v37, %v9018_v45  ;;  %v9079_v28 = vpop.f32.mrb[102].mxu1  ;;  %v9120_v27 = vpop.f32.mrb[66].mxu0 }
0x14cc   :  { %v9080_v46 = vpop.f32.mrb[103].mxu1  ;;  %v9121_v63 = vpop.f32.mrb[67].mxu0 }
0x14cd   :  { %14270 = dma.done.wait [#allocation5 + $0x2], 8192 }
0x14ce   :  { %14271 = vsyncadd [#allocation5 + $0x2], 4294959104  ;;  %9182 = vmatprep.mubr.bf16.mxu1 %v14279_v44  ;;  %9223 = vmatprep.mubr.bf16.mxu0 %v14279_v44  ;;  %v9132_v17 = vld [vmem:[#allocation4 + $0x408] sm:$0xff]  ;;  %v9134_v55 = vld [vmem:[#allocation4 + $0x418] sm:$0xff] }
0x14cf   :  { %v9131_v51 = vld [vmem:[#allocation4 + $0x400] sm:$0xff]  ;;  %9150 = vmatprep.subr.bf16.mxu1 %v9132_v17  ;;  %9191 = vmatprep.subr.bf16.mxu0 %v9134_v55  ;;  %v9133_v16 = vld [vmem:[#allocation4 + $0x410] sm:$0xff]  ;;  %v9136_v39 = vld [vmem:[#allocation4 + $0x428] sm:$0xff] }
0x14d0   :  { %v9138_v34 = vld [vmem:[#allocation4 + $0x438] sm:$0xff]  ;;  %9151 = vmatpush1.bf16.msra.mxu1 %v9131_v51  ;;  %9192 = vmatpush1.bf16.msra.mxu0 %v9133_v16  ;;  %v9135_v58 = vld [vmem:[#allocation4 + $0x420] sm:$0xff]  ;;  %v9137_v1 = vld [vmem:[#allocation4 + $0x430] sm:$0xff] }
0x14d1   :  { %9152 = vmatprep.subr.bf16.mxu1 %v9136_v39  ;;  %9193 = vmatprep.subr.bf16.mxu0 %v9138_v34  ;;  %v9140_v23 = vld [vmem:[#allocation4 + $0x448] sm:$0xff]  ;;  %v9142_v14 = vld [vmem:[#allocation4 + $0x458] sm:$0xff]  ;;  %v9139_v5 = vld [vmem:[#allocation4 + $0x440] sm:$0xff] }
0x14d2   :  { %v9141_v26 = vld [vmem:[#allocation4 + $0x450] sm:$0xff]  ;;  %v9144_v18 = vld [vmem:[#allocation4 + $0x468] sm:$0xff]  ;;  %v9146_v62 = vld [vmem:[#allocation4 + $0x478] sm:$0xff] }
0x14d3   :  { %v9129_v36 = vld [vmem:[#allocation3 + $0x18] sm:$0x3]  ;;  %v9143_v60 = vld [vmem:[#allocation4 + $0x460] sm:$0xff]  ;;  %v9145_v24 = vld [vmem:[#allocation4 + $0x470] sm:$0xff] }
0x14d4   :  { %9153 = vmatpush1.bf16.msra.mxu1 %v9135_v58  ;;  %9194 = vmatpush1.bf16.msra.mxu0 %v9137_v1  ;;  %v9240_v12 = vld [vmem:[#allocation4 + $0x488] sm:$0xff]  ;;  %v9242_v8 = vld [vmem:[#allocation4 + $0x498] sm:$0xff]  ;;  %v9130_v33 = vpack.c.bf16 %v9129_v36, %v9129_v36  ;;  %v9239_v53 = vld [vmem:[#allocation4 + $0x480] sm:$0xff] }
0x14d5   :  { %9154 = vmatprep.subr.bf16.mxu1 %v9140_v23  ;;  %9195 = vmatprep.subr.bf16.mxu0 %v9142_v14  ;;  %v9241_v41 = vld [vmem:[#allocation4 + $0x490] sm:$0xff]  ;;  %v9244_v29 = vld [vmem:[#allocation4 + $0x4a8] sm:$0xff]  ;;  %v9246_v32 = vld [vmem:[#allocation4 + $0x4b8] sm:$0xff] }
0x14d6   :  { %v9243_v9 = vld [vmem:[#allocation4 + $0x4a0] sm:$0xff]  ;;  %v9245_v49 = vld [vmem:[#allocation4 + $0x4b0] sm:$0xff]  ;;  %v9248_v3 = vld [vmem:[#allocation4 + $0x4c8] sm:$0xff] }
0x14d7   :  { %v9250_v61 = vld [vmem:[#allocation4 + $0x4d8] sm:$0xff]  ;;  %v9247_v10 = vld [vmem:[#allocation4 + $0x4c0] sm:$0xff]  ;;  %v9249_v0 = vld [vmem:[#allocation4 + $0x4d0] sm:$0xff] }
0x14d8   :  { %9155 = vmatpush1.bf16.msra.mxu1 %v9139_v5  ;;  %9196 = vmatpush1.bf16.msra.mxu0 %v9141_v26  ;;  %v9252_v50 = vld [vmem:[#allocation4 + $0x4e8] sm:$0xff]  ;;  %v9254_v13 = vld [vmem:[#allocation4 + $0x4f8] sm:$0xff]  ;;  %v9251_v15 = vld [vmem:[#allocation4 + $0x4e0] sm:$0xff] }
0x14d9   :  { %9156 = vmatprep.subr.bf16.mxu1 %v9144_v18  ;;  %9197 = vmatprep.subr.bf16.mxu0 %v9146_v62  ;;  %v9236_v47 = vld [vmem:[#allocation3 + $0x1a] sm:$0x3]  ;;  %v9253_v11 = vld [vmem:[#allocation4 + $0x4f0] sm:$0xff]  ;;  %v9350_v43 = vld [vmem:[#allocation4 + $0x518] sm:$0xff] }
0x14da   :  { %v9348_v57 = vld [vmem:[#allocation4 + $0x508] sm:$0xff]  ;;  %v9237_v52 = vpack.c.bf16 %v9236_v47, %v9236_v47  ;;  %v9347_v48 = vld [vmem:[#allocation4 + $0x500] sm:$0xff]  ;;  %v9349_v30 = vld [vmem:[#allocation4 + $0x510] sm:$0xff] }
0x14db   :  { %v9352_v7 = vld [vmem:[#allocation4 + $0x528] sm:$0xff]  ;;  %v9354_v56 = vld [vmem:[#allocation4 + $0x538] sm:$0xff]  ;;  %v9351_v21 = vld [vmem:[#allocation4 + $0x520] sm:$0xff] }
0x14dc   :  { %9157 = vmatpush1.bf16.msra.mxu1 %v9143_v60  ;;  %9198 = vmatpush1.bf16.msra.mxu0 %v9145_v24  ;;  %v9353_v38 = vld [vmem:[#allocation4 + $0x530] sm:$0xff]  ;;  %v9356_v19 = vld [vmem:[#allocation4 + $0x548] sm:$0xff]  ;;  %v9358_v6 = vld [vmem:[#allocation4 + $0x558] sm:$0xff] }
0x14dd   :  { %9258 = vmatprep.subr.bf16.mxu1 %v9240_v12  ;;  %9299 = vmatprep.subr.bf16.mxu0 %v9242_v8  ;;  %v9355_v45 = vld [vmem:[#allocation4 + $0x540] sm:$0xff]  ;;  %v9357_v59 = vld [vmem:[#allocation4 + $0x550] sm:$0xff]  ;;  %v9360_v54 = vld [vmem:[#allocation4 + $0x568] sm:$0xff] }
0x14de   :  { %v9362_v35 = vld [vmem:[#allocation4 + $0x578] sm:$0xff]  ;;  %v9344_v25 = vld [vmem:[#allocation3 + $0x1c] sm:$0x3]  ;;  %v9359_v20 = vld [vmem:[#allocation4 + $0x560] sm:$0xff] }
0x14df   :  { %11624 = vmatmul.mubr.msk.bf16.vlgmr.msra.gmra.mrb[104].mxu1 %vm7037_vm2, %v9130_v33  ;;  %11625 = vmatmul.mubr.msk.bf16.vlgmr.msra.gmra.mrb[68].mxu0 %vm7037_vm2, %v9130_v33  ;;  %v9361_v31 = vld [vmem:[#allocation4 + $0x570] sm:$0xff]  ;;  %v9456_v40 = vld [vmem:[#allocation4 + $0x588] sm:$0xff]  ;;  %v9458_v37 = vld [vmem:[#allocation4 + $0x598] sm:$0xff]  ;;  %v9345_v28 = vpack.c.bf16 %v9344_v25, %v9344_v25 }
0x14e0   :  { %9259 = vmatpush1.bf16.msra.mxu1 %v9239_v53  ;;  %9300 = vmatpush1.bf16.msra.mxu0 %v9241_v41  ;;  %v9455_v27 = vld [vmem:[#allocation4 + $0x580] sm:$0xff]  ;;  %v9457_v46 = vld [vmem:[#allocation4 + $0x590] sm:$0xff]  ;;  %v9460_v63 = vld [vmem:[#allocation4 + $0x5a8] sm:$0xff] }
0x14e1   :  { %9260 = vmatprep.subr.bf16.mxu1 %v9244_v29  ;;  %9301 = vmatprep.subr.bf16.mxu0 %v9246_v32  ;;  %v9462_v17 = vld [vmem:[#allocation4 + $0x5b8] sm:$0xff]  ;;  %v9459_v55 = vld [vmem:[#allocation4 + $0x5a0] sm:$0xff]  ;;  %v9461_v51 = vld [vmem:[#allocation4 + $0x5b0] sm:$0xff] }
0x14e2   :  { %9290 = vmatprep.mubr.bf16.mxu1 %v14279_v44  ;;  %9331 = vmatprep.mubr.bf16.mxu0 %v14279_v44  ;;  %v9464_v16 = vld [vmem:[#allocation4 + $0x5c8] sm:$0xff]  ;;  %v9466_v39 = vld [vmem:[#allocation4 + $0x5d8] sm:$0xff]  ;;  %v9463_v34 = vld [vmem:[#allocation4 + $0x5c0] sm:$0xff] }
0x14e3   :  { %v9465_v58 = vld [vmem:[#allocation4 + $0x5d0] sm:$0xff]  ;;  %v9468_v1 = vld [vmem:[#allocation4 + $0x5e8] sm:$0xff]  ;;  %v9470_v23 = vld [vmem:[#allocation4 + $0x5f8] sm:$0xff] }
0x14e4   :  { %9261 = vmatpush1.bf16.msra.mxu1 %v9243_v9  ;;  %9302 = vmatpush1.bf16.msra.mxu0 %v9245_v49  ;;  %v9452_v14 = vld [vmem:[#allocation3 + $0x1e] sm:$0x3]  ;;  %v9467_v5 = vld [vmem:[#allocation4 + $0x5e0] sm:$0xff]  ;;  %v9469_v26 = vld [vmem:[#allocation4 + $0x5f0] sm:$0xff] }
0x14e5   :  { %9262 = vmatprep.subr.bf16.mxu1 %v9248_v3  ;;  %9303 = vmatprep.subr.bf16.mxu0 %v9250_v61  ;;  %v9453_v18 = vpack.c.bf16 %v9452_v14, %v9452_v14 }
0x14e8   :  { %9263 = vmatpush1.bf16.msra.mxu1 %v9247_v10  ;;  %9304 = vmatpush1.bf16.msra.mxu0 %v9249_v0 }
0x14e9   :  { %9264 = vmatprep.subr.bf16.mxu1 %v9252_v50  ;;  %9305 = vmatprep.subr.bf16.mxu0 %v9254_v13 }
0x14ec   :  { %9265 = vmatpush1.bf16.msra.mxu1 %v9251_v15  ;;  %9306 = vmatpush1.bf16.msra.mxu0 %v9253_v11 }
0x14ed   :  { %9366 = vmatprep.subr.bf16.mxu1 %v9348_v57  ;;  %9407 = vmatprep.subr.bf16.mxu0 %v9350_v43 }
0x14ef   :  { %11626 = vmatmul.mubr.msk.bf16.vlgmr.msra.gmra.mrb[108].mxu1 %vm7037_vm2, %v9237_v52  ;;  %11627 = vmatmul.mubr.msk.bf16.vlgmr.msra.gmra.mrb[72].mxu0 %vm7037_vm2, %v9237_v52 }
0x14f0   :  { %9367 = vmatpush1.bf16.msra.mxu1 %v9347_v48  ;;  %9408 = vmatpush1.bf16.msra.mxu0 %v9349_v30 }
0x14f1   :  { %9368 = vmatprep.subr.bf16.mxu1 %v9352_v7  ;;  %9409 = vmatprep.subr.bf16.mxu0 %v9354_v56 }
0x14f2   :  { %9398 = vmatprep.mubr.bf16.mxu1 %v14279_v44  ;;  %9439 = vmatprep.mubr.bf16.mxu0 %v14279_v44 }
0x14f4   :  { %9369 = vmatpush1.bf16.msra.mxu1 %v9351_v21  ;;  %9410 = vmatpush1.bf16.msra.mxu0 %v9353_v38 }
0x14f5   :  { %9370 = vmatprep.subr.bf16.mxu1 %v9356_v19  ;;  %9411 = vmatprep.subr.bf16.mxu0 %v9358_v6 }
0x14f8   :  { %9371 = vmatpush1.bf16.msra.mxu1 %v9355_v45  ;;  %9412 = vmatpush1.bf16.msra.mxu0 %v9357_v59 }
0x14f9   :  { %9372 = vmatprep.subr.bf16.mxu1 %v9360_v54  ;;  %9413 = vmatprep.subr.bf16.mxu0 %v9362_v35 }
0x14fc   :  { %9373 = vmatpush1.bf16.msra.mxu1 %v9359_v20  ;;  %9414 = vmatpush1.bf16.msra.mxu0 %v9361_v31 }
0x14fd   :  { %9474 = vmatprep.subr.bf16.mxu1 %v9456_v40  ;;  %9515 = vmatprep.subr.bf16.mxu0 %v9458_v37 }
0x14ff   :  { %11628 = vmatmul.mubr.msk.bf16.vlgmr.msra.gmra.mrb[112].mxu1 %vm7037_vm2, %v9345_v28  ;;  %11629 = vmatmul.mubr.msk.bf16.vlgmr.msra.gmra.mrb[76].mxu0 %vm7037_vm2, %v9345_v28 }
0x1500   :  { %9475 = vmatpush1.bf16.msra.mxu1 %v9455_v27  ;;  %9516 = vmatpush1.bf16.msra.mxu0 %v9457_v46 }
0x1501   :  { %9476 = vmatprep.subr.bf16.mxu1 %v9460_v63  ;;  %9517 = vmatprep.subr.bf16.mxu0 %v9462_v17 }
0x1502   :  { %9506 = vmatprep.mubr.bf16.mxu1 %v14279_v44  ;;  %9547 = vmatprep.mubr.bf16.mxu0 %v14279_v44 }
0x1504   :  { %9477 = vmatpush1.bf16.msra.mxu1 %v9459_v55  ;;  %9518 = vmatpush1.bf16.msra.mxu0 %v9461_v51 }
0x1505   :  { %9478 = vmatprep.subr.bf16.mxu1 %v9464_v16  ;;  %9519 = vmatprep.subr.bf16.mxu0 %v9466_v39 }
0x1508   :  { %9479 = vmatpush1.bf16.msra.mxu1 %v9463_v34  ;;  %9520 = vmatpush1.bf16.msra.mxu0 %v9465_v58 }
0x1509   :  { %9480 = vmatprep.subr.bf16.mxu1 %v9468_v1  ;;  %9521 = vmatprep.subr.bf16.mxu0 %v9470_v23 }
0x150c   :  { %9481 = vmatpush1.bf16.msra.mxu1 %v9467_v5  ;;  %9522 = vmatpush1.bf16.msra.mxu0 %v9469_v26 }
0x150f   :  { %11630 = vmatmul.mubr.msk.bf16.vlgmr.msra.gmra.mrb[116].mxu1 %vm7037_vm2, %v9453_v18  ;;  %11631 = vmatmul.mubr.msk.bf16.vlgmr.msra.gmra.mrb[80].mxu0 %vm7037_vm2, %v9453_v18 }
0x15b2   :  { %v9184_v62 = vpop.f32.mrb[104].mxu1  ;;  %v9225_v36 = vpop.f32.mrb[68].mxu0 }
0x15b3   :  { %v9186_v60 = vpop.f32.mrb[105].mxu1  ;;  %v9227_v24 = vpop.f32.mrb[69].mxu0  ;;  %v9232_v41 = vadd.f32 %v9184_v62, %v18323_v2  ;;  %v9234_v29 = vadd.f32 %v9225_v36, %v18325_v22 }
0x15b4   :  { %v9188_v12 = vpop.f32.mrb[106].mxu1  ;;  %v9229_v8 = vpop.f32.mrb[70].mxu0  ;;  %v9233_v32 = vadd.f32 %v9186_v60, %v18327_v4  ;;  %v9235_v9 = vadd.f32 %v9227_v24, %v18329_v42 }
0x15b5   :  { %v9189_v33 = vpop.f32.mrb[107].mxu1  ;;  %v9230_v53 = vpop.f32.mrb[71].mxu0 }
0x15c2   :  { %v9292_v49 = vpop.f32.mrb[108].mxu1  ;;  %v9333_v3 = vpop.f32.mrb[72].mxu0 }
0x15c3   :  { %v9340_v61 = vadd.f32 %v9292_v49, %v9232_v41  ;;  %v9342_v10 = vadd.f32 %v9333_v3, %v9234_v29  ;;  %v9294_v0 = vpop.f32.mrb[109].mxu1  ;;  %v9335_v50 = vpop.f32.mrb[73].mxu0 }
0x15c4   :  { %v9341_v13 = vadd.f32 %v9294_v0, %v9233_v32  ;;  %v9343_v47 = vadd.f32 %v9335_v50, %v9235_v9  ;;  %v9296_v15 = vpop.f32.mrb[110].mxu1  ;;  %v9337_v11 = vpop.f32.mrb[74].mxu0 }
0x15c5   :  { %v9297_v57 = vpop.f32.mrb[111].mxu1  ;;  %v9338_v43 = vpop.f32.mrb[75].mxu0 }
0x15d2   :  { %v9400_v52 = vpop.f32.mrb[112].mxu1  ;;  %v9441_v2 = vpop.f32.mrb[76].mxu0 }
0x15d3   :  { %v9448_v48 = vadd.f32 %v9400_v52, %v9340_v61  ;;  %v9450_v22 = vadd.f32 %v9441_v2, %v9342_v10  ;;  %v9402_v30 = vpop.f32.mrb[113].mxu1  ;;  %v9443_v4 = vpop.f32.mrb[77].mxu0 }
0x15d4   :  { %v9449_v7 = vadd.f32 %v9402_v30, %v9341_v13  ;;  %v9451_v42 = vadd.f32 %v9443_v4, %v9343_v47  ;;  %v9404_v56 = vpop.f32.mrb[114].mxu1  ;;  %v9445_v21 = vpop.f32.mrb[78].mxu0 }
0x15d5   :  { %v9405_v38 = vpop.f32.mrb[115].mxu1  ;;  %v9446_v19 = vpop.f32.mrb[79].mxu0 }
0x15e2   :  { %v9508_v6 = vpop.f32.mrb[116].mxu1  ;;  %v9549_v45 = vpop.f32.mrb[80].mxu0 }
0x15e3   :  { %v18351_v59 = vadd.f32 %v9508_v6, %v9448_v48  ;;  %v18353_v54 = vadd.f32 %v9549_v45, %v9450_v22  ;;  %v9510_v35 = vpop.f32.mrb[117].mxu1  ;;  %v9551_v25 = vpop.f32.mrb[81].mxu0 }
0x15e4   :  { %v18355_v20 = vadd.f32 %v9510_v35, %v9449_v7  ;;  %v18357_v31 = vadd.f32 %v9551_v25, %v9451_v42  ;;  %v9512_v40 = vpop.f32.mrb[118].mxu1  ;;  %v9553_v37 = vpop.f32.mrb[82].mxu0 }
0x15e5   :  { %v9513_v28 = vpop.f32.mrb[119].mxu1  ;;  %v9554_v27 = vpop.f32.mrb[83].mxu0 }
0x15e6   :  { %14272 = dma.done.wait [#allocation5 + $0x3], 8192 }
0x15e7   :  { %14273 = vsyncadd [#allocation5 + $0x3], 4294959104  ;;  %9615 = vmatprep.mubr.bf16.mxu1 %v14279_v44  ;;  %9656 = vmatprep.mubr.bf16.mxu0 %v14279_v44  ;;  %v9565_v46 = vld [vmem:[#allocation4 + $0x608] sm:$0xff]  ;;  %v9567_v63 = vld [vmem:[#allocation4 + $0x618] sm:$0xff]  ;;  %s14280_s28 = smov [#allocation6]   ;;  %vm10234_vm4 = vcmask 41984  }
0x15e8   :  { %v9564_v17 = vld [vmem:[#allocation4 + $0x600] sm:$0xff]  ;;  %9583 = vmatprep.subr.bf16.mxu1 %v9565_v46  ;;  %9624 = vmatprep.subr.bf16.mxu0 %v9567_v63  ;;  %v9566_v55 = vld [vmem:[#allocation4 + $0x610] sm:$0xff]  ;;  %v9569_v51 = vld [vmem:[#allocation4 + $0x628] sm:$0xff]  ;;  %s10242_s29 = sshll.u32 %s14280_s28, 4  ;;  %s10243_s29 = int_to_ptr.vmem [resolvable:$true] %s10242_s29 }
0x15e9   :  { %v9571_v16 = vld [vmem:[#allocation4 + $0x638] sm:$0xff]  ;;  %9584 = vmatpush1.bf16.msra.mxu1 %v9564_v17  ;;  %9625 = vmatpush1.bf16.msra.mxu0 %v9566_v55  ;;  %v9568_v39 = vld [vmem:[#allocation4 + $0x620] sm:$0xff]  ;;  %v9570_v34 = vld [vmem:[#allocation4 + $0x630] sm:$0xff]  ;;  %s14244_s1 = scalar_lea.vmem %s10243_s29, 32  ;;  %p14249_p1 = scmp.lt.s32.totalorder %s10243_s29, %s10243_s29 }
0x15ea   :  { %9585 = vmatprep.subr.bf16.mxu1 %v9569_v51  ;;  %9626 = vmatprep.subr.bf16.mxu0 %v9571_v16  ;;  %v9573_v58 = vld [vmem:[#allocation4 + $0x648] sm:$0xff]  ;;  %v9575_v1 = vld [vmem:[#allocation4 + $0x658] sm:$0xff]  ;;  %v9572_v23 = vld [vmem:[#allocation4 + $0x640] sm:$0xff]  ;;  %p14245_p0 = scmp.ne.s32.totalorder %s10243_s29, %s14244_s1  ;;  %p14250_p2 = scmp.lt.s32.totalorder %s14244_s1, %s14244_s1 }
0x15eb   :  { %v9574_v14 = vld [vmem:[#allocation4 + $0x650] sm:$0xff]  ;;  %v9577_v5 = vld [vmem:[#allocation4 + $0x668] sm:$0xff]  ;;  %v9579_v26 = vld [vmem:[#allocation4 + $0x678] sm:$0xff] }
0x15ec   :  { %v9562_v18 = vld [vmem:[#allocation3 + $0x24] sm:$0x3]  ;;  %v9576_v62 = vld [vmem:[#allocation4 + $0x660] sm:$0xff]  ;;  %v9673_v60 = vld [vmem:[#allocation4 + $0x688] sm:$0xff]  ;;  %p14251_p3 = por %p14250_p2, %p14249_p1 }
0x15ed   :  { %9586 = vmatpush1.bf16.msra.mxu1 %v9568_v39  ;;  %9627 = vmatpush1.bf16.msra.mxu0 %v9570_v34  ;;  %v9578_v36 = vld [vmem:[#allocation4 + $0x670] sm:$0xff]  ;;  %v9675_v24 = vld [vmem:[#allocation4 + $0x698] sm:$0xff]  ;;  %v9563_v12 = vpack.c.bf16 %v9562_v18, %v9562_v18  ;;  %v9672_v8 = vld [vmem:[#allocation4 + $0x680] sm:$0xff] }
0x15ee   :  { %9587 = vmatprep.subr.bf16.mxu1 %v9573_v58  ;;  %9628 = vmatprep.subr.bf16.mxu0 %v9575_v1  ;;  %v9674_v33 = vld [vmem:[#allocation4 + $0x690] sm:$0xff]  ;;  %v9677_v53 = vld [vmem:[#allocation4 + $0x6a8] sm:$0xff]  ;;  %v9679_v41 = vld [vmem:[#allocation4 + $0x6b8] sm:$0xff]  ;;  %p14252_p4 = pnand %p14251_p3, %p14245_p0 }
0x15ef   :  { %v9676_v29 = vld [vmem:[#allocation4 + $0x6a0] sm:$0xff]  ;;  %v9678_v32 = vld [vmem:[#allocation4 + $0x6b0] sm:$0xff]  ;;  %v9681_v9 = vld [vmem:[#allocation4 + $0x6c8] sm:$0xff] }
0x15f0   :  { %v9683_v49 = vld [vmem:[#allocation4 + $0x6d8] sm:$0xff]  ;;  %v9680_v3 = vld [vmem:[#allocation4 + $0x6c0] sm:$0xff]  ;;  %v9682_v61 = vld [vmem:[#allocation4 + $0x6d0] sm:$0xff] }
0x15f1   :  { %9588 = vmatpush1.bf16.msra.mxu1 %v9572_v23  ;;  %9629 = vmatpush1.bf16.msra.mxu0 %v9574_v14  ;;  %v9685_v10 = vld [vmem:[#allocation4 + $0x6e8] sm:$0xff]  ;;  %v9687_v0 = vld [vmem:[#allocation4 + $0x6f8] sm:$0xff]  ;;  %v9669_v50 = vld [vmem:[#allocation3 + $0x26] sm:$0x3] }
0x15f2   :  { %9589 = vmatprep.subr.bf16.mxu1 %v9577_v5  ;;  %9630 = vmatprep.subr.bf16.mxu0 %v9579_v26  ;;  %v9684_v13 = vld [vmem:[#allocation4 + $0x6e0] sm:$0xff]  ;;  %v9686_v47 = vld [vmem:[#allocation4 + $0x6f0] sm:$0xff]  ;;  %v9781_v15 = vld [vmem:[#allocation4 + $0x708] sm:$0xff]  ;;  %v9670_v57 = vpack.c.bf16 %v9669_v50, %v9669_v50 }
0x15f3   :  { %v9783_v11 = vld [vmem:[#allocation4 + $0x718] sm:$0xff]  ;;  %v9780_v43 = vld [vmem:[#allocation4 + $0x700] sm:$0xff]  ;;  %v9782_v52 = vld [vmem:[#allocation4 + $0x710] sm:$0xff] }
0x15f4   :  { %v9785_v2 = vld [vmem:[#allocation4 + $0x728] sm:$0xff]  ;;  %v9787_v48 = vld [vmem:[#allocation4 + $0x738] sm:$0xff]  ;;  %v9784_v22 = vld [vmem:[#allocation4 + $0x720] sm:$0xff] }
0x15f5   :  { %9590 = vmatpush1.bf16.msra.mxu1 %v9576_v62  ;;  %9631 = vmatpush1.bf16.msra.mxu0 %v9578_v36  ;;  %v9786_v30 = vld [vmem:[#allocation4 + $0x730] sm:$0xff]  ;;  %v9789_v4 = vld [vmem:[#allocation4 + $0x748] sm:$0xff]  ;;  %v9791_v7 = vld [vmem:[#allocation4 + $0x758] sm:$0xff] }
0x15f6   :  { %9691 = vmatprep.subr.bf16.mxu1 %v9673_v60  ;;  %9732 = vmatprep.subr.bf16.mxu0 %v9675_v24  ;;  %v9788_v42 = vld [vmem:[#allocation4 + $0x740] sm:$0xff]  ;;  %v9790_v56 = vld [vmem:[#allocation4 + $0x750] sm:$0xff]  ;;  %v9793_v21 = vld [vmem:[#allocation4 + $0x768] sm:$0xff] }
0x15f7   :  { %v9795_v38 = vld [vmem:[#allocation4 + $0x778] sm:$0xff]  ;;  %v9792_v6 = vld [vmem:[#allocation4 + $0x760] sm:$0xff]  ;;  %v9794_v45 = vld [vmem:[#allocation4 + $0x770] sm:$0xff] }
0x15f8   :  { %11632 = vmatmul.mubr.msk.bf16.vlgmr.msra.gmra.mrb[96].mxu1 %vm7037_vm2, %v9563_v12  ;;  %11633 = vmatmul.mubr.msk.bf16.vlgmr.msra.gmra.mrb[84].mxu0 %vm7037_vm2, %v9563_v12  ;;  %v9777_v19 = vld [vmem:[#allocation3 + $0x28] sm:$0x3]  ;;  %v9889_v35 = vld [vmem:[#allocation4 + $0x788] sm:$0xff]  ;;  %v9888_v37 = vld [vmem:[#allocation4 + $0x780] sm:$0xff] }
0x15f9   :  { %9692 = vmatpush1.bf16.msra.mxu1 %v9672_v8  ;;  %9733 = vmatpush1.bf16.msra.mxu0 %v9674_v33  ;;  %v9891_v25 = vld [vmem:[#allocation4 + $0x798] sm:$0xff]  ;;  %v9778_v40 = vpack.c.bf16 %v9777_v19, %v9777_v19  ;;  %v9890_v28 = vld [vmem:[#allocation4 + $0x790] sm:$0xff]  ;;  %v9893_v27 = vld [vmem:[#allocation4 + $0x7a8] sm:$0xff] }
0x15fa   :  { %9693 = vmatprep.subr.bf16.mxu1 %v9677_v53  ;;  %9734 = vmatprep.subr.bf16.mxu0 %v9679_v41  ;;  %v9895_v46 = vld [vmem:[#allocation4 + $0x7b8] sm:$0xff]  ;;  %v9892_v63 = vld [vmem:[#allocation4 + $0x7a0] sm:$0xff]  ;;  %v9894_v17 = vld [vmem:[#allocation4 + $0x7b0] sm:$0xff] }
0x15fb   :  { %9723 = vmatprep.mubr.bf16.mxu1 %v14279_v44  ;;  %9764 = vmatprep.mubr.bf16.mxu0 %v14279_v44  ;;  %v9897_v55 = vld [vmem:[#allocation4 + $0x7c8] sm:$0xff]  ;;  %v9899_v51 = vld [vmem:[#allocation4 + $0x7d8] sm:$0xff]  ;;  %v9896_v16 = vld [vmem:[#allocation4 + $0x7c0] sm:$0xff] }
0x15fc   :  { %v9898_v39 = vld [vmem:[#allocation4 + $0x7d0] sm:$0xff]  ;;  %v9901_v34 = vld [vmem:[#allocation4 + $0x7e8] sm:$0xff]  ;;  %v9903_v58 = vld [vmem:[#allocation4 + $0x7f8] sm:$0xff] }
0x15fd   :  { %9694 = vmatpush1.bf16.msra.mxu1 %v9676_v29  ;;  %9735 = vmatpush1.bf16.msra.mxu0 %v9678_v32  ;;  %v9885_v1 = vld [vmem:[#allocation3 + $0x2a] sm:$0x3]  ;;  %v9900_v23 = vld [vmem:[#allocation4 + $0x7e0] sm:$0xff]  ;;  %v9902_v14 = vld [vmem:[#allocation4 + $0x7f0] sm:$0xff] }
0x15fe   :  { %9695 = vmatprep.subr.bf16.mxu1 %v9681_v9  ;;  %9736 = vmatprep.subr.bf16.mxu0 %v9683_v49  ;;  %v9886_v5 = vpack.c.bf16 %v9885_v1, %v9885_v1  ;;  %v10040_v26 = vld [vmem:[%s18598_s9 + $0x88] sm:$0xff]  ;;  %v10071_v18 = vld [vmem:[%s18598_s9 + $0x180] sm:$0xff]  ;;  %v10041_v41 = vld [vmem:[%s18598_s9 + $0x90] sm:$0xff] }
0x15ff   :  { %v10072_v36 = vld [vmem:[%s18598_s9 + $0x188] sm:$0xff]  ;;  %v10023_v60 = vld [vmem:[%s18598_s9] sm:$0xff]  ;;  %v10042_v32 = vld [vmem:[%s18598_s9 + $0x98] sm:$0xff] }
0x1600   :  { %v10024_v24 = vld [vmem:[%s18598_s9 + $0x8] sm:$0xff]  ;;  %v13842_v12 = vpack.c.bf16 %v10072_v36, %v10071_v18  ;;  %v10055_v33 = vld [vmem:[%s18598_s9 + $0x100] sm:$0xff]  ;;  %v10073_v9 = vld [vmem:[%s18598_s9 + $0x190] sm:$0xff] }
0x1601   :  { %9696 = vmatpush1.bf16.msra.mxu1 %v9680_v3  ;;  %9737 = vmatpush1.bf16.msra.mxu0 %v9682_v61  ;;  %v13812_v8 = vpack.c.bf16 %v10024_v24, %v10023_v60  ;;  %v10056_v53 = vld [vmem:[%s18598_s9 + $0x108] sm:$0xff]  ;;  %v10074_v49 = vld [vmem:[%s18598_s9 + $0x198] sm:$0xff]  ;;  %v13814_v3 = vpack.c.bf16 %v10042_v32, %v10041_v41  ;;  %v10057_v50 = vld [vmem:[%s18598_s9 + $0x110] sm:$0xff] }
0x1602   :  { %9697 = vmatprep.subr.bf16.mxu1 %v9685_v10  ;;  %9738 = vmatprep.subr.bf16.mxu0 %v9687_v0  ;;  %v13844_v29 = vpack.c.bf16 %v10056_v53, %v10055_v33  ;;  %v13846_v61 = vpack.c.bf16 %v10074_v49, %v10073_v9  ;;  %v10025_v10 = vld [vmem:[%s18598_s9 + $0x10] sm:$0xff]  ;;  %v10026_v0 = vld [vmem:[%s18598_s9 + $0x18] sm:$0xff]  ;;  %v10063_v1 = vld [vmem:[%s18598_s9 + $0x140] sm:$0xff] }
0x1603   :  { %v10077_v19 = vld [vmem:[%s18598_s9 + $0x1b0] sm:$0xff]  ;;  %v10082_v36 = vld [vmem:[%s18598_s9 + $0x1d8] sm:$0xff]  ;;  %v10052_v32 = vld [vmem:[%s18598_s9 + $0xe8] sm:$0xff] }
0x1604   :  { %v10033_v60 = vld [vmem:[%s18598_s9 + $0x50] sm:$0xff]  ;;  %v10066_v33 = vld [vmem:[%s18598_s9 + $0x158] sm:$0xff]  ;;  %v10083_v9 = vld [vmem:[%s18598_s9 + $0x1e0] sm:$0xff] }
0x1605   :  { %9698 = vmatpush1.bf16.msra.mxu1 %v9684_v13  ;;  %9739 = vmatpush1.bf16.msra.mxu0 %v9686_v47  ;;  %v13816_v13 = vpack.c.bf16 %v10026_v0, %v10025_v10  ;;  %v10058_v47 = vld [vmem:[%s18598_s9 + $0x118] sm:$0xff]  ;;  %v10036_v10 = vld [vmem:[%s18598_s9 + $0x68] sm:$0xff] }
0x1606   :  { %9799 = vmatprep.subr.bf16.mxu1 %v9781_v15  ;;  %9840 = vmatprep.subr.bf16.mxu0 %v9783_v11  ;;  %v13848_v15 = vpack.c.bf16 %v10058_v47, %v10057_v50  ;;  %v10043_v11 = vld [vmem:[%s18598_s9 + $0xa0] sm:$0xff]  ;;  %v10068_v47 = vld [vmem:[%s18598_s9 + $0x168] sm:$0xff] }
0x1608   :  { %11634 = vmatmul.mubr.msk.bf16.vlgmr.msra.gmra.mrb[120].mxu1 %vm7037_vm2, %v9670_v57  ;;  %11635 = vmatmul.mubr.msk.bf16.vlgmr.msra.gmra.mrb[88].mxu0 %vm7037_vm2, %v9670_v57  ;;  %v10044_v57 = vld [vmem:[%s18598_s9 + $0xa8] sm:$0xff] }
0x1609   :  { %9800 = vmatpush1.bf16.msra.mxu1 %v9780_v43  ;;  %9841 = vmatpush1.bf16.msra.mxu0 %v9782_v52  ;;  %v10075_v43 = vld [vmem:[%s18598_s9 + $0x1a0] sm:$0xff]  ;;  %v13818_v52 = vpack.c.bf16 %v10044_v57, %v10043_v11  ;;  %v10053_v11 = vld [vmem:[%s18598_s9 + $0xf0] sm:$0xff]  ;;  %v10054_v57 = vld [vmem:[%s18598_s9 + $0xf8] sm:$0xff] }
0x160a   :  { %9801 = vmatprep.subr.bf16.mxu1 %v9785_v2  ;;  %9842 = vmatprep.subr.bf16.mxu0 %v9787_v48  ;;  %v10076_v2 = vld [vmem:[%s18598_s9 + $0x1a8] sm:$0xff]  ;;  %v10027_v48 = vld [vmem:[%s18598_s9 + $0x20] sm:$0xff] }
0x160b   :  { %9831 = vmatprep.mubr.bf16.mxu1 %v14279_v44  ;;  %9872 = vmatprep.mubr.bf16.mxu0 %v14279_v44 }
0x160d   :  { %9802 = vmatpush1.bf16.msra.mxu1 %v9784_v22  ;;  %9843 = vmatpush1.bf16.msra.mxu0 %v9786_v30  ;;  %v10028_v22 = vld [vmem:[%s18598_s9 + $0x28] sm:$0xff]  ;;  %v13850_v30 = vpack.c.bf16 %v10076_v2, %v10075_v43  ;;  %v10085_v43 = vld [vmem:[%s18598_s9 + $0x1f0] sm:$0xff]  ;;  %v10086_v2 = vld [vmem:[%s18598_s9 + $0x1f8] sm:$0xff] }
0x160e   :  { %9803 = vmatprep.subr.bf16.mxu1 %v9789_v4  ;;  %9844 = vmatprep.subr.bf16.mxu0 %v9791_v7  ;;  %v13820_v4 = vpack.c.bf16 %v10028_v22, %v10027_v48  ;;  %v10059_v7 = vld [vmem:[%s18598_s9 + $0x120] sm:$0xff]  ;;  %v10037_v48 = vld [vmem:[%s18598_s9 + $0x70] sm:$0xff]  ;;  %v10038_v22 = vld [vmem:[%s18598_s9 + $0x78] sm:$0xff] }
0x1611   :  { %9804 = vmatpush1.bf16.msra.mxu1 %v9788_v42  ;;  %9845 = vmatpush1.bf16.msra.mxu0 %v9790_v56  ;;  %v10060_v42 = vld [vmem:[%s18598_s9 + $0x128] sm:$0xff] }
0x1612   :  { %9805 = vmatprep.subr.bf16.mxu1 %v9793_v21  ;;  %9846 = vmatprep.subr.bf16.mxu0 %v9795_v38  ;;  %v13852_v56 = vpack.c.bf16 %v10060_v42, %v10059_v7  ;;  %v10045_v21 = vld [vmem:[%s18598_s9 + $0xb0] sm:$0xff]  ;;  %v10046_v38 = vld [vmem:[%s18598_s9 + $0xb8] sm:$0xff] }
0x1613   :  { %v10069_v7 = vld [vmem:[%s18598_s9 + $0x170] sm:$0xff]  ;;  %v10070_v42 = vld [vmem:[%s18598_s9 + $0x178] sm:$0xff] }
0x1615   :  { %9806 = vmatpush1.bf16.msra.mxu1 %v9792_v6  ;;  %9847 = vmatpush1.bf16.msra.mxu0 %v9794_v45  ;;  %v13822_v6 = vpack.c.bf16 %v10046_v38, %v10045_v21  ;;  %v10078_v45 = vld [vmem:[%s18598_s9 + $0x1b8] sm:$0xff] }
0x1616   :  { %9907 = vmatprep.subr.bf16.mxu1 %v9889_v35  ;;  %9948 = vmatprep.subr.bf16.mxu0 %v9891_v25  ;;  %v10029_v35 = vld [vmem:[%s18598_s9 + $0x30] sm:$0xff]  ;;  %v10030_v25 = vld [vmem:[%s18598_s9 + $0x38] sm:$0xff] }
0x1618   :  { %11636 = vmatmul.mubr.msk.bf16.vlgmr.msra.gmra.mrb[124].mxu1 %vm7037_vm2, %v9778_v40  ;;  %11637 = vmatmul.mubr.msk.bf16.vlgmr.msra.gmra.mrb[92].mxu0 %vm7037_vm2, %v9778_v40  ;;  %v13854_v40 = vpack.c.bf16 %v10078_v45, %v10077_v19 }
0x1619   :  { %9908 = vmatpush1.bf16.msra.mxu1 %v9888_v37  ;;  %9949 = vmatpush1.bf16.msra.mxu0 %v9890_v28  ;;  %v13824_v37 = vpack.c.bf16 %v10030_v25, %v10029_v35  ;;  %v10061_v28 = vld [vmem:[%s18598_s9 + $0x130] sm:$0xff] }
0x161a   :  { %9909 = vmatprep.subr.bf16.mxu1 %v9893_v27  ;;  %9950 = vmatprep.subr.bf16.mxu0 %v9895_v46  ;;  %v10062_v27 = vld [vmem:[%s18598_s9 + $0x138] sm:$0xff]  ;;  %v10047_v46 = vld [vmem:[%s18598_s9 + $0xc0] sm:$0xff] }
0x161b   :  { %9939 = vmatprep.mubr.bf16.mxu1 %v14279_v44  ;;  %9980 = vmatprep.mubr.bf16.mxu0 %v14279_v44  ;;  %v10039_v44 = vld [vmem:[%s18598_s9 + $0x80] sm:$0xff] }
0x161c   :  { %v13810_v62 = vpack.c.bf16 %v10040_v26, %v10039_v44  ;;  %v10050_v44 = vld [vmem:[%s18598_s9 + $0xd8] sm:$0xff] }
0x161d   :  { %9910 = vmatpush1.bf16.msra.mxu1 %v9892_v63  ;;  %9951 = vmatpush1.bf16.msra.mxu0 %v9894_v17  ;;  %v13856_v63 = vpack.c.bf16 %v10062_v27, %v10061_v28  ;;  %v10048_v17 = vld [vmem:[%s18598_s9 + $0xc8] sm:$0xff] }
0x161e   :  { %9911 = vmatprep.subr.bf16.mxu1 %v9897_v55  ;;  %9952 = vmatprep.subr.bf16.mxu0 %v9899_v51  ;;  %v10079_v55 = vld [vmem:[%s18598_s9 + $0x1c0] sm:$0xff]  ;;  %v10080_v51 = vld [vmem:[%s18598_s9 + $0x1c8] sm:$0xff] }
0x1621   :  { %9912 = vmatpush1.bf16.msra.mxu1 %v9896_v16  ;;  %9953 = vmatpush1.bf16.msra.mxu0 %v9898_v39  ;;  %v13826_v16 = vpack.c.bf16 %v10048_v17, %v10047_v46  ;;  %v13858_v39 = vpack.c.bf16 %v10080_v51, %v10079_v55 }
0x1622   :  { %9913 = vmatprep.subr.bf16.mxu1 %v9901_v34  ;;  %9954 = vmatprep.subr.bf16.mxu0 %v9903_v58  ;;  %v10031_v34 = vld [vmem:[%s18598_s9 + $0x40] sm:$0xff]  ;;  %v10032_v58 = vld [vmem:[%s18598_s9 + $0x48] sm:$0xff] }
0x1625   :  { %9914 = vmatpush1.bf16.msra.mxu1 %v9900_v23  ;;  %9955 = vmatpush1.bf16.msra.mxu0 %v9902_v14  ;;  %v13828_v23 = vpack.c.bf16 %v10032_v58, %v10031_v34  ;;  %v10064_v14 = vld [vmem:[%s18598_s9 + $0x148] sm:$0xff] }
0x1626   :  { %13811 = vmatprep.subr.bf16.mxu1 %v13810_v62  ;;  %13843 = vmatprep.subr.bf16.mxu0 %v13842_v12  ;;  %v13860_v26 = vpack.c.bf16 %v10064_v14, %v10063_v1  ;;  %v10081_v62 = vld [vmem:[%s18598_s9 + $0x1d0] sm:$0xff]  ;;  %v10034_v12 = vld [vmem:[%s18598_s9 + $0x58] sm:$0xff] }
0x1627   :  { %v13862_v24 = vpack.c.bf16 %v10082_v36, %v10081_v62  ;;  %v13832_v53 = vpack.c.bf16 %v10034_v12, %v10033_v60 }
0x1628   :  { %11638 = vmatmul.mubr.msk.bf16.vlgmr.msra.gmra.mrb[128].mxu1 %vm7037_vm2, %v9886_v5  ;;  %11639 = vmatmul.mubr.msk.bf16.vlgmr.msra.gmra.mrb[96].mxu0 %vm7037_vm2, %v9886_v5  ;;  %v10049_v5 = vld [vmem:[%s18598_s9 + $0xd0] sm:$0xff] }
0x1629   :  { %13813 = vmatpush3.bf16.msra.mxu1 %v13812_v8  ;;  %13845 = vmatpush3.bf16.msra.mxu0 %v13844_v29  ;;  %v13830_v18 = vpack.c.bf16 %v10050_v44, %v10049_v5  ;;  %v10065_v8 = vld [vmem:[%s18598_s9 + $0x150] sm:$0xff]  ;;  %v10051_v29 = vld [vmem:[%s18598_s9 + $0xe0] sm:$0xff] }
0x162a   :  { %13815 = vmatprep.subr.bf16.mxu1 %v13814_v3  ;;  %13847 = vmatprep.subr.bf16.mxu0 %v13846_v61  ;;  %v13864_v41 = vpack.c.bf16 %v10066_v33, %v10065_v8  ;;  %v13834_v49 = vpack.c.bf16 %v10052_v32, %v10051_v29  ;;  %v10084_v3 = vld [vmem:[%s18598_s9 + $0x1e8] sm:$0xff]  ;;  %v10035_v61 = vld [vmem:[%s18598_s9 + $0x60] sm:$0xff]  ;;  %v9995_v8 = vlaneseq }
0x162b   :  { %v13866_v0 = vpack.c.bf16 %v10084_v3, %v10083_v9  ;;  %v13836_v50 = vpack.c.bf16 %v10036_v10, %v10035_v61  ;;  %v9993_v29 = vld [vmem:[%s18597_s8] sm:$0xf] }
0x162c   :  { %v9996_v33 = vshrl.u32 %v9995_v8, 7 }
0x162d   :  { %13817 = vmatpush3.bf16.msra.mxu1 %v13816_v13  ;;  %13849 = vmatpush3.bf16.msra.mxu0 %v13848_v15  ;;  %v10067_v13 = vld [vmem:[%s18598_s9 + $0x160] sm:$0xff] }
0x162e   :  { %13819 = vmatprep.subr.bf16.mxu1 %v13818_v52  ;;  %13851 = vmatprep.subr.bf16.mxu0 %v13850_v30  ;;  %v13868_v15 = vpack.c.bf16 %v10068_v47, %v10067_v13  ;;  %v13838_v52 = vpack.c.bf16 %v10054_v57, %v10053_v11  ;;  %v13870_v30 = vpack.c.bf16 %v10086_v2, %v10085_v43  ;;  %v10001_v32 = vsub.s32 1, %v9996_v33 }
0x162f   :  { %v10009_v9 = vsub.s32 3, %v9996_v33 }
0x1631   :  { %13821 = vmatpush3.bf16.msra.mxu1 %v13820_v4  ;;  %13853 = vmatpush3.bf16.msra.mxu0 %v13852_v56  ;;  %v13840_v4 = vpack.c.bf16 %v10038_v22, %v10037_v48  ;;  %v13872_v56 = vpack.c.bf16 %v10070_v42, %v10069_v7 }
0x1632   :  { %13823 = vmatprep.subr.bf16.mxu1 %v13822_v6  ;;  %13855 = vmatprep.subr.bf16.mxu0 %v13854_v40 }
0x1635   :  { %13825 = vmatpush3.bf16.msra.mxu1 %v13824_v37  ;;  %13857 = vmatpush3.bf16.msra.mxu0 %v13856_v63 }
0x1636   :  { %13827 = vmatprep.subr.bf16.mxu1 %v13826_v16  ;;  %13859 = vmatprep.subr.bf16.mxu0 %v13858_v39 }
0x1639   :  { %13829 = vmatpush3.bf16.msra.mxu1 %v13828_v23  ;;  %13861 = vmatpush3.bf16.msra.mxu0 %v13860_v26 }
0x163a   :  { %13831 = vmatprep.subr.bf16.mxu1 %v13830_v18  ;;  %13863 = vmatprep.subr.bf16.mxu0 %v13862_v24 }
0x163d   :  { %13833 = vmatpush3.bf16.msra.mxu1 %v13832_v53  ;;  %13865 = vmatpush3.bf16.msra.mxu0 %v13864_v41  ;;  %v9997_v53 = vsub.s32 0, %v9996_v33  ;;  %v10005_v41 = vsub.s32 2, %v9996_v33 }
0x163e   :  { %13835 = vmatprep.subr.bf16.mxu1 %v13834_v49  ;;  %13867 = vmatprep.subr.bf16.mxu0 %v13866_v0  ;;  %v10002_v0 = vrot.slane %v9993_v29, %v10001_v32 }
0x163f   :  { %v9998_v49 = vrot.slane %v9993_v29, %v9997_v53  ;;  %v10006_v3 = vrot.slane %v9993_v29, %v10005_v41 }
0x1641   :  { %13837 = vmatpush3.bf16.msra.mxu1 %v13836_v50  ;;  %13869 = vmatpush3.bf16.msra.mxu0 %v13868_v15  ;;  %v10010_v50 = vrot.slane %v9993_v29, %v10009_v9 }
0x1642   :  { %13839 = vmatprep.subr.bf16.mxu1 %v13838_v52  ;;  %13871 = vmatprep.subr.bf16.mxu0 %v13870_v30 }
0x1645   :  { %13841 = vmatpush3.bf16.msra.mxu1 %v13840_v4  ;;  %13873 = vmatpush3.bf16.msra.mxu0 %v13872_v56 }
0x16cb   :  { %v9617_v21 = vpop.f32.mrb[96].mxu1  ;;  %v9658_v38 = vpop.f32.mrb[84].mxu0 }
0x16cc   :  { %v9619_v19 = vpop.f32.mrb[97].mxu1  ;;  %v9660_v6 = vpop.f32.mrb[85].mxu0  ;;  %v9665_v37 = vadd.f32 %v9617_v21, %v18351_v59  ;;  %v9667_v28 = vadd.f32 %v9658_v38, %v18353_v54 }
0x16cd   :  { %v9621_v45 = vpop.f32.mrb[98].mxu1  ;;  %v9662_v35 = vpop.f32.mrb[86].mxu0  ;;  %v9666_v27 = vadd.f32 %v9619_v19, %v18355_v20  ;;  %v9668_v46 = vadd.f32 %v9660_v6, %v18357_v31 }
0x16ce   :  { %v9622_v25 = vpop.f32.mrb[99].mxu1  ;;  %v9663_v40 = vpop.f32.mrb[87].mxu0  ;;  %v11640_v35 = vld [vmem:[%s18599_s10] ss:$0 sm:$0xff] }
0x16db   :  { %v9725_v63 = vpop.f32.mrb[120].mxu1  ;;  %v9766_v17 = vpop.f32.mrb[88].mxu0 }
0x16dc   :  { %v9773_v55 = vadd.f32 %v9725_v63, %v9665_v37  ;;  %v9775_v51 = vadd.f32 %v9766_v17, %v9667_v28  ;;  %v9727_v16 = vpop.f32.mrb[121].mxu1  ;;  %v9768_v39 = vpop.f32.mrb[89].mxu0 }
0x16dd   :  { %v9774_v34 = vadd.f32 %v9727_v16, %v9666_v27  ;;  %v9776_v58 = vadd.f32 %v9768_v39, %v9668_v46  ;;  %v9729_v1 = vpop.f32.mrb[122].mxu1  ;;  %v9770_v23 = vpop.f32.mrb[90].mxu0 }
0x16de   :  { %v9730_v14 = vpop.f32.mrb[123].mxu1  ;;  %v9771_v5 = vpop.f32.mrb[91].mxu0 }
0x16eb   :  { %v9833_v44 = vpop.f32.mrb[124].mxu1  ;;  %v9874_v59 = vpop.f32.mrb[92].mxu0 }
0x16ec   :  { %v9881_v26 = vadd.f32 %v9833_v44, %v9773_v55  ;;  %v9883_v54 = vadd.f32 %v9874_v59, %v9775_v51  ;;  %v9835_v18 = vpop.f32.mrb[125].mxu1  ;;  %v9876_v20 = vpop.f32.mrb[93].mxu0 }
0x16ed   :  { %v9882_v62 = vadd.f32 %v9835_v18, %v9774_v34  ;;  %v9884_v31 = vadd.f32 %v9876_v20, %v9776_v58  ;;  %v9837_v36 = vpop.f32.mrb[126].mxu1  ;;  %v9878_v60 = vpop.f32.mrb[94].mxu0 }
0x16ee   :  { %v9838_v24 = vpop.f32.mrb[127].mxu1  ;;  %v9879_v12 = vpop.f32.mrb[95].mxu0 }
0x16fb   :  { %v9941_v61 = vpop.f32.mrb[128].mxu1  ;;  %v9982_v10 = vpop.f32.mrb[96].mxu0 }
0x16fc   :  { %v9989_v13 = vadd.f32 %v9941_v61, %v9881_v26  ;;  %v9991_v47 = vadd.f32 %v9982_v10, %v9883_v54  ;;  %v9943_v15 = vpop.f32.mrb[129].mxu1  ;;  %v9984_v11 = vpop.f32.mrb[97].mxu0 }
0x16fd   :  { %v9990_v57 = vadd.f32 %v9943_v15, %v9882_v62  ;;  %v9992_v43 = vadd.f32 %v9984_v11, %v9884_v31  ;;  %v9945_v52 = vpop.f32.mrb[130].mxu1  ;;  %v9986_v2 = vpop.f32.mrb[98].mxu0 }
0x16fe   :  { %v10015_v48 = vadd.f32 %v9998_v49, %v9989_v13  ;;  %v10017_v22 = vadd.f32 %v10006_v3, %v9991_v47  ;;  %v9946_v30 = vpop.f32.mrb[131].mxu1  ;;  %v9987_v4 = vpop.f32.mrb[99].mxu0 }
0x16ff   :  { %v10016_v7 = vadd.f32 %v10002_v0, %v9990_v57  ;;  %v10018_v42 = vadd.f32 %v10010_v50, %v9992_v43 }
0x1700   :  { %v10019_v38 = vmax.f32 %v10015_v48, 0.0  ;;  %v10021_v19 = vmax.f32 %v10017_v22, 0.0 }
0x1701   :  { %v10020_v56 = vmax.f32 %v10016_v7, 0.0  ;;  %v10022_v21 = vmax.f32 %v10018_v42, 0.0 }
0x1703   :  { %10158 = vmatprep.mubr.f32.mxu1 %v10020_v56  ;;  %10228 = vmatprep.mubr.f32.mxu0 %v10022_v21 }
0x1704   :  { %10159 = vmatmul.mubr.f32.vlgmr.msra.gmra.mrb[132].mxu1 %v10019_v38  ;;  %10229 = vmatmul.mubr.f32.vlgmr.msra.gmra.mrb[38].mxu0 %v10021_v19 }
0x17d7   :  { %v12747_v6 = vpop.f32.mrb[132].mxu1  ;;  %v12782_v45 = vpop.f32.mrb[38].mxu0 }
0x17d8   :  { %v12748_v25 = vpop.f32.mrb[133].mxu1  ;;  %v12783_v40 = vpop.f32.mrb[39].mxu0 }
0x17d9   :  { %v12749_v37 = vadd.f32 %v12748_v25, %v12747_v6  ;;  %v12784_v28 = vadd.f32 %v12783_v40, %v12782_v45 }
0x17db   :  { %v10161_v27 = vadd.f32 %v12749_v37, %v11640_v35 }
0x17dd   :  { %v10231_v46 = vadd.f32 %v12784_v28, %v10161_v27 }
0x17df   :  { %10235 = vst.msk [vmem:[#allocation6] sm:$0x3] %vm10234_vm4, %v10231_v46 }
0x17e0   :  { %14255 = shalt.err (!%p14252_p4)
}
0x17e1   :  { %s14256_s30 = scalar_lea.hbm %s18600_s11, 32 }
0x17e2   :  { %p14257_p5 = scmp.ne.s32.totalorder %s18600_s11, %s14256_s30  ;;  %p14260_p6 = scmp.lt.u32.totalorder %s14256_s30, %s18600_s11 }
0x17e4   :  { %p14262_p7 = pnand %p14260_p6, %p14257_p5 }
0x17e6   :  { %14265 = shalt.err (!%p14262_p7)
}
0x17e7   :  { %10245 = dma.vmem_to_hbm [thread:$0]  %s10243_s29, 32, %s18600_s11, [#allocation7]  }
0x17e8   :  { %14274 = dma.done.wait [#allocation7], 32  }
0x17e9   :  { %14275 = vsyncadd [#allocation7], 4294967264 }
0x17ea   :  { %10249 = vsyncpa [#allocation7], 1 }
0x17eb   :  { %10250 = vsyncmov [#allocation5] }
0x17ee   :  { %s10251_s14 = vpop.sfrf %10250 }
0x17ef   :  { %p11641_p8 = scmp.ne.s32.totalorder %s10251_s14, 0 }
0x17f1   :  { %10255 = shalt.err (%p11641_p8)  }
0x17f2   :  { %10257 = vsyncmov [#allocation5 + $0x1] }
0x17f5   :  { %s10258_s15 = vpop.sfrf %10257 }
0x17f6   :  { %p11642_p9 = scmp.ne.s32.totalorder %s10258_s15, 0 }
0x17f8   :  { %10262 = shalt.err (%p11642_p9)  }
0x17f9   :  { %10264 = vsyncmov [#allocation5 + $0x2] }
0x17fc   :  { %s10265_s3 = vpop.sfrf %10264 }
0x17fd   :  { %p11643_p10 = scmp.ne.s32.totalorder %s10265_s3, 0 }
0x17ff   :  { %10269 = shalt.err (%p11643_p10)  }
0x1800   :  { %10271 = vsyncmov [#allocation5 + $0x3] }
0x1803   :  { %s10272_s16 = vpop.sfrf %10271 }
0x1804   :  { %p11644_p11 = scmp.ne.s32.totalorder %s10272_s16, 0 }
0x1806   :  { %10276 = shalt.err (%p11644_p11)  }

</bundles_post_ra>
